<compile_context>
chip_gen: v7x
topology: tpu7x:2x2x1
jax: 0.10.0
libtpu: 0.0.40
codegen_flags: <defaults>
</compile_context>

<pallas_src>
import math
import functools

import numpy as np
import jax
import jax.numpy as jnp
from jax.experimental import pallas as pl
from jax.experimental.pallas import tpu as pltpu


def _round_up(x, m):
    return ((x + m - 1) // m) * m


def _device_kind():
    try:
        return jax.devices()[0].device_kind.lower()
    except Exception:
        return ""


def _num_tensorcores_per_chip():
    # v7x exposes 2 TensorCores to the ("parallel",) grid axes; v4/v5e/v6e: 1.
    return 2 if "v7" in _device_kind() else 1


def _vmem_capacity_bytes():
    try:
        return int(pltpu.get_tpu_info().vmem_capacity_bytes)
    except Exception:
        pass
    kind = _device_kind()
    if (not kind) or ("v7" in kind):
        return 64 << 20          # v7x: 64 MiB per TC (also a safe fallback)
    return 128 << 20             # v5e / v6e: 128 MiB per TC


def _rff_kernel(x_ref, w_ref, b_ref, o_ref, *, scale):
    # x_ref: (tm, in_dim)  w_ref: (in_dim, tn)  b_ref: (1, tn)  o_ref: (tm, tn)
    proj = jnp.dot(x_ref[...], w_ref[...], preferred_element_type=jnp.float32)
    # cos has no single EUP op (EUP = exp/recip/tanh/rsqrt); it expands to a
    # VALU range-reduction + polynomial.  If a bundle dump shows the VALU slot
    # saturated on v6e/v7x, casting `proj` to bf16 before the cos (~2x VALU
    # throughput) is the next lever; kept f32 here for parity with the
    # reference (v5e has no bf16 VPU anyway).
    o_ref[...] = (scale * jnp.cos(proj + b_ref[...])).astype(o_ref.dtype)


def _choose_tm(n_rows, tm_max, align, num_tc):
    """Row tile: multiple of `align`, <= round_up(N, align), generation-aware."""
    n_al = _round_up(max(n_rows, 1), align)
    tm = min(_round_up(max(tm_max, align), align), n_al)
    if num_tc <= 1:
        # Single TensorCore (v5e/v6e): biggest tile wins; splitting only adds
        # per-step overhead and shrinks DMA size.
        return tm
    steps = pl.cdiv(n_rows, tm)
    if steps >= 2 and steps % 2 == 0:
        return tm
    # v7x (2 TCs): look for an even row-step count so both cores get equal
    # work, without dropping below ~256-row tiles.
    min_tm = min(n_al, max(align, 256))
    for steps_t in range(2, 17, 2):
        cand = min(tm, _round_up(pl.cdiv(n_al, steps_t), align))
        if cand < min_tm:
            break
        if pl.cdiv(n_rows, cand) == steps_t:     # lands on an even step count
            return cand
    return tm


def _choose_tiles(n_rows, in_dim, rff_dim, tm_max, tn_max, out_itemsize,
                  num_tc, vmem_budget):
    # Sub-32-bit outputs pack 2 rows per sublane -> round the row tile to 16
    # so stores stay unmasked; f32 outputs only need 8.
    align_m = 16 if out_itemsize < 4 else 8
    tn = min(_round_up(rff_dim, 128), _round_up(max(tn_max, 128), 128))
    tm = _choose_tm(n_rows, tm_max, align_m, num_tc)

    def footprint(tm_, tn_):
        # double-buffered x / out tiles + (conservatively) double-buffered W/b
        return (2 * tm_ * in_dim * 4
                + 2 * in_dim * tn_ * 4
                + 2 * tn_ * 4
                + 2 * tm_ * tn_ * out_itemsize)

    # Fit the per-step footprint into the VMEM budget: shrink the column tile
    # first (keeping it lane-dense, >= 512), then the row tile.
    while footprint(tm, tn) > vmem_budget and tn > 512:
        tn = max(512, _round_up(tn // 2, 128))
    while footprint(tm, tn) > vmem_budget and tm > max(align_m, 256):
        tm = max(align_m, _round_up(tm // 2, align_m))
    return tm, tn, footprint(tm, tn)


def rff_mapping(x, W, b, *, tm=1024, tn=1024, out_dtype=None,
                single_buffer_resident=True):
    """Pallas TPU implementation of RFFMapping.forward.

    x: (N, in_dim) f32;  W: (in_dim, rff_dim) f32;  b: (rff_dim,) f32
    out_dtype: default x.dtype (strict parity); jnp.bfloat16 is the fast path
               (halves the dominant HBM writeback stream).
    """
    N, in_dim = x.shape
    in_dim_w, rff_dim = W.shape
    assert in_dim == in_dim_w
    out_dtype = np.dtype(x.dtype if out_dtype is None else out_dtype)

    num_tc = _num_tensorcores_per_chip()
    phys_vmem = _vmem_capacity_bytes()
    vmem_budget = (phys_vmem * 3) // 5          # leave headroom for scratch
    tm, tn, fp = _choose_tiles(N, in_dim, rff_dim, tm, tn, out_dtype.itemsize,
                               num_tc, vmem_budget)

    n_row = pl.cdiv(N, tm)                      # edge blocks masked by Pallas
    n_col = pl.cdiv(rff_dim, tn)

    scale = math.sqrt(2.0 / rff_dim)
    b2d = b.reshape(1, rff_dim)
    kernel = functools.partial(_rff_kernel, scale=scale)

    vmem_limit = int(min(phys_vmem, max(32 << 20, fp + (16 << 20))))
    compiler_params = pltpu.CompilerParams(
        dimension_semantics=("parallel", "arbitrary"),
        vmem_limit_bytes=vmem_limit,
    )
    out_shape = jax.ShapeDtypeStruct((N, rff_dim), out_dtype)

    def build(single_buffer):
        w_kwargs, b_kwargs = {}, {}
        if single_buffer:
            # Constant-index (fully resident) operands: one buffer is enough;
            # the second would be pure VMEM waste.
            w_kwargs = dict(pipeline_mode=pl.Buffered(1))
            b_kwargs = dict(pipeline_mode=pl.Buffered(1))
        grid_spec = pltpu.PrefetchScalarGridSpec(
            num_scalar_prefetch=0,
            grid=(n_row, n_col),
            in_specs=[
                # x row tile, resident across the (inner) column sweep.
                pl.BlockSpec((tm, in_dim), lambda i, j: (i, 0)),
                # W / b column tiles (fully resident when n_col == 1).
                pl.BlockSpec((in_dim, tn), lambda i, j: (0, j), **w_kwargs),
                pl.BlockSpec((1, tn), lambda i, j: (0, j), **b_kwargs),
            ],
            out_specs=pl.BlockSpec((tm, tn), lambda i, j: (i, j)),
        )
        return pl.pallas_call(kernel, out_shape=out_shape, grid_spec=grid_spec,
                              compiler_params=compiler_params)

    if single_buffer_resident and n_col == 1:
        # Only valid when the W/b block index is constant over the whole grid.
        # Fall back cleanly if this JAX version rejects Buffered(1).
        try:
            return build(True)(x, W, b2d)
        except Exception:
            pass
    return build(False)(x, W, b2d)


def rff_mapping_ref(x, W, b):
    scale = math.sqrt(2.0 / W.shape[1])
    return scale * jnp.cos(x @ W + b)


if __name__ == "__main__":
    # Small, module-consistent shapes.
    in_dim, rff_dim = 32, 256
    gamma = 0.5

    key = jax.random.PRNGKey(0)
    kx, kw, kb, kx2 = jax.random.split(key, 4)

    # Parameter init mirroring the PyTorch __init__:
    #   W ~ N(0, 1) * sqrt(2*gamma),  b ~ U[0, 2*pi)
    W = jax.random.normal(kw, (in_dim, rff_dim), dtype=jnp.float32) * math.sqrt(2 * gamma)
    b = 2.0 * math.pi * jax.random.uniform(kb, (rff_dim,), dtype=jnp.float32)

    # Case 1: N a multiple of the row tile.
    N1 = 128
    x1 = jax.random.normal(kx, (N1, in_dim), dtype=jnp.float32)
    out1 = jax.block_until_ready(rff_mapping(x1, W, b))
    ref1 = rff_mapping_ref(x1, W, b)
    assert out1.shape == (N1, rff_dim) and out1.dtype == x1.dtype
    assert jnp.allclose(out1, ref1, atol=1e-5, rtol=1e-5), "mismatch (N=128, f32)"

    # Case 2: ragged N — exercises the cdiv edge-masked path (no pad / slice).
    N2 = 100
    x2 = jax.random.normal(kx2, (N2, in_dim), dtype=jnp.float32)
    out2 = jax.block_until_ready(rff_mapping(x2, W, b))
    ref2 = rff_mapping_ref(x2, W, b)
    assert out2.shape == (N2, rff_dim)
    assert jnp.allclose(out2, ref2, atol=1e-5, rtol=1e-5), "mismatch (N=100, f32)"

    # Case 3: bf16 fast-path output (halves the dominant HBM writeback stream).
    out3 = jax.block_until_ready(rff_mapping(x2, W, b, out_dtype=jnp.bfloat16))
    assert out3.shape == (N2, rff_dim) and out3.dtype == jnp.bfloat16
    assert jnp.allclose(out3.astype(jnp.float32), ref2, atol=2e-2, rtol=2e-2), \
        "mismatch (N=100, bf16)"

    print("KERNEL_OK")
</pallas_src>

<mosaic_0001>
module attributes {stable_mosaic.version = 11 : i64} {
  func.func @_rff_kernel(%arg0: i32, %arg1: i32, %arg2: memref<128x32xf32, #tpu.memory_space<vmem>>, %arg3: memref<32x256xf32, #tpu.memory_space<vmem>>, %arg4: memref<1x256xf32, #tpu.memory_space<vmem>>, %arg5: memref<128x256xf32, #tpu.memory_space<vmem>>) attributes {dimension_semantics = [#tpu.dimension_semantics<parallel>, #tpu.dimension_semantics<arbitrary>], iteration_bounds = array<i64: 1, 1>, scalar_prefetch = 0 : i64, scratch_operands = 0 : i64, tpu.core_type = #tpu.core_type<tc>, window_params = [{transform_indices = @transform_0, window_bounds = array<i64: 128, 32>}, {pipeline_mode = #tpu.pipeline_mode<synchronous>, transform_indices = @transform_1, window_bounds = array<i64: 32, 256>}, {pipeline_mode = #tpu.pipeline_mode<synchronous>, transform_indices = @transform_2, window_bounds = array<i64: 1, 256>}, {transform_indices = @transform_3, window_bounds = array<i64: 128, 256>}]} {
    %c0 = arith.constant 0 : index
    %c0_0 = arith.constant 0 : index
    %0 = vector.load %arg2[%c0, %c0_0] : memref<128x32xf32, #tpu.memory_space<vmem>>, vector<128x32xf32>
    %c0_1 = arith.constant 0 : index
    %c0_2 = arith.constant 0 : index
    %1 = vector.load %arg3[%c0_1, %c0_2] : memref<32x256xf32, #tpu.memory_space<vmem>>, vector<32x256xf32>
    %cst = arith.constant dense<0.000000e+00> : vector<128x256xf32>
    %2 = tpu.matmul %0, %1, %cst {dimension_numbers = #tpu.dot_dimension_numbers<[1], [0], [0], [1], [0, 0, 1, 1], [], []>} : vector<128x32xf32>, vector<32x256xf32>, vector<128x256xf32> -> vector<128x256xf32>
    %c0_3 = arith.constant 0 : index
    %c0_4 = arith.constant 0 : index
    %3 = vector.load %arg4[%c0_3, %c0_4] : memref<1x256xf32, #tpu.memory_space<vmem>>, vector<1x256xf32>
    %4 = vector.broadcast %3 : vector<1x256xf32> to vector<128x256xf32>
    %5 = arith.addf %2, %4 : vector<128x256xf32>
    %6 = math.cos %5 : vector<128x256xf32>
    %cst_5 = arith.constant 0.0883883461 : f32
    %7 = vector.broadcast %cst_5 : f32 to vector<128x256xf32>
    %8 = arith.mulf %7, %6 : vector<128x256xf32>
    %c0_6 = arith.constant 0 : index
    %c0_7 = arith.constant 0 : index
    %9 = vector.load %arg5[%c0_6, %c0_7] : memref<128x256xf32, #tpu.memory_space<vmem>>, vector<128x256xf32>
    tpu.vector_store %arg5[%c0_6, %c0_7], %8 {strides = array<i32>} : memref<128x256xf32, #tpu.memory_space<vmem>>, vector<128x256xf32>,
    return
  }
  func.func @transform_0(%arg0: i32, %arg1: i32) -> (i32, i32) {
    %c0_i32 = arith.constant 0 : i32
    %c0_i32_0 = arith.constant 0 : i32
    return %arg0, %c0_i32 : i32, i32
  }
  func.func @transform_1(%arg0: i32, %arg1: i32) -> (i32, i32) {
    %c0_i32 = arith.constant 0 : i32
    %c0_i32_0 = arith.constant 0 : i32
    return %c0_i32, %arg1 : i32, i32
  }
  func.func @transform_2(%arg0: i32, %arg1: i32) -> (i32, i32) {
    %c0_i32 = arith.constant 0 : i32
    %c0_i32_0 = arith.constant 0 : i32
    return %c0_i32, %arg1 : i32, i32
  }
  func.func @transform_3(%arg0: i32, %arg1: i32) -> (i32, i32) {
    %c0_i32 = arith.constant 0 : i32
    return %arg0, %arg1 : i32, i32
  }
}

module attributes {stable_mosaic.version = 11 : i64} {
  func.func @_rff_kernel(%arg0: i32, %arg1: i32, %arg2: memref<128x32xf32, #tpu.memory_space<vmem>>, %arg3: memref<32x256xf32, #tpu.memory_space<vmem>>, %arg4: memref<1x256xf32, #tpu.memory_space<vmem>>, %arg5: memref<128x256xf32, #tpu.memory_space<vmem>>) attributes {dimension_semantics = [#tpu.dimension_semantics<parallel>, #tpu.dimension_semantics<arbitrary>], iteration_bounds = array<i64: 1, 1>, scalar_prefetch = 0 : i64, scratch_operands = 0 : i64, tpu.core_type = #tpu.core_type<tc>, window_params = [{transform_indices = @transform_0, window_bounds = array<i64: 128, 32>}, {transform_indices = @transform_1, window_bounds = array<i64: 32, 256>}, {transform_indices = @transform_2, window_bounds = array<i64: 1, 256>}, {transform_indices = @transform_3, window_bounds = array<i64: 128, 256>}]} {
    %c0 = arith.constant 0 : index
    %c0_0 = arith.constant 0 : index
    %0 = vector.load %arg2[%c0, %c0_0] : memref<128x32xf32, #tpu.memory_space<vmem>>, vector<128x32xf32>
    %c0_1 = arith.constant 0 : index
    %c0_2 = arith.constant 0 : index
    %1 = vector.load %arg3[%c0_1, %c0_2] : memref<32x256xf32, #tpu.memory_space<vmem>>, vector<32x256xf32>
    %cst = arith.constant dense<0.000000e+00> : vector<128x256xf32>
    %2 = tpu.matmul %0, %1, %cst {dimension_numbers = #tpu.dot_dimension_numbers<[1], [0], [0], [1], [0, 0, 1, 1], [], []>} : vector<128x32xf32>, vector<32x256xf32>, vector<128x256xf32> -> vector<128x256xf32>
    %c0_3 = arith.constant 0 : index
    %c0_4 = arith.constant 0 : index
    %3 = vector.load %arg4[%c0_3, %c0_4] : memref<1x256xf32, #tpu.memory_space<vmem>>, vector<1x256xf32>
    %4 = vector.broadcast %3 : vector<1x256xf32> to vector<128x256xf32>
    %5 = arith.addf %2, %4 : vector<128x256xf32>
    %6 = math.cos %5 : vector<128x256xf32>
    %cst_5 = arith.constant 0.0883883461 : f32
    %7 = vector.broadcast %cst_5 : f32 to vector<128x256xf32>
    %8 = arith.mulf %7, %6 : vector<128x256xf32>
    %c0_6 = arith.constant 0 : index
    %c0_7 = arith.constant 0 : index
    %9 = vector.load %arg5[%c0_6, %c0_7] : memref<128x256xf32, #tpu.memory_space<vmem>>, vector<128x256xf32>
    tpu.vector_store %arg5[%c0_6, %c0_7], %8 {strides = array<i32>} : memref<128x256xf32, #tpu.memory_space<vmem>>, vector<128x256xf32>,
    return
  }
  func.func @transform_0(%arg0: i32, %arg1: i32) -> (i32, i32) {
    %c0_i32 = arith.constant 0 : i32
    %c0_i32_0 = arith.constant 0 : i32
    return %arg0, %c0_i32 : i32, i32
  }
  func.func @transform_1(%arg0: i32, %arg1: i32) -> (i32, i32) {
    %c0_i32 = arith.constant 0 : i32
    %c0_i32_0 = arith.constant 0 : i32
    return %c0_i32, %arg1 : i32, i32
  }
  func.func @transform_2(%arg0: i32, %arg1: i32) -> (i32, i32) {
    %c0_i32 = arith.constant 0 : i32
    %c0_i32_0 = arith.constant 0 : i32
    return %c0_i32, %arg1 : i32, i32
  }
  func.func @transform_3(%arg0: i32, %arg1: i32) -> (i32, i32) {
    %c0_i32 = arith.constant 0 : i32
    return %arg0, %arg1 : i32, i32
  }
}

</mosaic_0001>

<bundles_post_ra>
// kernel: tpu_custom_call.1
= control target key start
LH: loop header
LB: loop body
LE: loop exit
PB: predicated region body
PF: predicated region fallthrough
CT: control target
= control target key end

     0   :  { %v4083_v7 = vmov 0.0   ;;  %vm51_vm0 = vcmask 261120   ;;  %s6924_s0 = inlined_call_operand.vmem [shape: f32[128,32], index: 0, kind: input, shape index: {}]   ;;  %s6925_s1 = inlined_call_operand.vmem [shape: f32[32,256], index: 1, kind: input, shape index: {}]   ;;  %s6926_s2 = inlined_call_operand.vmem [shape: f32[1,256], index: 2, kind: input, shape index: {}]   ;;  %s6927_s3 = inlined_call_operand.hbm [shape: f32[128,256], index: 3, kind: output, shape index: {}]  }
   0x1   :  { %v32_v0 = vld [vmem:[%s6925_s1 + $0x8] sm:$0xff]  ;;  %v34_v1 = vld [vmem:[%s6925_s1 + $0x18] sm:$0xff]  ;;  %v31_v2 = vld [vmem:[%s6925_s1] sm:$0xff]  ;;  %164 = vmatprep.mubr.f32.mxu0 %v4083_v7  ;;  %212 = vmatprep.mubr.f32.mxu1 %v4083_v7 }
   0x2   :  { %v3781_v3 = vpack.c.bf16 %v34_v1, %v32_v0  ;;  %v33_v4 = vld [vmem:[%s6925_s1 + $0x10] sm:$0xff]  ;;  %v36_v5 = vld [vmem:[%s6925_s1 + $0x28] sm:$0xff]  ;;  %v38_v6 = vld [vmem:[%s6925_s1 + $0x38] sm:$0xff] }
   0x3   :  { %v3783_v8 = vpack.c.bf16 %v33_v4, %v31_v2  ;;  %v3785_v9 = vpack.c.bf16 %v38_v6, %v36_v5  ;;  %v35_v10 = vld [vmem:[%s6925_s1 + $0x20] sm:$0xff]  ;;  %v37_v11 = vld [vmem:[%s6925_s1 + $0x30] sm:$0xff] }
   0x4   :  { %3782 = vmatprep.subr.bf16.mxu0 %v3781_v3  ;;  %3789 = vmatprep.subr.bf16.mxu1 %v3781_v3  ;;  %v3787_v12 = vpack.c.bf16 %v37_v11, %v35_v10  ;;  %v15_v13 = vld [vmem:[%s6924_s0] sm:$0xff] }
   0x5   :  { %3784 = vmatpush1.bf16.msra.mxu0 %v3783_v8  ;;  %3791 = vmatpush1.bf16.msra.mxu1 %v3783_v8  ;;  %v23_v14 = vld [vmem:[%s6924_s0 + $0x40] sm:$0xff] }
   0x6   :  { %3786 = vmatprep.subr.bf16.mxu0 %v3785_v9  ;;  %3790 = vmatprep.subr.bf16.mxu1 %v3785_v9 }
   0x9   :  { %3788 = vmatpush1.bf16.msra.mxu0 %v3787_v12  ;;  %3792 = vmatpush1.bf16.msra.mxu1 %v3787_v12 }
   0xa   :  { %8 = vsyncpa [#allocation3], 0  ;;  %v16_v15 = vld [vmem:[%s6924_s0 + $0x8] sm:$0xff]  ;;  %v17_v17 = vld [vmem:[%s6924_s0 + $0x10] sm:$0xff]  ;;  %v41_v29 = vlaneseq  ;;  %v4084_v11 = vmov 683565275  }
   0xb   :  { %v24_v16 = vld [vmem:[%s6924_s0 + $0x48] sm:$0xff]  ;;  %v25_v18 = vld [vmem:[%s6924_s0 + $0x50] sm:$0xff]  ;;  %v18_v19 = vld [vmem:[%s6924_s0 + $0x18] sm:$0xff] }
   0xc   :  { %3637 = vmatmul.mubr.msk.f32.vlgmr.msra.gmra.mrb[0].mxu0 %vm51_vm0, %v15_v13  ;;  %3645 = vmatmul.mubr.msk.f32.vlgmr.msra.gmra.mrb[0].mxu1 %vm51_vm0, %v23_v14  ;;  %v26_v20 = vld [vmem:[%s6924_s0 + $0x58] sm:$0xff]  ;;  %v19_v21 = vld [vmem:[%s6924_s0 + $0x20] sm:$0xff]  ;;  %v20_v23 = vld [vmem:[%s6924_s0 + $0x28] sm:$0xff]  ;;  %v42_v30 = vshrl.u32 %v41_v29, 7 }
   0xd   :  { %170 = vmatprep.mubr.f32.mxu0 %v4083_v7  ;;  %218 = vmatprep.mubr.f32.mxu1 %v4083_v7  ;;  %v27_v22 = vld [vmem:[%s6924_s0 + $0x60] sm:$0xff]  ;;  %v28_v24 = vld [vmem:[%s6924_s0 + $0x68] sm:$0xff]  ;;  %v21_v25 = vld [vmem:[%s6924_s0 + $0x30] sm:$0xff] }
   0xe   :  { %v29_v26 = vld [vmem:[%s6924_s0 + $0x70] sm:$0xff]  ;;  %v22_v27 = vld [vmem:[%s6924_s0 + $0x38] sm:$0xff]  ;;  %v43_v31 = vsub.s32 0, %v42_v30  ;;  %v39_v32 = vld [vmem:[%s6926_s2] sm:$0x3]  ;;  %v47_v33 = vsub.s32 1, %v42_v30 }
   0xf   :  { %v30_v28 = vld [vmem:[%s6924_s0 + $0x78] sm:$0xff]  ;;  %s4090_s0 = smov [#allocation2]  }
  0x10   :  { %3638 = vmatmul.mubr.msk.f32.gmra.mrb[2].mxu0 %vm51_vm0, %v16_v15  ;;  %3646 = vmatmul.mubr.msk.f32.gmra.mrb[2].mxu1 %vm51_vm0, %v24_v16  ;;  %v4204_v34 = vrot.slane %v39_v32, %v43_v31  ;;  %v4206_v35 = vrot.slane %v39_v32, %v47_v33  ;;  %v4085_v15 = vmov 2475754826   ;;  %s3626_s2 = sshll.u32 %s4090_s0, 4  ;;  %s3627_s2 = int_to_ptr.vmem [resolvable:$true] %s3626_s2 }
  0x11   :  { %176 = vmatprep.mubr.f32.mxu0 %v4083_v7  ;;  %224 = vmatprep.mubr.f32.mxu1 %v4083_v7  ;;  %s4059_s6 = scalar_lea.vmem %s3627_s2, 4096  ;;  %p4064_p1 = scmp.lt.s32.totalorder %s3627_s2, %s3627_s2 }
  0x12   :  { %p4060_p0 = scmp.ne.s32.totalorder %s3627_s2, %s4059_s6  ;;  %p4065_p2 = scmp.lt.s32.totalorder %s4059_s6, %s4059_s6 }
  0x14   :  { %3639 = vmatmul.mubr.msk.f32.gmra.mrb[4].mxu0 %vm51_vm0, %v17_v17  ;;  %3647 = vmatmul.mubr.msk.f32.gmra.mrb[4].mxu1 %vm51_vm0, %v25_v18  ;;  %v4086_v17 = vmov 2131351028   ;;  %p4066_p3 = por %p4065_p2, %p4064_p1 }
  0x15   :  { %182 = vmatprep.mubr.f32.mxu0 %v4083_v7  ;;  %230 = vmatprep.mubr.f32.mxu1 %v4083_v7 }
  0x16   :  { %p4067_p4 = pnand %p4066_p3, %p4060_p0 }
  0x18   :  { %3640 = vmatmul.mubr.msk.f32.gmra.mrb[6].mxu0 %vm51_vm0, %v18_v19  ;;  %3648 = vmatmul.mubr.msk.f32.gmra.mrb[6].mxu1 %vm51_vm0, %v26_v20  ;;  %v4087_v19 = vmov 2102212464  }
  0x19   :  { %188 = vmatprep.mubr.f32.mxu0 %v4083_v7  ;;  %236 = vmatprep.mubr.f32.mxu1 %v4083_v7 }
  0x1c   :  { %3641 = vmatmul.mubr.msk.f32.gmra.mrb[8].mxu0 %vm51_vm0, %v19_v21  ;;  %3649 = vmatmul.mubr.msk.f32.gmra.mrb[8].mxu1 %vm51_vm0, %v27_v22  ;;  %v4088_v21 = vmov 920167782  }
  0x1d   :  { %194 = vmatprep.mubr.f32.mxu0 %v4083_v7  ;;  %242 = vmatprep.mubr.f32.mxu1 %v4083_v7 }
  0x20   :  { %3642 = vmatmul.mubr.msk.f32.gmra.mrb[10].mxu0 %vm51_vm0, %v20_v23  ;;  %3650 = vmatmul.mubr.msk.f32.gmra.mrb[10].mxu1 %vm51_vm0, %v28_v24 }
  0x21   :  { %200 = vmatprep.mubr.f32.mxu0 %v4083_v7  ;;  %248 = vmatprep.mubr.f32.mxu1 %v4083_v7 }
  0x24   :  { %3643 = vmatmul.mubr.msk.f32.gmra.mrb[12].mxu0 %vm51_vm0, %v21_v25  ;;  %3651 = vmatmul.mubr.msk.f32.gmra.mrb[12].mxu1 %vm51_vm0, %v29_v26 }
  0x25   :  { %206 = vmatprep.mubr.f32.mxu0 %v4083_v7  ;;  %254 = vmatprep.mubr.f32.mxu1 %v4083_v7 }
  0x28   :  { %3644 = vmatmul.mubr.msk.f32.gmra.mrb[14].mxu0 %vm51_vm0, %v22_v27  ;;  %3652 = vmatmul.mubr.msk.f32.gmra.mrb[14].mxu1 %vm51_vm0, %v30_v28  ;;  %v4089_v28 = vmov 1326507024  }
  0xdf   :  { %v166_v36 = vpop.f32.mrb[0].mxu0  ;;  %v214_v37 = vpop.f32.mrb[0].mxu1 }
  0xe0   :  { %v4209_v38 = vadd.f32 %v166_v36, %v4204_v34  ;;  %v4212_v39 = vadd.f32 %v214_v37, %v4204_v34  ;;  %v168_v40 = vpop.f32.mrb[1].mxu0  ;;  %v216_v41 = vpop.f32.mrb[1].mxu1 }
  0xe1   :  { %v4215_v42 = vadd.f32 %v168_v40, %v4206_v35  ;;  %v4236_v5 = vadd.f32 %v216_v41, %v4206_v35 }
  0xe2   :  { %v261_v43 = vand.u32 2147483647, %v4209_v38  ;;  %v264_v44 = vand.u32 2139095040, %v4209_v38  ;;  %v1909_v45 = vand.u32 2147483647, %v4212_v39  ;;  %v1912_v46 = vand.u32 2139095040, %v4212_v39 }
  0xe3   :  { %v4221_v47 = vpop.f32.mrb[2].mxu0  ;;  %v4223_v48 = vpop.f32.mrb[2].mxu1  ;;  %v367_v53 = vand.u32 2139095040, %v4215_v42  ;;  %v364_v63 = vand.u32 2147483647, %v4215_v42  ;;  %vm263_vm14 = vcmp.lt.s32.totalorder %v4209_v38, 0 }
  0xe4   :  { %v265_v49 = vshrl.u32 %v264_v44, 23  ;;  %v268_v50 = vand.u32 8388607, %v261_v43  ;;  %v1913_v51 = vshrl.u32 %v1912_v46, 23  ;;  %v1916_v52 = vand.u32 8388607, %v1909_v45 }
  0xe5   :  { %v4230_v55 = vpop.f32.mrb[3].mxu0  ;;  %v4232_v56 = vpop.f32.mrb[3].mxu1  ;;  %v368_v58 = vshrl.u32 %v367_v53, 23  ;;  %v4244_v8 = vand.u32 8388607, %v364_v63 }
  0xe6   :  { %v3653_v54 = vadd.s32 4294967169, %v265_v49  ;;  %v3717_v57 = vadd.s32 4294967169, %v1913_v51  ;;  %v269_v59 = vor.u32 8388608, %v268_v50  ;;  %v1917_v61 = vor.u32 8388608, %v1916_v52 }
  0xe7   :  { %v3657_v0 = vadd.s32 4294967169, %v368_v58 }
  0xe8   :  { %v271_v60 = vadd.s32 1, %v3653_v54  ;;  %v1919_v62 = vadd.s32 1, %v3717_v57  ;;  %v4238_v6 = vshll.u32 %v269_v59, 8  ;;  %v4240_v7 = vshll.u32 %v1917_v61, 8 }
  0xe9   :  { %v4246_v9 = vadd.s32 1, %v3657_v0 }
  0xea   :  { %vm272_vm1 = vcmp.gt.s32.totalorder %v271_v60, 0  ;;  %vm1920_vm2 = vcmp.gt.s32.totalorder %v1919_v62, 0 }
  0xeb   :  { %v273_v1 = vsel %vm272_vm1, %v271_v60, 0  ;;  %v1921_v4 = vsel %vm1920_vm2, %v1919_v62, 0  ;;  %vm375_vm7 = vcmp.gt.s32.totalorder %v4246_v9, 0 }
  0xec   :  { %v274_v2 = vshrl.u32 %v273_v1, 5  ;;  %v275_v3 = vand.u32 31, %v273_v1  ;;  %v4249_v13 = vshrl.u32 %v1921_v4, 5  ;;  %v1923_v14 = vand.u32 31, %v1921_v4 }
  0xee   :  { %v276_v10 = vsub.s32 32, %v275_v3  ;;  %v278_v12 = vshll.u32 %v4084_v11, %v275_v3  ;;  %v281_v16 = vshll.u32 %v4085_v15, %v275_v3  ;;  %v284_v18 = vshll.u32 %v4086_v17, %v275_v3 }
  0xef   :  { %v287_v20 = vshll.u32 %v4087_v19, %v275_v3  ;;  %v290_v22 = vshll.u32 %v4088_v21, %v275_v3  ;;  %vm293_vm3 = vcmp.lt.s32.totalorder %v274_v2, 1  ;;  %vm294_vm4 = vcmp.lt.s32.totalorder %v274_v2, 2 }
  0xf0   :  { %v279_v23 = vshrl.u32 %v4085_v15, %v276_v10  ;;  %v282_v24 = vshrl.u32 %v4086_v17, %v276_v10  ;;  %v285_v25 = vshrl.u32 %v4087_v19, %v276_v10  ;;  %v277_v26 = vshrl.u32 %v4084_v11, %v276_v10 }
  0xf1   :  { %v288_v27 = vshrl.u32 %v4088_v21, %v276_v10  ;;  %v291_v29 = vshrl.u32 %v4089_v28, %v276_v10  ;;  %v1924_v33 = vsub.s32 32, %v1923_v14  ;;  %vm295_vm5 = vcmp.lt.s32.totalorder %v274_v2, 3 }
  0xf2   :  { %v280_v30 = vor.u32 %v279_v23, %v278_v12  ;;  %v283_v31 = vor.u32 %v282_v24, %v281_v16  ;;  %v286_v32 = vor.u32 %v285_v25, %v284_v18  ;;  %vm296_vm6 = vcmp.lt.s32.totalorder %v274_v2, 4 }
  0xf3   :  { %v289_v36 = vor.u32 %v288_v27, %v287_v20  ;;  %v292_v37 = vor.u32 %v291_v29, %v290_v22  ;;  %v1926_v52 = vshll.u32 %v4084_v11, %v1923_v14  ;;  %v1927_v57 = vshrl.u32 %v4085_v15, %v1924_v33 }
  0xf4   :  { %v297_v40 = vsel %vm293_vm3, %v277_v26, %v280_v30  ;;  %v298_v41 = vsel %vm296_vm6, %v286_v32, 2102212464  ;;  %v301_v44 = vsel %vm293_vm3, %v280_v30, %v283_v31  ;;  %v305_v46 = vsel %vm293_vm3, %v283_v31, %v286_v32 }
  0xf5   :  { %v299_v49 = vsel %vm295_vm5, %v283_v31, %v298_v41  ;;  %v302_v50 = vsel %vm296_vm6, %v289_v36, 920167782  ;;  %v306_v51 = vsel %vm296_vm6, %v292_v37, 1326507024  ;;  %v1929_v58 = vshll.u32 %v4085_v15, %v1923_v14 }
  0xf6   :  { %v303_v53 = vsel %vm295_vm5, %v286_v32, %v302_v50  ;;  %v307_v54 = vsel %vm295_vm5, %v289_v36, %v306_v51  ;;  %v300_v59 = vsel %vm294_vm4, %v297_v40, %v299_v49  ;;  %v1930_v62 = vshrl.u32 %v4086_v17, %v1924_v33 }
  0xf7   :  { %v304_v60 = vsel %vm294_vm4, %v301_v44, %v303_v53  ;;  %v308_v61 = vsel %vm294_vm4, %v305_v46, %v307_v54  ;;  %v1928_v10 = vor.u32 %v1927_v57, %v1926_v52  ;;  %v1932_v16 = vshll.u32 %v4086_v17, %v1923_v14 }
  0xf8   :  { %v4273_v0 = vmul.u32.u64.low %v4238_v6, %v308_v61  ;;  %v4274_v1 = vmul.u32.u64.high %v4238_v6, %v308_v61, %v4273_v0  ;;  %v4277_v3 = vmul.u32.u64.low %v4238_v6, %v304_v60  ;;  %v4278_v4 = vmul.u32.u64.high %v4238_v6, %v304_v60, %v4277_v3 }
  0xf9   :  { %v1931_v12 = vor.u32 %v1930_v62, %v1929_v58  ;;  %v1933_v18 = vshrl.u32 %v4087_v19, %v1924_v33  ;;  %v1925_v2 = vshrl.u32 %v4084_v11, %v1924_v33  ;;  %v1935_v20 = vshll.u32 %v4087_v19, %v1923_v14 }
  0xfa   :  { %v1936_v22 = vshrl.u32 %v4088_v21, %v1924_v33  ;;  %v1939_v23 = vshrl.u32 %v4089_v28, %v1924_v33  ;;  %v316_v24 = vmul.u32 %v4238_v6, %v300_v59  ;;  %v1938_v26 = vshll.u32 %v4088_v21, %v1923_v14 }
  0xfb   :  { %v1934_v25 = vor.u32 %v1933_v18, %v1932_v16  ;;  %vm1941_vm8 = vcmp.lt.s32.totalorder %v4249_v13, 1  ;;  %vm318_vm9 = vc.u32 %v4274_v1, %v4277_v3  ;;  %v319_v27 = vadd.s32 1, %v4278_v4  ;;  %v4322_v16 = vpop.f32.mrb[4].mxu0 }
  0xfc   :  { %v1937_v29 = vor.u32 %v1936_v22, %v1935_v20  ;;  %vm1942_vm10 = vcmp.lt.s32.totalorder %v4249_v13, 2  ;;  %v1940_v30 = vor.u32 %v1939_v23, %v1938_v26  ;;  %vm1943_vm11 = vcmp.lt.s32.totalorder %v4249_v13, 3 }
  0xfd   :  { %vm1944_vm12 = vcmp.lt.s32.totalorder %v4249_v13, 4  ;;  %v1949_v31 = vsel %vm1941_vm8, %v1928_v10, %v1931_v12  ;;  %v320_v6 = vsel %vm318_vm9, %v319_v27, %v4278_v4  ;;  %v1953_v33 = vsel %vm1941_vm8, %v1931_v12, %v1934_v25 }
  0xfe   :  { %v1946_v32 = vsel %vm1944_vm12, %v1934_v25, 2102212464  ;;  %v1950_v14 = vsel %vm1944_vm12, %v1937_v29, 920167782  ;;  %v321_v36 = vadd.s32 %v320_v6, %v316_v24  ;;  %v1945_v37 = vsel %vm1941_vm8, %v1925_v2, %v1928_v10 }
  0xff   :  { %v1951_v40 = vsel %vm1943_vm11, %v1934_v25, %v1950_v14  ;;  %v1954_v41 = vsel %vm1944_vm12, %v1940_v30, 1326507024  ;;  %v1947_v44 = vsel %vm1943_vm11, %v1931_v12, %v1946_v32  ;;  %v376_v50 = vsel %vm375_vm7, %v4246_v9, 0 }
 0x100   :  { %v1952_v46 = vsel %vm1942_vm10, %v1949_v31, %v1951_v40  ;;  %v1955_v49 = vsel %vm1943_vm11, %v1937_v29, %v1954_v41  ;;  %v322_v51 = vadd.s32 536870912, %v321_v36  ;;  %v1948_v60 = vsel %vm1942_vm10, %v1945_v37, %v1947_v44 }
 0x101   :  { %v1956_v52 = vsel %vm1942_vm10, %v1953_v33, %v1955_v49  ;;  %v4305_v53 = vmul.u32.u64.low %v4240_v7, %v1952_v46  ;;  %v4306_v54 = vmul.u32.u64.high %v4240_v7, %v1952_v46, %v4305_v53  ;;  %v378_v61 = vand.u32 31, %v376_v50 }
 0x102   :  { %v4310_v57 = vmul.u32.u64.low %v4240_v7, %v1956_v52  ;;  %v4311_v58 = vmul.u32.u64.high %v4240_v7, %v1956_v52, %v4310_v57  ;;  %v4313_v59 = vshrl.u32 %v322_v51, 30  ;;  %v2015_v9 = vand.u32 2139095040, %v4236_v5 }
 0x103   :  { %v2012_v62 = vand.u32 2147483647, %v4236_v5  ;;  %v1967_v4 = vadd.s32 1, %v4306_v54  ;;  %v372_v10 = vor.u32 8388608, %v4244_v8  ;;  %v379_v12 = vsub.s32 32, %v378_v61 }
 0x104   :  { %v324_v0 = vshll.u32 %v4313_v59, 30  ;;  %v1964_v18 = vmul.u32 %v4240_v7, %v1948_v60  ;;  %vm1966_vm13 = vc.u32 %v4311_v58, %v4305_v53  ;;  %v2016_v20 = vshrl.u32 %v2015_v9, 23 }
 0x105   :  { %v1968_v2 = vsel %vm1966_vm13, %v1967_v4, %v4306_v54  ;;  %v382_v23 = vshrl.u32 %v4085_v15, %v379_v12  ;;  %v385_v24 = vshrl.u32 %v4086_v17, %v379_v12  ;;  %v4334_v8 = vand.u32 8388607, %v2012_v62 }
 0x106   :  { %v4327_v13 = vsub.s32 %v321_v36, %v324_v0  ;;  %v1969_v22 = vadd.s32 %v1968_v2, %v1964_v18  ;;  %v381_v7 = vshll.u32 %v4084_v11, %v378_v61  ;;  %v388_v26 = vshrl.u32 %v4087_v19, %v379_v12 }
 0x107   :  { %v4339_v27 = vshll.u32 %v372_v10, 8  ;;  %v317_v29 = vadd.s32 %v4277_v3, %v4274_v1  ;;  %v4344_v31 = vshrl.u32 %v376_v50, 5  ;;  %v384_v6 = vshll.u32 %v4085_v15, %v378_v61 }
 0x108   :  { %v327_v25 = vsub.s32 0, %v4327_v13  ;;  %v1970_v30 = vadd.s32 536870912, %v1969_v22  ;;  %v383_v14 = vor.u32 %v382_v23, %v381_v7  ;;  %v387_v33 = vshll.u32 %v4086_v17, %v378_v61 }
 0x109   :  { %v3721_v36 = vadd.s32 4294967169, %v2016_v20  ;;  %v386_v40 = vor.u32 %v385_v24, %v384_v6  ;;  %v390_v41 = vshll.u32 %v4087_v19, %v378_v61  ;;  %v391_v44 = vshrl.u32 %v4088_v21, %v379_v12 }
 0x10a   :  { %v3654_v32 = vmin.u32 %v327_v25, %v4327_v13  ;;  %v4349_v37 = vshrl.u32 %v1970_v30, 30  ;;  %v389_v1 = vor.u32 %v388_v26, %v387_v33  ;;  %v393_v3 = vshll.u32 %v4088_v21, %v378_v61 }
 0x10b   :  { %v394_v49 = vshrl.u32 %v4089_v28, %v379_v12  ;;  %v392_v51 = vor.u32 %v391_v44, %v390_v41  ;;  %vm396_vm15 = vcmp.lt.s32.totalorder %v4344_v31, 1  ;;  %vm397_vm0 = vcmp.lt.s32.totalorder %v4344_v31, 2 }
 0x10c   :  { %v329_v46 = vclz %v3654_v32  ;;  %v1972_v50 = vshll.u32 %v4349_v37, 30  ;;  %v347_v54 = vsub.s32 4, %v4313_v59  ;;  %vm399_vm1 = vcmp.lt.s32.totalorder %v4344_v31, 4 }
 0x10d   :  { %v395_v57 = vor.u32 %v394_v49, %v393_v3  ;;  %vm398_vm2 = vcmp.lt.s32.totalorder %v4344_v31, 3  ;;  %v404_v61 = vsel %vm396_vm15, %v383_v14, %v386_v40  ;;  %v405_v9 = vsel %vm399_vm1, %v392_v51, 920167782  ;;  %v4403_v3 = vpop.f32.mrb[4].mxu1 }
 0x10e   :  { %v3655_v52 = vadd.s32 4294967294, %v329_v46  ;;  %v4360_v60 = vsub.s32 %v1969_v22, %v1972_v50  ;;  %vm4367_vm3 = vcmp.le.f32.partialorder %v261_v43, 0.7853982  ;;  %v401_v4 = vsel %vm399_vm1, %v389_v1, 2102212464 }
 0x10f   :  { %v406_v10 = vsel %vm398_vm2, %v389_v1, %v405_v9  ;;  %v409_v18 = vsel %vm399_vm1, %v395_v57, 1326507024  ;;  %v380_v22 = vshrl.u32 %v4084_v11, %v379_v12  ;;  %v408_v23 = vsel %vm396_vm15, %v386_v40, %v389_v1 }
 0x110   :  { %vm3656_vm4 = vcmp.lt.s32.totalorder %v3655_v52, 0  ;;  %v1975_v20 = vsub.s32 0, %v4360_v60  ;;  %v348_v43 = vsel %vm263_vm14, %v347_v54, %v4313_v59  ;;  %vm1911_vm5 = vcmp.lt.s32.totalorder %v4212_v39, 0 }
 0x111   :  { %v332_v2 = vsel %vm3656_vm4, 0, %v3655_v52  ;;  %v410_v7 = vsel %vm398_vm2, %v392_v51, %v409_v18  ;;  %v400_v30 = vsel %vm396_vm15, %v380_v22, %v383_v14  ;;  %v402_v12 = vsel %vm398_vm2, %v386_v40, %v401_v4 }
 0x112   :  { %v333_v24 = vsub.s32 32, %v332_v2  ;;  %v337_v25 = vsub.s32 4294967266, %v332_v2  ;;  %v3718_v26 = vmin.u32 %v1975_v20, %v4360_v60  ;;  %v407_v6 = vsel %vm397_vm0, %v404_v61, %v406_v10 }
 0x113   :  { %v334_v32 = vshll.u32 %v4327_v13, %v332_v2  ;;  %v411_v41 = vsel %vm397_vm0, %v408_v23, %v410_v7  ;;  %vm4395_vm6 = vcmp.le.f32.partialorder %v1909_v45, 0.7853982  ;;  %v2022_v1 = vadd.s32 1, %v3721_v36 }
 0x114   :  { %v335_v33 = vshrl.u32 %v317_v29, %v333_v24  ;;  %v338_v59 = vadd.s32 127, %v337_v25  ;;  %v1977_v14 = vclz %v3718_v26  ;;  %v1995_v45 = vsub.s32 4, %v4349_v37 }
 0x115   :  { %v4400_v46 = vmul.u32.u64.low %v4339_v27, %v411_v41  ;;  %v4401_v40 = vmul.u32.u64.high %v4339_v27, %v411_v41, %v4400_v46  ;;  %v4406_v49 = vmul.u32.u64.low %v4339_v27, %v407_v6  ;;  %v4407_v50 = vmul.u32.u64.high %v4339_v27, %v407_v6, %v4406_v49 }
 0x116   :  { %v336_v13 = vor.u32 %v335_v33, %v334_v32  ;;  %v339_v29 = vshll.u32 %v338_v59, 23  ;;  %v3719_v51 = vadd.s32 4294967294, %v1977_v14  ;;  %v2020_v52 = vor.u32 8388608, %v4334_v8 }
 0x117   :  { %vm2023_vm7 = vcmp.gt.s32.totalorder %v2022_v1, 0  ;;  %v1965_v57 = vadd.s32 %v4305_v53, %v4311_v58  ;;  %v403_v36 = vsel %vm397_vm0, %v400_v30, %v402_v12  ;;  %v350_v4 = vsel %vm4367_vm3, 0, %v348_v43 }
 0x118   :  { %v340_v54 = vor.u32 4788187, %v339_v29  ;;  %v2024_v61 = vsel %vm2023_vm7, %v2022_v1, 0  ;;  %v343_v9 = vcvt.s32.f32 %v336_v13  ;;  %vm3720_vm8 = vcmp.lt.s32.totalorder %v3719_v51, 0 }
 0x119   :  { %vm421_vm9 = vc.u32 %v4401_v40, %v4406_v49  ;;  %v1980_v18 = vsel %vm3720_vm8, 0, %v3719_v51  ;;  %v422_v8 = vadd.s32 1, %v4407_v50  ;;  %v2026_v2 = vand.u32 31, %v2024_v61 }
 0x11a   :  { %v341_v10 = vand.u32 2147483647, %v340_v54  ;;  %v1981_v20 = vsub.s32 32, %v1980_v18  ;;  %v1985_v22 = vsub.s32 4294967266, %v1980_v18  ;;  %v1996_v53 = vsel %vm1911_vm5, %v1995_v45, %v4349_v37 }
 0x11b   :  { %v419_v58 = vmul.u32 %v4339_v27, %v403_v36  ;;  %v4425_v23 = vand.u32 3, %v350_v4  ;;  %v423_v24 = vsel %vm421_vm9, %v422_v8, %v4407_v50  ;;  %v2027_v25 = vsub.s32 32, %v2026_v2 }
 0x11c   :  { %v344_v31 = vmul.f32 %v343_v9, %v341_v10  ;;  %v1982_v43 = vshll.u32 %v4360_v60, %v1980_v18  ;;  %v1983_v7 = vshrl.u32 %v1965_v57, %v1981_v20  ;;  %v1986_v26 = vadd.s32 127, %v1985_v22 }
 0x11d   :  { %v424_v30 = vadd.s32 %v423_v24, %v419_v58  ;;  %v1998_v6 = vsel %vm4395_vm6, 0, %v1996_v53  ;;  %v4431_v32 = vshrl.u32 %v2024_v61, 5  ;;  %v2029_v37 = vshll.u32 %v4084_v11, %v2026_v2 }
 0x11e   :  { %v345_v12 = vxor.u32 2147483648, %v344_v31  ;;  %v1984_v27 = vor.u32 %v1983_v7, %v1982_v43  ;;  %v1987_v33 = vshll.u32 %v1986_v26, 23  ;;  %v2032_v41 = vshll.u32 %v4085_v15, %v2026_v2 }
 0x11f   :  { %v425_v59 = vadd.s32 536870912, %v424_v30  ;;  %v2030_v60 = vshrl.u32 %v4085_v15, %v2027_v25  ;;  %v2033_v46 = vshrl.u32 %v4086_v17, %v2027_v25  ;;  %v2036_v1 = vshrl.u32 %v4087_v19, %v2027_v25 }
 0x120   :  { %v346_v14 = vsel %vm263_vm14, %v345_v12, %v344_v31  ;;  %v1988_v29 = vor.u32 4788187, %v1987_v33  ;;  %v2035_v51 = vshll.u32 %v4086_v17, %v2026_v2  ;;  %v1991_v45 = vcvt.s32.f32 %v1984_v27 }
 0x121   :  { %v349_v13 = vsel %vm4367_vm3, %v4209_v38, %v346_v14  ;;  %v4443_v50 = vshrl.u32 %v425_v59, 30  ;;  %v2038_v54 = vshll.u32 %v4087_v19, %v2026_v2  ;;  %v2039_v57 = vshrl.u32 %v4088_v21, %v2027_v25 }
 0x122   :  { %3931 = vcosq.f32 %v349_v13  ;;  %v1989_v36 = vand.u32 2147483647, %v1988_v29  ;;  %v2037_v9 = vor.u32 %v2036_v1, %v2035_v51  ;;  %v2031_v4 = vor.u32 %v2030_v60, %v2029_v37 }
 0x123   :  { %3933 = vsinq.f32 %v349_v13  ;;  %v427_v61 = vshll.u32 %v4443_v50, 30  ;;  %v2034_v10 = vor.u32 %v2033_v46, %v2032_v41  ;;  %v2040_v0 = vor.u32 %v2039_v57, %v2038_v54 }
 0x124   :  { %v2042_v18 = vshrl.u32 %v4089_v28, %v2027_v25  ;;  %v1992_v8 = vmul.f32 %v1991_v45, %v1989_v36  ;;  %v4450_v20 = vand.u32 3, %v1998_v6  ;;  %v2041_v53 = vshll.u32 %v4088_v21, %v2026_v2 }
 0x125   :  { %v4452_v22 = vsub.s32 %v424_v30, %v427_v61  ;;  %vm359_vm10 = vcmp.eq.s32.totalorder %v4425_v23, 2  ;;  %v2028_v58 = vshrl.u32 %v4084_v11, %v2027_v25  ;;  %vm2044_vm11 = vcmp.lt.s32.totalorder %v4431_v32, 1 }
 0x126   :  { %vm2047_vm12 = vcmp.lt.s32.totalorder %v4431_v32, 4  ;;  %v2060_v31 = vshll.u32 %v2020_v52, 8  ;;  %vm356_vm13 = vcmp.eq.s32.totalorder %v4425_v23, 0  ;;  %v1993_v24 = vxor.u32 2147483648, %v1992_v8 }
 0x127   :  { %v430_v43 = vsub.s32 0, %v4452_v22  ;;  %v2043_v7 = vor.u32 %v2042_v18, %v2041_v53  ;;  %v2049_v26 = vsel %vm2047_vm12, %v2037_v9, 2102212464  ;;  %vm355_vm14 = vcmp.lt.s32.totalorder %v4425_v23, 2 }
 0x128   :  { %vm2045_vm15 = vcmp.lt.s32.totalorder %v4431_v32, 2  ;;  %v2052_v2 = vsel %vm2044_vm11, %v2031_v4, %v2034_v10  ;;  %v2053_v25 = vsel %vm2047_vm12, %v2040_v0, 920167782  ;;  %v4471_v52 = vadd.f32 %v4221_v47, %v4204_v34 }
 0x129   :  { %vm353_vm0 = vweird.f32 %v4209_v38  ;;  %v1994_v30 = vsel %vm1911_vm5, %v1993_v24, %v1992_v8  ;;  %v3658_v12 = vmin.u32 %v430_v43, %v4452_v22  ;;  %vm2046_vm1 = vcmp.lt.s32.totalorder %v4431_v32, 3 }
 0x12a   :  { %v2048_v6 = vsel %vm2044_vm11, %v2028_v58, %v2031_v4  ;;  %v1997_v37 = vsel %vm4395_vm6, %v4212_v39, %v1994_v30  ;;  %v2050_v27 = vsel %vm2046_vm1, %v2034_v10, %v2049_v26  ;;  %v2054_v33 = vsel %vm2046_vm1, %v2037_v9, %v2053_v25 }
 0x12b   :  { %v2056_v47 = vsel %vm2044_vm11, %v2034_v10, %v2037_v9  ;;  %3935 = vcosq.f32 %v1997_v37  ;;  %v432_v59 = vclz %v3658_v12  ;;  %v2055_v41 = vsel %vm2045_vm15, %v2052_v2, %v2054_v33 }
 0x12c   :  { %v2057_v14 = vsel %vm2047_vm12, %v2043_v7, 1326507024  ;;  %v3932_v60 = vpop.eup %3931  ;;  %3937 = vsinq.f32 %v1997_v37  ;;  %v4489_v1 = vmul.u32.u64.low %v2060_v31, %v2055_v41  ;;  %v4490_v13 = vmul.u32.u64.high %v2060_v31, %v2055_v41, %v4489_v1 }
 0x12d   :  { %v2058_v46 = vsel %vm2046_vm1, %v2040_v0, %v2057_v14  ;;  %v3934_v44 = vpop.eup %3933  ;;  %v360_v29 = vxor.u32 2147483648, %v3932_v60  ;;  %v3659_v51 = vadd.s32 4294967294, %v432_v59  ;;  %v2051_v45 = vsel %vm2045_vm15, %v2048_v6, %v2050_v27  ;;  %v4520_v6 = vpop.f32.mrb[5].mxu0 }
 0x12e   :  { %v2059_v54 = vsel %vm2045_vm15, %v2056_v47, %v2058_v46  ;;  %v357_v57 = vxor.u32 2147483648, %v3934_v44  ;;  %v420_v36 = vadd.s32 %v4406_v49, %v4401_v40  ;;  %v450_v10 = vsub.s32 4, %v4443_v50 }
 0x12f   :  { %v4499_v61 = vmul.u32.u64.low %v2060_v31, %v2059_v54  ;;  %v4500_v9 = vmul.u32.u64.high %v2060_v31, %v2059_v54, %v4499_v61  ;;  %v361_v4 = vsel %vm359_vm10, %v360_v29, %v3934_v44  ;;  %vm3660_vm2 = vcmp.lt.s32.totalorder %v3659_v51, 0 }
 0x130   :  { %v470_v0 = vand.u32 2139095040, %v4471_v52  ;;  %v358_v18 = vsel %vm356_vm13, %v3932_v60, %v357_v57  ;;  %v435_v32 = vsel %vm3660_vm2, 0, %v3659_v51  ;;  %v2067_v8 = vmul.u32 %v2060_v31, %v2051_v45 }
 0x131   :  { %v2070_v53 = vadd.s32 1, %v4490_v13  ;;  %v362_v40 = vsel %vm355_vm14, %v358_v18, %v361_v4  ;;  %v436_v49 = vsub.s32 32, %v435_v32  ;;  %v440_v58 = vsub.s32 4294967266, %v435_v32 }
 0x132   :  { %v467_v24 = vand.u32 2147483647, %v4471_v52  ;;  %v363_v43 = vsel %vm353_vm0, nan, %v362_v40  ;;  %v437_v7 = vshll.u32 %v4452_v22, %v435_v32  ;;  %vm2069_vm3 = vc.u32 %v4500_v9, %v4489_v1 }
 0x133   :  { %v471_v26 = vshrl.u32 %v470_v0, 23  ;;  %v3557_v2 = vmul.f32 0.088388346, %v363_v43  ;;  %v438_v31 = vshrl.u32 %v420_v36, %v436_v49  ;;  %v441_v25 = vadd.s32 127, %v440_v58 }
 0x134   :  { %v2071_v30 = vsel %vm2069_vm3, %v2070_v53, %v4490_v13  ;;  %vm2001_vm4 = vweird.f32 %v4212_v39  ;;  %vm366_vm5 = vcmp.lt.s32.totalorder %v4215_v42, 0  ;;  %vm2003_vm6 = vcmp.lt.s32.totalorder %v4450_v20, 2 }
 0x135   :  { %v2072_v23 = vadd.s32 %v2071_v30, %v2067_v8  ;;  %v3661_v12 = vadd.s32 4294967169, %v471_v26  ;;  %v3936_v38 = vpop.eup %3935  ;;  %3589 = vst [vmem:[#allocation2] sm:$0xff] %v3557_v2  ;;  %vm4525_vm7 = vcmp.le.f32.partialorder %v364_v63, 0.7853982  ;;  %v439_v37 = vor.u32 %v438_v31, %v437_v7 }
 0x136   :  { %v442_v27 = vshll.u32 %v441_v25, 23  ;;  %v3938_v33 = vpop.eup %3937  ;;  %v2008_v47 = vxor.u32 2147483648, %v3936_v38  ;;  %v474_v41 = vand.u32 8388607, %v467_v24  ;;  %vm2007_vm8 = vcmp.eq.s32.totalorder %v4450_v20, 2 }
 0x137   :  { %v2073_v59 = vadd.s32 536870912, %v2072_v23  ;;  %v477_v14 = vadd.s32 1, %v3661_v12  ;;  %v2005_v60 = vxor.u32 2147483648, %v3938_v33  ;;  %v451_v63 = vsel %vm366_vm5, %v450_v10, %v4443_v50 }
 0x138   :  { %v443_v46 = vor.u32 4788187, %v442_v27  ;;  %vm2004_vm9 = vcmp.eq.s32.totalorder %v4450_v20, 0  ;;  %v2009_v13 = vsel %vm2007_vm8, %v2008_v47, %v3938_v33  ;;  %v446_v45 = vcvt.s32.f32 %v439_v37 }
 0x139   :  { %v4536_v44 = vshrl.u32 %v2073_v59, 30  ;;  %vm478_vm10 = vcmp.gt.s32.totalorder %v477_v14, 0  ;;  %v2006_v29 = vsel %vm2004_vm9, %v3936_v38, %v2005_v60  ;;  %v453_v36 = vsel %vm4525_vm7, 0, %v451_v63 }
 0x13a   :  { %v444_v51 = vand.u32 2147483647, %v443_v46  ;;  %v479_v54 = vsel %vm478_vm10, %v477_v14, 0  ;;  %v2010_v57 = vsel %vm2003_vm6, %v2006_v29, %v2009_v13  ;;  %v475_v4 = vor.u32 8388608, %v474_v41 }
 0x13b   :  { %v2075_v61 = vshll.u32 %v4536_v44, 30  ;;  %v2011_v50 = vsel %vm2001_vm4, nan, %v2010_v57  ;;  %v481_v0 = vand.u32 31, %v479_v54  ;;  %v4547_v8 = vshrl.u32 %v479_v54, 5 }
 0x13c   :  { %v447_v10 = vmul.f32 %v446_v45, %v444_v51  ;;  %v3573_v18 = vmul.f32 0.088388346, %v2011_v50  ;;  %v4549_v40 = vand.u32 3, %v453_v36  ;;  %v2068_v20 = vadd.s32 %v4489_v1, %v4500_v9 }
 0x13d   :  { %v4545_v32 = vsub.s32 %v2072_v23, %v2075_v61  ;;  %v482_v49 = vsub.s32 32, %v481_v0  ;;  %v484_v39 = vshll.u32 %v4084_v11, %v481_v0  ;;  %v4555_v43 = vshll.u32 %v475_v4, 8  ;;  %v4592_v4 = vpop.f32.mrb[5].mxu1 }
 0x13e   :  { %v448_v53 = vxor.u32 2147483648, %v447_v10  ;;  %3605 = vst [vmem:[#allocation2 + $0x80] sm:$0xff] %v3573_v18  ;;  %v4559_v7 = vadd.f32 %v4223_v48, %v4204_v34  ;;  %v487_v31 = vshll.u32 %v4085_v15, %v481_v0  ;;  %v2098_v30 = vsub.s32 4, %v4536_v44 }
 0x13f   :  { %v2078_v58 = vsub.s32 0, %v4545_v32  ;;  %v485_v2 = vshrl.u32 %v4085_v15, %v482_v49  ;;  %v488_v1 = vshrl.u32 %v4086_v17, %v482_v49  ;;  %vm499_vm11 = vcmp.lt.s32.totalorder %v4547_v8, 1 }
 0x140   :  { %v449_v26 = vsel %vm366_vm5, %v448_v53, %v447_v10  ;;  %v490_v12 = vshll.u32 %v4086_v17, %v481_v0  ;;  %v483_v37 = vshrl.u32 %v4084_v11, %v482_v49  ;;  %v491_v27 = vshrl.u32 %v4087_v19, %v482_v49 }
 0x141   :  { %v452_v9 = vsel %vm4525_vm7, %v4215_v42, %v449_v26  ;;  %v3722_v25 = vmin.u32 %v2078_v58, %v4545_v32  ;;  %v486_v48 = vor.u32 %v485_v2, %v484_v39  ;;  %v489_v23 = vor.u32 %v488_v1, %v487_v31 }
 0x142   :  { %3939 = vcosq.f32 %v452_v9  ;;  %v493_v22 = vshll.u32 %v4087_v19, %v481_v0  ;;  %v494_v33 = vshrl.u32 %v4088_v21, %v482_v49  ;;  %v496_v47 = vshll.u32 %v4088_v21, %v481_v0 }
 0x143   :  { %3941 = vsinq.f32 %v452_v9  ;;  %v2080_v38 = vclz %v3722_v25  ;;  %v497_v59 = vshrl.u32 %v4089_v28, %v482_v49  ;;  %v492_v14 = vor.u32 %v491_v27, %v490_v12 }
 0x144   :  { %vm501_vm12 = vcmp.lt.s32.totalorder %v4547_v8, 3  ;;  %vm502_vm13 = vcmp.lt.s32.totalorder %v4547_v8, 4  ;;  %vm2014_vm14 = vcmp.lt.s32.totalorder %v4236_v5, 0  ;;  %v495_v60 = vor.u32 %v494_v33, %v493_v22 }
 0x145   :  { %v3723_v41 = vadd.s32 4294967294, %v2080_v38  ;;  %v498_v46 = vor.u32 %v497_v59, %v496_v47  ;;  %v503_v63 = vsel %vm499_vm11, %v483_v37, %v486_v48  ;;  %v507_v13 = vsel %vm499_vm11, %v486_v48, %v489_v23 }
 0x146   :  { %v504_v29 = vsel %vm502_vm13, %v492_v14, 2102212464  ;;  %v511_v51 = vsel %vm499_vm11, %v489_v23, %v492_v14  ;;  %v2118_v45 = vand.u32 2139095040, %v4559_v7  ;;  %vm458_vm0 = vcmp.lt.s32.totalorder %v4549_v40, 2 }
 0x147   :  { %vm3724_vm15 = vcmp.lt.s32.totalorder %v3723_v41, 0  ;;  %v505_v57 = vsel %vm501_vm12, %v489_v23, %v504_v29  ;;  %v508_v36 = vsel %vm502_vm13, %v495_v60, 920167782  ;;  %v512_v61 = vsel %vm502_vm13, %v498_v46, 1326507024 }
 0x148   :  { %v2083_v54 = vsel %vm3724_vm15, 0, %v3723_v41  ;;  %vm456_vm1 = vweird.f32 %v4215_v42  ;;  %vm500_vm2 = vcmp.lt.s32.totalorder %v4547_v8, 2  ;;  %vm4599_vm3 = vcmp.le.f32.partialorder %v2012_v62, 0.7853982 }
 0x149   :  { %v2084_v50 = vsub.s32 32, %v2083_v54  ;;  %v2085_v10 = vshll.u32 %v4545_v32, %v2083_v54  ;;  %v2088_v0 = vsub.s32 4294967266, %v2083_v54  ;;  %v506_v53 = vsel %vm500_vm2, %v503_v63, %v505_v57 }
 0x14a   :  { %v509_v49 = vsel %vm501_vm12, %v492_v14, %v508_v36  ;;  %v513_v58 = vsel %vm501_vm12, %v495_v60, %v512_v61  ;;  %v2119_v39 = vshrl.u32 %v2118_v45, 23  ;;  %vm459_vm4 = vcmp.eq.s32.totalorder %v4549_v40, 0 }
 0x14b   :  { %v2086_v26 = vshrl.u32 %v2068_v20, %v2084_v50  ;;  %v2089_v2 = vadd.s32 127, %v2088_v0  ;;  %v510_v32 = vsel %vm500_vm2, %v507_v13, %v509_v49  ;;  %v514_v31 = vsel %vm500_vm2, %v511_v51, %v513_v58 }
 0x14c   :  { %v3940_v1 = vpop.eup %3939  ;;  %v4608_v9 = vmul.u32.u64.low %v4555_v43, %v514_v31  ;;  %v4609_v25 = vmul.u32.u64.high %v4555_v43, %v514_v31, %v4608_v9  ;;  %v4612_v62 = vmul.u32.u64.low %v4555_v43, %v510_v32  ;;  %v4613_v48 = vmul.u32.u64.high %v4555_v43, %v510_v32, %v4612_v62 }
 0x14d   :  { %v3942_v23 = vpop.eup %3941  ;;  %v463_v12 = vxor.u32 2147483648, %v3940_v1  ;;  %v2087_v38 = vor.u32 %v2086_v26, %v2085_v10  ;;  %v2090_v8 = vshll.u32 %v2089_v2, 23  ;;  %v3725_v37 = vadd.s32 4294967169, %v2119_v39 }
 0x14e   :  { %v460_v20 = vxor.u32 2147483648, %v3942_v23  ;;  %vm462_vm5 = vcmp.eq.s32.totalorder %v4549_v40, 2  ;;  %v2115_v27 = vand.u32 2147483647, %v4559_v7  ;;  %v2099_v47 = vsel %vm2014_vm14, %v2098_v30, %v4536_v44 }
 0x14f   :  { %v464_v22 = vsel %vm462_vm5, %v463_v12, %v3942_v23  ;;  %v2091_v33 = vor.u32 4788187, %v2090_v8  ;;  %v2125_v59 = vadd.s32 1, %v3725_v37  ;;  %v522_v14 = vmul.u32 %v4555_v43, %v506_v53 }
 0x150   :  { %v461_v41 = vsel %vm459_vm4, %v3940_v1, %v460_v20  ;;  %vm524_vm6 = vc.u32 %v4609_v25, %v4612_v62  ;;  %v525_v60 = vadd.s32 1, %v4613_v48  ;;  %v2094_v13 = vcvt.s32.f32 %v2087_v38 }
 0x151   :  { %v465_v46 = vsel %vm458_vm0, %v461_v41, %v464_v22  ;;  %v2092_v63 = vand.u32 2147483647, %v2091_v33  ;;  %vm2126_vm7 = vcmp.gt.s32.totalorder %v2125_v59, 0  ;;  %v2122_v30 = vand.u32 8388607, %v2115_v27 }
 0x152   :  { %v466_v29 = vsel %vm456_vm1, nan, %v465_v46  ;;  %v526_v44 = vsel %vm524_vm6, %v525_v60, %v4613_v48  ;;  %v2127_v43 = vsel %vm2126_vm7, %v2125_v59, 0  ;;  %v2101_v54 = vsel %vm4599_vm3, 0, %v2099_v47 }
 0x153   :  { %v3558_v51 = vmul.f32 0.088388346, %v466_v29  ;;  %v2095_v45 = vmul.f32 %v2094_v13, %v2092_v63  ;;  %v527_v57 = vadd.s32 %v526_v44, %v522_v14  ;;  %v2129_v40 = vand.u32 31, %v2127_v43 }
 0x154   :  { %v4639_v42 = vadd.f32 %v4230_v55, %v4206_v35  ;;  %v4641_v50 = vand.u32 3, %v2101_v54  ;;  %v2123_v10 = vor.u32 8388608, %v2122_v30  ;;  %v2128_v0 = vshrl.u32 %v2127_v43, 5 }
 0x155   :  { %3590 = vst [vmem:[#allocation2 + $0x8] sm:$0xff] %v3558_v51  ;;  %v2096_v36 = vxor.u32 2147483648, %v2095_v45  ;;  %v528_v61 = vadd.s32 536870912, %v527_v57  ;;  %v2130_v53 = vsub.s32 32, %v2129_v40  ;;  %v2132_v39 = vshll.u32 %v4084_v11, %v2129_v40 }
 0x156   :  { %v2135_v26 = vshll.u32 %v4085_v15, %v2129_v40  ;;  %v2138_v31 = vshll.u32 %v4086_v17, %v2129_v40  ;;  %v2141_v48 = vshll.u32 %v4087_v19, %v2129_v40  ;;  %v2144_v37 = vshll.u32 %v4088_v21, %v2129_v40 }
 0x157   :  { %v2097_v49 = vsel %vm2014_vm14, %v2096_v36, %v2095_v45  ;;  %v4645_v58 = vshrl.u32 %v528_v61, 30  ;;  %v2133_v55 = vshrl.u32 %v4085_v15, %v2130_v53  ;;  %v2136_v32 = vshrl.u32 %v4086_v17, %v2130_v53 }
 0x158   :  { %v2100_v2 = vsel %vm4599_vm3, %v4236_v5, %v2097_v49  ;;  %v2139_v9 = vshrl.u32 %v4087_v19, %v2130_v53  ;;  %v2142_v38 = vshrl.u32 %v4088_v21, %v2130_v53  ;;  %v2145_v20 = vshrl.u32 %v4089_v28, %v2130_v53 }
 0x159   :  { %3943 = vcosq.f32 %v2100_v2  ;;  %v530_v1 = vshll.u32 %v4645_v58, 30  ;;  %v2134_v23 = vor.u32 %v2133_v55, %v2132_v39  ;;  %v2137_v12 = vor.u32 %v2136_v32, %v2135_v26 }
 0x15a   :  { %3945 = vsinq.f32 %v2100_v2  ;;  %v2140_v8 = vor.u32 %v2139_v9, %v2138_v31  ;;  %v2143_v22 = vor.u32 %v2142_v38, %v2141_v48  ;;  %v2163_v33 = vshll.u32 %v2123_v10, 8 }
 0x15b   :  { %v4659_v18 = vsub.s32 %v527_v57, %v530_v1  ;;  %v573_v47 = vand.u32 2139095040, %v4639_v42  ;;  %v2146_v41 = vor.u32 %v2145_v20, %v2144_v37  ;;  %vm2147_vm8 = vcmp.lt.s32.totalorder %v2128_v0, 1 }
 0x15c   :  { %vm2150_vm9 = vcmp.lt.s32.totalorder %v2128_v0, 4  ;;  %v2131_v14 = vshrl.u32 %v4084_v11, %v2130_v53  ;;  %v2155_v46 = vsel %vm2147_vm8, %v2134_v23, %v2137_v12  ;;  %vm2106_vm10 = vcmp.lt.s32.totalorder %v4641_v50, 2 }
 0x15d   :  { %v533_v59 = vsub.s32 0, %v4659_v18  ;;  %v2152_v60 = vsel %vm2150_vm9, %v2140_v8, 2102212464  ;;  %v2156_v63 = vsel %vm2150_vm9, %v2143_v22, 920167782  ;;  %vm2148_vm11 = vcmp.lt.s32.totalorder %v2128_v0, 2 }
 0x15e   :  { %vm2149_vm12 = vcmp.lt.s32.totalorder %v2128_v0, 3  ;;  %v2159_v29 = vsel %vm2147_vm8, %v2137_v12, %v2140_v8  ;;  %vm2104_vm13 = vweird.f32 %v4236_v5  ;;  %v2151_v44 = vsel %vm2147_vm8, %v2131_v14, %v2134_v23 }
 0x15f   :  { %v3662_v13 = vmin.u32 %v533_v59, %v4659_v18  ;;  %v2157_v30 = vsel %vm2149_vm12, %v2140_v8, %v2156_v63  ;;  %v2160_v43 = vsel %vm2150_vm9, %v2146_v41, 1326507024  ;;  %v574_v51 = vshrl.u32 %v573_v47, 23 }
 0x160   :  { %v2153_v54 = vsel %vm2149_vm12, %v2137_v12, %v2152_v60  ;;  %v2158_v57 = vsel %vm2148_vm11, %v2155_v46, %v2157_v30  ;;  %v2161_v40 = vsel %vm2149_vm12, %v2143_v22, %v2160_v43  ;;  %vm2107_vm14 = vcmp.eq.s32.totalorder %v4641_v50, 0 }
 0x161   :  { %v535_v45 = vclz %v3662_v13  ;;  %v2162_v36 = vsel %vm2148_vm11, %v2159_v29, %v2161_v40  ;;  %v4672_v61 = vmul.u32.u64.low %v2163_v33, %v2158_v57  ;;  %v4673_v10 = vmul.u32.u64.high %v2163_v33, %v2158_v57, %v4672_v61 }
 0x162   :  { %v4676_v39 = vmul.u32.u64.low %v2163_v33, %v2162_v36  ;;  %v4677_v26 = vmul.u32.u64.high %v2163_v33, %v2162_v36, %v4676_v39  ;;  %v3665_v2 = vadd.s32 4294967169, %v574_v51  ;;  %vm2110_vm15 = vcmp.eq.s32.totalorder %v4641_v50, 2 }
 0x163   :  { %v3944_v53 = vpop.eup %3943  ;;  %v3663_v49 = vadd.s32 4294967294, %v535_v45  ;;  %v2154_v31 = vsel %vm2148_vm11, %v2151_v44, %v2153_v54  ;;  %v570_v1 = vand.u32 2147483647, %v4639_v42  ;;  %v523_v48 = vadd.s32 %v4612_v62, %v4609_v25  ;;  %v4693_v25 = vpop.f32.mrb[6].mxu0 }
 0x164   :  { %v3946_v55 = vpop.eup %3945  ;;  %v2111_v32 = vxor.u32 2147483648, %v3944_v53  ;;  %v580_v23 = vadd.s32 1, %v3665_v2  ;;  %v553_v8 = vsub.s32 4, %v4645_v58  ;;  %v2173_v37 = vadd.s32 1, %v4673_v10 }
 0x165   :  { %v2108_v9 = vxor.u32 2147483648, %v3946_v55  ;;  %vm3664_vm0 = vcmp.lt.s32.totalorder %v3663_v49, 0  ;;  %v2170_v47 = vmul.u32 %v2163_v33, %v2154_v31  ;;  %vm2172_vm1 = vc.u32 %v4677_v26, %v4672_v61 }
 0x166   :  { %v2112_v12 = vsel %vm2110_vm15, %v2111_v32, %v3946_v55  ;;  %v538_v38 = vsel %vm3664_vm0, 0, %v3663_v49  ;;  %vm581_vm2 = vcmp.gt.s32.totalorder %v580_v23, 0  ;;  %v2174_v46 = vsel %vm2172_vm1, %v2173_v37, %v4673_v10 }
 0x167   :  { %v2109_v20 = vsel %vm2107_vm14, %v3944_v53, %v2108_v9  ;;  %v539_v22 = vsub.s32 32, %v538_v38  ;;  %v543_v0 = vsub.s32 4294967266, %v538_v38  ;;  %v540_v41 = vshll.u32 %v4659_v18, %v538_v38 }
 0x168   :  { %v2113_v59 = vsel %vm2106_vm10, %v2109_v20, %v2112_v12  ;;  %v2175_v33 = vadd.s32 %v2174_v46, %v2170_v47  ;;  %v577_v50 = vand.u32 8388607, %v570_v1  ;;  %v582_v13 = vsel %vm581_vm2, %v580_v23, 0 }
 0x169   :  { %v2114_v62 = vsel %vm2104_vm13, nan, %v2113_v59  ;;  %v541_v14 = vshrl.u32 %v523_v48, %v539_v22  ;;  %v544_v60 = vadd.s32 127, %v543_v0  ;;  %v584_v44 = vand.u32 31, %v582_v13 }
 0x16a   :  { %v3574_v63 = vmul.f32 0.088388346, %v2114_v62  ;;  %vm469_vm3 = vcmp.lt.s32.totalorder %v4471_v52, 0  ;;  %v2176_v30 = vadd.s32 536870912, %v2175_v33  ;;  %vm4703_vm4 = vcmp.le.f32.partialorder %v467_v24, 0.7853982 }
 0x16b   :  { %v542_v18 = vor.u32 %v541_v14, %v540_v41  ;;  %v545_v29 = vshll.u32 %v544_v60, 23  ;;  %v554_v51 = vsel %vm469_vm3, %v553_v8, %v4645_v58  ;;  %v585_v45 = vsub.s32 32, %v584_v44 }
 0x16c   :  { %3606 = vst [vmem:[#allocation2 + $0x88] sm:$0xff] %v3574_v63  ;;  %v4710_v57 = vshrl.u32 %v2176_v30, 30  ;;  %v578_v40 = vor.u32 8388608, %v577_v50  ;;  %v4714_v36 = vadd.f32 %v4232_v56, %v4206_v35  ;;  %v587_v24 = vshll.u32 %v4084_v11, %v584_v44 }
 0x16d   :  { %v546_v43 = vor.u32 4788187, %v545_v29  ;;  %v549_v54 = vcvt.s32.f32 %v542_v18  ;;  %v588_v53 = vshrl.u32 %v4085_v15, %v585_v45  ;;  %v591_v49 = vshrl.u32 %v4086_v17, %v585_v45 }
 0x16e   :  { %v2178_v39 = vshll.u32 %v4710_v57, 30  ;;  %v590_v58 = vshll.u32 %v4085_v15, %v584_v44  ;;  %v594_v2 = vshrl.u32 %v4087_v19, %v585_v45  ;;  %v597_v55 = vshrl.u32 %v4088_v21, %v585_v45 }
 0x16f   :  { %v547_v10 = vand.u32 2147483647, %v546_v43  ;;  %v556_v56 = vsel %vm4703_vm4, 0, %v554_v51  ;;  %v583_v31 = vshrl.u32 %v582_v13, 5  ;;  %v593_v9 = vshll.u32 %v4086_v17, %v584_v44 }
 0x170   :  { %v4726_v48 = vsub.s32 %v2175_v33, %v2178_v39  ;;  %v589_v23 = vor.u32 %v588_v53, %v587_v24  ;;  %v592_v12 = vor.u32 %v591_v49, %v590_v58  ;;  %v596_v38 = vshll.u32 %v4087_v19, %v584_v44  ;;  %v4756_v58 = vpop.f32.mrb[6].mxu1 }
 0x171   :  { %v550_v32 = vmul.f32 %v549_v54, %v547_v10  ;;  %v595_v37 = vor.u32 %v594_v2, %v593_v9  ;;  %v599_v20 = vshll.u32 %v4088_v21, %v584_v44  ;;  %v600_v22 = vshrl.u32 %v4089_v28, %v585_v45 }
 0x172   :  { %v2181_v0 = vsub.s32 0, %v4726_v48  ;;  %v598_v47 = vor.u32 %v597_v55, %v596_v38  ;;  %v4732_v59 = vshll.u32 %v578_v40, 8  ;;  %v2221_v41 = vand.u32 2139095040, %v4714_v36 }
 0x173   :  { %v551_v8 = vxor.u32 2147483648, %v550_v32  ;;  %v586_v14 = vshrl.u32 %v4084_v11, %v585_v45  ;;  %v601_v60 = vor.u32 %v600_v22, %v599_v20  ;;  %vm602_vm5 = vcmp.lt.s32.totalorder %v583_v31, 1 }
 0x174   :  { %v3726_v63 = vmin.u32 %v2181_v0, %v4726_v48  ;;  %vm604_vm6 = vcmp.lt.s32.totalorder %v583_v31, 3  ;;  %vm605_vm7 = vcmp.lt.s32.totalorder %v583_v31, 4  ;;  %v610_v13 = vsel %vm602_vm5, %v589_v23, %v592_v12 }
 0x175   :  { %v552_v62 = vsel %vm469_vm3, %v551_v8, %v550_v32  ;;  %v606_v33 = vsel %vm602_vm5, %v586_v14, %v589_v23  ;;  %v607_v50 = vsel %vm605_vm7, %v595_v37, 2102212464  ;;  %v611_v44 = vsel %vm605_vm7, %v598_v47, 920167782 }
 0x176   :  { %v555_v46 = vsel %vm4703_vm4, %v4471_v52, %v552_v62  ;;  %v2183_v18 = vclz %v3726_v63  ;;  %v608_v29 = vsel %vm604_vm6, %v592_v12, %v607_v50  ;;  %vm603_vm8 = vcmp.lt.s32.totalorder %v583_v31, 2 }
 0x177   :  { %3947 = vcosq.f32 %v555_v46  ;;  %v612_v30 = vsel %vm604_vm6, %v595_v37, %v611_v44  ;;  %v614_v43 = vsel %vm602_vm5, %v592_v12, %v595_v37  ;;  %v615_v51 = vsel %vm605_vm7, %v601_v60, 1326507024 }
 0x178   :  { %3949 = vsinq.f32 %v555_v46  ;;  %v560_v5 = vand.u32 3, %v556_v56  ;;  %v3727_v45 = vadd.s32 4294967294, %v2183_v18  ;;  %v613_v54 = vsel %vm603_vm8, %v610_v13, %v612_v30 }
 0x179   :  { %v616_v40 = vsel %vm604_vm6, %v598_v47, %v615_v51  ;;  %vm4747_vm9 = vcmp.le.f32.partialorder %v2115_v27, 0.7853982  ;;  %v609_v24 = vsel %vm603_vm8, %v606_v33, %v608_v29  ;;  %v2222_v32 = vshrl.u32 %v2221_v41, 23 }
 0x17a   :  { %v617_v53 = vsel %vm603_vm8, %v614_v43, %v616_v40  ;;  %v4752_v49 = vmul.u32.u64.low %v4732_v59, %v613_v54  ;;  %v4753_v39 = vmul.u32.u64.high %v4732_v59, %v613_v54, %v4752_v49  ;;  %vm3728_vm10 = vcmp.lt.s32.totalorder %v3727_v45, 0 }
 0x17b   :  { %v4759_v2 = vmul.u32.u64.low %v4732_v59, %v617_v53  ;;  %v4760_v55 = vmul.u32.u64.high %v4732_v59, %v617_v53, %v4759_v2  ;;  %vm2117_vm11 = vcmp.lt.s32.totalorder %v4559_v7, 0  ;;  %v2186_v27 = vsel %vm3728_vm10, 0, %v3727_v45 }
 0x17c   :  { %v2201_v56 = vsub.s32 4, %v4710_v57  ;;  %v4766_v31 = vadd.f32 %v4322_v16, %v4204_v34  ;;  %vm559_vm12 = vweird.f32 %v4471_v52  ;;  %v2171_v9 = vadd.s32 %v4672_v61, %v4677_v26 }
 0x17d   :  { %v2187_v23 = vsub.s32 32, %v2186_v27  ;;  %v2191_v12 = vsub.s32 4294967266, %v2186_v27  ;;  %v3729_v38 = vadd.s32 4294967169, %v2222_v32  ;;  %vm561_vm13 = vcmp.lt.s32.totalorder %v560_v5, 2 }
 0x17e   :  { %v625_v8 = vmul.u32 %v4732_v59, %v609_v24  ;;  %v628_v37 = vadd.s32 1, %v4753_v39  ;;  %v2218_v20 = vand.u32 2147483647, %v4714_v36  ;;  %v2188_v22 = vshll.u32 %v4726_v48, %v2186_v27 }
 0x17f   :  { %v2189_v0 = vshrl.u32 %v2171_v9, %v2187_v23  ;;  %v2192_v16 = vadd.s32 127, %v2191_v12  ;;  %vm627_vm14 = vc.u32 %v4760_v55, %v4752_v49  ;;  %v2202_v61 = vsel %vm2117_vm11, %v2201_v56, %v4710_v57 }
 0x180   :  { %v629_v26 = vsel %vm627_vm14, %v628_v37, %v4753_v39  ;;  %v2228_v41 = vadd.s32 1, %v3729_v38  ;;  %v676_v59 = vand.u32 2139095040, %v4766_v31  ;;  %vm562_vm15 = vcmp.eq.s32.totalorder %v560_v5, 0 }
 0x181   :  { %v3948_v47 = vpop.eup %3947  ;;  %v2190_v60 = vor.u32 %v2189_v0, %v2188_v22  ;;  %v2193_v46 = vshll.u32 %v2192_v16, 23  ;;  %v630_v48 = vadd.s32 %v629_v26, %v625_v8  ;;  %vm565_vm0 = vcmp.eq.s32.totalorder %v560_v5, 2 }
 0x182   :  { %v3950_v62 = vpop.eup %3949  ;;  %v566_v14 = vxor.u32 2147483648, %v3948_v47  ;;  %vm2229_vm1 = vcmp.gt.s32.totalorder %v2228_v41, 0  ;;  %v2204_v13 = vsel %vm4747_vm9, 0, %v2202_v61  ;;  %v2225_v29 = vand.u32 8388607, %v2218_v20 }
 0x183   :  { %v563_v63 = vxor.u32 2147483648, %v3950_v62  ;;  %v2194_v50 = vor.u32 4788187, %v2193_v46  ;;  %v631_v57 = vadd.s32 536870912, %v630_v48  ;;  %v2230_v44 = vsel %vm2229_vm1, %v2228_v41, 0 }
 0x184   :  { %v567_v33 = vsel %vm565_vm0, %v566_v14, %v3950_v62  ;;  %v677_v30 = vshrl.u32 %v676_v59, 23  ;;  %v2197_v45 = vcvt.s32.f32 %v2190_v60  ;;  %v2232_v24 = vand.u32 31, %v2230_v44 }
 0x185   :  { %v564_v18 = vsel %vm562_vm15, %v3948_v47, %v563_v63  ;;  %v2195_v51 = vand.u32 2147483647, %v2194_v50  ;;  %v4787_v54 = vshrl.u32 %v631_v57, 30  ;;  %v4792_v32 = vand.u32 3, %v2204_v13 }
 0x186   :  { %v568_v43 = vsel %vm561_vm13, %v564_v18, %v567_v33  ;;  %v2233_v27 = vsub.s32 32, %v2232_v24  ;;  %v673_v56 = vand.u32 2147483647, %v4766_v31  ;;  %v2226_v23 = vor.u32 8388608, %v2225_v29 }
 0x187   :  { %v569_v40 = vsel %vm559_vm12, nan, %v568_v43  ;;  %v2198_v39 = vmul.f32 %v2197_v45, %v2195_v51  ;;  %v633_v2 = vshll.u32 %v4787_v54, 30  ;;  %v3669_v12 = vadd.s32 4294967169, %v677_v30 }
 0x188   :  { %v3559_v53 = vmul.f32 0.088388346, %v569_v40  ;;  %v4797_v38 = vshrl.u32 %v2230_v44, 5  ;;  %v2235_v52 = vshll.u32 %v4084_v11, %v2232_v24  ;;  %v2236_v8 = vshrl.u32 %v4085_v15, %v2233_v27 }
 0x189   :  { %v2199_v5 = vxor.u32 2147483648, %v2198_v39  ;;  %v4795_v9 = vsub.s32 %v630_v48, %v633_v2  ;;  %v2239_v37 = vshrl.u32 %v4086_v17, %v2233_v27  ;;  %v2238_v16 = vshll.u32 %v4085_v15, %v2232_v24  ;;  %v4835_v2 = vpop.f32.mrb[7].mxu0 }
 0x18a   :  { %3591 = vst [vmem:[#allocation2 + $0x10] sm:$0xff] %v3559_v53  ;;  %v2242_v47 = vshrl.u32 %v4087_v19, %v2233_v27  ;;  %v2241_v26 = vshll.u32 %v4086_v17, %v2232_v24  ;;  %v2244_v41 = vshll.u32 %v4087_v19, %v2232_v24  ;;  %v2245_v59 = vshrl.u32 %v4088_v21, %v2233_v27 }
 0x18b   :  { %v2200_v22 = vsel %vm2117_vm11, %v2199_v5, %v2198_v39  ;;  %v636_v0 = vsub.s32 0, %v4795_v9  ;;  %v2237_v14 = vor.u32 %v2236_v8, %v2235_v52  ;;  %v2240_v60 = vor.u32 %v2239_v37, %v2238_v16 }
 0x18c   :  { %v2203_v61 = vsel %vm4747_vm9, %v4559_v7, %v2200_v22  ;;  %v626_v46 = vadd.s32 %v4752_v49, %v4760_v55  ;;  %v2243_v48 = vor.u32 %v2242_v47, %v2241_v26  ;;  %v2246_v63 = vor.u32 %v2245_v59, %v2244_v41 }
 0x18d   :  { %3951 = vcosq.f32 %v2203_v61  ;;  %v3666_v62 = vmin.u32 %v636_v0, %v4795_v9  ;;  %v2247_v10 = vshll.u32 %v4088_v21, %v2232_v24  ;;  %v2248_v50 = vshrl.u32 %v4089_v28, %v2233_v27 }
 0x18e   :  { %3953 = vsinq.f32 %v2203_v61  ;;  %v4818_v13 = vshll.u32 %v2226_v23, 8  ;;  %v2234_v57 = vshrl.u32 %v4084_v11, %v2233_v27  ;;  %vm2250_vm2 = vcmp.lt.s32.totalorder %v4797_v38, 1 }
 0x18f   :  { %v638_v33 = vclz %v3666_v62  ;;  %vm2251_vm3 = vcmp.lt.s32.totalorder %v4797_v38, 2  ;;  %v683_v18 = vadd.s32 1, %v3669_v12  ;;  %v2249_v44 = vor.u32 %v2248_v50, %v2247_v10 }
 0x190   :  { %vm2253_vm4 = vcmp.lt.s32.totalorder %v4797_v38, 4  ;;  %v2258_v49 = vsel %vm2250_vm2, %v2237_v14, %v2240_v60  ;;  %vm2210_vm5 = vcmp.eq.s32.totalorder %v4792_v32, 0  ;;  %vm2252_vm6 = vcmp.lt.s32.totalorder %v4797_v38, 3 }
 0x191   :  { %v3667_v29 = vadd.s32 4294967294, %v638_v33  ;;  %v2255_v55 = vsel %vm2253_vm4, %v2243_v48, 2102212464  ;;  %v2259_v30 = vsel %vm2253_vm4, %v2246_v63, 920167782  ;;  %v2262_v43 = vsel %vm2250_vm2, %v2240_v60, %v2243_v48 }
 0x192   :  { %vm2209_vm7 = vcmp.lt.s32.totalorder %v4792_v32, 2  ;;  %vm572_vm8 = vcmp.lt.s32.totalorder %v4639_v42, 0  ;;  %v2254_v51 = vsel %vm2250_vm2, %v2234_v57, %v2237_v14  ;;  %v2260_v45 = vsel %vm2252_vm6, %v2243_v48, %v2259_v30 }
 0x193   :  { %vm3668_vm9 = vcmp.lt.s32.totalorder %v3667_v29, 0  ;;  %v2263_v40 = vsel %vm2253_vm4, %v2249_v44, 1326507024  ;;  %vm2207_vm10 = vweird.f32 %v4559_v7  ;;  %v2261_v53 = vsel %vm2251_vm3, %v2258_v49, %v2260_v45 }
 0x194   :  { %v641_v24 = vsel %vm3668_vm9, 0, %v3667_v29  ;;  %v2264_v39 = vsel %vm2252_vm6, %v2246_v63, %v2263_v40  ;;  %vm684_vm11 = vcmp.gt.s32.totalorder %v683_v18, 0  ;;  %v2256_v23 = vsel %vm2252_vm6, %v2240_v60, %v2255_v55 }
 0x195   :  { %v642_v27 = vsub.s32 32, %v641_v24  ;;  %v646_v5 = vsub.s32 4294967266, %v641_v24  ;;  %v2265_v12 = vsel %vm2251_vm3, %v2262_v43, %v2264_v39  ;;  %v643_v16 = vshll.u32 %v4795_v9, %v641_v24 }
 0x196   :  { %v4842_v52 = vmul.u32.u64.low %v4818_v13, %v2265_v12  ;;  %v4843_v8 = vmul.u32.u64.high %v4818_v13, %v2265_v12, %v4842_v52  ;;  %v4846_v37 = vmul.u32.u64.low %v4818_v13, %v2261_v53  ;;  %v4847_v22 = vmul.u32.u64.high %v4818_v13, %v2261_v53, %v4846_v37 }
 0x197   :  { %v3952_v0 = vpop.eup %3951  ;;  %v644_v47 = vshrl.u32 %v626_v46, %v642_v27  ;;  %v647_v61 = vadd.s32 127, %v646_v5  ;;  %v685_v26 = vsel %vm684_vm11, %v683_v18, 0  ;;  %v656_v62 = vsub.s32 4, %v4787_v54 }
 0x198   :  { %v3954_v41 = vpop.eup %3953  ;;  %v2214_v59 = vxor.u32 2147483648, %v3952_v0  ;;  %v2257_v14 = vsel %vm2251_vm3, %v2254_v51, %v2256_v23  ;;  %v687_v60 = vand.u32 31, %v685_v26  ;;  %vm2213_vm12 = vcmp.eq.s32.totalorder %v4792_v32, 2 }
 0x199   :  { %v2211_v48 = vxor.u32 2147483648, %v3954_v41  ;;  %v645_v63 = vor.u32 %v644_v47, %v643_v16  ;;  %v648_v33 = vshll.u32 %v647_v61, 23  ;;  %vm2275_vm13 = vc.u32 %v4843_v8, %v4846_v37 }
 0x19a   :  { %v2215_v10 = vsel %vm2213_vm12, %v2214_v59, %v3954_v41  ;;  %v2276_v9 = vadd.s32 1, %v4847_v22  ;;  %v680_v46 = vand.u32 8388607, %v673_v56  ;;  %v2273_v57 = vmul.u32 %v4818_v13, %v2257_v14 }
 0x19b   :  { %v2212_v50 = vsel %vm2210_vm5, %v3952_v0, %v2211_v48  ;;  %v649_v38 = vor.u32 4788187, %v648_v33  ;;  %v688_v18 = vsub.s32 32, %v687_v60  ;;  %v657_v44 = vsel %vm572_vm8, %v656_v62, %v4787_v54 }
 0x19c   :  { %v2216_v29 = vsel %vm2209_vm7, %v2212_v50, %v2215_v10  ;;  %v2277_v49 = vsel %vm2275_vm13, %v2276_v9, %v4847_v22  ;;  %v4869_v55 = vshrl.u32 %v685_v26, 5  ;;  %v652_v51 = vcvt.s32.f32 %v645_v63 }
 0x19d   :  { %v2217_v30 = vsel %vm2207_vm10, nan, %v2216_v29  ;;  %v650_v43 = vand.u32 2147483647, %v649_v38  ;;  %v2278_v45 = vadd.s32 %v2277_v49, %v2273_v57  ;;  %v690_v13 = vshll.u32 %v4084_v11, %v687_v60 }
 0x19e   :  { %v3575_v40 = vmul.f32 0.088388346, %v2217_v30  ;;  %v691_v32 = vshrl.u32 %v4085_v15, %v688_v18  ;;  %v694_v24 = vshrl.u32 %v4086_v17, %v688_v18  ;;  %v693_v54 = vshll.u32 %v4085_v15, %v687_v60 }
 0x19f   :  { %v653_v53 = vmul.f32 %v652_v51, %v650_v43  ;;  %v2279_v39 = vadd.s32 536870912, %v2278_v45  ;;  %v697_v27 = vshrl.u32 %v4087_v19, %v688_v18  ;;  %v696_v7 = vshll.u32 %v4086_v17, %v687_v60 }
 0x1a0   :  { %3607 = vst [vmem:[#allocation2 + $0x90] sm:$0xff] %v3575_v40  ;;  %v692_v5 = vor.u32 %v691_v32, %v690_v13  ;;  %v699_v23 = vshll.u32 %v4087_v19, %v687_v60  ;;  %v700_v12 = vshrl.u32 %v4088_v21, %v688_v18  ;;  %v695_v0 = vor.u32 %v694_v24, %v693_v54 }
 0x1a1   :  { %v654_v52 = vxor.u32 2147483648, %v653_v53  ;;  %v4881_v22 = vshrl.u32 %v2279_v39, 30  ;;  %v703_v16 = vshrl.u32 %v4089_v28, %v688_v18  ;;  %vm4886_vm14 = vcmp.le.f32.partialorder %v570_v1, 0.7853982 }
 0x1a2   :  { %v698_v61 = vor.u32 %v697_v27, %v696_v7  ;;  %v701_v26 = vor.u32 %v700_v12, %v699_v23  ;;  %v702_v41 = vshll.u32 %v4088_v21, %v687_v60  ;;  %v659_v62 = vsel %vm4886_vm14, 0, %v657_v44  ;;  %v4935_v7 = vpop.f32.mrb[7].mxu1 }
 0x1a3   :  { %v655_v59 = vsel %vm572_vm8, %v654_v52, %v653_v53  ;;  %v2281_v14 = vshll.u32 %v4881_v22, 30  ;;  %v681_v48 = vor.u32 8388608, %v680_v46  ;;  %vm705_vm15 = vcmp.lt.s32.totalorder %v4869_v55, 1 }
 0x1a4   :  { %v658_v1 = vsel %vm4886_vm14, %v4639_v42, %v655_v59  ;;  %v704_v63 = vor.u32 %v703_v16, %v702_v41  ;;  %v4902_v33 = vadd.f32 %v4403_v3, %v4204_v34  ;;  %vm708_vm0 = vcmp.lt.s32.totalorder %v4869_v55, 4 }
 0x1a5   :  { %3955 = vcosq.f32 %v658_v1  ;;  %v4904_v60 = vsub.s32 %v2278_v45, %v2281_v14  ;;  %v713_v10 = vsel %vm705_vm15, %v692_v5, %v695_v0  ;;  %vm707_vm1 = vcmp.lt.s32.totalorder %v4869_v55, 3 }
 0x1a6   :  { %3957 = vsinq.f32 %v658_v1  ;;  %v710_v9 = vsel %vm708_vm0, %v698_v61, 2102212464  ;;  %v714_v46 = vsel %vm708_vm0, %v701_v26, 920167782  ;;  %v689_v38 = vshrl.u32 %v4084_v11, %v688_v18 }
 0x1a7   :  { %v2284_v50 = vsub.s32 0, %v4904_v60  ;;  %vm706_vm2 = vcmp.lt.s32.totalorder %v4869_v55, 2  ;;  %v715_v3 = vsel %vm707_vm1, %v698_v61, %v714_v46  ;;  %v717_v29 = vsel %vm705_vm15, %v695_v0, %v698_v61 }
 0x1a8   :  { %v716_v57 = vsel %vm706_vm2, %v713_v10, %v715_v3  ;;  %v718_v44 = vsel %vm708_vm0, %v704_v63, 1326507024  ;;  %v721_v49 = vshll.u32 %v681_v48, 8  ;;  %v663_v30 = vand.u32 3, %v659_v62 }
 0x1a9   :  { %v3730_v43 = vmin.u32 %v2284_v50, %v4904_v60  ;;  %v709_v51 = vsel %vm705_vm15, %v689_v38, %v692_v5  ;;  %v711_v45 = vsel %vm707_vm1, %v695_v0, %v710_v9  ;;  %v719_v40 = vsel %vm707_vm1, %v701_v26, %v718_v44 }
 0x1aa   :  { %v4920_v18 = vmul.u32.u64.low %v721_v49, %v716_v57  ;;  %v4921_v13 = vmul.u32.u64.high %v721_v49, %v716_v57, %v4920_v18  ;;  %vm2220_vm3 = vcmp.lt.s32.totalorder %v4714_v36, 0  ;;  %v720_v24 = vsel %vm706_vm2, %v717_v29, %v719_v40 }
 0x1ab   :  { %v2286_v32 = vclz %v3730_v43  ;;  %v2324_v53 = vand.u32 2139095040, %v4902_v33  ;;  %vm662_vm4 = vweird.f32 %v4639_v42  ;;  %v712_v39 = vsel %vm706_vm2, %v709_v51, %v711_v45 }
 0x1ac   :  { %v4931_v54 = vmul.u32.u64.low %v721_v49, %v720_v24  ;;  %v4932_v27 = vmul.u32.u64.high %v721_v49, %v720_v24, %v4931_v54  ;;  %v2321_v5 = vand.u32 2147483647, %v4902_v33  ;;  %vm664_vm5 = vcmp.lt.s32.totalorder %v663_v30, 2 }
 0x1ad   :  { %v3731_v23 = vadd.s32 4294967294, %v2286_v32  ;;  %v2325_v12 = vshrl.u32 %v2324_v53, 23  ;;  %v4939_v52 = vadd.f32 %v4520_v6, %v4206_v35  ;;  %vm665_vm6 = vcmp.eq.s32.totalorder %v663_v30, 0 }
 0x1ae   :  { %vm668_vm7 = vcmp.eq.s32.totalorder %v663_v30, 2  ;;  %v2274_v55 = vadd.s32 %v4846_v37, %v4843_v8  ;;  %v731_v0 = vadd.s32 1, %v4921_v13  ;;  %v2304_v47 = vsub.s32 4, %v4881_v22 }
 0x1af   :  { %v3956_v16 = vpop.eup %3955  ;;  %vm3732_vm8 = vcmp.lt.s32.totalorder %v3731_v23, 0  ;;  %v728_v61 = vmul.u32 %v721_v49, %v712_v39  ;;  %v3733_v26 = vadd.s32 4294967169, %v2325_v12  ;;  %vm730_vm9 = vc.u32 %v4932_v27, %v4920_v18 }
 0x1b0   :  { %v3958_v41 = vpop.eup %3957  ;;  %v669_v59 = vxor.u32 2147483648, %v3956_v16  ;;  %v2289_v62 = vsel %vm3732_vm8, 0, %v3731_v23  ;;  %v2328_v6 = vand.u32 8388607, %v2321_v5  ;;  %v779_v37 = vand.u32 2139095040, %v4939_v52 }
 0x1b1   :  { %v666_v14 = vxor.u32 2147483648, %v3958_v41  ;;  %v2290_v48 = vsub.s32 32, %v2289_v62  ;;  %v2294_v8 = vsub.s32 4294967266, %v2289_v62  ;;  %v2291_v63 = vshll.u32 %v4904_v60, %v2289_v62 }
 0x1b2   :  { %v670_v1 = vsel %vm668_vm7, %v669_v59, %v3958_v41  ;;  %v732_v10 = vsel %vm730_vm9, %v731_v0, %v4921_v13  ;;  %v2331_v9 = vadd.s32 1, %v3733_v26  ;;  %vm4957_vm10 = vcmp.le.f32.partialorder %v2218_v20, 0.7853982 }
 0x1b3   :  { %v667_v46 = vsel %vm665_vm6, %v3956_v16, %v666_v14  ;;  %v2292_v50 = vshrl.u32 %v2274_v55, %v2290_v48  ;;  %v2295_v38 = vadd.s32 127, %v2294_v8  ;;  %v733_v3 = vadd.s32 %v732_v10, %v728_v61 }
 0x1b4   :  { %v671_v57 = vsel %vm664_vm5, %v667_v46, %v670_v1  ;;  %v2305_v60 = vsel %vm2220_vm3, %v2304_v47, %v4881_v22  ;;  %vm2332_vm11 = vcmp.gt.s32.totalorder %v2331_v9, 0  ;;  %v776_v40 = vand.u32 2147483647, %v4939_v52 }
 0x1b5   :  { %v672_v44 = vsel %vm662_vm4, nan, %v671_v57  ;;  %v2293_v49 = vor.u32 %v2292_v50, %v2291_v63  ;;  %v2296_v43 = vshll.u32 %v2295_v38, 23  ;;  %v734_v51 = vadd.s32 536870912, %v733_v3 }
 0x1b6   :  { %v3560_v45 = vmul.f32 0.088388346, %v672_v44  ;;  %v2333_v30 = vsel %vm2332_vm11, %v2331_v9, 0  ;;  %v780_v13 = vshrl.u32 %v779_v37, 23  ;;  %v2307_v32 = vsel %vm4957_vm10, 0, %v2305_v60 }
 0x1b7   :  { %v2297_v20 = vor.u32 4788187, %v2296_v43  ;;  %v4969_v24 = vshrl.u32 %v734_v51, 30  ;;  %v2329_v53 = vor.u32 8388608, %v2328_v6  ;;  %v2335_v22 = vand.u32 31, %v2333_v30 }
 0x1b8   :  { %3592 = vst [vmem:[#allocation2 + $0x18] sm:$0xff] %v3560_v45  ;;  %v2300_v42 = vcvt.s32.f32 %v2293_v49  ;;  %v4972_v23 = vand.u32 3, %v2307_v32  ;;  %v3673_v55 = vadd.s32 4294967169, %v780_v13  ;;  %v4976_v0 = vand.u32 8388607, %v776_v40 }
 0x1b9   :  { %v2298_v39 = vand.u32 2147483647, %v2297_v20  ;;  %v736_v54 = vshll.u32 %v4969_v24, 30  ;;  %v2336_v12 = vsub.s32 32, %v2335_v22  ;;  %v729_v47 = vadd.s32 %v4920_v18, %v4932_v27 }
 0x1ba   :  { %v4982_v26 = vshll.u32 %v2329_v53, 8  ;;  %v2334_v41 = vshrl.u32 %v2333_v30, 5  ;;  %v2338_v59 = vshll.u32 %v4084_v11, %v2335_v22  ;;  %v2341_v8 = vshll.u32 %v4085_v15, %v2335_v22 }
 0x1bb   :  { %v2301_v16 = vmul.f32 %v2300_v42, %v2298_v39  ;;  %v4980_v61 = vsub.s32 %v733_v3, %v736_v54  ;;  %v2339_v62 = vshrl.u32 %v4085_v15, %v2336_v12  ;;  %v2342_v6 = vshrl.u32 %v4086_v17, %v2336_v12 }
 0x1bc   :  { %v2345_v37 = vshrl.u32 %v4087_v19, %v2336_v12  ;;  %v2344_v18 = vshll.u32 %v4086_v17, %v2335_v22  ;;  %v2347_v27 = vshll.u32 %v4087_v19, %v2335_v22  ;;  %v2348_v1 = vshrl.u32 %v4088_v21, %v2336_v12 }
 0x1bd   :  { %v2302_v14 = vxor.u32 2147483648, %v2301_v16  ;;  %v739_v48 = vsub.s32 0, %v4980_v61  ;;  %v786_v63 = vadd.s32 1, %v3673_v55  ;;  %v2340_v46 = vor.u32 %v2339_v62, %v2338_v59 }
 0x1be   :  { %v2343_v50 = vor.u32 %v2342_v6, %v2341_v8  ;;  %v759_v3 = vsub.s32 4, %v4969_v24  ;;  %v2346_v57 = vor.u32 %v2345_v37, %v2344_v18  ;;  %v2349_v60 = vor.u32 %v2348_v1, %v2347_v27 }
 0x1bf   :  { %v2303_v10 = vsel %vm2220_vm3, %v2302_v14, %v2301_v16  ;;  %v3670_v9 = vmin.u32 %v739_v48, %v4980_v61  ;;  %v2350_v49 = vshll.u32 %v4088_v21, %v2335_v22  ;;  %v2351_v43 = vshrl.u32 %v4089_v28, %v2336_v12  ;;  %v5013_v16 = vpop.f32.mrb[8].mxu0 }
 0x1c0   :  { %v2306_v38 = vsel %vm4957_vm10, %v4714_v36, %v2303_v10  ;;  %vm675_vm12 = vcmp.lt.s32.totalorder %v4766_v31, 0  ;;  %v2337_v51 = vshrl.u32 %v4084_v11, %v2336_v12  ;;  %vm2353_vm13 = vcmp.lt.s32.totalorder %v2334_v41, 1 }
 0x1c1   :  { %3959 = vcosq.f32 %v2306_v38  ;;  %v741_v44 = vclz %v3670_v9  ;;  %vm2354_vm14 = vcmp.lt.s32.totalorder %v2334_v41, 2  ;;  %v2352_v29 = vor.u32 %v2351_v43, %v2350_v49 }
 0x1c2   :  { %3961 = vsinq.f32 %v2306_v38  ;;  %vm2356_vm15 = vcmp.lt.s32.totalorder %v2334_v41, 4  ;;  %v2361_v30 = vsel %vm2353_vm13, %v2340_v46, %v2343_v50  ;;  %vm2355_vm0 = vcmp.lt.s32.totalorder %v2334_v41, 3 }
 0x1c3   :  { %v3671_v45 = vadd.s32 4294967294, %v741_v44  ;;  %v2358_v13 = vsel %vm2356_vm15, %v2346_v57, 2102212464  ;;  %v2362_v20 = vsel %vm2356_vm15, %v2349_v60, 920167782  ;;  %v2365_v32 = vsel %vm2353_vm13, %v2343_v50, %v2346_v57 }
 0x1c4   :  { %vm5006_vm1 = vcmp.le.f32.partialorder %v673_v56, 0.7853982  ;;  %v2357_v22 = vsel %vm2353_vm13, %v2337_v51, %v2340_v46  ;;  %v2363_v39 = vsel %vm2355_vm0, %v2346_v57, %v2362_v20  ;;  %v2366_v42 = vsel %vm2356_vm15, %v2352_v29, 1326507024 }
 0x1c5   :  { %vm3672_vm2 = vcmp.lt.s32.totalorder %v3671_v45, 0  ;;  %v2364_v12 = vsel %vm2354_vm14, %v2361_v30, %v2363_v39  ;;  %v2367_v55 = vsel %vm2355_vm0, %v2349_v60, %v2366_v42  ;;  %vm787_vm3 = vcmp.gt.s32.totalorder %v786_v63, 0 }
 0x1c6   :  { %v744_v54 = vsel %vm3672_vm2, 0, %v3671_v45  ;;  %v2359_v56 = vsel %vm2355_vm0, %v2343_v50, %v2358_v13  ;;  %v2368_v6 = vsel %vm2354_vm14, %v2365_v32, %v2367_v55  ;;  %vm2310_vm4 = vweird.f32 %v4714_v36 }
 0x1c7   :  { %v745_v59 = vsub.s32 32, %v744_v54  ;;  %v749_v62 = vsub.s32 4294967266, %v744_v54  ;;  %v5019_v14 = vmul.u32.u64.low %v4982_v26, %v2368_v6  ;;  %v5020_v48 = vmul.u32.u64.high %v4982_v26, %v2368_v6, %v5019_v14 }
 0x1c8   :  { %v5023_v8 = vmul.u32.u64.low %v4982_v26, %v2364_v12  ;;  %v5024_v37 = vmul.u32.u64.high %v4982_v26, %v2364_v12, %v5023_v8  ;;  %v746_v18 = vshll.u32 %v4980_v61, %v744_v54  ;;  %v788_v10 = vsel %vm787_vm3, %v786_v63, 0 }
 0x1c9   :  { %v747_v27 = vshrl.u32 %v729_v47, %v745_v59  ;;  %v750_v1 = vadd.s32 127, %v749_v62  ;;  %vm2312_vm5 = vcmp.lt.s32.totalorder %v4972_v23, 2  ;;  %vm2313_vm6 = vcmp.eq.s32.totalorder %v4972_v23, 0 }
 0x1ca   :  { %v2360_v9 = vsel %vm2354_vm14, %v2357_v22, %v2359_v56  ;;  %v790_v46 = vand.u32 31, %v788_v10  ;;  %vm2316_vm7 = vcmp.eq.s32.totalorder %v4972_v23, 2  ;;  %v760_v60 = vsel %vm675_vm12, %v759_v3, %v4969_v24 }
 0x1cb   :  { %v3960_v50 = vpop.eup %3959  ;;  %v748_v38 = vor.u32 %v747_v27, %v746_v18  ;;  %v751_v57 = vshll.u32 %v750_v1, 23  ;;  %vm2378_vm8 = vc.u32 %v5020_v48, %v5023_v8  ;;  %v2379_v63 = vadd.s32 1, %v5024_v37 }
 0x1cc   :  { %v3962_v61 = vpop.eup %3961  ;;  %v2317_v47 = vxor.u32 2147483648, %v3960_v50  ;;  %v784_v41 = vor.u32 8388608, %v4976_v0  ;;  %v2376_v43 = vmul.u32 %v4982_v26, %v2360_v9  ;;  %v791_v51 = vsub.s32 32, %v790_v46 }
 0x1cd   :  { %v2314_v44 = vxor.u32 2147483648, %v3962_v61  ;;  %v752_v49 = vor.u32 4788187, %v751_v57  ;;  %v762_v29 = vsel %vm5006_vm1, 0, %v760_v60  ;;  %v2380_v24 = vsel %vm2378_vm8, %v2379_v63, %v5024_v37 }
 0x1ce   :  { %v2318_v45 = vsel %vm2316_vm7, %v2317_v47, %v3962_v61  ;;  %v5045_v3 = vadd.f32 %v4592_v4, %v4206_v35  ;;  %v755_v0 = vcvt.s32.f32 %v748_v38  ;;  %v2381_v20 = vadd.s32 %v2380_v24, %v2376_v43 }
 0x1cf   :  { %v2315_v30 = vsel %vm2313_vm6, %v3960_v50, %v2314_v44  ;;  %v753_v13 = vand.u32 2147483647, %v752_v49  ;;  %v5051_v32 = vshrl.u32 %v788_v10, 5  ;;  %v794_v22 = vshrl.u32 %v4085_v15, %v791_v51 }
 0x1d0   :  { %v2319_v26 = vsel %vm2312_vm5, %v2315_v30, %v2318_v45  ;;  %v797_v39 = vshrl.u32 %v4086_v17, %v791_v51  ;;  %v2382_v54 = vadd.s32 536870912, %v2381_v20  ;;  %v800_v12 = vshrl.u32 %v4087_v19, %v791_v51 }
 0x1d1   :  { %v2320_v42 = vsel %vm2310_vm4, nan, %v2319_v26  ;;  %v756_v4 = vmul.f32 %v755_v0, %v753_v13  ;;  %v793_v59 = vshll.u32 %v4084_v11, %v790_v46  ;;  %v796_v62 = vshll.u32 %v4085_v15, %v790_v46 }
 0x1d2   :  { %v3576_v55 = vmul.f32 0.088388346, %v2320_v42  ;;  %v799_v23 = vshll.u32 %v4086_v17, %v790_v46  ;;  %v2383_v6 = vshrl.u32 %v2382_v54, 30  ;;  %v802_v14 = vshll.u32 %v4087_v19, %v790_v46 }
 0x1d3   :  { %v757_v56 = vxor.u32 2147483648, %v756_v4  ;;  %v803_v37 = vshrl.u32 %v4088_v21, %v791_v51  ;;  %v795_v36 = vor.u32 %v794_v22, %v793_v59  ;;  %v798_v18 = vor.u32 %v797_v39, %v796_v62 }
 0x1d4   :  { %3608 = vst [vmem:[#allocation2 + $0x98] sm:$0xff] %v3576_v55  ;;  %v805_v27 = vshll.u32 %v4088_v21, %v790_v46  ;;  %v806_v1 = vshrl.u32 %v4089_v28, %v791_v51  ;;  %v2384_v9 = vshll.u32 %v2383_v6, 30  ;;  %v801_v50 = vor.u32 %v800_v12, %v799_v23  ;;  %v5176_v23 = vpop.f32.mrb[9].mxu0 }
 0x1d5   :  { %v758_v10 = vsel %vm675_vm12, %v757_v56, %v756_v4  ;;  %v804_v38 = vor.u32 %v803_v37, %v802_v14  ;;  %v5070_v60 = vand.u32 3, %v762_v29  ;;  %v5072_v47 = vshll.u32 %v784_v41, 8 }
 0x1d6   :  { %v761_v57 = vsel %vm5006_vm1, %v4766_v31, %v758_v10  ;;  %v807_v61 = vor.u32 %v806_v1, %v805_v27  ;;  %v5074_v63 = vsub.s32 %v2381_v20, %v2384_v9  ;;  %v792_v46 = vshrl.u32 %v4084_v11, %v791_v51  ;;  %v5124_v10 = vpop.f32.mrb[8].mxu1 }
 0x1d7   :  { %3963 = vcosq.f32 %v761_v57  ;;  %v2427_v44 = vand.u32 2139095040, %v5045_v3  ;;  %vm808_vm9 = vcmp.lt.s32.totalorder %v5051_v32, 1  ;;  %vm810_vm10 = vcmp.lt.s32.totalorder %v5051_v32, 3 }
 0x1d8   :  { %3965 = vsinq.f32 %v761_v57  ;;  %vm811_vm11 = vcmp.lt.s32.totalorder %v5051_v32, 4  ;;  %v2387_v53 = vsub.s32 0, %v5074_v63  ;;  %v816_v43 = vsel %vm808_vm9, %v795_v36, %v798_v18 }
 0x1d9   :  { %v813_v49 = vsel %vm811_vm11, %v801_v50, 2102212464  ;;  %v817_v41 = vsel %vm811_vm11, %v804_v38, 920167782  ;;  %v820_v29 = vsel %vm808_vm9, %v798_v18, %v801_v50  ;;  %v821_v24 = vsel %vm811_vm11, %v807_v61, 1326507024 }
 0x1da   :  { %v818_v45 = vsel %vm810_vm10, %v801_v50, %v817_v41  ;;  %v2424_v51 = vand.u32 2147483647, %v5045_v3  ;;  %v3734_v30 = vmin.u32 %v2387_v53, %v5074_v63  ;;  %v2407_v13 = vsub.s32 4, %v2383_v6 }
 0x1db   :  { %vm809_vm12 = vcmp.lt.s32.totalorder %v5051_v32, 2  ;;  %v812_v0 = vsel %vm808_vm9, %v792_v46, %v795_v36  ;;  %v814_v20 = vsel %vm810_vm10, %v798_v18, %v813_v49  ;;  %v822_v22 = vsel %vm810_vm10, %v804_v38, %v821_v24 }
 0x1dc   :  { %v819_v26 = vsel %vm809_vm12, %v816_v43, %v818_v45  ;;  %v2428_v39 = vshrl.u32 %v2427_v44, 23  ;;  %v2389_v42 = vclz %v3734_v30  ;;  %v823_v4 = vsel %vm809_vm12, %v820_v29, %v822_v22 }
 0x1dd   :  { %v5096_v54 = vmul.u32.u64.low %v5072_v47, %v819_v26  ;;  %v5097_v12 = vmul.u32.u64.high %v5072_v47, %v819_v26, %v5096_v54  ;;  %vm765_vm13 = vweird.f32 %v4766_v31  ;;  %vm2323_vm14 = vcmp.lt.s32.totalorder %v4902_v33, 0 }
 0x1de   :  { %v5103_v55 = vmul.u32.u64.low %v5072_v47, %v823_v4  ;;  %v5104_v59 = vmul.u32.u64.high %v5072_v47, %v823_v4, %v5103_v55  ;;  %v3737_v62 = vadd.s32 4294967169, %v2428_v39  ;;  %vm767_vm15 = vcmp.lt.s32.totalorder %v5070_v60, 2 }
 0x1df   :  { %vm5109_vm0 = vcmp.le.f32.partialorder %v2321_v5, 0.7853982  ;;  %v3735_v56 = vadd.s32 4294967294, %v2389_v42  ;;  %v2408_v14 = vsel %vm2323_vm14, %v2407_v13, %v2383_v6  ;;  %vm768_vm1 = vcmp.eq.s32.totalorder %v5070_v60, 0 }
 0x1e0   :  { %vm771_vm2 = vcmp.eq.s32.totalorder %v5070_v60, 2  ;;  %v815_v37 = vsel %vm809_vm12, %v812_v0, %v814_v20  ;;  %v2434_v36 = vadd.s32 1, %v3737_v62  ;;  %v2377_v27 = vadd.s32 %v5023_v8, %v5020_v48 }
 0x1e1   :  { %v3964_v18 = vpop.eup %3963  ;;  %vm3736_vm3 = vcmp.lt.s32.totalorder %v3735_v56, 0  ;;  %v834_v5 = vadd.s32 1, %v5097_v12  ;;  %v2431_v1 = vand.u32 8388607, %v2424_v51  ;;  %v2410_v32 = vsel %vm5109_vm0, 0, %v2408_v14 }
 0x1e2   :  { %v3966_v6 = vpop.eup %3965  ;;  %v772_v9 = vxor.u32 2147483648, %v3964_v18  ;;  %v2392_v50 = vsel %vm3736_vm3, 0, %v3735_v56  ;;  %vm833_vm4 = vc.u32 %v5104_v59, %v5096_v54  ;;  %v831_v8 = vmul.u32 %v5072_v47, %v815_v37 }
 0x1e3   :  { %v769_v38 = vxor.u32 2147483648, %v3966_v6  ;;  %v2393_v57 = vsub.s32 32, %v2392_v50  ;;  %v2397_v48 = vsub.s32 4294967266, %v2392_v50  ;;  %v2394_v46 = vshll.u32 %v5074_v63, %v2392_v50 }
 0x1e4   :  { %v773_v61 = vsel %vm771_vm2, %v772_v9, %v3966_v6  ;;  %v835_v44 = vsel %vm833_vm4, %v834_v5, %v5097_v12  ;;  %vm2435_vm5 = vcmp.gt.s32.totalorder %v2434_v36, 0  ;;  %v2432_v29 = vor.u32 8388608, %v2431_v1 }
 0x1e5   :  { %v770_v53 = vsel %vm768_vm1, %v3964_v18, %v769_v38  ;;  %v2395_v49 = vshrl.u32 %v2377_v27, %v2393_v57  ;;  %v2398_v43 = vadd.s32 127, %v2397_v48  ;;  %v836_v41 = vadd.s32 %v835_v44, %v831_v8 }
 0x1e6   :  { %v774_v45 = vsel %vm767_vm15, %v770_v53, %v773_v61  ;;  %v2436_v24 = vsel %vm2435_vm5, %v2434_v36, 0  ;;  %v5141_v47 = vadd.f32 %v4693_v25, %v4204_v34  ;;  %v5147_v60 = vand.u32 3, %v2410_v32 }
 0x1e7   :  { %v775_v63 = vsel %vm765_vm13, nan, %v774_v45  ;;  %v2396_v30 = vor.u32 %v2395_v49, %v2394_v46  ;;  %v2399_v13 = vshll.u32 %v2398_v43, 23  ;;  %v837_v0 = vadd.s32 536870912, %v836_v41 }
 0x1e8   :  { %v3561_v20 = vmul.f32 0.088388346, %v775_v63  ;;  %v2438_v26 = vand.u32 31, %v2436_v24  ;;  %v5149_v4 = vshll.u32 %v2432_v29, 8  ;;  %v882_v31 = vand.u32 2139095040, %v5141_v47 }
 0x1e9   :  { %v2400_v22 = vor.u32 4788187, %v2399_v13  ;;  %v5145_v39 = vshrl.u32 %v837_v0, 30  ;;  %v2403_v25 = vcvt.s32.f32 %v2396_v30  ;;  %v2437_v1 = vshrl.u32 %v2436_v24, 5 }
 0x1ea   :  { %3593 = vst [vmem:[#allocation2 + $0x20] sm:$0xff] %v3561_v20  ;;  %v2439_v42 = vsub.s32 32, %v2438_v26  ;;  %v2441_v62 = vshll.u32 %v4084_v11, %v2438_v26  ;;  %v2444_v27 = vshll.u32 %v4085_v15, %v2438_v26  ;;  %v2447_v6 = vshll.u32 %v4086_v17, %v2438_v26 }
 0x1eb   :  { %v2401_v12 = vand.u32 2147483647, %v2400_v22  ;;  %v839_v55 = vshll.u32 %v5145_v39, 30  ;;  %v2450_v9 = vshll.u32 %v4087_v19, %v2438_v26  ;;  %v879_v50 = vand.u32 2147483647, %v5141_v47 }
 0x1ec   :  { %v2442_v56 = vshrl.u32 %v4085_v15, %v2439_v42  ;;  %v2445_v14 = vshrl.u32 %v4086_v17, %v2439_v42  ;;  %v2448_v37 = vshrl.u32 %v4087_v19, %v2439_v42  ;;  %v2451_v5 = vshrl.u32 %v4088_v21, %v2439_v42 }
 0x1ed   :  { %v2404_v36 = vmul.f32 %v2403_v25, %v2401_v12  ;;  %v5157_v18 = vsub.s32 %v836_v41, %v839_v55  ;;  %v2453_v46 = vshll.u32 %v4088_v21, %v2438_v26  ;;  %v2454_v44 = vshrl.u32 %v4089_v28, %v2439_v42 }
 0x1ee   :  { %v2443_v57 = vor.u32 %v2442_v56, %v2441_v62  ;;  %v2446_v48 = vor.u32 %v2445_v14, %v2444_v27  ;;  %v2449_v8 = vor.u32 %v2448_v37, %v2447_v6  ;;  %v2452_v61 = vor.u32 %v2451_v5, %v2450_v9 }
 0x1ef   :  { %v2405_v32 = vxor.u32 2147483648, %v2404_v36  ;;  %v842_v38 = vsub.s32 0, %v5157_v18  ;;  %v2440_v43 = vshrl.u32 %v4084_v11, %v2439_v42  ;;  %v883_v41 = vshrl.u32 %v882_v31, 23 }
 0x1f0   :  { %v2455_v29 = vor.u32 %v2454_v44, %v2453_v46  ;;  %vm2456_vm6 = vcmp.lt.s32.totalorder %v2437_v1, 1  ;;  %vm2457_vm7 = vcmp.lt.s32.totalorder %v2437_v1, 2  ;;  %vm2458_vm8 = vcmp.lt.s32.totalorder %v2437_v1, 3 }
 0x1f1   :  { %v2406_v53 = vsel %vm2323_vm14, %v2405_v32, %v2404_v36  ;;  %v3674_v49 = vmin.u32 %v842_v38, %v5157_v18  ;;  %vm2459_vm9 = vcmp.lt.s32.totalorder %v2437_v1, 4  ;;  %vm778_vm10 = vcmp.lt.s32.totalorder %v4939_v52, 0 }
 0x1f2   :  { %v2409_v45 = vsel %vm5109_vm0, %v4902_v33, %v2406_v53  ;;  %v2461_v63 = vsel %vm2459_vm9, %v2449_v8, 2102212464  ;;  %v2464_v30 = vsel %vm2456_vm6, %v2443_v57, %v2446_v48  ;;  %v2465_v13 = vsel %vm2459_vm9, %v2452_v61, 920167782 }
 0x1f3   :  { %3967 = vcosq.f32 %v2409_v45  ;;  %v844_v24 = vclz %v3674_v49  ;;  %v2460_v20 = vsel %vm2456_vm6, %v2440_v43, %v2443_v57  ;;  %v2466_v26 = vsel %vm2458_vm8, %v2449_v8, %v2465_v13 }
 0x1f4   :  { %3969 = vsinq.f32 %v2409_v45  ;;  %v2468_v22 = vsel %vm2456_vm6, %v2446_v48, %v2449_v8  ;;  %v2462_v42 = vsel %vm2458_vm8, %v2446_v48, %v2461_v63  ;;  %v2467_v12 = vsel %vm2457_vm7, %v2464_v30, %v2466_v26 }
 0x1f5   :  { %v3675_v0 = vadd.s32 4294967294, %v844_v24  ;;  %v2469_v25 = vsel %vm2459_vm9, %v2455_v29, 1326507024  ;;  %v3677_v55 = vadd.s32 4294967169, %v883_v41  ;;  %v832_v14 = vadd.s32 %v5096_v54, %v5104_v59 }
 0x1f6   :  { %v2470_v31 = vsel %vm2458_vm8, %v2452_v61, %v2469_v25  ;;  %v5182_v62 = vmul.u32.u64.low %v5149_v4, %v2467_v12  ;;  %v5183_v56 = vmul.u32.u64.high %v5149_v4, %v2467_v12, %v5182_v62  ;;  %v862_v9 = vsub.s32 4, %v5145_v39 }
 0x1f7   :  { %vm3676_vm11 = vcmp.lt.s32.totalorder %v3675_v0, 0  ;;  %v2471_v36 = vsel %vm2457_vm7, %v2468_v22, %v2470_v31  ;;  %v889_v27 = vadd.s32 1, %v3677_v55  ;;  %v2463_v32 = vsel %vm2457_vm7, %v2460_v20, %v2462_v42 }
 0x1f8   :  { %v847_v37 = vsel %vm3676_vm11, 0, %v3675_v0  ;;  %vm2413_vm12 = vweird.f32 %v4902_v33  ;;  %v5194_v57 = vmul.u32.u64.low %v5149_v4, %v2471_v36  ;;  %v5195_v48 = vmul.u32.u64.high %v5149_v4, %v2471_v36, %v5194_v57 }
 0x1f9   :  { %v848_v5 = vsub.s32 32, %v847_v37  ;;  %v852_v6 = vsub.s32 4294967266, %v847_v37  ;;  %v849_v38 = vshll.u32 %v5157_v18, %v847_v37  ;;  %vm890_vm13 = vcmp.gt.s32.totalorder %v889_v27, 0 }
 0x1fa   :  { %v2482_v8 = vadd.s32 1, %v5183_v56  ;;  %v891_v61 = vsel %vm890_vm13, %v889_v27, 0  ;;  %vm2415_vm14 = vcmp.lt.s32.totalorder %v5147_v60, 2  ;;  %vm5201_vm15 = vcmp.le.f32.partialorder %v776_v40, 0.7853982 }
 0x1fb   :  { %v850_v54 = vshrl.u32 %v832_v14, %v848_v5  ;;  %v853_v59 = vadd.s32 127, %v852_v6  ;;  %v886_v18 = vand.u32 8388607, %v879_v50  ;;  %v893_v46 = vand.u32 31, %v891_v61 }
 0x1fc   :  { %vm2416_vm0 = vcmp.eq.s32.totalorder %v5147_v60, 0  ;;  %v863_v43 = vsel %vm778_vm10, %v862_v9, %v5145_v39  ;;  %v2479_v40 = vmul.u32 %v5149_v4, %v2463_v32  ;;  %vm2481_vm1 = vc.u32 %v5195_v48, %v5182_v62 }
 0x1fd   :  { %v3968_v44 = vpop.eup %3967  ;;  %v851_v53 = vor.u32 %v850_v54, %v849_v38  ;;  %v854_v49 = vshll.u32 %v853_v59, 23  ;;  %v894_v29 = vsub.s32 32, %v893_v46  ;;  %vm2419_vm2 = vcmp.eq.s32.totalorder %v5147_v60, 2 }
 0x1fe   :  { %v3970_v41 = vpop.eup %3969  ;;  %v2420_v45 = vxor.u32 2147483648, %v3968_v44  ;;  %v2483_v30 = vsel %vm2481_vm1, %v2482_v8, %v5183_v56  ;;  %v887_v20 = vor.u32 8388608, %v886_v18  ;;  %v5218_v39 = vadd.f32 %v4756_v58, %v4204_v34 }
 0x1ff   :  { %v2417_v24 = vxor.u32 2147483648, %v3970_v41  ;;  %v855_v63 = vor.u32 4788187, %v854_v49  ;;  %v2484_v0 = vadd.s32 %v2483_v30, %v2479_v40  ;;  %v858_v22 = vcvt.s32.f32 %v851_v53 }
 0x200   :  { %v2421_v13 = vsel %vm2419_vm2, %v2420_v45, %v3970_v41  ;;  %v865_v42 = vsel %vm5201_vm15, 0, %v863_v43  ;;  %v897_v55 = vshrl.u32 %v4085_v15, %v894_v29  ;;  %v900_v31 = vshrl.u32 %v4086_v17, %v894_v29 }
 0x201   :  { %v2418_v4 = vsel %vm2416_vm0, %v3968_v44, %v2417_v24  ;;  %v856_v26 = vand.u32 2147483647, %v855_v63  ;;  %v2485_v25 = vadd.s32 536870912, %v2484_v0  ;;  %v892_v14 = vshrl.u32 %v891_v61, 5 }
 0x202   :  { %v2422_v12 = vsel %vm2415_vm14, %v2418_v4, %v2421_v13  ;;  %v903_v37 = vshrl.u32 %v4087_v19, %v894_v29  ;;  %v896_v5 = vshll.u32 %v4084_v11, %v893_v46  ;;  %v899_v60 = vshll.u32 %v4085_v15, %v893_v46 }
 0x203   :  { %v2423_v58 = vsel %vm2413_vm12, nan, %v2422_v12  ;;  %v859_v56 = vmul.f32 %v858_v22, %v856_v26  ;;  %v5231_v27 = vshrl.u32 %v2485_v25, 30  ;;  %v902_v9 = vshll.u32 %v4086_v17, %v893_v46 }
 0x204   :  { %v3577_v36 = vmul.f32 0.088388346, %v2423_v58  ;;  %v905_v32 = vshll.u32 %v4087_v19, %v893_v46  ;;  %v906_v38 = vshrl.u32 %v4088_v21, %v894_v29  ;;  %v898_v57 = vor.u32 %v897_v55, %v896_v5 }
 0x205   :  { %v860_v6 = vxor.u32 2147483648, %v859_v56  ;;  %v2487_v33 = vshll.u32 %v5231_v27, 30  ;;  %v901_v54 = vor.u32 %v900_v31, %v899_v60  ;;  %v909_v59 = vshrl.u32 %v4089_v28, %v894_v29 }
 0x206   :  { %3609 = vst [vmem:[#allocation2 + $0xa0] sm:$0xff] %v3577_v36  ;;  %v904_v61 = vor.u32 %v903_v37, %v902_v9  ;;  %v907_v18 = vor.u32 %v906_v38, %v905_v32  ;;  %v908_v44 = vshll.u32 %v4088_v21, %v893_v46  ;;  %v5246_v49 = vand.u32 3, %v865_v42 }
 0x207   :  { %v861_v8 = vsel %vm778_vm10, %v860_v6, %v859_v56  ;;  %v5248_v43 = vsub.s32 %v2484_v0, %v2487_v33  ;;  %v5250_v45 = vshll.u32 %v887_v20, 8  ;;  %v2530_v40 = vand.u32 2139095040, %v5218_v39  ;;  %v5287_v33 = vpop.f32.mrb[9].mxu1 }
 0x208   :  { %v864_v53 = vsel %vm5201_vm15, %v4939_v52, %v861_v8  ;;  %v910_v41 = vor.u32 %v909_v59, %v908_v44  ;;  %vm2426_vm3 = vcmp.lt.s32.totalorder %v5045_v3, 0  ;;  %vm911_vm4 = vcmp.lt.s32.totalorder %v892_v14, 1 }
 0x209   :  { %3971 = vcosq.f32 %v864_v53  ;;  %v2490_v24 = vsub.s32 0, %v5248_v43  ;;  %vm914_vm5 = vcmp.lt.s32.totalorder %v892_v14, 4  ;;  %v895_v1 = vshrl.u32 %v4084_v11, %v894_v29 }
 0x20a   :  { %3973 = vsinq.f32 %v864_v53  ;;  %v916_v46 = vsel %vm914_vm5, %v904_v61, 2102212464  ;;  %v919_v63 = vsel %vm911_vm4, %v898_v57, %v901_v54  ;;  %v920_v30 = vsel %vm914_vm5, %v907_v18, 920167782 }
 0x20b   :  { %v3738_v13 = vmin.u32 %v2490_v24, %v5248_v43  ;;  %v2510_v0 = vsub.s32 4, %v5231_v27  ;;  %vm913_vm6 = vcmp.lt.s32.totalorder %v892_v14, 3  ;;  %v923_v20 = vsel %vm911_vm4, %v901_v54, %v904_v61 }
 0x20c   :  { %vm912_vm7 = vcmp.lt.s32.totalorder %v892_v14, 2  ;;  %v915_v4 = vsel %vm911_vm4, %v895_v1, %v898_v57  ;;  %v921_v26 = vsel %vm913_vm6, %v904_v61, %v920_v30  ;;  %v924_v22 = vsel %vm914_vm5, %v910_v41, 1326507024 }
 0x20d   :  { %vm5260_vm8 = vcmp.le.f32.partialorder %v2424_v51, 0.7853982  ;;  %v2492_v29 = vclz %v3738_v13  ;;  %v917_v12 = vsel %vm913_vm6, %v901_v54, %v916_v46  ;;  %v922_v25 = vsel %vm912_vm7, %v919_v63, %v921_v26 }
 0x20e   :  { %v925_v55 = vsel %vm913_vm6, %v907_v18, %v924_v22  ;;  %v5267_v58 = vmul.u32.u64.low %v5250_v45, %v922_v25  ;;  %v5268_v56 = vmul.u32.u64.high %v5250_v45, %v922_v25, %v5267_v58  ;;  %v2531_v37 = vshrl.u32 %v2530_v40, 23 }
 0x20f   :  { %v926_v31 = vsel %vm912_vm7, %v923_v20, %v925_v55  ;;  %vm868_vm9 = vweird.f32 %v4939_v52  ;;  %v3739_v36 = vadd.s32 4294967294, %v2492_v29  ;;  %v5278_v60 = vadd.f32 %v4835_v2, %v4206_v35 }
 0x210   :  { %v5273_v51 = vmul.u32.u64.low %v5250_v45, %v926_v31  ;;  %v5274_v5 = vmul.u32.u64.high %v5250_v45, %v926_v31, %v5273_v51  ;;  %vm870_vm10 = vcmp.lt.s32.totalorder %v5246_v49, 2  ;;  %vm871_vm11 = vcmp.eq.s32.totalorder %v5246_v49, 0 }
 0x211   :  { %v918_v6 = vsel %vm912_vm7, %v915_v4, %v917_v12  ;;  %v3741_v9 = vadd.s32 4294967169, %v2531_v37  ;;  %vm874_vm12 = vcmp.eq.s32.totalorder %v5246_v49, 2  ;;  %v2480_v32 = vadd.s32 %v5182_v62, %v5195_v48 }
 0x212   :  { %vm3740_vm13 = vcmp.lt.s32.totalorder %v3739_v36, 0  ;;  %v2527_v38 = vand.u32 2147483647, %v5218_v39  ;;  %v2511_v54 = vsel %vm2426_vm3, %v2510_v0, %v5231_v27  ;;  %v937_v14 = vadd.s32 1, %v5268_v56 }
 0x213   :  { %v3972_v57 = vpop.eup %3971  ;;  %v2495_v2 = vsel %vm3740_vm13, 0, %v3739_v36  ;;  %v2537_v59 = vadd.s32 1, %v3741_v9  ;;  %v934_v62 = vmul.u32 %v5250_v45, %v918_v6  ;;  %vm936_vm14 = vc.u32 %v5274_v5, %v5267_v58 }
 0x214   :  { %v3974_v8 = vpop.eup %3973  ;;  %v875_v61 = vxor.u32 2147483648, %v3972_v57  ;;  %v2496_v18 = vsub.s32 32, %v2495_v2  ;;  %v2500_v44 = vsub.s32 4294967266, %v2495_v2  ;;  %v2497_v53 = vshll.u32 %v5248_v43, %v2495_v2 }
 0x215   :  { %v872_v48 = vxor.u32 2147483648, %v3974_v8  ;;  %vm2538_vm15 = vcmp.gt.s32.totalorder %v2537_v59, 0  ;;  %v938_v24 = vsel %vm936_vm14, %v937_v14, %v5268_v56  ;;  %v2513_v45 = vsel %vm5260_vm8, 0, %v2511_v54 }
 0x216   :  { %v876_v41 = vsel %vm874_vm12, %v875_v61, %v3974_v8  ;;  %v2498_v27 = vshrl.u32 %v2480_v32, %v2496_v18  ;;  %v2501_v40 = vadd.s32 127, %v2500_v44  ;;  %v939_v46 = vadd.s32 %v938_v24, %v934_v62 }
 0x217   :  { %v873_v1 = vsel %vm871_vm11, %v3972_v57, %v872_v48  ;;  %v2539_v63 = vsel %vm2538_vm15, %v2537_v59, 0  ;;  %v2534_v0 = vand.u32 8388607, %v2527_v38  ;;  %v5310_v12 = vand.u32 3, %v2513_v45 }
 0x218   :  { %v877_v43 = vsel %vm870_vm10, %v873_v1, %v876_v41  ;;  %v2499_v30 = vor.u32 %v2498_v27, %v2497_v53  ;;  %v2502_v13 = vshll.u32 %v2501_v40, 23  ;;  %v940_v4 = vadd.s32 536870912, %v939_v46 }
 0x219   :  { %v878_v20 = vsel %vm868_vm9, nan, %v877_v43  ;;  %v2541_v26 = vand.u32 31, %v2539_v63  ;;  %v2535_v56 = vor.u32 8388608, %v2534_v0  ;;  %v985_v37 = vand.u32 2139095040, %v5278_v60 }
 0x21a   :  { %v3562_v22 = vmul.f32 0.088388346, %v878_v20  ;;  %v2503_v29 = vor.u32 4788187, %v2502_v13  ;;  %v941_v25 = vshrl.u32 %v940_v4, 30  ;;  %v2506_v49 = vcvt.s32.f32 %v2499_v30 }
 0x21b   :  { %v2542_v55 = vsub.s32 32, %v2541_v26  ;;  %v2540_v51 = vshrl.u32 %v2539_v63, 5  ;;  %v2544_v6 = vshll.u32 %v4084_v11, %v2541_v26  ;;  %v2547_v14 = vshll.u32 %v4085_v15, %v2541_v26 }
 0x21c   :  { %3594 = vst [vmem:[#allocation2 + $0x28] sm:$0xff] %v3562_v22  ;;  %v2504_v31 = vand.u32 2147483647, %v2503_v29  ;;  %v942_v36 = vshll.u32 %v941_v25, 30  ;;  %v2550_v59 = vshll.u32 %v4086_v17, %v2541_v26  ;;  %v2553_v18 = vshll.u32 %v4087_v19, %v2541_v26 }
 0x21d   :  { %v2545_v52 = vshrl.u32 %v4085_v15, %v2542_v55  ;;  %v2548_v32 = vshrl.u32 %v4086_v17, %v2542_v55  ;;  %v2551_v57 = vshrl.u32 %v4087_v19, %v2542_v55  ;;  %v2554_v2 = vshrl.u32 %v4088_v21, %v2542_v55 }
 0x21e   :  { %v2507_v9 = vmul.f32 %v2506_v49, %v2504_v31  ;;  %v5318_v54 = vsub.s32 %v939_v46, %v942_v36  ;;  %v2557_v8 = vshrl.u32 %v4089_v28, %v2542_v55  ;;  %v2556_v44 = vshll.u32 %v4088_v21, %v2541_v26 }
 0x21f   :  { %v5325_v62 = vshll.u32 %v2535_v56, 8  ;;  %vm881_vm0 = vcmp.lt.s32.totalorder %v5141_v47, 0  ;;  %v2546_v53 = vor.u32 %v2545_v52, %v2544_v6  ;;  %v2549_v41 = vor.u32 %v2548_v32, %v2547_v14  ;;  %v5344_v32 = vpop.f32.mrb[10].mxu0 }
 0x220   :  { %v2508_v61 = vxor.u32 2147483648, %v2507_v9  ;;  %v945_v48 = vsub.s32 0, %v5318_v54  ;;  %v2552_v27 = vor.u32 %v2551_v57, %v2550_v59  ;;  %v2555_v24 = vor.u32 %v2554_v2, %v2553_v18 }
 0x221   :  { %v2558_v1 = vor.u32 %v2557_v8, %v2556_v44  ;;  %v986_v45 = vshrl.u32 %v985_v37, 23  ;;  %v965_v43 = vsub.s32 4, %v941_v25  ;;  %vm2559_vm1 = vcmp.lt.s32.totalorder %v2540_v51, 1 }
 0x222   :  { %v2509_v40 = vsel %vm2426_vm3, %v2508_v61, %v2507_v9  ;;  %v3678_v63 = vmin.u32 %v945_v48, %v5318_v54  ;;  %v2543_v30 = vshrl.u32 %v4084_v11, %v2542_v55  ;;  %vm2560_vm2 = vcmp.lt.s32.totalorder %v2540_v51, 2 }
 0x223   :  { %v2512_v46 = vsel %vm5260_vm8, %v5045_v3, %v2509_v40  ;;  %vm2562_vm4 = vcmp.lt.s32.totalorder %v2540_v51, 4  ;;  %v2567_v20 = vsel %vm2559_vm1, %v2546_v53, %v2549_v41  ;;  %vm2561_vm3 = vcmp.lt.s32.totalorder %v2540_v51, 3 }
 0x224   :  { %3975 = vcosq.f32 %v2512_v46  ;;  %v947_v13 = vclz %v3678_v63  ;;  %v2564_v0 = vsel %vm2562_vm4, %v2552_v27, 2102212464  ;;  %v2568_v4 = vsel %vm2562_vm4, %v2555_v24, 920167782 }
 0x225   :  { %3977 = vsinq.f32 %v2512_v46  ;;  %v2571_v26 = vsel %vm2559_vm1, %v2549_v41, %v2552_v27  ;;  %v2572_v22 = vsel %vm2562_vm4, %v2558_v1, 1326507024  ;;  %v2563_v42 = vsel %vm2559_vm1, %v2543_v30, %v2546_v53 }
 0x226   :  { %v3679_v29 = vadd.s32 4294967294, %v947_v13  ;;  %v2569_v31 = vsel %vm2561_vm3, %v2552_v27, %v2568_v4  ;;  %v2573_v49 = vsel %vm2561_vm3, %v2555_v24, %v2572_v22  ;;  %v2565_v56 = vsel %vm2561_vm3, %v2549_v41, %v2564_v0 }
 0x227   :  { %v2570_v37 = vsel %vm2560_vm2, %v2567_v20, %v2569_v31  ;;  %v2574_v36 = vsel %vm2560_vm2, %v2571_v26, %v2573_v49  ;;  %v3681_v55 = vadd.s32 4294967169, %v986_v45  ;;  %v935_v6 = vadd.s32 %v5267_v58, %v5274_v5 }
 0x228   :  { %vm3680_vm5 = vcmp.lt.s32.totalorder %v3679_v29, 0  ;;  %v5341_v52 = vmul.u32.u64.low %v5325_v62, %v2574_v36  ;;  %v5342_v9 = vmul.u32.u64.high %v5325_v62, %v2574_v36, %v5341_v52  ;;  %v966_v2 = vsel %vm881_vm0, %v965_v43, %v941_v25 }
 0x229   :  { %v950_v57 = vsel %vm3680_vm5, 0, %v3679_v29  ;;  %v5349_v14 = vmul.u32.u64.low %v5325_v62, %v2570_v37  ;;  %v5350_v59 = vmul.u32.u64.high %v5325_v62, %v2570_v37, %v5349_v14  ;;  %vm2516_vm6 = vweird.f32 %v5045_v3 }
 0x22a   :  { %v951_v8 = vsub.s32 32, %v950_v57  ;;  %v955_v58 = vsub.s32 4294967266, %v950_v57  ;;  %v2566_v5 = vsel %vm2560_vm2, %v2563_v42, %v2565_v56  ;;  %v992_v61 = vadd.s32 1, %v3681_v55 }
 0x22b   :  { %vm2522_vm7 = vcmp.eq.s32.totalorder %v5310_v12, 2  ;;  %vm5358_vm8 = vcmp.le.f32.partialorder %v879_v50, 0.7853982  ;;  %v982_v25 = vand.u32 2147483647, %v5278_v60  ;;  %v5365_v44 = vadd.f32 %v4935_v7, %v4206_v35 }
 0x22c   :  { %v952_v48 = vshll.u32 %v5318_v54, %v950_v57  ;;  %v953_v53 = vshrl.u32 %v935_v6, %v951_v8  ;;  %v956_v51 = vadd.s32 127, %v955_v58  ;;  %vm2584_vm9 = vc.u32 %v5342_v9, %v5349_v14 }
 0x22d   :  { %v968_v50 = vsel %vm5358_vm8, 0, %v966_v2  ;;  %v2582_v27 = vmul.u32 %v5325_v62, %v2566_v5  ;;  %v2585_v40 = vadd.s32 1, %v5350_v59  ;;  %vm993_vm10 = vcmp.gt.s32.totalorder %v992_v61, 0 }
 0x22e   :  { %v3976_v41 = vpop.eup %3975  ;;  %v954_v7 = vor.u32 %v953_v53, %v952_v48  ;;  %v957_v45 = vshll.u32 %v956_v51, 23  ;;  %v994_v46 = vsel %vm993_vm10, %v992_v61, 0  ;;  %v989_v43 = vand.u32 8388607, %v982_v25 }
 0x22f   :  { %v3978_v24 = vpop.eup %3977  ;;  %v2523_v1 = vxor.u32 2147483648, %v3976_v41  ;;  %v2586_v63 = vsel %vm2584_vm9, %v2585_v40, %v5350_v59  ;;  %v996_v30 = vand.u32 31, %v994_v46  ;;  %vm2519_vm11 = vcmp.eq.s32.totalorder %v5310_v12, 0 }
 0x230   :  { %v2520_v54 = vxor.u32 2147483648, %v3978_v24  ;;  %v958_v13 = vor.u32 4788187, %v957_v45  ;;  %v2587_v0 = vadd.s32 %v2586_v63, %v2582_v27  ;;  %vm2518_vm12 = vcmp.lt.s32.totalorder %v5310_v12, 2 }
 0x231   :  { %v2524_v62 = vsel %vm2522_vm7, %v2523_v1, %v3978_v24  ;;  %v5381_v4 = vand.u32 3, %v968_v50  ;;  %v997_v26 = vsub.s32 32, %v996_v30  ;;  %v961_v42 = vcvt.s32.f32 %v954_v7 }
 0x232   :  { %v2521_v20 = vsel %vm2519_vm11, %v3976_v41, %v2520_v54  ;;  %v959_v29 = vand.u32 2147483647, %v958_v13  ;;  %v2588_v31 = vadd.s32 536870912, %v2587_v0  ;;  %v990_v56 = vor.u32 8388608, %v989_v43 }
 0x233   :  { %v2525_v22 = vsel %vm2518_vm12, %v2521_v20, %v2524_v62  ;;  %v1000_v37 = vshrl.u32 %v4085_v15, %v997_v26  ;;  %v1003_v36 = vshrl.u32 %v4086_v17, %v997_v26  ;;  %v1006_v12 = vshrl.u32 %v4087_v19, %v997_v26 }
 0x234   :  { %v2526_v49 = vsel %vm2516_vm6, nan, %v2525_v22  ;;  %v962_v6 = vmul.f32 %v961_v42, %v959_v29  ;;  %v5387_v52 = vshrl.u32 %v2588_v31, 30  ;;  %v995_v57 = vshrl.u32 %v994_v46, 5 }
 0x235   :  { %v3578_v55 = vmul.f32 0.088388346, %v2526_v49  ;;  %v1005_v2 = vshll.u32 %v4086_v17, %v996_v30  ;;  %v1009_v59 = vshrl.u32 %v4088_v21, %v997_v26  ;;  %v2633_v8 = vand.u32 2139095040, %v5365_v44 }
 0x236   :  { %v963_v3 = vxor.u32 2147483648, %v962_v6  ;;  %v2590_v58 = vshll.u32 %v5387_v52, 30  ;;  %v999_v5 = vshll.u32 %v4084_v11, %v996_v30  ;;  %v1002_v61 = vshll.u32 %v4085_v15, %v996_v30 }
 0x237   :  { %3610 = vst [vmem:[#allocation2 + $0xa8] sm:$0xff] %v3578_v55  ;;  %v1007_v48 = vor.u32 %v1006_v12, %v1005_v2  ;;  %v1008_v53 = vshll.u32 %v4087_v19, %v996_v30  ;;  %v1011_v51 = vshll.u32 %v4088_v21, %v996_v30  ;;  %v1012_v41 = vshrl.u32 %v4089_v28, %v997_v26 }
 0x238   :  { %v964_v50 = vsel %vm881_vm0, %v963_v3, %v962_v6  ;;  %v5401_v27 = vsub.s32 %v2587_v0, %v2590_v58  ;;  %v1001_v40 = vor.u32 %v1000_v37, %v999_v5  ;;  %v1004_v24 = vor.u32 %v1003_v36, %v1002_v61  ;;  %v5428_v58 = vpop.f32.mrb[10].mxu1 }
 0x239   :  { %v967_v1 = vsel %vm5358_vm8, %v5141_v47, %v964_v50  ;;  %v1010_v7 = vor.u32 %v1009_v59, %v1008_v53  ;;  %v1013_v45 = vor.u32 %v1012_v41, %v1011_v51  ;;  %v5406_v46 = vshll.u32 %v990_v56, 8 }
 0x23a   :  { %3979 = vcosq.f32 %v967_v1  ;;  %v2593_v54 = vsub.s32 0, %v5401_v27  ;;  %vm1017_vm13 = vcmp.lt.s32.totalorder %v995_v57, 4  ;;  %v2634_v63 = vshrl.u32 %v2633_v8, 23 }
 0x23b   :  { %3981 = vsinq.f32 %v967_v1  ;;  %v998_v43 = vshrl.u32 %v4084_v11, %v997_v26  ;;  %vm1014_vm14 = vcmp.lt.s32.totalorder %v995_v57, 1  ;;  %v1019_v30 = vsel %vm1017_vm13, %v1007_v48, 2102212464 }
 0x23c   :  { %v3742_v62 = vmin.u32 %v2593_v54, %v5401_v27  ;;  %vm1015_vm15 = vcmp.lt.s32.totalorder %v995_v57, 2  ;;  %vm1016_vm0 = vcmp.lt.s32.totalorder %v995_v57, 3  ;;  %v1022_v18 = vsel %vm1014_vm14, %v1001_v40, %v1004_v24 }
 0x23d   :  { %v1018_v13 = vsel %vm1014_vm14, %v998_v43, %v1001_v40  ;;  %v1023_v0 = vsel %vm1017_vm13, %v1010_v7, 920167782  ;;  %v1026_v20 = vsel %vm1014_vm14, %v1004_v24, %v1007_v48  ;;  %v1027_v22 = vsel %vm1017_vm13, %v1013_v45, 1326507024 }
 0x23e   :  { %v2595_v29 = vclz %v3742_v62  ;;  %v1020_v42 = vsel %vm1016_vm0, %v1004_v24, %v1019_v30  ;;  %v1024_v31 = vsel %vm1016_vm0, %v1007_v48, %v1023_v0  ;;  %v1028_v49 = vsel %vm1016_vm0, %v1010_v7, %v1027_v22 }
 0x23f   :  { %v1025_v56 = vsel %vm1015_vm15, %v1022_v18, %v1024_v31  ;;  %v1029_v37 = vsel %vm1015_vm15, %v1026_v20, %v1028_v49  ;;  %v2630_v26 = vand.u32 2147483647, %v5365_v44  ;;  %v3745_v36 = vadd.s32 4294967169, %v2634_v63 }
 0x240   :  { %vm2529_vm1 = vcmp.lt.s32.totalorder %v5218_v39, 0  ;;  %v3743_v55 = vadd.s32 4294967294, %v2595_v29  ;;  %v5416_v6 = vmul.u32.u64.low %v5406_v46, %v1029_v37  ;;  %v5417_v12 = vmul.u32.u64.high %v5406_v46, %v1029_v37, %v5416_v6 }
 0x241   :  { %v1021_v2 = vsel %vm1015_vm15, %v1018_v13, %v1020_v42  ;;  %v5421_v59 = vmul.u32.u64.low %v5406_v46, %v1025_v56  ;;  %v5422_v8 = vmul.u32.u64.high %v5406_v46, %v1025_v56, %v5421_v59  ;;  %v2640_v3 = vadd.s32 1, %v3745_v36 }
 0x242   :  { %vm973_vm2 = vcmp.lt.s32.totalorder %v5381_v4, 2  ;;  %vm974_vm4 = vcmp.eq.s32.totalorder %v5381_v4, 0  ;;  %vm977_vm3 = vcmp.eq.s32.totalorder %v5381_v4, 2  ;;  %vm3744_vm5 = vcmp.lt.s32.totalorder %v3743_v55, 0 }
 0x243   :  { %v2598_v5 = vsel %vm3744_vm5, 0, %v3743_v55  ;;  %v2613_v61 = vsub.s32 4, %v5387_v52  ;;  %v2637_v57 = vand.u32 8388607, %v2630_v26  ;;  %vm2641_vm6 = vcmp.gt.s32.totalorder %v2640_v3, 0 }
 0x244   :  { %v3980_v48 = vpop.eup %3979  ;;  %v2583_v53 = vadd.s32 %v5349_v14, %v5342_v9  ;;  %v2599_v51 = vsub.s32 32, %v2598_v5  ;;  %v2603_v41 = vsub.s32 4294967266, %v2598_v5  ;;  %v1037_v50 = vmul.u32 %v5406_v46, %v1021_v2 }
 0x245   :  { %v3982_v40 = vpop.eup %3981  ;;  %v978_v24 = vxor.u32 2147483648, %v3980_v48  ;;  %vm1039_vm7 = vc.u32 %v5417_v12, %v5421_v59  ;;  %v1040_v1 = vadd.s32 1, %v5422_v8  ;;  %v2642_v7 = vsel %vm2641_vm6, %v2640_v3, 0 }
 0x246   :  { %v975_v45 = vxor.u32 2147483648, %v3982_v40  ;;  %v2600_v54 = vshll.u32 %v5401_v27, %v2598_v5  ;;  %v2601_v63 = vshrl.u32 %v2583_v53, %v2599_v51  ;;  %v2604_v43 = vadd.s32 127, %v2603_v41 }
 0x247   :  { %v979_v9 = vsel %vm977_vm3, %v978_v24, %v3982_v40  ;;  %v2614_v14 = vsel %vm2529_vm1, %v2613_v61, %v5387_v52  ;;  %v1041_v46 = vsel %vm1039_vm7, %v1040_v1, %v5422_v8  ;;  %v2644_v30 = vand.u32 31, %v2642_v7 }
 0x248   :  { %v976_v62 = vsel %vm974_vm4, %v3980_v48, %v975_v45  ;;  %v2602_v18 = vor.u32 %v2601_v63, %v2600_v54  ;;  %v2605_v13 = vshll.u32 %v2604_v43, 23  ;;  %v1042_v0 = vadd.s32 %v1041_v46, %v1037_v50 }
 0x249   :  { %vm971_vm8 = vweird.f32 %v5141_v47  ;;  %v980_v27 = vsel %vm973_vm2, %v976_v62, %v979_v9  ;;  %vm5453_vm9 = vcmp.le.f32.partialorder %v2527_v38, 0.7853982  ;;  %v2645_v52 = vsub.s32 32, %v2644_v30 }
 0x24a   :  { %v981_v22 = vsel %vm971_vm8, nan, %v980_v27  ;;  %v2606_v29 = vor.u32 4788187, %v2605_v13  ;;  %v1043_v42 = vadd.s32 536870912, %v1042_v0  ;;  %v2638_v31 = vor.u32 8388608, %v2637_v57 }
 0x24b   :  { %v3563_v49 = vmul.f32 0.088388346, %v981_v22  ;;  %v2616_v56 = vsel %vm5453_vm9, 0, %v2614_v14  ;;  %v2648_v47 = vshrl.u32 %v4085_v15, %v2645_v52  ;;  %v2651_v4 = vshrl.u32 %v4086_v17, %v2645_v52 }
 0x24c   :  { %v2607_v37 = vand.u32 2147483647, %v2606_v29  ;;  %v2609_v36 = vcvt.s32.f32 %v2602_v18  ;;  %v5461_v55 = vshrl.u32 %v1043_v42, 30  ;;  %v2654_v38 = vshrl.u32 %v4087_v19, %v2645_v52 }
 0x24d   :  { %3595 = vst [vmem:[#allocation2 + $0x30] sm:$0xff] %v3563_v49  ;;  %v2647_v6 = vshll.u32 %v4084_v11, %v2644_v30  ;;  %v2650_v2 = vshll.u32 %v4085_v15, %v2644_v30  ;;  %v2656_v8 = vshll.u32 %v4087_v19, %v2644_v30  ;;  %v2657_v3 = vshrl.u32 %v4088_v21, %v2645_v52 }
 0x24e   :  { %v2610_v5 = vmul.f32 %v2609_v36, %v2607_v37  ;;  %v1045_v61 = vshll.u32 %v5461_v55, 30  ;;  %v2643_v57 = vshrl.u32 %v2642_v7, 5  ;;  %v2653_v48 = vshll.u32 %v4086_v17, %v2644_v30 }
 0x24f   :  { %v2649_v53 = vor.u32 %v2648_v47, %v2647_v6  ;;  %v2652_v51 = vor.u32 %v2651_v4, %v2650_v2  ;;  %v2658_v41 = vor.u32 %v2657_v3, %v2656_v8  ;;  %v2660_v50 = vshrl.u32 %v4089_v28, %v2645_v52  ;;  %v5504_v47 = vpop.f32.mrb[11].mxu0 }
 0x250   :  { %v2611_v40 = vxor.u32 2147483648, %v2610_v5  ;;  %v5471_v24 = vsub.s32 %v1042_v0, %v1045_v61  ;;  %v2655_v1 = vor.u32 %v2654_v38, %v2653_v48  ;;  %v5473_v45 = vand.u32 3, %v2616_v56 }
 0x251   :  { %v2646_v54 = vshrl.u32 %v4084_v11, %v2645_v52  ;;  %v2659_v63 = vshll.u32 %v4088_v21, %v2644_v30  ;;  %v5477_v43 = vshll.u32 %v2638_v31, 8  ;;  %vm2662_vm10 = vcmp.lt.s32.totalorder %v2643_v57, 1 }
 0x252   :  { %v2612_v7 = vsel %vm2529_vm1, %v2611_v40, %v2610_v5  ;;  %v1048_v9 = vsub.s32 0, %v5471_v24  ;;  %vm2665_vm11 = vcmp.lt.s32.totalorder %v2643_v57, 4  ;;  %v2670_v62 = vsel %vm2662_vm10, %v2649_v53, %v2652_v51 }
 0x253   :  { %v2615_v14 = vsel %vm5453_vm9, %v5218_v39, %v2612_v7  ;;  %v2661_v46 = vor.u32 %v2660_v50, %v2659_v63  ;;  %v2671_v18 = vsel %vm2665_vm11, %v2658_v41, 920167782  ;;  %vm2664_vm12 = vcmp.lt.s32.totalorder %v2643_v57, 3 }
 0x254   :  { %3983 = vcosq.f32 %v2615_v14  ;;  %v3682_v30 = vmin.u32 %v1048_v9, %v5471_v24  ;;  %v2667_v13 = vsel %vm2665_vm11, %v2655_v1, 2102212464  ;;  %vm2663_vm13 = vcmp.lt.s32.totalorder %v2643_v57, 2 }
 0x255   :  { %3985 = vsinq.f32 %v2615_v14  ;;  %v2672_v0 = vsel %vm2664_vm12, %v2655_v1, %v2671_v18  ;;  %v5492_v27 = vadd.f32 %v5013_v16, %v4204_v34  ;;  %v2666_v52 = vsel %vm2662_vm10, %v2646_v54, %v2649_v53 }
 0x256   :  { %v1050_v20 = vclz %v3682_v30  ;;  %v2673_v22 = vsel %vm2663_vm13, %v2670_v62, %v2672_v0  ;;  %v2674_v29 = vsel %vm2662_vm10, %v2652_v51, %v2655_v1  ;;  %v2668_v42 = vsel %vm2664_vm12, %v2652_v51, %v2667_v13 }
 0x257   :  { %v2675_v31 = vsel %vm2665_vm11, %v2661_v46, 1326507024  ;;  %v5500_v49 = vmul.u32.u64.low %v5477_v43, %v2673_v22  ;;  %v5501_v56 = vmul.u32.u64.high %v5477_v43, %v2673_v22, %v5500_v49  ;;  %vm984_vm14 = vcmp.lt.s32.totalorder %v5278_v60, 0 }
 0x258   :  { %v3683_v16 = vadd.s32 4294967294, %v1050_v20  ;;  %v2676_v4 = vsel %vm2664_vm12, %v2658_v41, %v2675_v31  ;;  %vm5510_vm15 = vcmp.le.f32.partialorder %v982_v25, 0.7853982  ;;  %v1068_v36 = vsub.s32 4, %v5461_v55 }
 0x259   :  { %v2677_v38 = vsel %vm2663_vm13, %v2674_v29, %v2676_v4  ;;  %v1088_v6 = vand.u32 2139095040, %v5492_v27  ;;  %v5519_v2 = vadd.f32 %v5124_v10, %v4204_v34  ;;  %v2669_v8 = vsel %vm2663_vm13, %v2666_v52, %v2668_v42 }
 0x25a   :  { %vm3684_vm0 = vcmp.lt.s32.totalorder %v3683_v16, 0  ;;  %v5523_v3 = vmul.u32.u64.low %v5477_v43, %v2677_v38  ;;  %v5524_v5 = vmul.u32.u64.high %v5477_v43, %v2677_v38, %v5523_v3  ;;  %vm2619_vm1 = vweird.f32 %v5218_v39 }
 0x25b   :  { %vm2625_vm2 = vcmp.eq.s32.totalorder %v5473_v45, 2  ;;  %v1053_v25 = vsel %vm3684_vm0, 0, %v3683_v16  ;;  %v2688_v61 = vadd.s32 1, %v5501_v56  ;;  %v1089_v48 = vshrl.u32 %v1088_v6, 23 }
 0x25c   :  { %v1038_v53 = vadd.s32 %v5421_v59, %v5417_v12  ;;  %v1054_v10 = vsub.s32 32, %v1053_v25  ;;  %v1058_v51 = vsub.s32 4294967266, %v1053_v25  ;;  %v1085_v57 = vand.u32 2147483647, %v5492_v27 }
 0x25d   :  { %v1069_v41 = vsel %vm984_vm14, %v1068_v36, %v5461_v55  ;;  %v2685_v50 = vmul.u32 %v5477_v43, %v2669_v8  ;;  %v3685_v40 = vadd.s32 4294967169, %v1089_v48  ;;  %v2736_v1 = vand.u32 2139095040, %v5519_v2 }
 0x25e   :  { %v3984_v54 = vpop.eup %3983  ;;  %v1055_v63 = vshll.u32 %v5471_v24, %v1053_v25  ;;  %v1056_v7 = vshrl.u32 %v1038_v53, %v1054_v10  ;;  %v1059_v9 = vadd.s32 127, %v1058_v51  ;;  %vm2687_vm4 = vc.u32 %v5524_v5, %v5500_v49 }
 0x25f   :  { %v3986_v12 = vpop.eup %3985  ;;  %v2626_v59 = vxor.u32 2147483648, %v3984_v54  ;;  %v2689_v14 = vsel %vm2687_vm4, %v2688_v61, %v5501_v56  ;;  %v1095_v46 = vadd.s32 1, %v3685_v40  ;;  %v2737_v62 = vshrl.u32 %v2736_v1, 23 }
 0x260   :  { %v2623_v55 = vxor.u32 2147483648, %v3986_v12  ;;  %v1057_v18 = vor.u32 %v1056_v7, %v1055_v63  ;;  %v1060_v43 = vshll.u32 %v1059_v9, 23  ;;  %v2690_v30 = vadd.s32 %v2689_v14, %v2685_v50 }
 0x261   :  { %vm2621_vm3 = vcmp.lt.s32.totalorder %v5473_v45, 2  ;;  %vm2622_vm5 = vcmp.eq.s32.totalorder %v5473_v45, 0  ;;  %v2627_v24 = vsel %vm2625_vm2, %v2626_v59, %v3986_v12  ;;  %vm1096_vm6 = vcmp.gt.s32.totalorder %v1095_v46, 0 }
 0x262   :  { %v2624_v13 = vsel %vm2622_vm5, %v3984_v54, %v2623_v55  ;;  %v1061_v0 = vor.u32 4788187, %v1060_v43  ;;  %v1071_v20 = vsel %vm5510_vm15, 0, %v1069_v41  ;;  %v2691_v52 = vadd.s32 536870912, %v2690_v30 }
 0x263   :  { %v2628_v22 = vsel %vm2621_vm3, %v2624_v13, %v2627_v24  ;;  %v1092_v29 = vand.u32 8388607, %v1085_v57  ;;  %v1097_v42 = vsel %vm1096_vm6, %v1095_v46, 0  ;;  %v3749_v31 = vadd.s32 4294967169, %v2737_v62 }
 0x264   :  { %v2629_v56 = vsel %vm2619_vm1, nan, %v2628_v22  ;;  %v1062_v16 = vand.u32 2147483647, %v1061_v0  ;;  %v1064_v4 = vcvt.s32.f32 %v1057_v18  ;;  %v5551_v45 = vshrl.u32 %v2691_v52, 30 }
 0x265   :  { %v3579_v36 = vmul.f32 0.088388346, %v2629_v56  ;;  %v1099_v38 = vand.u32 31, %v1097_v42  ;;  %v5553_v8 = vand.u32 3, %v1071_v20  ;;  %v1093_v25 = vor.u32 8388608, %v1092_v29 }
 0x266   :  { %v1065_v6 = vmul.f32 %v1064_v4, %v1062_v16  ;;  %v2693_v3 = vshll.u32 %v5551_v45, 30  ;;  %v2733_v48 = vand.u32 2147483647, %v5519_v2  ;;  %v2743_v53 = vadd.s32 1, %v3749_v31 }
 0x267   :  { %3611 = vst [vmem:[#allocation2 + $0xb0] sm:$0xff] %v3579_v36  ;;  %v1100_v61 = vsub.s32 32, %v1099_v38  ;;  %v1098_v51 = vshrl.u32 %v1097_v42, 5  ;;  %v1102_v41 = vshll.u32 %v4084_v11, %v1099_v38  ;;  %v1105_v40 = vshll.u32 %v4085_v15, %v1099_v38 }
 0x268   :  { %v1066_v10 = vxor.u32 2147483648, %v1065_v6  ;;  %v5557_v39 = vsub.s32 %v2690_v30, %v2693_v3  ;;  %v1108_v54 = vshll.u32 %v4086_v17, %v1099_v38  ;;  %v1111_v12 = vshll.u32 %v4087_v19, %v1099_v38 }
 0x269   :  { %v1103_v50 = vshrl.u32 %v4085_v15, %v1100_v61  ;;  %v1106_v1 = vshrl.u32 %v4086_v17, %v1100_v61  ;;  %v1109_v9 = vshrl.u32 %v4087_v19, %v1100_v61  ;;  %v1112_v62 = vshrl.u32 %v4088_v21, %v1100_v61 }
 0x26a   :  { %v1067_v63 = vsel %vm984_vm14, %v1066_v10, %v1065_v6  ;;  %v2696_v7 = vsub.s32 0, %v5557_v39  ;;  %v5574_v18 = vshll.u32 %v1093_v25, 8  ;;  %vm2744_vm7 = vcmp.gt.s32.totalorder %v2743_v53, 0 }
 0x26b   :  { %v1070_v59 = vsel %vm5510_vm15, %v5278_v60, %v1067_v63  ;;  %v1104_v14 = vor.u32 %v1103_v50, %v1102_v41  ;;  %v1107_v46 = vor.u32 %v1106_v1, %v1105_v40  ;;  %v1110_v43 = vor.u32 %v1109_v9, %v1108_v54  ;;  %v5599_v54 = vpop.f32.mrb[11].mxu1 }
 0x26c   :  { %3987 = vcosq.f32 %v1070_v59  ;;  %v3746_v55 = vmin.u32 %v2696_v7, %v5557_v39  ;;  %v1113_v30 = vor.u32 %v1112_v62, %v1111_v12  ;;  %vm1117_vm8 = vcmp.lt.s32.totalorder %v1098_v51, 1 }
 0x26d   :  { %3989 = vsinq.f32 %v1070_v59  ;;  %v1101_v13 = vshrl.u32 %v4084_v11, %v1100_v61  ;;  %v1114_v37 = vshll.u32 %v4088_v21, %v1099_v38  ;;  %v1115_v0 = vshrl.u32 %v4089_v28, %v1100_v61 }
 0x26e   :  { %v2698_v24 = vclz %v3746_v55  ;;  %vm1118_vm9 = vcmp.lt.s32.totalorder %v1098_v51, 2  ;;  %vm1119_vm10 = vcmp.lt.s32.totalorder %v1098_v51, 3  ;;  %vm1120_vm11 = vcmp.lt.s32.totalorder %v1098_v51, 4 }
 0x26f   :  { %v1125_v20 = vsel %vm1117_vm8, %v1104_v14, %v1107_v46  ;;  %vm2632_vm12 = vcmp.lt.s32.totalorder %v5365_v44, 0  ;;  %v1116_v22 = vor.u32 %v1115_v0, %v1114_v37  ;;  %v1122_v29 = vsel %vm1120_vm11, %v1110_v43, 2102212464 }
 0x270   :  { %v3747_v52 = vadd.s32 4294967294, %v2698_v24  ;;  %v1126_v42 = vsel %vm1120_vm11, %v1113_v30, 920167782  ;;  %vm1077_vm13 = vcmp.eq.s32.totalorder %v5553_v8, 0  ;;  %v1121_v31 = vsel %vm1117_vm8, %v1101_v13, %v1104_v14 }
 0x271   :  { %v1123_v56 = vsel %vm1119_vm10, %v1107_v46, %v1122_v29  ;;  %v1127_v16 = vsel %vm1119_vm10, %v1110_v43, %v1126_v42  ;;  %v1129_v4 = vsel %vm1117_vm8, %v1107_v46, %v1110_v43  ;;  %vm1076_vm14 = vcmp.lt.s32.totalorder %v5553_v8, 2 }
 0x272   :  { %vm3748_vm15 = vcmp.lt.s32.totalorder %v3747_v52, 0  ;;  %v1128_v36 = vsel %vm1118_vm9, %v1125_v20, %v1127_v16  ;;  %v1130_v38 = vsel %vm1120_vm11, %v1116_v22, 1326507024  ;;  %v2745_v6 = vsel %vm2744_vm7, %v2743_v53, 0 }
 0x273   :  { %vm1074_vm0 = vweird.f32 %v5278_v60  ;;  %v2701_v3 = vsel %vm3748_vm15, 0, %v3747_v52  ;;  %v1131_v25 = vsel %vm1119_vm10, %v1113_v30, %v1130_v38  ;;  %v2686_v41 = vadd.s32 %v5500_v49, %v5524_v5 }
 0x274   :  { %v5592_v61 = vmul.u32.u64.low %v5574_v18, %v1128_v36  ;;  %v5593_v10 = vmul.u32.u64.high %v5574_v18, %v1128_v36, %v5592_v61  ;;  %v2702_v50 = vsub.s32 32, %v2701_v3  ;;  %v2706_v40 = vsub.s32 4294967266, %v2701_v3 }
 0x275   :  { %v1132_v1 = vsel %vm1118_vm9, %v1129_v4, %v1131_v25  ;;  %v2716_v53 = vsub.s32 4, %v5551_v45  ;;  %v1124_v63 = vsel %vm1118_vm9, %v1121_v31, %v1123_v56  ;;  %v2703_v59 = vshll.u32 %v5557_v39, %v2701_v3 }
 0x276   :  { %v5604_v7 = vmul.u32.u64.low %v5574_v18, %v1132_v1  ;;  %v5605_v9 = vmul.u32.u64.high %v5574_v18, %v1132_v1, %v5604_v7  ;;  %v3988_v12 = vpop.eup %3987  ;;  %v2704_v14 = vshrl.u32 %v2686_v41, %v2702_v50  ;;  %v2707_v46 = vadd.s32 127, %v2706_v40 }
 0x277   :  { %v2747_v49 = vand.u32 31, %v2745_v6  ;;  %v3990_v5 = vpop.eup %3989  ;;  %vm1080_vm1 = vcmp.eq.s32.totalorder %v5553_v8, 2  ;;  %v1081_v62 = vxor.u32 2147483648, %v3988_v12  ;;  %v1143_v55 = vadd.s32 1, %v5593_v10 }
 0x278   :  { %v2740_v51 = vand.u32 8388607, %v2733_v48  ;;  %v1078_v43 = vxor.u32 2147483648, %v3990_v5  ;;  %vm5614_vm2 = vcmp.le.f32.partialorder %v2630_v26, 0.7853982  ;;  %v2705_v39 = vor.u32 %v2704_v14, %v2703_v59 }
 0x279   :  { %v2708_v24 = vshll.u32 %v2707_v46, 23  ;;  %v2748_v13 = vsub.s32 32, %v2747_v49  ;;  %v1082_v37 = vsel %vm1080_vm1, %v1081_v62, %v3990_v5  ;;  %v2717_v0 = vsel %vm2632_vm12, %v2716_v53, %v5551_v45 }
 0x27a   :  { %v1140_v20 = vmul.u32 %v5574_v18, %v1124_v63  ;;  %vm1142_vm4 = vc.u32 %v5605_v9, %v5592_v61  ;;  %v1079_v52 = vsel %vm1077_vm13, %v3988_v12, %v1078_v43  ;;  %v2750_v29 = vshll.u32 %v4084_v11, %v2747_v49 }
 0x27b   :  { %v2709_v26 = vor.u32 4788187, %v2708_v24  ;;  %v1144_v22 = vsel %vm1142_vm4, %v1143_v55, %v5593_v10  ;;  %v1083_v42 = vsel %vm1076_vm14, %v1079_v52, %v1082_v37  ;;  %v2712_v31 = vcvt.s32.f32 %v2705_v39 }
 0x27c   :  { %v1145_v56 = vadd.s32 %v1144_v22, %v1140_v20  ;;  %v2751_v45 = vshrl.u32 %v4085_v15, %v2748_v13  ;;  %v1084_v18 = vsel %vm1074_vm0, nan, %v1083_v42  ;;  %v2753_v4 = vshll.u32 %v4085_v15, %v2747_v49 }
 0x27d   :  { %v2710_v16 = vand.u32 2147483647, %v2709_v26  ;;  %v2754_v36 = vshrl.u32 %v4086_v17, %v2748_v13  ;;  %v3564_v38 = vmul.f32 0.088388346, %v1084_v18  ;;  %v2746_v25 = vshrl.u32 %v2745_v6, 5 }
 0x27e   :  { %v1146_v3 = vadd.s32 536870912, %v1145_v56  ;;  %v2752_v10 = vor.u32 %v2751_v45, %v2750_v29  ;;  %v2756_v8 = vshll.u32 %v4086_v17, %v2747_v49  ;;  %v2757_v40 = vshrl.u32 %v4087_v19, %v2748_v13 }
 0x27f   :  { %v2713_v41 = vmul.f32 %v2712_v31, %v2710_v16  ;;  %v2755_v50 = vor.u32 %v2754_v36, %v2753_v4  ;;  %3596 = vst [vmem:[#allocation2 + $0x38] sm:$0xff] %v3564_v38  ;;  %v2759_v60 = vshll.u32 %v4087_v19, %v2747_v49  ;;  %v2760_v53 = vshrl.u32 %v4088_v21, %v2748_v13 }
 0x280   :  { %v1147_v1 = vshrl.u32 %v1146_v3, 30  ;;  %v2763_v63 = vshrl.u32 %v4089_v28, %v2748_v13  ;;  %v2741_v12 = vor.u32 8388608, %v2740_v51  ;;  %v2762_v59 = vshll.u32 %v4088_v21, %v2747_v49 }
 0x281   :  { %v2714_v7 = vxor.u32 2147483648, %v2713_v41  ;;  %v5643_v6 = vadd.f32 %v5176_v23, %v4206_v35  ;;  %v2719_v14 = vsel %vm5614_vm2, 0, %v2717_v0  ;;  %v2758_v5 = vor.u32 %v2757_v40, %v2756_v8 }
 0x282   :  { %v1148_v46 = vshll.u32 %v1147_v1, 30  ;;  %v2761_v62 = vor.u32 %v2760_v53, %v2759_v60  ;;  %v2764_v43 = vor.u32 %v2763_v63, %v2762_v59  ;;  %vm2765_vm3 = vcmp.lt.s32.totalorder %v2746_v25, 1  ;;  %v5684_v53 = vpop.f32.mrb[12].mxu0 }
 0x283   :  { %v2715_v55 = vsel %vm2632_vm12, %v2714_v7, %v2713_v41  ;;  %vm2766_vm5 = vcmp.lt.s32.totalorder %v2746_v25, 2  ;;  %vm2768_vm6 = vcmp.lt.s32.totalorder %v2746_v25, 4  ;;  %v2773_v23 = vsel %vm2765_vm3, %v2752_v10, %v2755_v50 }
 0x284   :  { %v2718_v49 = vsel %vm5614_vm2, %v5365_v44, %v2715_v55  ;;  %v5652_v51 = vsub.s32 %v1145_v56, %v1148_v46  ;;  %v2749_v39 = vshrl.u32 %v4084_v11, %v2748_v13  ;;  %vm2767_vm7 = vcmp.lt.s32.totalorder %v2746_v25, 3 }
 0x285   :  { %3991 = vcosq.f32 %v2718_v49  ;;  %v2774_v24 = vsel %vm2768_vm6, %v2761_v62, 920167782  ;;  %v2770_v0 = vsel %vm2768_vm6, %v2758_v5, 2102212464  ;;  %v2777_v30 = vsel %vm2765_vm3, %v2755_v50, %v2758_v5 }
 0x286   :  { %3993 = vsinq.f32 %v2718_v49  ;;  %v1151_v37 = vsub.s32 0, %v5652_v51  ;;  %v2775_v20 = vsel %vm2767_vm7, %v2758_v5, %v2774_v24  ;;  %v2778_v26 = vsel %vm2768_vm6, %v2764_v43, 1326507024 }
 0x287   :  { %v2776_v52 = vsel %vm2766_vm5, %v2773_v23, %v2775_v20  ;;  %v2781_v22 = vshll.u32 %v2741_v12, 8  ;;  %v2723_v29 = vand.u32 3, %v2719_v14  ;;  %v2769_v31 = vsel %vm2765_vm3, %v2749_v39, %v2752_v10 }
 0x288   :  { %v3686_v42 = vmin.u32 %v1151_v37, %v5652_v51  ;;  %v5663_v13 = vadd.f32 %v5287_v33, %v4206_v35  ;;  %v2771_v56 = vsel %vm2767_vm7, %v2755_v50, %v2770_v0  ;;  %v2779_v45 = vsel %vm2767_vm7, %v2761_v62, %v2778_v26 }
 0x289   :  { %v5665_v18 = vmul.u32.u64.low %v2781_v22, %v2776_v52  ;;  %v5666_v16 = vmul.u32.u64.high %v2781_v22, %v2776_v52, %v5665_v18  ;;  %v1171_v36 = vsub.s32 4, %v1147_v1  ;;  %v2780_v38 = vsel %vm2766_vm5, %v2777_v30, %v2779_v45 }
 0x28a   :  { %v1153_v4 = vclz %v3686_v42  ;;  %v1191_v3 = vand.u32 2139095040, %v5643_v6  ;;  %v5671_v41 = vmul.u32.u64.low %v2781_v22, %v2780_v38  ;;  %v5672_v8 = vmul.u32.u64.high %v2781_v22, %v2780_v38, %v5671_v41 }
 0x28b   :  { %v1188_v10 = vand.u32 2147483647, %v5643_v6  ;;  %vm2722_vm8 = vweird.f32 %v5365_v44  ;;  %vm5678_vm9 = vcmp.le.f32.partialorder %v1085_v57, 0.7853982  ;;  %vm1087_vm10 = vcmp.lt.s32.totalorder %v5492_v27, 0 }
 0x28c   :  { %v3687_v50 = vadd.s32 4294967294, %v1153_v4  ;;  %v2772_v40 = vsel %vm2766_vm5, %v2769_v31, %v2771_v56  ;;  %v1192_v60 = vshrl.u32 %v1191_v3, 23  ;;  %vm2725_vm11 = vcmp.eq.s32.totalorder %v2723_v29, 0 }
 0x28d   :  { %vm2728_vm12 = vcmp.eq.s32.totalorder %v2723_v29, 2  ;;  %v2791_v63 = vadd.s32 1, %v5666_v16  ;;  %v2839_v7 = vand.u32 2139095040, %v5663_v13  ;;  %v1141_v57 = vadd.s32 %v5592_v61, %v5605_v9 }
 0x28e   :  { %vm3688_vm13 = vcmp.lt.s32.totalorder %v3687_v50, 0  ;;  %v1172_v12 = vsel %vm1087_vm10, %v1171_v36, %v1147_v1  ;;  %v3689_v59 = vadd.s32 4294967169, %v1192_v60  ;;  %v2788_v46 = vmul.u32 %v2781_v22, %v2772_v40 }
 0x28f   :  { %v3992_v14 = vpop.eup %3991  ;;  %v1156_v25 = vsel %vm3688_vm13, 0, %v3687_v50  ;;  %vm2790_vm14 = vc.u32 %v5672_v8, %v5665_v18  ;;  %v1195_v5 = vand.u32 8388607, %v1188_v10  ;;  %v2840_v39 = vshrl.u32 %v2839_v7, 23 }
 0x290   :  { %v3994_v62 = vpop.eup %3993  ;;  %v2729_v55 = vxor.u32 2147483648, %v3992_v14  ;;  %v1157_v43 = vsub.s32 32, %v1156_v25  ;;  %v1158_v49 = vshll.u32 %v5652_v51, %v1156_v25  ;;  %v1161_v61 = vsub.s32 4294967266, %v1156_v25 }
 0x291   :  { %v2726_v9 = vxor.u32 2147483648, %v3994_v62  ;;  %v2792_v23 = vsel %vm2790_vm14, %v2791_v63, %v5666_v16  ;;  %v1198_v1 = vadd.s32 1, %v3689_v59  ;;  %vm2724_vm15 = vcmp.lt.s32.totalorder %v2723_v29, 2 }
 0x292   :  { %v2730_v24 = vsel %vm2728_vm12, %v2729_v55, %v3994_v62  ;;  %v1159_v37 = vshrl.u32 %v1141_v57, %v1157_v43  ;;  %v1162_v0 = vadd.s32 127, %v1161_v61  ;;  %v2793_v20 = vadd.s32 %v2792_v23, %v2788_v46 }
 0x293   :  { %v2727_v52 = vsel %vm2725_vm11, %v3992_v14, %v2726_v9  ;;  %vm1199_vm0 = vcmp.gt.s32.totalorder %v1198_v1, 0  ;;  %v3753_v30 = vadd.s32 4294967169, %v2840_v39  ;;  %v1174_v56 = vsel %vm5678_vm9, 0, %v1172_v12 }
 0x294   :  { %v2731_v26 = vsel %vm2724_vm15, %v2727_v52, %v2730_v24  ;;  %v1160_v22 = vor.u32 %v1159_v37, %v1158_v49  ;;  %v1163_v42 = vshll.u32 %v1162_v0, 23  ;;  %v2794_v51 = vadd.s32 536870912, %v2793_v20 }
 0x295   :  { %v2732_v31 = vsel %vm2722_vm8, nan, %v2731_v26  ;;  %v1200_v45 = vsel %vm1199_vm0, %v1198_v1, 0  ;;  %v2836_v16 = vand.u32 2147483647, %v5663_v13  ;;  %v1196_v29 = vor.u32 8388608, %v1195_v5 }
 0x296   :  { %v3580_v4 = vmul.f32 0.088388346, %v2732_v31  ;;  %v1164_v36 = vor.u32 4788187, %v1163_v42  ;;  %v5705_v38 = vshrl.u32 %v2794_v51, 30  ;;  %v1202_v3 = vand.u32 31, %v1200_v45 }
 0x297   :  { %v2846_v41 = vadd.s32 1, %v3753_v30  ;;  %v1167_v40 = vcvt.s32.f32 %v1160_v22  ;;  %v5708_v44 = vand.u32 3, %v1174_v56  ;;  %v5712_v7 = vand.u32 8388607, %v2836_v16 }
 0x298   :  { %3612 = vst [vmem:[#allocation2 + $0xb8] sm:$0xff] %v3580_v4  ;;  %v1165_v50 = vand.u32 2147483647, %v1164_v36  ;;  %v2796_v60 = vshll.u32 %v5705_v38, 30  ;;  %v1203_v63 = vsub.s32 32, %v1202_v3  ;;  %v5716_v57 = vadd.f32 %v5344_v32, %v4204_v34 }
 0x299   :  { %v2789_v59 = vadd.s32 %v5665_v18, %v5672_v8  ;;  %v5722_v25 = vshll.u32 %v1196_v29, 8  ;;  %v1201_v46 = vshrl.u32 %v1200_v45, 5  ;;  %vm2847_vm1 = vcmp.gt.s32.totalorder %v2846_v41, 0 }
 0x29a   :  { %v1168_v12 = vmul.f32 %v1167_v40, %v1165_v50  ;;  %v5720_v14 = vsub.s32 %v2793_v20, %v2796_v60  ;;  %v1206_v5 = vshrl.u32 %v4085_v15, %v1203_v63  ;;  %v1209_v62 = vshrl.u32 %v4086_v17, %v1203_v63 }
 0x29b   :  { %v1205_v32 = vshll.u32 %v4084_v11, %v1202_v3  ;;  %v1212_v49 = vshrl.u32 %v4087_v19, %v1203_v63  ;;  %v1208_v61 = vshll.u32 %v4085_v15, %v1202_v3  ;;  %v1211_v18 = vshll.u32 %v4086_v17, %v1202_v3 }
 0x29c   :  { %v1169_v55 = vxor.u32 2147483648, %v1168_v12  ;;  %v2799_v43 = vsub.s32 0, %v5720_v14  ;;  %v1214_v8 = vshll.u32 %v4087_v19, %v1202_v3  ;;  %v1215_v9 = vshrl.u32 %v4088_v21, %v1203_v63 }
 0x29d   :  { %v2819_v39 = vsub.s32 4, %v5705_v38  ;;  %v1207_v24 = vor.u32 %v1206_v5, %v1205_v32  ;;  %v1210_v0 = vor.u32 %v1209_v62, %v1208_v61  ;;  %v1213_v20 = vor.u32 %v1212_v49, %v1211_v18 }
 0x29e   :  { %v1170_v23 = vsel %vm1087_vm10, %v1169_v55, %v1168_v12  ;;  %v3750_v1 = vmin.u32 %v2799_v43, %v5720_v14  ;;  %v1216_v52 = vor.u32 %v1215_v9, %v1214_v8  ;;  %v1217_v26 = vshll.u32 %v4088_v21, %v1202_v3  ;;  %v5753_v55 = vpop.f32.mrb[12].mxu1 }
 0x29f   :  { %v1173_v37 = vsel %vm5678_vm9, %v5492_v27, %v1170_v23  ;;  %v1218_v22 = vshrl.u32 %v4089_v28, %v1203_v63  ;;  %v1204_v42 = vshrl.u32 %v4084_v11, %v1203_v63  ;;  %vm1220_vm2 = vcmp.lt.s32.totalorder %v1201_v46, 1 }
 0x2a0   :  { %3995 = vcosq.f32 %v1173_v37  ;;  %v2801_v30 = vclz %v3750_v1  ;;  %v2848_v51 = vsel %vm2847_vm1, %v2846_v41, 0  ;;  %vm2735_vm4 = vcmp.lt.s32.totalorder %v5519_v2, 0 }
 0x2a1   :  { %3997 = vsinq.f32 %v1173_v37  ;;  %v1219_v33 = vor.u32 %v1218_v22, %v1217_v26  ;;  %vm1222_vm3 = vcmp.lt.s32.totalorder %v1201_v46, 3  ;;  %vm1223_vm5 = vcmp.lt.s32.totalorder %v1201_v46, 4 }
 0x2a2   :  { %v3751_v31 = vadd.s32 4294967294, %v2801_v30  ;;  %v1225_v56 = vsel %vm1223_vm5, %v1213_v20, 2102212464  ;;  %v1228_v45 = vsel %vm1220_vm2, %v1207_v24, %v1210_v0  ;;  %v1229_v4 = vsel %vm1223_vm5, %v1216_v52, 920167782 }
 0x2a3   :  { %v1232_v36 = vsel %vm1220_vm2, %v1210_v0, %v1213_v20  ;;  %vm1221_vm7 = vcmp.lt.s32.totalorder %v1201_v46, 2  ;;  %v1230_v29 = vsel %vm1222_vm3, %v1213_v20, %v1229_v4  ;;  %v1233_v3 = vsel %vm1223_vm5, %v1219_v33, 1326507024 }
 0x2a4   :  { %vm3752_vm6 = vcmp.lt.s32.totalorder %v3751_v31, 0  ;;  %v1224_v41 = vsel %vm1220_vm2, %v1204_v42, %v1207_v24  ;;  %v1231_v40 = vsel %vm1221_vm7, %v1228_v45, %v1230_v29  ;;  %v1234_v60 = vsel %vm1222_vm3, %v1216_v52, %v1233_v3 }
 0x2a5   :  { %v2804_v50 = vsel %vm3752_vm6, 0, %v3751_v31  ;;  %v1226_v5 = vsel %vm1222_vm3, %v1210_v0, %v1225_v56  ;;  %v1235_v62 = vsel %vm1221_vm7, %v1232_v36, %v1234_v60  ;;  %vm1177_vm8 = vweird.f32 %v5492_v27 }
 0x2a6   :  { %v2805_v63 = vsub.s32 32, %v2804_v50  ;;  %v2809_v12 = vsub.s32 4294967266, %v2804_v50  ;;  %v5757_v43 = vmul.u32.u64.low %v5722_v25, %v1235_v62  ;;  %v5758_v32 = vmul.u32.u64.high %v5722_v25, %v1235_v62, %v5757_v43 }
 0x2a7   :  { %v5761_v49 = vmul.u32.u64.low %v5722_v25, %v1231_v40  ;;  %v5762_v61 = vmul.u32.u64.high %v5722_v25, %v1231_v40, %v5761_v49  ;;  %v2806_v18 = vshll.u32 %v5720_v14, %v2804_v50  ;;  %v2850_v23 = vand.u32 31, %v2848_v51 }
 0x2a8   :  { %v2807_v8 = vshrl.u32 %v2789_v59, %v2805_v63  ;;  %v2810_v9 = vadd.s32 127, %v2809_v12  ;;  %vm1179_vm9 = vcmp.lt.s32.totalorder %v5708_v44, 2  ;;  %vm1180_vm10 = vcmp.eq.s32.totalorder %v5708_v44, 0 }
 0x2a9   :  { %vm1183_vm11 = vcmp.eq.s32.totalorder %v5708_v44, 2  ;;  %v1227_v1 = vsel %vm1221_vm7, %v1224_v41, %v1226_v5  ;;  %v2844_v20 = vor.u32 8388608, %v5712_v7  ;;  %v2851_v52 = vsub.s32 32, %v2850_v23 }
 0x2aa   :  { %v3996_v24 = vpop.eup %3995  ;;  %v2808_v37 = vor.u32 %v2807_v8, %v2806_v18  ;;  %v2811_v0 = vshll.u32 %v2810_v9, 23  ;;  %v2820_v59 = vsel %vm2735_vm4, %v2819_v39, %v5705_v38  ;;  %vm1245_vm12 = vc.u32 %v5758_v32, %v5761_v49 }
 0x2ab   :  { %v3998_v30 = vpop.eup %3997  ;;  %v1184_v26 = vxor.u32 2147483648, %v3996_v24  ;;  %v1246_v14 = vadd.s32 1, %v5762_v61  ;;  %v1243_v42 = vmul.u32 %v5722_v25, %v1227_v1  ;;  %v2853_v31 = vshll.u32 %v4084_v11, %v2850_v23 }
 0x2ac   :  { %v1181_v22 = vxor.u32 2147483648, %v3998_v30  ;;  %v2812_v46 = vor.u32 4788187, %v2811_v0  ;;  %v2815_v33 = vcvt.s32.f32 %v2808_v37  ;;  %v2854_v45 = vshrl.u32 %v4085_v15, %v2851_v52 }
 0x2ad   :  { %v1185_v7 = vsel %vm1183_vm11, %v1184_v26, %v3998_v30  ;;  %v1247_v56 = vsel %vm1245_vm12, %v1246_v14, %v5762_v61  ;;  %v2857_v36 = vshrl.u32 %v4086_v17, %v2851_v52  ;;  %v5788_v29 = vshrl.u32 %v2848_v51, 5 }
 0x2ae   :  { %v1182_v38 = vsel %vm1180_vm10, %v3996_v24, %v1181_v22  ;;  %v2813_v39 = vand.u32 2147483647, %v2812_v46  ;;  %v1248_v4 = vadd.s32 %v1247_v56, %v1243_v42  ;;  %v2855_v3 = vor.u32 %v2854_v45, %v2853_v31 }
 0x2af   :  { %v1186_v25 = vsel %vm1179_vm9, %v1182_v38, %v1185_v7  ;;  %v2856_v50 = vshll.u32 %v4085_v15, %v2850_v23  ;;  %v2860_v63 = vshrl.u32 %v4087_v19, %v2851_v52  ;;  %v2859_v5 = vshll.u32 %v4086_v17, %v2850_v23 }
 0x2b0   :  { %v1187_v41 = vsel %vm1177_vm8, nan, %v1186_v25  ;;  %v2816_v40 = vmul.f32 %v2815_v33, %v2813_v39  ;;  %v1249_v60 = vadd.s32 536870912, %v1248_v4  ;;  %v2862_v62 = vshll.u32 %v4087_v19, %v2850_v23 }
 0x2b1   :  { %v3565_v12 = vmul.f32 0.088388346, %v1187_v41  ;;  %v2863_v44 = vshrl.u32 %v4088_v21, %v2851_v52  ;;  %v2858_v61 = vor.u32 %v2857_v36, %v2856_v50  ;;  %v2866_v18 = vshrl.u32 %v4089_v28, %v2851_v52  ;;  %v5843_v41 = vpop.f32.mrb[13].mxu0 }
 0x2b2   :  { %v2817_v43 = vxor.u32 2147483648, %v2816_v40  ;;  %v1250_v51 = vshrl.u32 %v1249_v60, 30  ;;  %vm5800_vm13 = vcmp.le.f32.partialorder %v2733_v48, 0.7853982  ;;  %v2865_v9 = vshll.u32 %v4088_v21, %v2850_v23 }
 0x2b3   :  { %3597 = vst [vmem:[#allocation2 + $0x40] sm:$0xff] %v3565_v12  ;;  %v2864_v8 = vor.u32 %v2863_v44, %v2862_v62  ;;  %v5805_v1 = vshll.u32 %v2844_v20, 8  ;;  %v2822_v37 = vsel %vm5800_vm13, 0, %v2820_v59  ;;  %v2861_v30 = vor.u32 %v2860_v63, %v2859_v5 }
 0x2b4   :  { %v2818_v24 = vsel %vm2735_vm4, %v2817_v43, %v2816_v40  ;;  %v1251_v0 = vshll.u32 %v1250_v51, 30  ;;  %v2867_v26 = vor.u32 %v2866_v18, %v2865_v9  ;;  %vm2868_vm14 = vcmp.lt.s32.totalorder %v5788_v29, 1 }
 0x2b5   :  { %v2821_v48 = vsel %vm5800_vm13, %v5519_v2, %v2818_v24  ;;  %v1294_v14 = vand.u32 2139095040, %v5716_v57  ;;  %vm2871_vm15 = vcmp.lt.s32.totalorder %v5788_v29, 4  ;;  %v2876_v20 = vsel %vm2868_vm14, %v2855_v3, %v2858_v61 }
 0x2b6   :  { %3999 = vcosq.f32 %v2821_v48  ;;  %v5816_v23 = vsub.s32 %v1248_v4, %v1251_v0  ;;  %v2852_v59 = vshrl.u32 %v4084_v11, %v2851_v52  ;;  %vm2870_vm0 = vcmp.lt.s32.totalorder %v5788_v29, 3 }
 0x2b7   :  { %4001 = vsinq.f32 %v2821_v48  ;;  %v2877_v22 = vsel %vm2871_vm15, %v2864_v8, 920167782  ;;  %v1274_v42 = vsub.s32 4, %v1250_v51  ;;  %vm2869_vm1 = vcmp.lt.s32.totalorder %v5788_v29, 2 }
 0x2b8   :  { %v1254_v46 = vsub.s32 0, %v5816_v23  ;;  %v2878_v31 = vsel %vm2870_vm0, %v2861_v30, %v2877_v22  ;;  %v2873_v7 = vsel %vm2871_vm15, %v2861_v30, 2102212464  ;;  %v2880_v56 = vsel %vm2868_vm14, %v2858_v61, %v2861_v30 }
 0x2b9   :  { %v2879_v33 = vsel %vm2869_vm1, %v2876_v20, %v2878_v31  ;;  %v2881_v45 = vsel %vm2871_vm15, %v2867_v26, 1326507024  ;;  %v2826_v52 = vand.u32 3, %v2822_v37  ;;  %vm1190_vm2 = vcmp.lt.s32.totalorder %v5643_v6, 0 }
 0x2ba   :  { %v3690_v38 = vmin.u32 %v1254_v46, %v5816_v23  ;;  %v1291_v39 = vand.u32 2147483647, %v5716_v57  ;;  %v2872_v4 = vsel %vm2868_vm14, %v2852_v59, %v2855_v3  ;;  %v2882_v36 = vsel %vm2870_vm0, %v2864_v8, %v2881_v45 }
 0x2bb   :  { %v5839_v25 = vmul.u32.u64.low %v5805_v1, %v2879_v33  ;;  %v5840_v50 = vmul.u32.u64.high %v5805_v1, %v2879_v33, %v5839_v25  ;;  %v2874_v60 = vsel %vm2870_vm0, %v2858_v61, %v2873_v7  ;;  %v2883_v63 = vsel %vm2869_vm1, %v2880_v56, %v2882_v36 }
 0x2bc   :  { %v1256_v40 = vclz %v3690_v38  ;;  %v1295_v12 = vshrl.u32 %v1294_v14, 23  ;;  %vm2825_vm4 = vweird.f32 %v5519_v2  ;;  %vm5852_vm3 = vcmp.le.f32.partialorder %v1188_v10, 0.7853982 }
 0x2bd   :  { %v1275_v5 = vsel %vm1190_vm2, %v1274_v42, %v1250_v51  ;;  %v5859_v62 = vmul.u32.u64.low %v5805_v1, %v2883_v63  ;;  %v5860_v44 = vmul.u32.u64.high %v5805_v1, %v2883_v63, %v5859_v62  ;;  %vm2827_vm5 = vcmp.lt.s32.totalorder %v2826_v52, 2 }
 0x2be   :  { %vm2828_vm6 = vcmp.eq.s32.totalorder %v2826_v52, 0  ;;  %v3691_v43 = vadd.s32 4294967294, %v1256_v40  ;;  %v3693_v61 = vadd.s32 4294967169, %v1295_v12  ;;  %vm2831_vm7 = vcmp.eq.s32.totalorder %v2826_v52, 2 }
 0x2bf   :  { %v1244_v18 = vadd.s32 %v5761_v49, %v5758_v32  ;;  %v2875_v10 = vsel %vm2869_vm1, %v2872_v4, %v2874_v60  ;;  %v2894_v27 = vadd.s32 1, %v5840_v50  ;;  %v1277_v51 = vsel %vm5852_vm3, 0, %v1275_v5 }
 0x2c0   :  { %v4000_v8 = vpop.eup %3999  ;;  %vm3692_vm8 = vcmp.lt.s32.totalorder %v3691_v43, 0  ;;  %v1298_v9 = vand.u32 8388607, %v1291_v39  ;;  %v1301_v24 = vadd.s32 1, %v3693_v61  ;;  %vm2893_vm9 = vc.u32 %v5860_v44, %v5839_v25 }
 0x2c1   :  { %v4002_v37 = vpop.eup %4001  ;;  %v2832_v0 = vxor.u32 2147483648, %v4000_v8  ;;  %v1259_v30 = vsel %vm3692_vm8, 0, %v3691_v43  ;;  %v5875_v32 = vadd.f32 %v5428_v58, %v4204_v34  ;;  %v2891_v26 = vmul.u32 %v5805_v1, %v2875_v10 }
 0x2c2   :  { %v2829_v49 = vxor.u32 2147483648, %v4002_v37  ;;  %v1260_v29 = vsub.s32 32, %v1259_v30  ;;  %v1264_v48 = vsub.s32 4294967266, %v1259_v30  ;;  %v1261_v20 = vshll.u32 %v5816_v23, %v1259_v30 }
 0x2c3   :  { %v2833_v14 = vsel %vm2831_vm7, %v2832_v0, %v4002_v37  ;;  %v2895_v59 = vsel %vm2893_vm9, %v2894_v27, %v5840_v50  ;;  %vm1302_vm10 = vcmp.gt.s32.totalorder %v1301_v24, 0  ;;  %v1299_v7 = vor.u32 8388608, %v1298_v9 }
 0x2c4   :  { %v2830_v22 = vsel %vm2828_vm6, %v4000_v8, %v2829_v49  ;;  %v1262_v46 = vshrl.u32 %v1244_v18, %v1260_v29  ;;  %v1265_v42 = vadd.s32 127, %v1264_v48  ;;  %v2896_v31 = vadd.s32 %v2895_v59, %v2891_v26 }
 0x2c5   :  { %v2834_v58 = vsel %vm2827_vm5, %v2830_v22, %v2833_v14  ;;  %v1303_v33 = vsel %vm1302_vm10, %v1301_v24, 0  ;;  %v2942_v56 = vand.u32 2139095040, %v5875_v32  ;;  %v5888_v60 = vand.u32 3, %v1277_v51 }
 0x2c6   :  { %v2835_v1 = vsel %vm2825_vm4, nan, %v2834_v58  ;;  %v1263_v45 = vor.u32 %v1262_v46, %v1261_v20  ;;  %v1266_v38 = vshll.u32 %v1265_v42, 23  ;;  %v2897_v23 = vadd.s32 536870912, %v2896_v31 }
 0x2c7   :  { %v3581_v4 = vmul.f32 0.088388346, %v2835_v1  ;;  %v1305_v36 = vand.u32 31, %v1303_v33  ;;  %v5890_v63 = vshll.u32 %v1299_v7, 8  ;;  %v2939_v12 = vand.u32 2147483647, %v5875_v32 }
 0x2c8   :  { %v1267_v50 = vor.u32 4788187, %v1266_v38  ;;  %v5886_v40 = vshrl.u32 %v2897_v23, 30  ;;  %v1270_v62 = vcvt.s32.f32 %v1263_v45  ;;  %v2943_v43 = vshrl.u32 %v2942_v56, 23 }
 0x2c9   :  { %3613 = vst [vmem:[#allocation2 + $0xc0] sm:$0xff] %v3581_v4  ;;  %v1306_v52 = vsub.s32 32, %v1305_v36  ;;  %v1308_v61 = vshll.u32 %v4084_v11, %v1305_v36  ;;  %v1311_v9 = vshll.u32 %v4085_v15, %v1305_v36  ;;  %v2892_v37 = vadd.s32 %v5839_v25, %v5860_v44 }
 0x2ca   :  { %v1268_v5 = vand.u32 2147483647, %v1267_v50  ;;  %v2899_v2 = vshll.u32 %v5886_v40, 30  ;;  %v1304_v0 = vshrl.u32 %v1303_v33, 5  ;;  %v1314_v30 = vshll.u32 %v4086_v17, %v1305_v36 }
 0x2cb   :  { %v1309_v18 = vshrl.u32 %v4085_v15, %v1306_v52  ;;  %v1312_v10 = vshrl.u32 %v4086_v17, %v1306_v52  ;;  %v1315_v27 = vshrl.u32 %v4087_v19, %v1306_v52  ;;  %v1318_v24 = vshrl.u32 %v4088_v21, %v1306_v52 }
 0x2cc   :  { %v1271_v8 = vmul.f32 %v1270_v62, %v1268_v5  ;;  %v5898_v51 = vsub.s32 %v2896_v31, %v2899_v2  ;;  %v1317_v49 = vshll.u32 %v4087_v19, %v1305_v36  ;;  %v1320_v22 = vshll.u32 %v4088_v21, %v1305_v36 }
 0x2cd   :  { %v1310_v26 = vor.u32 %v1309_v18, %v1308_v61  ;;  %v1313_v14 = vor.u32 %v1312_v10, %v1311_v9  ;;  %v1316_v20 = vor.u32 %v1315_v27, %v1314_v30  ;;  %v1321_v46 = vshrl.u32 %v4089_v28, %v1306_v52  ;;  %v5928_v30 = vpop.f32.mrb[13].mxu1 }
 0x2ce   :  { %v1272_v29 = vxor.u32 2147483648, %v1271_v8  ;;  %v2902_v48 = vsub.s32 0, %v5898_v51  ;;  %v1319_v59 = vor.u32 %v1318_v24, %v1317_v49  ;;  %v1307_v44 = vshrl.u32 %v4084_v11, %v1306_v52 }
 0x2cf   :  { %v3757_v31 = vadd.s32 4294967169, %v2943_v43  ;;  %v1322_v7 = vor.u32 %v1321_v46, %v1320_v22  ;;  %vm1323_vm11 = vcmp.lt.s32.totalorder %v1304_v0, 1  ;;  %vm1324_vm12 = vcmp.lt.s32.totalorder %v1304_v0, 2 }
 0x2d0   :  { %v1273_v42 = vsel %vm1190_vm2, %v1272_v29, %v1271_v8  ;;  %v3754_v25 = vmin.u32 %v2902_v48, %v5898_v51  ;;  %vm2838_vm13 = vcmp.lt.s32.totalorder %v5663_v13, 0  ;;  %vm1325_vm14 = vcmp.lt.s32.totalorder %v1304_v0, 3 }
 0x2d1   :  { %v1276_v58 = vsel %vm5852_vm3, %v5643_v6, %v1273_v42  ;;  %vm1326_vm15 = vcmp.lt.s32.totalorder %v1304_v0, 4  ;;  %v1331_v1 = vsel %vm1323_vm11, %v1310_v26, %v1313_v14  ;;  %v1327_v23 = vsel %vm1323_vm11, %v1307_v44, %v1310_v26 }
 0x2d2   :  { %4003 = vcosq.f32 %v1276_v58  ;;  %v2904_v33 = vclz %v3754_v25  ;;  %v1328_v56 = vsel %vm1326_vm15, %v1316_v20, 2102212464  ;;  %v1332_v45 = vsel %vm1326_vm15, %v1319_v59, 920167782 }
 0x2d3   :  { %4005 = vsinq.f32 %v1276_v58  ;;  %v1333_v4 = vsel %vm1325_vm14, %v1316_v20, %v1332_v45  ;;  %v1335_v36 = vsel %vm1323_vm11, %v1313_v14, %v1316_v20  ;;  %v1329_v50 = vsel %vm1325_vm14, %v1313_v14, %v1328_v56 }
 0x2d4   :  { %v3755_v38 = vadd.s32 4294967294, %v2904_v33  ;;  %v1334_v3 = vsel %vm1324_vm12, %v1331_v1, %v1333_v4  ;;  %v1336_v52 = vsel %vm1326_vm15, %v1322_v7, 1326507024  ;;  %v2949_v5 = vadd.s32 1, %v3757_v31 }
 0x2d5   :  { %v1337_v62 = vsel %vm1325_vm14, %v1319_v59, %v1336_v52  ;;  %v5919_v2 = vmul.u32.u64.low %v5890_v63, %v1334_v3  ;;  %v5920_v43 = vmul.u32.u64.high %v5890_v63, %v1334_v3, %v5919_v2  ;;  %vm1283_vm1 = vcmp.eq.s32.totalorder %v5888_v60, 0 }
 0x2d6   :  { %vm3756_vm0 = vcmp.lt.s32.totalorder %v3755_v38, 0  ;;  %v2922_v18 = vsub.s32 4, %v5886_v40  ;;  %v1338_v10 = vsel %vm1324_vm12, %v1335_v36, %v1337_v62  ;;  %vm2950_vm2 = vcmp.gt.s32.totalorder %v2949_v5, 0 }
 0x2d7   :  { %v2907_v61 = vsel %vm3756_vm0, 0, %v3755_v38  ;;  %vm1282_vm4 = vcmp.lt.s32.totalorder %v5888_v60, 2  ;;  %v1330_v9 = vsel %vm1324_vm12, %v1327_v23, %v1329_v50  ;;  %v2951_v24 = vsel %vm2950_vm2, %v2949_v5, 0 }
 0x2d8   :  { %v2908_v27 = vsub.s32 32, %v2907_v61  ;;  %v2912_v8 = vsub.s32 4294967266, %v2907_v61  ;;  %vm1280_vm3 = vweird.f32 %v5643_v6  ;;  %vm1286_vm5 = vcmp.eq.s32.totalorder %v5888_v60, 2 }
 0x2d9   :  { %v5933_v49 = vmul.u32.u64.low %v5890_v63, %v1338_v10  ;;  %v5934_v29 = vmul.u32.u64.high %v5890_v63, %v1338_v10, %v5933_v49  ;;  %v2953_v48 = vand.u32 31, %v2951_v24  ;;  %v2909_v26 = vshll.u32 %v5898_v51, %v2907_v61 }
 0x2da   :  { %v2910_v14 = vshrl.u32 %v2892_v37, %v2908_v27  ;;  %v2913_v20 = vadd.s32 127, %v2912_v8  ;;  %v1349_v59 = vadd.s32 1, %v5920_v43  ;;  %v5941_v0 = vsel %vm2838_vm13, %v2922_v18, %v5886_v40 }
 0x2db   :  { %v1346_v22 = vmul.u32 %v5890_v63, %v1330_v9  ;;  %v2946_v46 = vand.u32 8388607, %v2939_v12  ;;  %v2954_v42 = vsub.s32 32, %v2953_v48  ;;  %vm5948_vm6 = vcmp.le.f32.partialorder %v2836_v16, 0.7853982 }
 0x2dc   :  { %v4004_v25 = vpop.eup %4003  ;;  %v2911_v37 = vor.u32 %v2910_v14, %v2909_v26  ;;  %v2914_v44 = vshll.u32 %v2913_v20, 23  ;;  %v5952_v31 = vshrl.u32 %v2951_v24, 5  ;;  %v2956_v40 = vshll.u32 %v4084_v11, %v2953_v48 }
 0x2dd   :  { %v4006_v58 = vpop.eup %4005  ;;  %v1287_v7 = vxor.u32 2147483648, %v4004_v25  ;;  %vm1348_vm7 = vc.u32 %v5934_v29, %v5919_v2  ;;  %v2959_v63 = vshll.u32 %v4085_v15, %v2953_v48  ;;  %v2965_v33 = vshll.u32 %v4087_v19, %v2953_v48 }
 0x2de   :  { %v1284_v56 = vxor.u32 2147483648, %v4006_v58  ;;  %v2915_v16 = vor.u32 4788187, %v2914_v44  ;;  %v2918_v1 = vcvt.s32.f32 %v2911_v37  ;;  %v1350_v45 = vsel %vm1348_vm7, %v1349_v59, %v5920_v43 }
 0x2df   :  { %v1288_v38 = vsel %vm1286_vm5, %v1287_v7, %v4006_v58  ;;  %v1351_v23 = vadd.s32 %v1350_v45, %v1346_v22  ;;  %v2957_v4 = vshrl.u32 %v4085_v15, %v2954_v42  ;;  %v2960_v36 = vshrl.u32 %v4086_v17, %v2954_v42 }
 0x2e0   :  { %v1285_v50 = vsel %vm1283_vm1, %v4004_v25, %v1284_v56  ;;  %v2916_v3 = vand.u32 2147483647, %v2915_v16  ;;  %v2963_v52 = vshrl.u32 %v4087_v19, %v2954_v42  ;;  %v2966_v5 = vshrl.u32 %v4088_v21, %v2954_v42 }
 0x2e1   :  { %v1289_v62 = vsel %vm1282_vm4, %v1285_v50, %v1288_v38  ;;  %v1352_v43 = vadd.s32 536870912, %v1351_v23  ;;  %v2958_v61 = vor.u32 %v2957_v4, %v2956_v40  ;;  %v2962_v18 = vshll.u32 %v4086_v17, %v2953_v48 }
 0x2e2   :  { %v1290_v10 = vsel %vm1280_vm3, nan, %v1289_v62  ;;  %v2919_v27 = vmul.f32 %v2918_v1, %v2916_v3  ;;  %v2961_v8 = vor.u32 %v2960_v36, %v2959_v63  ;;  %v2967_v9 = vor.u32 %v2966_v5, %v2965_v33 }
 0x2e3   :  { %v3566_v24 = vmul.f32 0.088388346, %v1290_v10  ;;  %v1353_v49 = vshrl.u32 %v1352_v43, 30  ;;  %v2947_v26 = vor.u32 8388608, %v2946_v46  ;;  %v2969_v14 = vshrl.u32 %v4089_v28, %v2954_v42 }
 0x2e4   :  { %v2920_v20 = vxor.u32 2147483648, %v2919_v27  ;;  %v2964_v59 = vor.u32 %v2963_v52, %v2962_v18  ;;  %v2968_v60 = vshll.u32 %v4088_v21, %v2953_v48  ;;  %v5977_v22 = vadd.f32 %v5504_v47, %v4206_v35 }
 0x2e5   :  { %3598 = vst [vmem:[#allocation2 + $0x48] sm:$0xff] %v3566_v24  ;;  %v2925_v6 = vsel %vm5948_vm6, 0, %v5941_v0  ;;  %v1354_v25 = vshll.u32 %v1353_v49, 30  ;;  %vm2971_vm8 = vcmp.lt.s32.totalorder %v5952_v31, 1  ;;  %vm2974_vm9 = vcmp.lt.s32.totalorder %v5952_v31, 4 }
 0x2e6   :  { %v2921_v46 = vsel %vm2838_vm13, %v2920_v20, %v2919_v27  ;;  %v2970_v37 = vor.u32 %v2969_v14, %v2968_v60  ;;  %v2979_v48 = vsel %vm2971_vm8, %v2958_v61, %v2961_v8  ;;  %v2980_v47 = vsel %vm2974_vm9, %v2967_v9, 920167782 }
 0x2e7   :  { %v2924_v44 = vsel %vm5948_vm6, %v5663_v13, %v2921_v46  ;;  %v5993_v0 = vsub.s32 %v1351_v23, %v1354_v25  ;;  %vm2973_vm10 = vcmp.lt.s32.totalorder %v5952_v31, 3  ;;  %v2987_v40 = vshll.u32 %v2947_v26, 8  ;;  %v6043_v26 = vpop.f32.mrb[14].mxu0 }
 0x2e8   :  { %4007 = vcosq.f32 %v2924_v44  ;;  %v2955_v58 = vshrl.u32 %v4084_v11, %v2954_v42  ;;  %vm2972_vm11 = vcmp.lt.s32.totalorder %v5952_v31, 2  ;;  %v2981_v7 = vsel %vm2973_vm10, %v2964_v59, %v2980_v47 }
 0x2e9   :  { %4009 = vsinq.f32 %v2924_v44  ;;  %v1357_v63 = vsub.s32 0, %v5993_v0  ;;  %v2976_v51 = vsel %vm2974_vm9, %v2964_v59, 2102212464  ;;  %v2982_v33 = vsel %vm2972_vm11, %v2979_v48, %v2981_v7 }
 0x2ea   :  { %v2983_v56 = vsel %vm2971_vm8, %v2961_v8, %v2964_v59  ;;  %v2984_v42 = vsel %vm2974_vm9, %v2970_v37, 1326507024  ;;  %v6009_v16 = vmul.u32.u64.low %v2987_v40, %v2982_v33  ;;  %v6010_v1 = vmul.u32.u64.high %v2987_v40, %v2982_v33, %v6009_v16 }
 0x2eb   :  { %v3694_v45 = vmin.u32 %v1357_v63, %v5993_v0  ;;  %v6016_v38 = vadd.f32 %v5599_v54, %v4206_v35  ;;  %v2929_v23 = vand.u32 3, %v2925_v6  ;;  %v2975_v4 = vsel %vm2971_vm8, %v2955_v58, %v2958_v61 }
 0x2ec   :  { %v2977_v36 = vsel %vm2973_vm10, %v2961_v8, %v2976_v51  ;;  %v2985_v50 = vsel %vm2973_vm10, %v2967_v9, %v2984_v42  ;;  %v1377_v52 = vsub.s32 4, %v1353_v49  ;;  %v1397_v62 = vand.u32 2139095040, %v5977_v22 }
 0x2ed   :  { %v1359_v3 = vclz %v3694_v45  ;;  %v2986_v5 = vsel %vm2972_vm11, %v2983_v56, %v2985_v50  ;;  %vm1293_vm12 = vcmp.lt.s32.totalorder %v5716_v57, 0  ;;  %vm2928_vm13 = vweird.f32 %v5663_v13 }
 0x2ee   :  { %v6028_v54 = vmul.u32.u64.low %v2987_v40, %v2986_v5  ;;  %v6029_v43 = vmul.u32.u64.high %v2987_v40, %v2986_v5, %v6028_v54  ;;  %vm6034_vm14 = vcmp.le.f32.partialorder %v1291_v39, 0.7853982  ;;  %v2978_v10 = vsel %vm2972_vm11, %v2975_v4, %v2977_v36 }
 0x2ef   :  { %v3695_v18 = vadd.s32 4294967294, %v1359_v3  ;;  %v1394_v27 = vand.u32 2147483647, %v5977_v22  ;;  %v1398_v8 = vshrl.u32 %v1397_v62, 23  ;;  %vm2931_vm15 = vcmp.eq.s32.totalorder %v2929_v23, 0 }
 0x2f0   :  { %vm2934_vm0 = vcmp.eq.s32.totalorder %v2929_v23, 2  ;;  %v2997_v9 = vadd.s32 1, %v6010_v1  ;;  %v3045_v24 = vand.u32 2139095040, %v6016_v38  ;;  %v1347_v39 = vadd.s32 %v5919_v2, %v5934_v29 }
 0x2f1   :  { %vm3696_vm1 = vcmp.lt.s32.totalorder %v3695_v18, 0  ;;  %v1378_v14 = vsel %vm1293_vm12, %v1377_v52, %v1353_v49  ;;  %v3697_v31 = vadd.s32 4294967169, %v1398_v8  ;;  %v2994_v60 = vmul.u32 %v2987_v40, %v2978_v10 }
 0x2f2   :  { %v4008_v20 = vpop.eup %4007  ;;  %v1362_v59 = vsel %vm3696_vm1, 0, %v3695_v18  ;;  %vm2996_vm2 = vc.u32 %v6029_v43, %v6009_v16  ;;  %v3046_v6 = vshrl.u32 %v3045_v24, 23  ;;  %v1401_v47 = vand.u32 8388607, %v1394_v27 }
 0x2f3   :  { %v4010_v25 = vpop.eup %4009  ;;  %v2935_v46 = vxor.u32 2147483648, %v4008_v20  ;;  %v1363_v37 = vsub.s32 32, %v1362_v59  ;;  %v1367_v48 = vsub.s32 4294967266, %v1362_v59  ;;  %v1364_v29 = vshll.u32 %v5993_v0, %v1362_v59 }
 0x2f4   :  { %v2932_v2 = vxor.u32 2147483648, %v4010_v25  ;;  %v2998_v49 = vsel %vm2996_vm2, %v2997_v9, %v6010_v1  ;;  %v1404_v44 = vadd.s32 1, %v3697_v31  ;;  %vm2930_vm4 = vcmp.lt.s32.totalorder %v2929_v23, 2 }
 0x2f5   :  { %v2936_v58 = vsel %vm2934_vm0, %v2935_v46, %v4010_v25  ;;  %v1365_v40 = vshrl.u32 %v1347_v39, %v1363_v37  ;;  %v1368_v7 = vadd.s32 127, %v1367_v48  ;;  %v2999_v63 = vadd.s32 %v2998_v49, %v2994_v60 }
 0x2f6   :  { %v2933_v51 = vsel %vm2931_vm15, %v4008_v20, %v2932_v2  ;;  %vm1405_vm3 = vcmp.gt.s32.totalorder %v1404_v44, 0  ;;  %v3761_v33 = vadd.s32 4294967169, %v3046_v6  ;;  %v1380_v1 = vsel %vm6034_vm14, 0, %v1378_v14 }
 0x2f7   :  { %v2937_v56 = vsel %vm2930_vm4, %v2933_v51, %v2936_v58  ;;  %v1366_v42 = vor.u32 %v1365_v40, %v1364_v29  ;;  %v1369_v45 = vshll.u32 %v1368_v7, 23  ;;  %v3000_v4 = vadd.s32 536870912, %v2999_v63 }
 0x2f8   :  { %v2938_v0 = vsel %vm2928_vm13, nan, %v2937_v56  ;;  %v1406_v36 = vsel %vm1405_vm3, %v1404_v44, 0  ;;  %v3042_v50 = vand.u32 2147483647, %v6016_v38  ;;  %v1402_v23 = vor.u32 8388608, %v1401_v47 }
 0x2f9   :  { %v3582_v3 = vmul.f32 0.088388346, %v2938_v0  ;;  %v1370_v52 = vor.u32 4788187, %v1369_v45  ;;  %v6062_v5 = vshrl.u32 %v3000_v4, 30  ;;  %v1408_v62 = vand.u32 31, %v1406_v36 }
 0x2fa   :  { %v3052_v54 = vadd.s32 1, %v3761_v33  ;;  %v1373_v10 = vcvt.s32.f32 %v1366_v42  ;;  %v6065_v13 = vand.u32 3, %v1380_v1  ;;  %v2995_v9 = vadd.s32 %v6009_v16, %v6029_v43 }
 0x2fb   :  { %3614 = vst [vmem:[#allocation2 + $0xc8] sm:$0xff] %v3582_v3  ;;  %v1371_v18 = vand.u32 2147483647, %v1370_v52  ;;  %v3002_v8 = vshll.u32 %v6062_v5, 30  ;;  %v1409_v24 = vsub.s32 32, %v1408_v62  ;;  %v6071_v31 = vshll.u32 %v1402_v23, 8 }
 0x2fc   :  { %v6075_v20 = vand.u32 8388607, %v3042_v50  ;;  %v1407_v59 = vshrl.u32 %v1406_v36, 5  ;;  %vm3053_vm5 = vcmp.gt.s32.totalorder %v3052_v54, 0  ;;  %v1411_v16 = vshll.u32 %v4084_v11, %v1408_v62 }
 0x2fd   :  { %v1374_v39 = vmul.f32 %v1373_v10, %v1371_v18  ;;  %v6069_v14 = vsub.s32 %v2999_v63, %v3002_v8  ;;  %v1412_v60 = vshrl.u32 %v4085_v15, %v1409_v24  ;;  %v1415_v6 = vshrl.u32 %v4086_v17, %v1409_v24 }
 0x2fe   :  { %v1418_v43 = vshrl.u32 %v4087_v19, %v1409_v24  ;;  %v1414_v37 = vshll.u32 %v4085_v15, %v1408_v62  ;;  %v1417_v48 = vshll.u32 %v4086_v17, %v1408_v62  ;;  %v1420_v47 = vshll.u32 %v4087_v19, %v1408_v62 }
 0x2ff   :  { %v1375_v25 = vxor.u32 2147483648, %v1374_v39  ;;  %v3005_v46 = vsub.s32 0, %v6069_v14  ;;  %v1421_v2 = vshrl.u32 %v4088_v21, %v1409_v24  ;;  %v3025_v44 = vsub.s32 4, %v6062_v5 }
 0x300   :  { %v1413_v58 = vor.u32 %v1412_v60, %v1411_v16  ;;  %v1416_v7 = vor.u32 %v1415_v6, %v1414_v37  ;;  %v1419_v63 = vor.u32 %v1418_v43, %v1417_v48  ;;  %v1423_v56 = vshll.u32 %v4088_v21, %v1408_v62 }
 0x301   :  { %v1376_v29 = vsel %vm1293_vm12, %v1375_v25, %v1374_v39  ;;  %v3758_v49 = vmin.u32 %v3005_v46, %v6069_v14  ;;  %v1422_v51 = vor.u32 %v1421_v2, %v1420_v47  ;;  %v1424_v42 = vshrl.u32 %v4089_v28, %v1409_v24  ;;  %v6107_v25 = vpop.f32.mrb[14].mxu1 }
 0x302   :  { %v1379_v40 = vsel %vm6034_vm14, %v5716_v57, %v1376_v29  ;;  %v1410_v45 = vshrl.u32 %v4084_v11, %v1409_v24  ;;  %vm1426_vm6 = vcmp.lt.s32.totalorder %v1407_v59, 1  ;;  %v3054_v4 = vsel %vm3053_vm5, %v3052_v54, 0 }
 0x303   :  { %4011 = vcosq.f32 %v1379_v40  ;;  %v3007_v33 = vclz %v3758_v49  ;;  %vm2941_vm7 = vcmp.lt.s32.totalorder %v5875_v32, 0  ;;  %v1425_v61 = vor.u32 %v1424_v42, %v1423_v56 }
 0x304   :  { %4013 = vsinq.f32 %v1379_v40  ;;  %vm1428_vm8 = vcmp.lt.s32.totalorder %v1407_v59, 3  ;;  %vm1429_vm9 = vcmp.lt.s32.totalorder %v1407_v59, 4  ;;  %v1434_v36 = vsel %vm1426_vm6, %v1413_v58, %v1416_v7 }
 0x305   :  { %v3759_v0 = vadd.s32 4294967294, %v3007_v33  ;;  %v1431_v1 = vsel %vm1429_vm9, %v1419_v63, 2102212464  ;;  %v1435_v3 = vsel %vm1429_vm9, %v1422_v51, 920167782  ;;  %v1438_v52 = vsel %vm1426_vm6, %v1416_v7, %v1419_v63 }
 0x306   :  { %vm1427_vm11 = vcmp.lt.s32.totalorder %v1407_v59, 2  ;;  %v1436_v23 = vsel %vm1428_vm8, %v1419_v63, %v1435_v3  ;;  %v1439_v62 = vsel %vm1429_vm9, %v1425_v61, 1326507024  ;;  %v1430_v54 = vsel %vm1426_vm6, %v1410_v45, %v1413_v58 }
 0x307   :  { %vm3760_vm10 = vcmp.lt.s32.totalorder %v3759_v0, 0  ;;  %v1437_v10 = vsel %vm1427_vm11, %v1434_v36, %v1436_v23  ;;  %v1440_v8 = vsel %vm1428_vm8, %v1422_v51, %v1439_v62  ;;  %vm1385_vm12 = vcmp.lt.s32.totalorder %v6065_v13, 2 }
 0x308   :  { %v3010_v18 = vsel %vm3760_vm10, 0, %v3759_v0  ;;  %v1432_v60 = vsel %vm1428_vm8, %v1416_v7, %v1431_v1  ;;  %v1441_v6 = vsel %vm1427_vm11, %v1438_v52, %v1440_v8  ;;  %vm1383_vm13 = vweird.f32 %v5716_v57 }
 0x309   :  { %v3011_v24 = vsub.s32 32, %v3010_v18  ;;  %v3015_v39 = vsub.s32 4294967266, %v3010_v18  ;;  %v6111_v46 = vmul.u32.u64.low %v6071_v31, %v1441_v6  ;;  %v6112_v16 = vmul.u32.u64.high %v6071_v31, %v1441_v6, %v6111_v46 }
 0x30a   :  { %v6115_v43 = vmul.u32.u64.low %v6071_v31, %v1437_v10  ;;  %v6116_v37 = vmul.u32.u64.high %v6071_v31, %v1437_v10, %v6115_v43  ;;  %v3012_v48 = vshll.u32 %v6069_v14, %v3010_v18  ;;  %v3056_v29 = vand.u32 31, %v3054_v4 }
 0x30b   :  { %v3013_v47 = vshrl.u32 %v2995_v9, %v3011_v24  ;;  %v3016_v2 = vadd.s32 127, %v3015_v39  ;;  %vm1386_vm14 = vcmp.eq.s32.totalorder %v6065_v13, 0  ;;  %vm1389_vm15 = vcmp.eq.s32.totalorder %v6065_v13, 2 }
 0x30c   :  { %v1433_v49 = vsel %vm1427_vm11, %v1430_v54, %v1432_v60  ;;  %v6125_v58 = vadd.f32 %v5684_v53, %v4204_v34  ;;  %v3050_v51 = vor.u32 8388608, %v6075_v20  ;;  %v3057_v33 = vsub.s32 32, %v3056_v29 }
 0x30d   :  { %v4012_v40 = vpop.eup %4011  ;;  %v3014_v7 = vor.u32 %v3013_v47, %v3012_v48  ;;  %v3017_v63 = vshll.u32 %v3016_v2, 23  ;;  %v3026_v56 = vsel %vm2941_vm7, %v3025_v44, %v6062_v5  ;;  %vm1451_vm0 = vc.u32 %v6112_v16, %v6115_v43 }
 0x30e   :  { %v4014_v14 = vpop.eup %4013  ;;  %v1390_v9 = vxor.u32 2147483648, %v4012_v40  ;;  %v1452_v59 = vadd.s32 1, %v6116_v37  ;;  %v1449_v45 = vmul.u32 %v6071_v31, %v1433_v49  ;;  %v3059_v0 = vshll.u32 %v4084_v11, %v3056_v29 }
 0x30f   :  { %v1387_v42 = vxor.u32 2147483648, %v4014_v14  ;;  %v3018_v53 = vor.u32 4788187, %v3017_v63  ;;  %v3021_v61 = vcvt.s32.f32 %v3014_v7  ;;  %v3060_v36 = vshrl.u32 %v4085_v15, %v3057_v33 }
 0x310   :  { %v1391_v20 = vsel %vm1389_vm15, %v1390_v9, %v4014_v14  ;;  %v1453_v1 = vsel %vm1451_vm0, %v1452_v59, %v6116_v37  ;;  %v3063_v52 = vshrl.u32 %v4086_v17, %v3057_v33  ;;  %v6145_v23 = vshrl.u32 %v3054_v4, 5 }
 0x311   :  { %v1388_v5 = vsel %vm1386_vm14, %v4012_v40, %v1387_v42  ;;  %v3019_v44 = vand.u32 2147483647, %v3018_v53  ;;  %v1454_v3 = vadd.s32 %v1453_v1, %v1449_v45  ;;  %v3061_v62 = vor.u32 %v3060_v36, %v3059_v0 }
 0x312   :  { %v1392_v31 = vsel %vm1385_vm12, %v1388_v5, %v1391_v20  ;;  %v3062_v18 = vshll.u32 %v4085_v15, %v3056_v29  ;;  %v3066_v24 = vshrl.u32 %v4087_v19, %v3057_v33  ;;  %v3065_v60 = vshll.u32 %v4086_v17, %v3056_v29 }
 0x313   :  { %v1393_v54 = vsel %vm1383_vm13, nan, %v1392_v31  ;;  %v3022_v10 = vmul.f32 %v3021_v61, %v3019_v44  ;;  %v1455_v8 = vadd.s32 536870912, %v1454_v3  ;;  %v3068_v6 = vshll.u32 %v4087_v19, %v3056_v29 }
 0x314   :  { %v3567_v39 = vmul.f32 0.088388346, %v1393_v54  ;;  %v3069_v13 = vshrl.u32 %v4088_v21, %v3057_v33  ;;  %v3064_v37 = vor.u32 %v3063_v52, %v3062_v18  ;;  %v3072_v48 = vshrl.u32 %v4089_v28, %v3057_v33  ;;  %v6200_v54 = vpop.f32.mrb[15].mxu0 }
 0x315   :  { %v3023_v46 = vxor.u32 2147483648, %v3022_v10  ;;  %v1456_v4 = vshrl.u32 %v1455_v8, 30  ;;  %vm6157_vm1 = vcmp.le.f32.partialorder %v2939_v12, 0.7853982  ;;  %v3071_v2 = vshll.u32 %v4088_v21, %v3056_v29 }
 0x316   :  { %3599 = vst [vmem:[#allocation2 + $0x50] sm:$0xff] %v3567_v39  ;;  %v3070_v47 = vor.u32 %v3069_v13, %v3068_v6  ;;  %v6162_v49 = vshll.u32 %v3050_v51, 8  ;;  %v3028_v7 = vsel %vm6157_vm1, 0, %v3026_v56  ;;  %v3067_v14 = vor.u32 %v3066_v24, %v3065_v60 }
 0x317   :  { %v3024_v40 = vsel %vm2941_vm7, %v3023_v46, %v3022_v10  ;;  %v1457_v63 = vshll.u32 %v1456_v4, 30  ;;  %v3073_v9 = vor.u32 %v3072_v48, %v3071_v2  ;;  %vm3074_vm2 = vcmp.lt.s32.totalorder %v6145_v23, 1 }
 0x318   :  { %v3027_v12 = vsel %vm6157_vm1, %v5875_v32, %v3024_v40  ;;  %v1500_v59 = vand.u32 2139095040, %v6125_v58  ;;  %vm3077_vm4 = vcmp.lt.s32.totalorder %v6145_v23, 4  ;;  %v3082_v51 = vsel %vm3074_vm2, %v3061_v62, %v3064_v37 }
 0x319   :  { %4015 = vcosq.f32 %v3027_v12  ;;  %v6173_v29 = vsub.s32 %v1454_v3, %v1457_v63  ;;  %v3058_v56 = vshrl.u32 %v4084_v11, %v3057_v33  ;;  %vm3076_vm3 = vcmp.lt.s32.totalorder %v6145_v23, 3 }
 0x31a   :  { %4017 = vsinq.f32 %v3027_v12  ;;  %v3083_v42 = vsel %vm3077_vm4, %v3070_v47, 920167782  ;;  %v1480_v45 = vsub.s32 4, %v1456_v4  ;;  %vm3075_vm5 = vcmp.lt.s32.totalorder %v6145_v23, 2 }
 0x31b   :  { %v1460_v53 = vsub.s32 0, %v6173_v29  ;;  %v3084_v0 = vsel %vm3076_vm3, %v3067_v14, %v3083_v42  ;;  %v3079_v20 = vsel %vm3077_vm4, %v3067_v14, 2102212464  ;;  %v3086_v1 = vsel %vm3074_vm2, %v3064_v37, %v3067_v14 }
 0x31c   :  { %v3085_v61 = vsel %vm3075_vm5, %v3082_v51, %v3084_v0  ;;  %v3087_v36 = vsel %vm3077_vm4, %v3073_v9, 1326507024  ;;  %v3032_v33 = vand.u32 3, %v3028_v7  ;;  %vm1396_vm6 = vcmp.lt.s32.totalorder %v5977_v22, 0 }
 0x31d   :  { %v3698_v5 = vmin.u32 %v1460_v53, %v6173_v29  ;;  %v1497_v44 = vand.u32 2147483647, %v6125_v58  ;;  %v3078_v3 = vsel %vm3074_vm2, %v3058_v56, %v3061_v62  ;;  %v3088_v52 = vsel %vm3076_vm3, %v3070_v47, %v3087_v36 }
 0x31e   :  { %v6196_v31 = vmul.u32.u64.low %v6162_v49, %v3085_v61  ;;  %v6197_v18 = vmul.u32.u64.high %v6162_v49, %v3085_v61, %v6196_v31  ;;  %v3080_v8 = vsel %vm3076_vm3, %v3064_v37, %v3079_v20  ;;  %v3089_v24 = vsel %vm3075_vm5, %v3086_v1, %v3088_v52 }
 0x31f   :  { %v1462_v10 = vclz %v3698_v5  ;;  %v1501_v39 = vshrl.u32 %v1500_v59, 23  ;;  %vm3031_vm7 = vweird.f32 %v5875_v32  ;;  %vm6209_vm8 = vcmp.le.f32.partialorder %v1394_v27, 0.7853982 }
 0x320   :  { %v1481_v60 = vsel %vm1396_vm6, %v1480_v45, %v1456_v4  ;;  %v6216_v6 = vmul.u32.u64.low %v6162_v49, %v3089_v24  ;;  %v6217_v13 = vmul.u32.u64.high %v6162_v49, %v3089_v24, %v6216_v6  ;;  %vm3033_vm9 = vcmp.lt.s32.totalorder %v3032_v33, 2 }
 0x321   :  { %vm3034_vm10 = vcmp.eq.s32.totalorder %v3032_v33, 0  ;;  %v3699_v46 = vadd.s32 4294967294, %v1462_v10  ;;  %v3701_v37 = vadd.s32 4294967169, %v1501_v39  ;;  %vm3037_vm11 = vcmp.eq.s32.totalorder %v3032_v33, 2 }
 0x322   :  { %v1450_v48 = vadd.s32 %v6115_v43, %v6112_v16  ;;  %v3081_v27 = vsel %vm3075_vm5, %v3078_v3, %v3080_v8  ;;  %v3100_v57 = vadd.s32 1, %v6197_v18  ;;  %v1483_v4 = vsel %vm6209_vm8, 0, %v1481_v60 }
 0x323   :  { %v4016_v47 = vpop.eup %4015  ;;  %vm3700_vm12 = vcmp.lt.s32.totalorder %v3699_v46, 0  ;;  %v1504_v2 = vand.u32 8388607, %v1497_v44  ;;  %v1507_v40 = vadd.s32 1, %v3701_v37  ;;  %vm3099_vm13 = vc.u32 %v6217_v13, %v6196_v31 }
 0x324   :  { %v4018_v7 = vpop.eup %4017  ;;  %v3038_v63 = vxor.u32 2147483648, %v4016_v47  ;;  %v1465_v14 = vsel %vm3700_vm12, 0, %v3699_v46  ;;  %v6232_v16 = vadd.f32 %v5753_v55, %v4204_v34  ;;  %v3097_v9 = vmul.u32 %v6162_v49, %v3081_v27 }
 0x325   :  { %v3035_v43 = vxor.u32 2147483648, %v4018_v7  ;;  %v1466_v23 = vsub.s32 32, %v1465_v14  ;;  %v1470_v12 = vsub.s32 4294967266, %v1465_v14  ;;  %v1467_v51 = vshll.u32 %v6173_v29, %v1465_v14 }
 0x326   :  { %v3039_v59 = vsel %vm3037_vm11, %v3038_v63, %v4018_v7  ;;  %v3101_v56 = vsel %vm3099_vm13, %v3100_v57, %v6197_v18  ;;  %vm1508_vm14 = vcmp.gt.s32.totalorder %v1507_v40, 0  ;;  %v1505_v20 = vor.u32 8388608, %v1504_v2 }
 0x327   :  { %v3036_v42 = vsel %vm3034_vm10, %v4016_v47, %v3035_v43  ;;  %v1468_v53 = vshrl.u32 %v1450_v48, %v1466_v23  ;;  %v1471_v45 = vadd.s32 127, %v1470_v12  ;;  %v3102_v0 = vadd.s32 %v3101_v56, %v3097_v9 }
 0x328   :  { %v3040_v55 = vsel %vm3033_vm9, %v3036_v42, %v3039_v59  ;;  %v1509_v61 = vsel %vm1508_vm14, %v1507_v40, 0  ;;  %v3148_v1 = vand.u32 2139095040, %v6232_v16  ;;  %v6245_v8 = vand.u32 3, %v1483_v4 }
 0x329   :  { %v3041_v49 = vsel %vm3031_vm7, nan, %v3040_v55  ;;  %v1469_v36 = vor.u32 %v1468_v53, %v1467_v51  ;;  %v1472_v5 = vshll.u32 %v1471_v45, 23  ;;  %v3103_v29 = vadd.s32 536870912, %v3102_v0 }
 0x32a   :  { %v3583_v3 = vmul.f32 0.088388346, %v3041_v49  ;;  %v1511_v52 = vand.u32 31, %v1509_v61  ;;  %v6247_v24 = vshll.u32 %v1505_v20, 8  ;;  %v3145_v39 = vand.u32 2147483647, %v6232_v16 }
 0x32b   :  { %v1473_v18 = vor.u32 4788187, %v1472_v5  ;;  %v6243_v10 = vshrl.u32 %v3103_v29, 30  ;;  %v1476_v6 = vcvt.s32.f32 %v1469_v36  ;;  %v3149_v46 = vshrl.u32 %v3148_v1, 23 }
 0x32c   :  { %3615 = vst [vmem:[#allocation2 + $0xd0] sm:$0xff] %v3583_v3  ;;  %v1512_v33 = vsub.s32 32, %v1511_v52  ;;  %v1514_v37 = vshll.u32 %v4084_v11, %v1511_v52  ;;  %v1517_v2 = vshll.u32 %v4085_v15, %v1511_v52  ;;  %v3098_v7 = vadd.s32 %v6196_v31, %v6217_v13 }
 0x32d   :  { %v1474_v60 = vand.u32 2147483647, %v1473_v18  ;;  %v3105_v32 = vshll.u32 %v6243_v10, 30  ;;  %v1510_v63 = vshrl.u32 %v1509_v61, 5  ;;  %v1520_v14 = vshll.u32 %v4086_v17, %v1511_v52 }
 0x32e   :  { %v1515_v48 = vshrl.u32 %v4085_v15, %v1512_v33  ;;  %v1518_v27 = vshrl.u32 %v4086_v17, %v1512_v33  ;;  %v1521_v57 = vshrl.u32 %v4087_v19, %v1512_v33  ;;  %v1524_v40 = vshrl.u32 %v4088_v21, %v1512_v33 }
 0x32f   :  { %v1477_v47 = vmul.f32 %v1476_v6, %v1474_v60  ;;  %v6255_v4 = vsub.s32 %v3102_v0, %v3105_v32  ;;  %v1523_v43 = vshll.u32 %v4087_v19, %v1511_v52  ;;  %v1526_v42 = vshll.u32 %v4088_v21, %v1511_v52 }
 0x330   :  { %v1516_v9 = vor.u32 %v1515_v48, %v1514_v37  ;;  %v1519_v59 = vor.u32 %v1518_v27, %v1517_v2  ;;  %v1522_v51 = vor.u32 %v1521_v57, %v1520_v14  ;;  %v1527_v53 = vshrl.u32 %v4089_v28, %v1512_v33  ;;  %v6285_v14 = vpop.f32.mrb[15].mxu1 }
 0x331   :  { %v1478_v23 = vxor.u32 2147483648, %v1477_v47  ;;  %v3108_v12 = vsub.s32 0, %v6255_v4  ;;  %v1525_v56 = vor.u32 %v1524_v40, %v1523_v43  ;;  %v1513_v13 = vshrl.u32 %v4084_v11, %v1512_v33 }
 0x332   :  { %v3765_v0 = vadd.s32 4294967169, %v3149_v46  ;;  %v1528_v20 = vor.u32 %v1527_v53, %v1526_v42  ;;  %vm1529_vm15 = vcmp.lt.s32.totalorder %v1510_v63, 1  ;;  %vm1530_vm0 = vcmp.lt.s32.totalorder %v1510_v63, 2 }
 0x333   :  { %v1479_v45 = vsel %vm1396_vm6, %v1478_v23, %v1477_v47  ;;  %v3762_v31 = vmin.u32 %v3108_v12, %v6255_v4  ;;  %vm3044_vm1 = vcmp.lt.s32.totalorder %v6016_v38, 0  ;;  %vm1531_vm2 = vcmp.lt.s32.totalorder %v1510_v63, 3 }
 0x334   :  { %v1482_v55 = vsel %vm6209_vm8, %v5977_v22, %v1479_v45  ;;  %vm1532_vm4 = vcmp.lt.s32.totalorder %v1510_v63, 4  ;;  %v1537_v49 = vsel %vm1529_vm15, %v1516_v9, %v1519_v59  ;;  %v1533_v29 = vsel %vm1529_vm15, %v1513_v13, %v1516_v9 }
 0x335   :  { %4019 = vcosq.f32 %v1482_v55  ;;  %v3110_v61 = vclz %v3762_v31  ;;  %v1534_v1 = vsel %vm1532_vm4, %v1522_v51, 2102212464  ;;  %v1538_v36 = vsel %vm1532_vm4, %v1525_v56, 920167782 }
 0x336   :  { %4021 = vsinq.f32 %v1482_v55  ;;  %v1539_v3 = vsel %vm1531_vm2, %v1522_v51, %v1538_v36  ;;  %v1541_v52 = vsel %vm1529_vm15, %v1519_v59, %v1522_v51  ;;  %v1535_v18 = vsel %vm1531_vm2, %v1519_v59, %v1534_v1 }
 0x337   :  { %v3763_v5 = vadd.s32 4294967294, %v3110_v61  ;;  %v1540_v62 = vsel %vm1530_vm0, %v1537_v49, %v1539_v3  ;;  %v1542_v33 = vsel %vm1532_vm4, %v1528_v20, 1326507024  ;;  %v3155_v60 = vadd.s32 1, %v3765_v0 }
 0x338   :  { %v1543_v6 = vsel %vm1531_vm2, %v1525_v56, %v1542_v33  ;;  %v6276_v32 = vmul.u32.u64.low %v6247_v24, %v1540_v62  ;;  %v6277_v46 = vmul.u32.u64.high %v6247_v24, %v1540_v62, %v6276_v32  ;;  %vm1489_vm5 = vcmp.eq.s32.totalorder %v6245_v8, 0 }
 0x339   :  { %vm3764_vm3 = vcmp.lt.s32.totalorder %v3763_v5, 0  ;;  %v3128_v48 = vsub.s32 4, %v6243_v10  ;;  %v1544_v27 = vsel %vm1530_vm0, %v1541_v52, %v1543_v6  ;;  %vm3156_vm6 = vcmp.gt.s32.totalorder %v3155_v60, 0 }
 0x33a   :  { %v3113_v37 = vsel %vm3764_vm3, 0, %v3763_v5  ;;  %vm1488_vm7 = vcmp.lt.s32.totalorder %v6245_v8, 2  ;;  %v1536_v2 = vsel %vm1530_vm0, %v1533_v29, %v1535_v18  ;;  %v3157_v40 = vsel %vm3156_vm6, %v3155_v60, 0 }
 0x33b   :  { %v3114_v57 = vsub.s32 32, %v3113_v37  ;;  %v3118_v47 = vsub.s32 4294967266, %v3113_v37  ;;  %vm1486_vm8 = vweird.f32 %v5977_v22  ;;  %vm1492_vm9 = vcmp.eq.s32.totalorder %v6245_v8, 2 }
 0x33c   :  { %v6290_v43 = vmul.u32.u64.low %v6247_v24, %v1544_v27  ;;  %v6291_v23 = vmul.u32.u64.high %v6247_v24, %v1544_v27, %v6290_v43  ;;  %v3159_v12 = vand.u32 31, %v3157_v40  ;;  %v3115_v9 = vshll.u32 %v6255_v4, %v3113_v37 }
 0x33d   :  { %v3116_v59 = vshrl.u32 %v3098_v7, %v3114_v57  ;;  %v3119_v51 = vadd.s32 127, %v3118_v47  ;;  %v1555_v56 = vadd.s32 1, %v6277_v46  ;;  %v6298_v63 = vsel %vm3044_vm1, %v3128_v48, %v6243_v10 }
 0x33e   :  { %v1552_v42 = vmul.u32 %v6247_v24, %v1536_v2  ;;  %v3152_v53 = vand.u32 8388607, %v3145_v39  ;;  %v3160_v45 = vsub.s32 32, %v3159_v12  ;;  %vm6305_vm10 = vcmp.le.f32.partialorder %v3042_v50, 0.7853982 }
 0x33f   :  { %v4020_v31 = vpop.eup %4019  ;;  %v3117_v7 = vor.u32 %v3116_v59, %v3115_v9  ;;  %v3120_v13 = vshll.u32 %v3119_v51, 23  ;;  %v6309_v0 = vshrl.u32 %v3157_v40, 5  ;;  %v3162_v10 = vshll.u32 %v4084_v11, %v3159_v12 }
 0x340   :  { %v4022_v55 = vpop.eup %4021  ;;  %v1493_v20 = vxor.u32 2147483648, %v4020_v31  ;;  %vm1554_vm11 = vc.u32 %v6291_v23, %v6276_v32  ;;  %v3165_v24 = vshll.u32 %v4085_v15, %v3159_v12  ;;  %v3171_v61 = vshll.u32 %v4087_v19, %v3159_v12 }
 0x341   :  { %v1490_v1 = vxor.u32 2147483648, %v4022_v55  ;;  %v3121_v50 = vor.u32 4788187, %v3120_v13  ;;  %v3124_v49 = vcvt.s32.f32 %v3117_v7  ;;  %v1556_v36 = vsel %vm1554_vm11, %v1555_v56, %v6277_v46 }
 0x342   :  { %v1494_v5 = vsel %vm1492_vm9, %v1493_v20, %v4022_v55  ;;  %v1557_v29 = vadd.s32 %v1556_v36, %v1552_v42  ;;  %v3163_v3 = vshrl.u32 %v4085_v15, %v3160_v45  ;;  %v3166_v52 = vshrl.u32 %v4086_v17, %v3160_v45 }
 0x343   :  { %v1491_v18 = vsel %vm1489_vm5, %v4020_v31, %v1490_v1  ;;  %v3122_v62 = vand.u32 2147483647, %v3121_v50  ;;  %v3169_v33 = vshrl.u32 %v4087_v19, %v3160_v45  ;;  %v3172_v60 = vshrl.u32 %v4088_v21, %v3160_v45 }
 0x344   :  { %v1495_v6 = vsel %vm1488_vm7, %v1491_v18, %v1494_v5  ;;  %v1558_v46 = vadd.s32 536870912, %v1557_v29  ;;  %v3164_v37 = vor.u32 %v3163_v3, %v3162_v10  ;;  %v3168_v48 = vshll.u32 %v4086_v17, %v3159_v12 }
 0x345   :  { %v1496_v27 = vsel %vm1486_vm8, nan, %v1495_v6  ;;  %v3125_v57 = vmul.f32 %v3124_v49, %v3122_v62  ;;  %v3167_v47 = vor.u32 %v3166_v52, %v3165_v24  ;;  %v3173_v2 = vor.u32 %v3172_v60, %v3171_v61 }
 0x346   :  { %v3568_v40 = vmul.f32 0.088388346, %v1496_v27  ;;  %v1559_v43 = vshrl.u32 %v1558_v46, 30  ;;  %v3153_v9 = vor.u32 8388608, %v3152_v53  ;;  %v3175_v59 = vshrl.u32 %v4089_v28, %v3160_v45 }
 0x347   :  { %v3126_v51 = vxor.u32 2147483648, %v3125_v57  ;;  %v3170_v56 = vor.u32 %v3169_v33, %v3168_v48  ;;  %v3174_v8 = vshll.u32 %v4088_v21, %v3159_v12  ;;  %v6334_v42 = vadd.f32 %v5843_v41, %v4206_v35 }
 0x348   :  { %3600 = vst [vmem:[#allocation2 + $0x58] sm:$0xff] %v3568_v40  ;;  %v3131_v22 = vsel %vm6305_vm10, 0, %v6298_v63  ;;  %v1560_v31 = vshll.u32 %v1559_v43, 30  ;;  %vm3177_vm12 = vcmp.lt.s32.totalorder %v6309_v0, 1  ;;  %vm3180_vm13 = vcmp.lt.s32.totalorder %v6309_v0, 4 }
 0x349   :  { %v3127_v53 = vsel %vm3044_vm1, %v3126_v51, %v3125_v57  ;;  %v3176_v7 = vor.u32 %v3175_v59, %v3174_v8  ;;  %v3185_v12 = vsel %vm3177_vm12, %v3164_v37, %v3167_v47  ;;  %v3186_v41 = vsel %vm3180_vm13, %v3173_v2, 920167782 }
 0x34a   :  { %v3130_v13 = vsel %vm6305_vm10, %v6016_v38, %v3127_v53  ;;  %v6350_v63 = vsub.s32 %v1557_v29, %v1560_v31  ;;  %vm3179_vm14 = vcmp.lt.s32.totalorder %v6309_v0, 3  ;;  %v3193_v10 = vshll.u32 %v3153_v9, 8 }
 0x34b   :  { %4023 = vcosq.f32 %v3130_v13  ;;  %v3161_v55 = vshrl.u32 %v4084_v11, %v3160_v45  ;;  %vm3178_vm15 = vcmp.lt.s32.totalorder %v6309_v0, 2  ;;  %v3187_v20 = vsel %vm3179_vm14, %v3170_v56, %v3186_v41 }
 0x34c   :  { %4025 = vsinq.f32 %v3130_v13  ;;  %v1563_v24 = vsub.s32 0, %v6350_v63  ;;  %v3182_v4 = vsel %vm3180_vm13, %v3170_v56, 2102212464  ;;  %v3188_v61 = vsel %vm3178_vm15, %v3185_v12, %v3187_v20 }
 0x34d   :  { %v3189_v1 = vsel %vm3177_vm12, %v3167_v47, %v3170_v56  ;;  %v3190_v45 = vsel %vm3180_vm13, %v3176_v7, 1326507024  ;;  %v6366_v50 = vmul.u32.u64.low %v3193_v10, %v3188_v61  ;;  %v6367_v49 = vmul.u32.u64.high %v3193_v10, %v3188_v61, %v6366_v50 }
 0x34e   :  { %v3702_v36 = vmin.u32 %v1563_v24, %v6350_v63  ;;  %v6373_v5 = vadd.f32 %v5928_v30, %v4206_v35  ;;  %v3135_v29 = vand.u32 3, %v3131_v22  ;;  %v3181_v3 = vsel %vm3177_vm12, %v3161_v55, %v3164_v37 }
 0x34f   :  { %v3183_v52 = vsel %vm3179_vm14, %v3167_v47, %v3182_v4  ;;  %v3191_v18 = vsel %vm3179_vm14, %v3173_v2, %v3190_v45  ;;  %v1583_v33 = vsub.s32 4, %v1559_v43  ;;  %v1603_v6 = vand.u32 2139095040, %v6334_v42 }
 0x350   :  { %v1565_v62 = vclz %v3702_v36  ;;  %v3192_v60 = vsel %vm3178_vm15, %v3189_v1, %v3191_v18  ;;  %vm1499_vm0 = vcmp.lt.s32.totalorder %v6125_v58, 0  ;;  %vm3134_vm1 = vweird.f32 %v6016_v38 }
 0x351   :  { %v6385_v30 = vmul.u32.u64.low %v3193_v10, %v3192_v60  ;;  %v6386_v46 = vmul.u32.u64.high %v3193_v10, %v3192_v60, %v6385_v30  ;;  %vm6391_vm2 = vcmp.le.f32.partialorder %v1497_v44, 0.7853982  ;;  %v3184_v27 = vsel %vm3178_vm15, %v3181_v3, %v3183_v52 }
 0x352   :  { %v3703_v48 = vadd.s32 4294967294, %v1565_v62  ;;  %v1600_v57 = vand.u32 2147483647, %v6334_v42  ;;  %v1604_v47 = vshrl.u32 %v1603_v6, 23  ;;  %vm3137_vm4 = vcmp.eq.s32.totalorder %v3135_v29, 0 }
 0x353   :  { %vm3140_vm3 = vcmp.eq.s32.totalorder %v3135_v29, 2  ;;  %v3203_v2 = vadd.s32 1, %v6367_v49  ;;  %v3251_v40 = vand.u32 2139095040, %v6373_v5  ;;  %v1553_v9 = vadd.s32 %v6276_v32, %v6291_v23 }
 0x354   :  { %vm3704_vm5 = vcmp.lt.s32.totalorder %v3703_v48, 0  ;;  %v1584_v44 = vsel %vm1499_vm0, %v1583_v33, %v1559_v43  ;;  %v3705_v59 = vadd.s32 4294967169, %v1604_v47  ;;  %v3200_v56 = vmul.u32 %v3193_v10, %v3184_v27 }
 0x355   :  { %v4024_v51 = vpop.eup %4023  ;;  %v1568_v0 = vsel %vm3704_vm5, 0, %v3703_v48  ;;  %vm3202_vm6 = vc.u32 %v6386_v46, %v6366_v50  ;;  %v3252_v8 = vshrl.u32 %v3251_v40, 23  ;;  %v1607_v12 = vand.u32 8388607, %v1600_v57 }
 0x356   :  { %v4026_v22 = vpop.eup %4025  ;;  %v3141_v31 = vxor.u32 2147483648, %v4024_v51  ;;  %v1569_v53 = vsub.s32 32, %v1568_v0  ;;  %v1573_v7 = vsub.s32 4294967266, %v1568_v0  ;;  %v1570_v23 = vshll.u32 %v6350_v63, %v1568_v0 }
 0x357   :  { %v3138_v32 = vxor.u32 2147483648, %v4026_v22  ;;  %v3204_v43 = vsel %vm3202_vm6, %v3203_v2, %v6367_v49  ;;  %v1610_v41 = vadd.s32 1, %v3705_v59  ;;  %vm3136_vm7 = vcmp.lt.s32.totalorder %v3135_v29, 2 }
 0x358   :  { %v3142_v13 = vsel %vm3140_vm3, %v3141_v31, %v4026_v22  ;;  %v1571_v10 = vshrl.u32 %v1553_v9, %v1569_v53  ;;  %v1574_v55 = vadd.s32 127, %v1573_v7  ;;  %v3205_v20 = vadd.s32 %v3204_v43, %v3200_v56 }
 0x359   :  { %v3139_v24 = vsel %vm3137_vm4, %v4024_v51, %v3138_v32  ;;  %vm1611_vm8 = vcmp.gt.s32.totalorder %v1610_v41, 0  ;;  %v3769_v4 = vadd.s32 4294967169, %v3252_v8  ;;  %v1586_v49 = vsel %vm6391_vm2, 0, %v1584_v44 }
 0x35a   :  { %v3143_v61 = vsel %vm3136_vm7, %v3139_v24, %v3142_v13  ;;  %v1572_v1 = vor.u32 %v1571_v10, %v1570_v23  ;;  %v1575_v45 = vshll.u32 %v1574_v55, 23  ;;  %v3206_v36 = vadd.s32 536870912, %v3205_v20 }
 0x35b   :  { %v3144_v63 = vsel %vm3134_vm1, nan, %v3143_v61  ;;  %v1612_v3 = vsel %vm1611_vm8, %v1610_v41, 0  ;;  %v3248_v52 = vand.u32 2147483647, %v6373_v5  ;;  %v1608_v29 = vor.u32 8388608, %v1607_v12 }
 0x35c   :  { %v3584_v18 = vmul.f32 0.088388346, %v3144_v63  ;;  %v1576_v62 = vor.u32 4788187, %v1575_v45  ;;  %v6417_v33 = vshrl.u32 %v3206_v36, 30  ;;  %v1614_v60 = vand.u32 31, %v1612_v3 }
 0x35d   :  { %v3258_v6 = vadd.s32 1, %v3769_v4  ;;  %v1579_v48 = vcvt.s32.f32 %v1572_v1  ;;  %v6420_v38 = vand.u32 3, %v1586_v49  ;;  %v3201_v47 = vadd.s32 %v6366_v50, %v6386_v46 }
 0x35e   :  { %3616 = vst [vmem:[#allocation2 + $0xd8] sm:$0xff] %v3584_v18  ;;  %v1577_v30 = vand.u32 2147483647, %v1576_v62  ;;  %v3208_v27 = vshll.u32 %v6417_v33, 30  ;;  %v1615_v2 = vsub.s32 32, %v1614_v60  ;;  %v6426_v44 = vshll.u32 %v1608_v29, 8 }
 0x35f   :  { %v6430_v59 = vand.u32 8388607, %v3248_v52  ;;  %v1613_v51 = vshrl.u32 %v1612_v3, 5  ;;  %vm3259_vm9 = vcmp.gt.s32.totalorder %v3258_v6, 0  ;;  %v1617_v50 = vshll.u32 %v4084_v11, %v1614_v60 }
 0x360   :  { %v1580_v40 = vmul.f32 %v1579_v48, %v1577_v30  ;;  %v6424_v9 = vsub.s32 %v3205_v20, %v3208_v27  ;;  %v1618_v0 = vshrl.u32 %v4085_v15, %v1615_v2  ;;  %v1621_v56 = vshrl.u32 %v4086_v17, %v1615_v2 }
 0x361   :  { %v1624_v46 = vshrl.u32 %v4087_v19, %v1615_v2  ;;  %v1620_v31 = vshll.u32 %v4085_v15, %v1614_v60  ;;  %v1623_v53 = vshll.u32 %v4086_v17, %v1614_v60  ;;  %v1626_v7 = vshll.u32 %v4087_v19, %v1614_v60 }
 0x362   :  { %v1581_v8 = vxor.u32 2147483648, %v1580_v40  ;;  %v3211_v22 = vsub.s32 0, %v6424_v9  ;;  %v1627_v12 = vshrl.u32 %v4088_v21, %v1615_v2  ;;  %v3231_v43 = vsub.s32 4, %v6417_v33 }
 0x363   :  { %v1619_v41 = vor.u32 %v1618_v0, %v1617_v50  ;;  %v1622_v10 = vor.u32 %v1621_v56, %v1620_v31  ;;  %v1625_v55 = vor.u32 %v1624_v46, %v1623_v53  ;;  %v1629_v4 = vshll.u32 %v4088_v21, %v1614_v60 }
 0x364   :  { %v1582_v32 = vsel %vm1499_vm0, %v1581_v8, %v1580_v40  ;;  %v3766_v23 = vmin.u32 %v3211_v22, %v6424_v9  ;;  %v1628_v20 = vor.u32 %v1627_v12, %v1626_v7  ;;  %v1630_v61 = vshrl.u32 %v4089_v28, %v1615_v2 }
 0x365   :  { %v1585_v13 = vsel %vm6391_vm2, %v6125_v58, %v1582_v32  ;;  %v1616_v1 = vshrl.u32 %v4084_v11, %v1615_v2  ;;  %vm1632_vm10 = vcmp.lt.s32.totalorder %v1613_v51, 1  ;;  %v3260_v45 = vsel %vm3259_vm9, %v3258_v6, 0 }
 0x366   :  { %4027 = vcosq.f32 %v1585_v13  ;;  %v3213_v24 = vclz %v3766_v23  ;;  %vm3147_vm11 = vcmp.lt.s32.totalorder %v6232_v16, 0  ;;  %v1631_v37 = vor.u32 %v1630_v61, %v1629_v4 }
 0x367   :  { %4029 = vsinq.f32 %v1585_v13  ;;  %vm1634_vm12 = vcmp.lt.s32.totalorder %v1613_v51, 3  ;;  %vm1635_vm13 = vcmp.lt.s32.totalorder %v1613_v51, 4  ;;  %v1640_v49 = vsel %vm1632_vm10, %v1619_v41, %v1622_v10 }
 0x368   :  { %v3767_v36 = vadd.s32 4294967294, %v3213_v24  ;;  %v1637_v63 = vsel %vm1635_vm13, %v1625_v55, 2102212464  ;;  %v1641_v3 = vsel %vm1635_vm13, %v1628_v20, 920167782  ;;  %v1644_v18 = vsel %vm1632_vm10, %v1622_v10, %v1625_v55 }
 0x369   :  { %vm1633_vm15 = vcmp.lt.s32.totalorder %v1613_v51, 2  ;;  %v1642_v62 = vsel %vm1634_vm12, %v1625_v55, %v1641_v3  ;;  %v1645_v29 = vsel %vm1635_vm13, %v1631_v37, 1326507024  ;;  %v1636_v6 = vsel %vm1632_vm10, %v1616_v1, %v1619_v41 }
 0x36a   :  { %vm3768_vm14 = vcmp.lt.s32.totalorder %v3767_v36, 0  ;;  %v1643_v30 = vsel %vm1633_vm15, %v1640_v49, %v1642_v62  ;;  %v1646_v48 = vsel %vm1634_vm12, %v1628_v20, %v1645_v29  ;;  %vm1591_vm0 = vcmp.lt.s32.totalorder %v6420_v38, 2 }
 0x36b   :  { %v3216_v60 = vsel %vm3768_vm14, 0, %v3767_v36  ;;  %v1638_v40 = vsel %vm1634_vm12, %v1622_v10, %v1637_v63  ;;  %v1647_v0 = vsel %vm1633_vm15, %v1644_v18, %v1646_v48  ;;  %vm1589_vm1 = vweird.f32 %v6125_v58 }
 0x36c   :  { %v3217_v27 = vsub.s32 32, %v3216_v60  ;;  %v3221_v2 = vsub.s32 4294967266, %v3216_v60  ;;  %v6464_v56 = vmul.u32.u64.low %v6426_v44, %v1647_v0  ;;  %v6465_v8 = vmul.u32.u64.high %v6426_v44, %v1647_v0, %v6464_v56 }
 0x36d   :  { %v6468_v22 = vmul.u32.u64.low %v6426_v44, %v1643_v30  ;;  %v6469_v50 = vmul.u32.u64.high %v6426_v44, %v1643_v30, %v6468_v22  ;;  %v3218_v46 = vshll.u32 %v6424_v9, %v3216_v60  ;;  %v3262_v7 = vand.u32 31, %v3260_v45 }
 0x36e   :  { %v3219_v31 = vshrl.u32 %v3201_v47, %v3217_v27  ;;  %v3222_v53 = vadd.s32 127, %v3221_v2  ;;  %vm1592_vm2 = vcmp.eq.s32.totalorder %v6420_v38, 0  ;;  %vm1595_vm4 = vcmp.eq.s32.totalorder %v6420_v38, 2 }
 0x36f   :  { %v1639_v12 = vsel %vm1633_vm15, %v1636_v6, %v1638_v40  ;;  %v6478_v32 = vadd.f32 %v6043_v26, %v4204_v34  ;;  %v3256_v10 = vor.u32 8388608, %v6430_v59  ;;  %v3263_v55 = vsub.s32 32, %v3262_v7 }
 0x370   :  { %v4028_v23 = vpop.eup %4027  ;;  %v3220_v41 = vor.u32 %v3219_v31, %v3218_v46  ;;  %v3223_v13 = vshll.u32 %v3222_v53, 23  ;;  %v3232_v20 = vsel %vm3147_vm11, %v3231_v43, %v6417_v33  ;;  %vm1657_vm3 = vc.u32 %v6465_v8, %v6468_v22 }
 0x371   :  { %v4030_v9 = vpop.eup %4029  ;;  %v1596_v47 = vxor.u32 2147483648, %v4028_v23  ;;  %v1658_v51 = vadd.s32 1, %v6469_v50  ;;  %v1655_v4 = vmul.u32 %v6426_v44, %v1639_v12  ;;  %v3265_v61 = vshll.u32 %v4084_v11, %v3262_v7 }
 0x372   :  { %v1593_v24 = vxor.u32 2147483648, %v4030_v9  ;;  %v3224_v26 = vor.u32 4788187, %v3223_v13  ;;  %v3227_v1 = vcvt.s32.f32 %v3220_v41  ;;  %v3266_v37 = vshrl.u32 %v4085_v15, %v3263_v55 }
 0x373   :  { %v1597_v59 = vsel %vm1595_vm4, %v1596_v47, %v4030_v9  ;;  %v1659_v36 = vsel %vm1657_vm3, %v1658_v51, %v6469_v50  ;;  %v3269_v49 = vshrl.u32 %v4086_v17, %v3263_v55  ;;  %v6498_v3 = vshrl.u32 %v3260_v45, 5 }
 0x374   :  { %v1594_v33 = vsel %vm1592_vm2, %v4028_v23, %v1593_v24  ;;  %v3225_v43 = vand.u32 2147483647, %v3224_v26  ;;  %v1660_v63 = vadd.s32 %v1659_v36, %v1655_v4  ;;  %v3267_v18 = vor.u32 %v3266_v37, %v3265_v61 }
 0x375   :  { %v1598_v44 = vsel %vm1591_vm0, %v1594_v33, %v1597_v59  ;;  %v3268_v62 = vshll.u32 %v4085_v15, %v3262_v7  ;;  %v3272_v30 = vshrl.u32 %v4087_v19, %v3263_v55  ;;  %v3271_v27 = vshll.u32 %v4086_v17, %v3262_v7 }
 0x376   :  { %v1599_v29 = vsel %vm1589_vm1, nan, %v1598_v44  ;;  %v3228_v60 = vmul.f32 %v3227_v1, %v3225_v43  ;;  %v1661_v6 = vadd.s32 536870912, %v1660_v63  ;;  %v3274_v2 = vshll.u32 %v4087_v19, %v3262_v7 }
 0x377   :  { %v3569_v48 = vmul.f32 0.088388346, %v1599_v29  ;;  %v3275_v38 = vshrl.u32 %v4088_v21, %v3263_v55  ;;  %v3270_v0 = vor.u32 %v3269_v49, %v3268_v62  ;;  %v3278_v56 = vshrl.u32 %v4089_v28, %v3263_v55 }
 0x378   :  { %v3229_v40 = vxor.u32 2147483648, %v3228_v60  ;;  %v1662_v45 = vshrl.u32 %v1661_v6, 30  ;;  %vm6510_vm5 = vcmp.le.f32.partialorder %v3145_v39, 0.7853982  ;;  %v3277_v46 = vshll.u32 %v4088_v21, %v3262_v7 }
 0x379   :  { %3601 = vst [vmem:[#allocation2 + $0x60] sm:$0xff] %v3569_v48  ;;  %v3276_v50 = vor.u32 %v3275_v38, %v3274_v2  ;;  %v6515_v31 = vshll.u32 %v3256_v10, 8  ;;  %v3234_v12 = vsel %vm6510_vm5, 0, %v3232_v20  ;;  %v3273_v41 = vor.u32 %v3272_v30, %v3271_v27 }
 0x37a   :  { %v3230_v53 = vsel %vm3147_vm11, %v3229_v40, %v3228_v60  ;;  %v1663_v23 = vshll.u32 %v1662_v45, 30  ;;  %v3279_v13 = vor.u32 %v3278_v56, %v3277_v46  ;;  %vm3280_vm6 = vcmp.lt.s32.totalorder %v6498_v3, 1 }
 0x37b   :  { %v3233_v39 = vsel %vm6510_vm5, %v6232_v16, %v3230_v53  ;;  %v1706_v9 = vand.u32 2139095040, %v6478_v32  ;;  %vm3283_vm7 = vcmp.lt.s32.totalorder %v6498_v3, 4  ;;  %v3288_v10 = vsel %vm3280_vm6, %v3267_v18, %v3270_v0 }
 0x37c   :  { %4031 = vcosq.f32 %v3233_v39  ;;  %v6526_v7 = vsub.s32 %v1660_v63, %v1663_v23  ;;  %v3264_v47 = vshrl.u32 %v4084_v11, %v3263_v55  ;;  %vm3282_vm8 = vcmp.lt.s32.totalorder %v6498_v3, 3 }
 0x37d   :  { %4033 = vsinq.f32 %v3233_v39  ;;  %v3289_v20 = vsel %vm3283_vm7, %v3276_v50, 920167782  ;;  %v1686_v24 = vsub.s32 4, %v1662_v45  ;;  %vm3281_vm9 = vcmp.lt.s32.totalorder %v6498_v3, 2 }
 0x37e   :  { %v1666_v51 = vsub.s32 0, %v6526_v7  ;;  %v3290_v26 = vsel %vm3282_vm8, %v3273_v41, %v3289_v20  ;;  %v3285_v4 = vsel %vm3283_vm7, %v3273_v41, 2102212464  ;;  %v3292_v59 = vsel %vm3280_vm6, %v3270_v0, %v3273_v41 }
 0x37f   :  { %v3291_v61 = vsel %vm3281_vm9, %v3288_v10, %v3290_v26  ;;  %v3293_v1 = vsel %vm3283_vm7, %v3279_v13, 1326507024  ;;  %v3238_v55 = vand.u32 3, %v3234_v12  ;;  %vm1602_vm10 = vcmp.lt.s32.totalorder %v6334_v42, 0 }
 0x380   :  { %v3706_v36 = vmin.u32 %v1666_v51, %v6526_v7  ;;  %v1703_v37 = vand.u32 2147483647, %v6478_v32  ;;  %v3284_v33 = vsel %vm3280_vm6, %v3264_v47, %v3267_v18  ;;  %v3294_v43 = vsel %vm3282_vm8, %v3276_v50, %v3293_v1 }
 0x381   :  { %v6549_v63 = vmul.u32.u64.low %v6515_v31, %v3291_v61  ;;  %v6550_v49 = vmul.u32.u64.high %v6515_v31, %v3291_v61, %v6549_v63  ;;  %v3286_v62 = vsel %vm3282_vm8, %v3270_v0, %v3285_v4  ;;  %v3295_v29 = vsel %vm3281_vm9, %v3292_v59, %v3294_v43 }
 0x382   :  { %v1668_v44 = vclz %v3706_v36  ;;  %v1707_v60 = vshrl.u32 %v1706_v9, 23  ;;  %vm3237_vm11 = vweird.f32 %v6232_v16  ;;  %vm6560_vm12 = vcmp.le.f32.partialorder %v1600_v57, 0.7853982 }
 0x383   :  { %v1687_v6 = vsel %vm1602_vm10, %v1686_v24, %v1662_v45  ;;  %v6567_v30 = vmul.u32.u64.low %v6515_v31, %v3295_v29  ;;  %v6568_v48 = vmul.u32.u64.high %v6515_v31, %v3295_v29, %v6567_v30  ;;  %vm3239_vm13 = vcmp.lt.s32.totalorder %v3238_v55, 2 }
 0x384   :  { %vm3240_vm14 = vcmp.eq.s32.totalorder %v3238_v55, 0  ;;  %v3707_v27 = vadd.s32 4294967294, %v1668_v44  ;;  %v3709_v2 = vadd.s32 4294967169, %v1707_v60  ;;  %vm3243_vm15 = vcmp.eq.s32.totalorder %v3238_v55, 2 }
 0x385   :  { %v1656_v38 = vadd.s32 %v6468_v22, %v6465_v8  ;;  %v3287_v57 = vsel %vm3281_vm9, %v3284_v33, %v3286_v62  ;;  %v3306_v40 = vadd.s32 1, %v6550_v49  ;;  %v1689_v45 = vsel %vm6560_vm12, 0, %v1687_v6 }
 0x386   :  { %v4032_v0 = vpop.eup %4031  ;;  %vm3708_vm0 = vcmp.lt.s32.totalorder %v3707_v27, 0  ;;  %v1710_v56 = vand.u32 8388607, %v1703_v37  ;;  %v1713_v58 = vadd.s32 1, %v3709_v2  ;;  %vm3305_vm1 = vc.u32 %v6568_v48, %v6549_v63 }
 0x387   :  { %v4034_v50 = vpop.eup %4033  ;;  %v3244_v46 = vxor.u32 2147483648, %v4032_v0  ;;  %v1671_v53 = vsel %vm3708_vm0, 0, %v3707_v27  ;;  %v6583_v8 = vadd.f32 %v6107_v25, %v4204_v34  ;;  %v3303_v23 = vmul.u32 %v6515_v31, %v3287_v57 }
 0x388   :  { %v3241_v22 = vxor.u32 2147483648, %v4034_v50  ;;  %v1672_v3 = vsub.s32 32, %v1671_v53  ;;  %v1676_v12 = vsub.s32 4294967266, %v1671_v53  ;;  %v1673_v39 = vshll.u32 %v6526_v7, %v1671_v53 }
 0x389   :  { %v3245_v41 = vsel %vm3243_vm15, %v3244_v46, %v4034_v50  ;;  %v3307_v13 = vsel %vm3305_vm1, %v3306_v40, %v6550_v49  ;;  %vm1714_vm2 = vcmp.gt.s32.totalorder %v1713_v58, 0  ;;  %v1711_v25 = vor.u32 8388608, %v1710_v56 }
 0x38a   :  { %v3242_v9 = vsel %vm3240_vm14, %v4032_v0, %v3241_v22  ;;  %v1674_v10 = vshrl.u32 %v1656_v38, %v1672_v3  ;;  %v1677_v47 = vadd.s32 127, %v1676_v12  ;;  %v3308_v20 = vadd.s32 %v3307_v13, %v3303_v23 }
 0x38b   :  { %v3246_v34 = vsel %vm3239_vm13, %v3242_v9, %v3245_v41  ;;  %v1715_v51 = vsel %vm1714_vm2, %v1713_v58, 0  ;;  %v3354_v24 = vand.u32 2139095040, %v6583_v8  ;;  %v6596_v33 = vand.u32 3, %v1689_v45 }
 0x38c   :  { %v3247_v31 = vsel %vm3237_vm11, nan, %v3246_v34  ;;  %v1675_v26 = vor.u32 %v1674_v10, %v1673_v39  ;;  %v1678_v4 = vshll.u32 %v1677_v47, 23  ;;  %v3309_v7 = vadd.s32 536870912, %v3308_v20 }
 0x38d   :  { %v3585_v61 = vmul.f32 0.088388346, %v3247_v31  ;;  %v1717_v59 = vand.u32 31, %v1715_v51  ;;  %v6598_v43 = vshll.u32 %v1711_v25, 8  ;;  %v3351_v49 = vand.u32 2147483647, %v6583_v8 }
 0x38e   :  { %v1679_v1 = vor.u32 4788187, %v1678_v4  ;;  %v6594_v36 = vshrl.u32 %v3309_v7, 30  ;;  %v1682_v62 = vcvt.s32.f32 %v1675_v26  ;;  %v3355_v29 = vshrl.u32 %v3354_v24, 23 }
 0x38f   :  { %3617 = vst [vmem:[#allocation2 + $0xe0] sm:$0xff] %v3585_v61  ;;  %v1718_v55 = vsub.s32 32, %v1717_v59  ;;  %v1720_v60 = vshll.u32 %v4084_v11, %v1717_v59  ;;  %v1723_v57 = vshll.u32 %v4085_v15, %v1717_v59  ;;  %v3304_v0 = vadd.s32 %v6549_v63, %v6568_v48 }
 0x390   :  { %v1680_v44 = vand.u32 2147483647, %v1679_v1  ;;  %v3311_v16 = vshll.u32 %v6594_v36, 30  ;;  %v1716_v45 = vshrl.u32 %v1715_v51, 5  ;;  %v1726_v56 = vshll.u32 %v4086_v17, %v1717_v59 }
 0x391   :  { %v1721_v6 = vshrl.u32 %v4085_v15, %v1718_v55  ;;  %v1724_v30 = vshrl.u32 %v4086_v17, %v1718_v55  ;;  %v1727_v27 = vshrl.u32 %v4087_v19, %v1718_v55  ;;  %v1730_v40 = vshrl.u32 %v4088_v21, %v1718_v55 }
 0x392   :  { %v1683_v2 = vmul.f32 %v1682_v62, %v1680_v44  ;;  %v6606_v38 = vsub.s32 %v3308_v20, %v3311_v16  ;;  %v1729_v58 = vshll.u32 %v4087_v19, %v1717_v59  ;;  %v1732_v23 = vshll.u32 %v4088_v21, %v1717_v59 }
 0x393   :  { %v1722_v53 = vor.u32 %v1721_v6, %v1720_v60  ;;  %v1725_v22 = vor.u32 %v1724_v30, %v1723_v57  ;;  %v1728_v3 = vor.u32 %v1727_v27, %v1726_v56  ;;  %v1733_v41 = vshrl.u32 %v4089_v28, %v1718_v55 }
 0x394   :  { %v1684_v50 = vxor.u32 2147483648, %v1683_v2  ;;  %v3314_v46 = vsub.s32 0, %v6606_v38  ;;  %v1731_v12 = vor.u32 %v1730_v40, %v1729_v58  ;;  %v1719_v48 = vshrl.u32 %v4084_v11, %v1718_v55 }
 0x395   :  { %v3773_v13 = vadd.s32 4294967169, %v3355_v29  ;;  %v1734_v10 = vor.u32 %v1733_v41, %v1732_v23  ;;  %vm1735_vm4 = vcmp.lt.s32.totalorder %v1716_v45, 1  ;;  %vm1736_vm3 = vcmp.lt.s32.totalorder %v1716_v45, 2 }
 0x396   :  { %v1685_v39 = vsel %vm1602_vm10, %v1684_v50, %v1683_v2  ;;  %v3770_v63 = vmin.u32 %v3314_v46, %v6606_v38  ;;  %vm3250_vm5 = vcmp.lt.s32.totalorder %v6373_v5, 0  ;;  %vm1737_vm6 = vcmp.lt.s32.totalorder %v1716_v45, 3 }
 0x397   :  { %v1688_v9 = vsel %vm6560_vm12, %v6334_v42, %v1685_v39  ;;  %vm1738_vm7 = vcmp.lt.s32.totalorder %v1716_v45, 4  ;;  %v1743_v34 = vsel %vm1735_vm4, %v1722_v53, %v1725_v22  ;;  %v1739_v24 = vsel %vm1735_vm4, %v1719_v48, %v1722_v53 }
 0x398   :  { %4035 = vcosq.f32 %v1688_v9  ;;  %v3316_v47 = vclz %v3770_v63  ;;  %v1740_v20 = vsel %vm1738_vm7, %v1728_v3, 2102212464  ;;  %v1744_v25 = vsel %vm1738_vm7, %v1731_v12, 920167782 }
 0x399   :  { %4037 = vsinq.f32 %v1688_v9  ;;  %v1745_v31 = vsel %vm1737_vm6, %v1728_v3, %v1744_v25  ;;  %v1747_v26 = vsel %vm1735_vm4, %v1725_v22, %v1728_v3  ;;  %v1741_v4 = vsel %vm1737_vm6, %v1725_v22, %v1740_v20 }
 0x39a   :  { %v3771_v51 = vadd.s32 4294967294, %v3316_v47  ;;  %v1746_v18 = vsel %vm1736_vm3, %v1743_v34, %v1745_v31  ;;  %v1748_v7 = vsel %vm1738_vm7, %v1734_v10, 1326507024  ;;  %v3361_v61 = vadd.s32 1, %v3773_v13 }
 0x39b   :  { %v1749_v59 = vsel %vm1737_vm6, %v1731_v12, %v1748_v7  ;;  %v6627_v1 = vmul.u32.u64.low %v6598_v43, %v1746_v18  ;;  %v6628_v55 = vmul.u32.u64.high %v6598_v43, %v1746_v18, %v6627_v1  ;;  %vm1695_vm9 = vcmp.eq.s32.totalorder %v6596_v33, 0 }
 0x39c   :  { %vm3772_vm8 = vcmp.lt.s32.totalorder %v3771_v51, 0  ;;  %v3334_v62 = vsub.s32 4, %v6594_v36  ;;  %v1750_v16 = vsel %vm1736_vm3, %v1747_v26, %v1749_v59  ;;  %vm3362_vm10 = vcmp.gt.s32.totalorder %v3361_v61, 0 }
 0x39d   :  { %v3319_v44 = vsel %vm3772_vm8, 0, %v3771_v51  ;;  %vm1694_vm11 = vcmp.lt.s32.totalorder %v6596_v33, 2  ;;  %v1742_v6 = vsel %vm1736_vm3, %v1739_v24, %v1741_v4  ;;  %v3363_v30 = vsel %vm3362_vm10, %v3361_v61, 0 }
 0x39e   :  { %v3320_v29 = vsub.s32 32, %v3319_v44  ;;  %v3324_v60 = vsub.s32 4294967266, %v3319_v44  ;;  %vm1692_vm12 = vweird.f32 %v6334_v42  ;;  %vm1698_vm13 = vcmp.eq.s32.totalorder %v6596_v33, 2 }
 0x39f   :  { %v6639_v27 = vmul.u32.u64.low %v6598_v43, %v1750_v16  ;;  %v6640_v2 = vmul.u32.u64.high %v6598_v43, %v1750_v16, %v6639_v27  ;;  %v3365_v57 = vand.u32 31, %v3363_v30  ;;  %v3321_v40 = vshll.u32 %v6606_v38, %v3319_v44 }
 0x3a0   :  { %v3322_v56 = vshrl.u32 %v3304_v0, %v3320_v29  ;;  %v3325_v58 = vadd.s32 127, %v3324_v60  ;;  %v1761_v50 = vadd.s32 1, %v6628_v55  ;;  %v6647_v45 = vsel %vm3250_vm5, %v3334_v62, %v6594_v36 }
 0x3a1   :  { %v1758_v46 = vmul.u32 %v6598_v43, %v1742_v6  ;;  %v3358_v53 = vand.u32 8388607, %v3351_v49  ;;  %v3366_v22 = vsub.s32 32, %v3365_v57  ;;  %vm6654_vm14 = vcmp.le.f32.partialorder %v3248_v52, 0.7853982 }
 0x3a2   :  { %v4036_v3 = vpop.eup %4035  ;;  %v3323_v0 = vor.u32 %v3322_v56, %v3321_v40  ;;  %v3326_v12 = vshll.u32 %v3325_v58, 23  ;;  %v6658_v23 = vshrl.u32 %v3363_v30, 5  ;;  %v3368_v36 = vshll.u32 %v4084_v11, %v3365_v57 }
 0x3a3   :  { %v4038_v41 = vpop.eup %4037  ;;  %v1699_v39 = vxor.u32 2147483648, %v4036_v3  ;;  %vm1760_vm15 = vc.u32 %v6640_v2, %v6627_v1  ;;  %v3371_v43 = vshll.u32 %v4085_v15, %v3365_v57  ;;  %v3377_v63 = vshll.u32 %v4087_v19, %v3365_v57 }
 0x3a4   :  { %v1696_v48 = vxor.u32 2147483648, %v4038_v41  ;;  %v3327_v52 = vor.u32 4788187, %v3326_v12  ;;  %v3330_v13 = vcvt.s32.f32 %v3323_v0  ;;  %v1762_v9 = vsel %vm1760_vm15, %v1761_v50, %v6628_v55 }
 0x3a5   :  { %v1700_v10 = vsel %vm1698_vm13, %v1699_v39, %v4038_v41  ;;  %v1763_v47 = vadd.s32 %v1762_v9, %v1758_v46  ;;  %v3369_v20 = vshrl.u32 %v4085_v15, %v3366_v22  ;;  %v3372_v34 = vshrl.u32 %v4086_v17, %v3366_v22 }
 0x3a6   :  { %v1697_v25 = vsel %vm1695_vm9, %v4036_v3, %v1696_v48  ;;  %v3328_v51 = vand.u32 2147483647, %v3327_v52  ;;  %v3375_v24 = vshrl.u32 %v4087_v19, %v3366_v22  ;;  %v3378_v31 = vshrl.u32 %v4088_v21, %v3366_v22 }
 0x3a7   :  { %v1701_v26 = vsel %vm1694_vm11, %v1697_v25, %v1700_v10  ;;  %v1764_v4 = vadd.s32 536870912, %v1763_v47  ;;  %v3370_v18 = vor.u32 %v3369_v20, %v3368_v36  ;;  %v3374_v7 = vshll.u32 %v4086_v17, %v3365_v57 }
 0x3a8   :  { %v1702_v61 = vsel %vm1692_vm12, nan, %v1701_v26  ;;  %v3331_v59 = vmul.f32 %v3330_v13, %v3328_v51  ;;  %v3373_v55 = vor.u32 %v3372_v34, %v3371_v43  ;;  %v3379_v44 = vor.u32 %v3378_v31, %v3377_v63 }
 0x3a9   :  { %v3570_v62 = vmul.f32 0.088388346, %v1702_v61  ;;  %v1765_v16 = vshrl.u32 %v1764_v4, 30  ;;  %v3359_v29 = vor.u32 8388608, %v3358_v53  ;;  %v3381_v60 = vshrl.u32 %v4089_v28, %v3366_v22 }
 0x3aa   :  { %v3332_v6 = vxor.u32 2147483648, %v3331_v59  ;;  %v3376_v30 = vor.u32 %v3375_v24, %v3374_v7  ;;  %v3380_v33 = vshll.u32 %v4088_v21, %v3365_v57  ;;  %v6683_v27 = vadd.f32 %v6200_v54, %v4206_v35 }
 0x3ab   :  { %3602 = vst [vmem:[#allocation2 + $0x68] sm:$0xff] %v3570_v62  ;;  %v3337_v42 = vsel %vm6654_vm14, 0, %v6647_v45  ;;  %v1766_v40 = vshll.u32 %v1765_v16, 30  ;;  %vm3383_vm0 = vcmp.lt.s32.totalorder %v6658_v23, 1  ;;  %vm3386_vm1 = vcmp.lt.s32.totalorder %v6658_v23, 4 }
 0x3ac   :  { %v3333_v56 = vsel %vm3250_vm5, %v3332_v6, %v3331_v59  ;;  %v3382_v58 = vor.u32 %v3381_v60, %v3380_v33  ;;  %v3391_v57 = vsel %vm3383_vm0, %v3370_v18, %v3373_v55  ;;  %v3392_v54 = vsel %vm3386_vm1, %v3379_v44, 920167782 }
 0x3ad   :  { %v3336_v50 = vsel %vm6654_vm14, %v6373_v5, %v3333_v56  ;;  %v6699_v45 = vsub.s32 %v1763_v47, %v1766_v40  ;;  %vm3385_vm2 = vcmp.lt.s32.totalorder %v6658_v23, 3  ;;  %v3399_v46 = vshll.u32 %v3359_v29, 8 }
 0x3ae   :  { %4039 = vcosq.f32 %v3336_v50  ;;  %v3367_v53 = vshrl.u32 %v4084_v11, %v3366_v22  ;;  %vm3384_vm4 = vcmp.lt.s32.totalorder %v6658_v23, 2  ;;  %v3393_v3 = vsel %vm3385_vm2, %v3376_v30, %v3392_v54 }
 0x3af   :  { %4041 = vsinq.f32 %v3336_v50  ;;  %v1769_v0 = vsub.s32 0, %v6699_v45  ;;  %v3388_v38 = vsel %vm3386_vm1, %v3376_v30, 2102212464  ;;  %v3394_v12 = vsel %vm3384_vm4, %v3391_v57, %v3393_v3 }
 0x3b0   :  { %v3395_v36 = vsel %vm3383_vm0, %v3373_v55, %v3376_v30  ;;  %v3396_v22 = vsel %vm3386_vm1, %v3382_v58, 1326507024  ;;  %v6715_v41 = vmul.u32.u64.low %v3399_v46, %v3394_v12  ;;  %v6716_v39 = vmul.u32.u64.high %v3399_v46, %v3394_v12, %v6715_v41 }
 0x3b1   :  { %v3710_v43 = vmin.u32 %v1769_v0, %v6699_v45  ;;  %v6722_v63 = vadd.f32 %v6285_v14, %v4206_v35  ;;  %v3341_v48 = vand.u32 3, %v3337_v42  ;;  %v3387_v52 = vsel %vm3383_vm0, %v3367_v53, %v3370_v18 }
 0x3b2   :  { %v3389_v13 = vsel %vm3385_vm2, %v3373_v55, %v3388_v38  ;;  %v3397_v9 = vsel %vm3385_vm2, %v3379_v44, %v3396_v22  ;;  %v1789_v47 = vsub.s32 4, %v1765_v16  ;;  %v1809_v34 = vand.u32 2139095040, %v6683_v27 }
 0x3b3   :  { %v1771_v10 = vclz %v3710_v43  ;;  %v3398_v20 = vsel %vm3384_vm4, %v3395_v36, %v3397_v9  ;;  %vm1705_vm3 = vcmp.lt.s32.totalorder %v6478_v32, 0  ;;  %vm3340_vm5 = vweird.f32 %v6373_v5 }
 0x3b4   :  { %v6734_v35 = vmul.u32.u64.low %v3399_v46, %v3398_v20  ;;  %v6735_v14 = vmul.u32.u64.high %v3399_v46, %v3398_v20, %v6734_v35  ;;  %vm6740_vm6 = vcmp.le.f32.partialorder %v1703_v37, 0.7853982  ;;  %v3390_v24 = vsel %vm3384_vm4, %v3387_v52, %v3389_v13 }
 0x3b5   :  { %v3711_v51 = vadd.s32 4294967294, %v1771_v10  ;;  %v1810_v31 = vshrl.u32 %v1809_v34, 23  ;;  %vm3343_vm7 = vcmp.eq.s32.totalorder %v3341_v48, 0  ;;  %vm3346_vm8 = vcmp.eq.s32.totalorder %v3341_v48, 2 }
 0x3b6   :  { %v3409_v26 = vadd.s32 1, %v6716_v39  ;;  %v3457_v4 = vand.u32 2139095040, %v6722_v63  ;;  %v1759_v18 = vadd.s32 %v6627_v1, %v6640_v2  ;;  %v1790_v37 = vsel %vm1705_vm3, %v1789_v47, %v1765_v16 }
 0x3b7   :  { %vm3712_vm9 = vcmp.lt.s32.totalorder %v3711_v51, 0  ;;  %v3713_v7 = vadd.s32 4294967169, %v1810_v31  ;;  %v3406_v55 = vmul.u32 %v3399_v46, %v3390_v24  ;;  %vm3408_vm10 = vc.u32 %v6735_v14, %v6715_v41 }
 0x3b8   :  { %v4040_v61 = vpop.eup %4039  ;;  %v1774_v59 = vsel %vm3712_vm9, 0, %v3711_v51  ;;  %v1806_v23 = vand.u32 2147483647, %v6683_v27  ;;  %v3458_v6 = vshrl.u32 %v3457_v4, 23  ;;  %v3410_v2 = vsel %vm3408_vm10, %v3409_v26, %v6716_v39 }
 0x3b9   :  { %v4042_v44 = vpop.eup %4041  ;;  %v3347_v62 = vxor.u32 2147483648, %v4040_v61  ;;  %v1775_v29 = vsub.s32 32, %v1774_v59  ;;  %v1779_v60 = vsub.s32 4294967266, %v1774_v59  ;;  %v1776_v1 = vshll.u32 %v6699_v45, %v1774_v59 }
 0x3ba   :  { %v3344_v30 = vxor.u32 2147483648, %v4042_v44  ;;  %v1816_v16 = vadd.s32 1, %v3713_v7  ;;  %v3411_v56 = vadd.s32 %v3410_v2, %v3406_v55  ;;  %vm3342_vm11 = vcmp.lt.s32.totalorder %v3341_v48, 2 }
 0x3bb   :  { %v3348_v33 = vsel %vm3346_vm8, %v3347_v62, %v4042_v44  ;;  %v1777_v42 = vshrl.u32 %v1759_v18, %v1775_v29  ;;  %v1780_v40 = vadd.s32 127, %v1779_v60  ;;  %v1813_v57 = vand.u32 8388607, %v1806_v23 }
 0x3bc   :  { %v3345_v58 = vsel %vm3343_vm7, %v4040_v61, %v3344_v30  ;;  %vm1817_vm12 = vcmp.gt.s32.totalorder %v1816_v16, 0  ;;  %v3412_v53 = vadd.s32 536870912, %v3411_v56  ;;  %v1792_v3 = vsel %vm6740_vm6, 0, %v1790_v37 }
 0x3bd   :  { %v3349_v54 = vsel %vm3342_vm11, %v3345_v58, %v3348_v33  ;;  %v1778_v50 = vor.u32 %v1777_v42, %v1776_v1  ;;  %v1781_v46 = vshll.u32 %v1780_v40, 23  ;;  %v1818_v0 = vsel %vm1817_vm12, %v1816_v16, 0 }
 0x3be   :  { %v3350_v45 = vsel %vm3340_vm5, nan, %v3349_v54  ;;  %v6765_v36 = vshrl.u32 %v3412_v53, 30  ;;  %v3777_v22 = vadd.s32 4294967169, %v3458_v6  ;;  %v1814_v39 = vor.u32 8388608, %v1813_v57 }
 0x3bf   :  { %v3586_v38 = vmul.f32 0.088388346, %v3350_v45  ;;  %v1782_v12 = vor.u32 4788187, %v1781_v46  ;;  %v1820_v43 = vand.u32 31, %v1818_v0  ;;  %v1785_v52 = vcvt.s32.f32 %v1778_v50 }
 0x3c0   :  { %v3414_v13 = vshll.u32 %v6765_v36, 30  ;;  %v6768_v9 = vand.u32 3, %v1792_v3  ;;  %v3454_v10 = vand.u32 2147483647, %v6722_v63  ;;  %v3407_v20 = vadd.s32 %v6715_v41, %v6735_v14 }
 0x3c1   :  { %3618 = vst [vmem:[#allocation2 + $0xe8] sm:$0xff] %v3586_v38  ;;  %v1783_v48 = vand.u32 2147483647, %v1782_v12  ;;  %v1821_v5 = vsub.s32 32, %v1820_v43  ;;  %v3464_v35 = vadd.s32 1, %v3777_v22  ;;  %v1819_v51 = vshrl.u32 %v1818_v0, 5 }
 0x3c2   :  { %v6773_v34 = vsub.s32 %v3411_v56, %v3414_v13  ;;  %v6777_v26 = vshll.u32 %v1814_v39, 8  ;;  %v1823_v37 = vshll.u32 %v4084_v11, %v1820_v43  ;;  %v1826_v61 = vshll.u32 %v4085_v15, %v1820_v43 }
 0x3c3   :  { %v1786_v47 = vmul.f32 %v1785_v52, %v1783_v48  ;;  %v1824_v24 = vshrl.u32 %v4085_v15, %v1821_v5  ;;  %v1827_v31 = vshrl.u32 %v4086_v17, %v1821_v5  ;;  %v1830_v7 = vshrl.u32 %v4087_v19, %v1821_v5 }
 0x3c4   :  { %v3417_v18 = vsub.s32 0, %v6773_v34  ;;  %v1829_v41 = vshll.u32 %v4086_v17, %v1820_v43  ;;  %v1832_v14 = vshll.u32 %v4087_v19, %v1820_v43  ;;  %v1833_v59 = vshrl.u32 %v4088_v21, %v1821_v5 }
 0x3c5   :  { %v1787_v4 = vxor.u32 2147483648, %v1786_v47  ;;  %v1825_v62 = vor.u32 %v1824_v24, %v1823_v37  ;;  %vm3465_vm13 = vcmp.gt.s32.totalorder %v3464_v35, 0  ;;  %v1828_v60 = vor.u32 %v1827_v31, %v1826_v61 }
 0x3c6   :  { %v3774_v44 = vmin.u32 %v3417_v18, %v6773_v34  ;;  %v1831_v6 = vor.u32 %v1830_v7, %v1829_v41  ;;  %v1834_v30 = vor.u32 %v1833_v59, %v1832_v14  ;;  %v1835_v2 = vshll.u32 %v4088_v21, %v1820_v43 }
 0x3c7   :  { %v1788_v55 = vsel %vm1705_vm3, %v1787_v4, %v1786_v47  ;;  %v1836_v16 = vshrl.u32 %v4089_v28, %v1821_v5  ;;  %v1822_v33 = vshrl.u32 %v4084_v11, %v1821_v5  ;;  %vm1838_vm14 = vcmp.lt.s32.totalorder %v1819_v51, 1 }
 0x3c8   :  { %v1791_v29 = vsel %vm6740_vm6, %v6478_v32, %v1788_v55  ;;  %v3419_v1 = vclz %v3774_v44  ;;  %v3466_v42 = vsel %vm3465_vm13, %v3464_v35, 0  ;;  %vm1840_vm15 = vcmp.lt.s32.totalorder %v1819_v51, 3 }
 0x3c9   :  { %4043 = vcosq.f32 %v1791_v29  ;;  %v1837_v56 = vor.u32 %v1836_v16, %v1835_v2  ;;  %vm1841_vm0 = vcmp.lt.s32.totalorder %v1819_v51, 4  ;;  %v1846_v58 = vsel %vm1838_vm14, %v1825_v62, %v1828_v60 }
 0x3ca   :  { %4045 = vsinq.f32 %v1791_v29  ;;  %v3775_v40 = vadd.s32 4294967294, %v3419_v1  ;;  %v1843_v25 = vsel %vm1841_vm0, %v1831_v6, 2102212464  ;;  %v1847_v57 = vsel %vm1841_vm0, %v1834_v30, 920167782 }
 0x3cb   :  { %v1850_v54 = vsel %vm1838_vm14, %v1828_v60, %v1831_v6  ;;  %vm1839_vm2 = vcmp.lt.s32.totalorder %v1819_v51, 2  ;;  %v1848_v50 = vsel %vm1840_vm15, %v1831_v6, %v1847_v57  ;;  %v1851_v46 = vsel %vm1841_vm0, %v1837_v56, 1326507024 }
 0x3cc   :  { %vm3776_vm1 = vcmp.lt.s32.totalorder %v3775_v40, 0  ;;  %v1842_v45 = vsel %vm1838_vm14, %v1822_v33, %v1825_v62  ;;  %v1849_v3 = vsel %vm1839_vm2, %v1846_v58, %v1848_v50  ;;  %v1852_v0 = vsel %vm1840_vm15, %v1834_v30, %v1851_v46 }
 0x3cd   :  { %v3422_v53 = vsel %vm3776_vm1, 0, %v3775_v40  ;;  %v1844_v22 = vsel %vm1840_vm15, %v1828_v60, %v1843_v25  ;;  %v1853_v39 = vsel %vm1839_vm2, %v1850_v54, %v1852_v0  ;;  %vm1795_vm4 = vweird.f32 %v6478_v32 }
 0x3ce   :  { %v3423_v38 = vsub.s32 32, %v3422_v53  ;;  %v3427_v12 = vsub.s32 4294967266, %v3422_v53  ;;  %v6802_v43 = vmul.u32.u64.low %v6777_v26, %v1853_v39  ;;  %v6803_v48 = vmul.u32.u64.high %v6777_v26, %v1853_v39, %v6802_v43 }
 0x3cf   :  { %v6806_v52 = vmul.u32.u64.low %v6777_v26, %v1849_v3  ;;  %v6807_v13 = vmul.u32.u64.high %v6777_v26, %v1849_v3, %v6806_v52  ;;  %v3424_v5 = vshll.u32 %v6773_v34, %v3422_v53  ;;  %v3468_v24 = vand.u32 31, %v3466_v42 }
 0x3d0   :  { %v3425_v47 = vshrl.u32 %v3407_v20, %v3423_v38  ;;  %v3428_v35 = vadd.s32 127, %v3427_v12  ;;  %vm1797_vm3 = vcmp.lt.s32.totalorder %v6768_v9, 2  ;;  %vm1798_vm5 = vcmp.eq.s32.totalorder %v6768_v9, 0 }
 0x3d1   :  { %vm1801_vm6 = vcmp.eq.s32.totalorder %v6768_v9, 2  ;;  %v1845_v31 = vsel %vm1839_vm2, %v1842_v45, %v1844_v22  ;;  %v3461_v7 = vand.u32 8388607, %v3454_v10  ;;  %v6817_v61 = vsub.s32 32, %v3468_v24 }
 0x3d2   :  { %v3426_v18 = vor.u32 %v3425_v47, %v3424_v5  ;;  %v3429_v37 = vshll.u32 %v3428_v35, 23  ;;  %v3437_v41 = vsub.s32 4, %v6765_v36  ;;  %vm1863_vm7 = vc.u32 %v6803_v48, %v6806_v52 }
 0x3d3   :  { %v4044_v4 = vpop.eup %4043  ;;  %v1864_v14 = vadd.s32 1, %v6807_v13  ;;  %v1861_v55 = vmul.u32 %v6777_v26, %v1845_v31  ;;  %v3471_v44 = vshll.u32 %v4084_v11, %v3468_v24  ;;  %v3472_v6 = vshrl.u32 %v4085_v15, %v6817_v61 }
 0x3d4   :  { %v4046_v34 = vpop.eup %4045  ;;  %v1802_v20 = vxor.u32 2147483648, %v4044_v4  ;;  %v3430_v51 = vor.u32 4788187, %v3429_v37  ;;  %v3433_v29 = vcvt.s32.f32 %v3426_v18  ;;  %v3475_v16 = vshrl.u32 %v4086_v17, %v6817_v61 }
 0x3d5   :  { %v1799_v59 = vxor.u32 2147483648, %v4046_v34  ;;  %v1865_v60 = vsel %vm1863_vm7, %v1864_v14, %v6807_v13  ;;  %v3467_v33 = vshrl.u32 %v3466_v42, 5  ;;  %v3473_v40 = vor.u32 %v3472_v6, %v3471_v44 }
 0x3d6   :  { %v1803_v62 = vsel %vm1801_vm6, %v1802_v20, %v4046_v34  ;;  %v3431_v1 = vand.u32 2147483647, %v3430_v51  ;;  %v1866_v2 = vadd.s32 %v1865_v60, %v1861_v55  ;;  %v3474_v56 = vshll.u32 %v4085_v15, %v3468_v24 }
 0x3d7   :  { %v1800_v30 = vsel %vm1798_vm5, %v4044_v4, %v1799_v59  ;;  %v3478_v54 = vshrl.u32 %v4087_v19, %v6817_v61  ;;  %v3477_v46 = vshll.u32 %v4086_v17, %v3468_v24  ;;  %v3480_v53 = vshll.u32 %v4087_v19, %v3468_v24 }
 0x3d8   :  { %v1804_v26 = vsel %vm1797_vm3, %v1800_v30, %v1803_v62  ;;  %v3434_v58 = vmul.f32 %v3433_v29, %v3431_v1  ;;  %v1867_v57 = vadd.s32 536870912, %v1866_v2  ;;  %v3481_v9 = vshrl.u32 %v4088_v21, %v6817_v61 }
 0x3d9   :  { %v1805_v25 = vsel %vm1795_vm4, nan, %v1804_v26  ;;  %v3476_v15 = vor.u32 %v3475_v16, %v3474_v56  ;;  %v3484_v32 = vshrl.u32 %v4089_v28, %v6817_v61  ;;  %vm3353_vm8 = vcmp.lt.s32.totalorder %v6583_v8, 0 }
 0x3da   :  { %v3571_v50 = vmul.f32 0.088388346, %v1805_v25  ;;  %v3435_v42 = vxor.u32 2147483648, %v3434_v58  ;;  %v6845_v45 = vshrl.u32 %v1867_v57, 30  ;;  %v3462_v3 = vor.u32 8388608, %v3461_v7 }
 0x3db   :  { %v3482_v0 = vor.u32 %v3481_v9, %v3480_v53  ;;  %v3483_v38 = vshll.u32 %v4088_v21, %v3468_v24  ;;  %vm6853_vm9 = vcmp.le.f32.partialorder %v3351_v49, 0.7853982  ;;  %v3479_v22 = vor.u32 %v3478_v54, %v3477_v46 }
 0x3dc   :  { %3603 = vst [vmem:[#allocation2 + $0x70] sm:$0xff] %v3571_v50  ;;  %v3436_v19 = vsel %vm3353_vm8, %v3435_v42, %v3434_v58  ;;  %v1869_v12 = vshll.u32 %v6845_v45, 30  ;;  %v3438_v39 = vsel %vm3353_vm8, %v3437_v41, %v6765_v36  ;;  %vm3486_vm10 = vcmp.lt.s32.totalorder %v3467_v33, 1 }
 0x3dd   :  { %v3439_v28 = vsel %vm6853_vm9, %v6583_v8, %v3436_v19  ;;  %v3485_v43 = vor.u32 %v3484_v32, %v3483_v38  ;;  %vm3489_vm11 = vcmp.lt.s32.totalorder %v3467_v33, 4  ;;  %v3494_v49 = vsel %vm3486_vm10, %v3473_v40, %v3476_v15 }
 0x3de   :  { %4047 = vcosq.f32 %v3439_v28  ;;  %v1870_v21 = vsub.s32 %v1866_v2, %v1869_v12  ;;  %vm3488_vm12 = vcmp.lt.s32.totalorder %v3467_v33, 3  ;;  %v3495_v13 = vsel %vm3489_vm11, %v3482_v0, 920167782 }
 0x3df   :  { %4049 = vsinq.f32 %v3439_v28  ;;  %v3502_v5 = vshll.u32 %v3462_v3, 8  ;;  %v3440_v47 = vsel %vm6853_vm9, 0, %v3438_v39  ;;  %vm3487_vm13 = vcmp.lt.s32.totalorder %v3467_v33, 2 }
 0x3e0   :  { %v1872_v35 = vsub.s32 0, %v1870_v21  ;;  %v3496_v36 = vsel %vm3488_vm12, %v3479_v22, %v3495_v13  ;;  %v3491_v24 = vsel %vm3489_vm11, %v3479_v22, 2102212464  ;;  %v3498_v4 = vsel %vm3486_vm10, %v3476_v15, %v3479_v22 }
 0x3e1   :  { %v3497_v31 = vsel %vm3487_vm13, %v3494_v49, %v3496_v36  ;;  %v3499_v18 = vsel %vm3489_vm11, %v3485_v43, 1326507024  ;;  %v3470_v7 = vshrl.u32 %v4084_v11, %v6817_v61  ;;  %v3444_v34 = vand.u32 3, %v3440_v47 }
 0x3e2   :  { %v3714_v37 = vmin.u32 %v1872_v35, %v1870_v21  ;;  %v3500_v20 = vsel %vm3488_vm12, %v3482_v0, %v3499_v18  ;;  %v6871_v41 = vmul.u32.u64.low %v3502_v5, %v3497_v31  ;;  %v6872_v14 = vmul.u32.u64.high %v3502_v5, %v3497_v31, %v6871_v41 }
 0x3e3   :  { %v3490_v51 = vsel %vm3486_vm10, %v3470_v7, %v3473_v40  ;;  %v3492_v55 = vsel %vm3488_vm12, %v3476_v15, %v3491_v24  ;;  %v3501_v44 = vsel %vm3487_vm13, %v3498_v4, %v3500_v20  ;;  %vm3445_vm14 = vcmp.lt.s32.totalorder %v3444_v34, 2 }
 0x3e4   :  { %v1874_v59 = vclz %v3714_v37  ;;  %v6878_v62 = vmul.u32.u64.low %v3502_v5, %v3501_v44  ;;  %v6879_v29 = vmul.u32.u64.high %v3502_v5, %v3501_v44, %v6878_v62  ;;  %v3493_v11 = vsel %vm3487_vm13, %v3490_v51, %v3492_v55 }
 0x3e5   :  { %v3512_v61 = vadd.s32 1, %v6872_v14  ;;  %vm3449_vm15 = vcmp.eq.s32.totalorder %v3444_v34, 2  ;;  %v1862_v2 = vadd.s32 %v6806_v52, %v6803_v48  ;;  %v3509_v33 = vmul.u32 %v3502_v5, %v3493_v11 }
 0x3e6   :  { %v3715_v60 = vadd.s32 4294967294, %v1874_v59  ;;  %vm3511_vm1 = vc.u32 %v6879_v29, %v6871_v41  ;;  %vm3446_vm2 = vcmp.eq.s32.totalorder %v3444_v34, 0  ;;  %vm3443_vm4 = vweird.f32 %v6583_v8 }
 0x3e7   :  { %v3513_v57 = vsel %vm3511_vm1, %v3512_v61, %v6872_v14  ;;  %vm1808_vm3 = vcmp.lt.s32.totalorder %v6683_v27, 0  ;;  %vm6893_vm5 = vcmp.le.f32.partialorder %v1806_v23, 0.7853982  ;;  %v3510_v24 = vadd.s32 %v6871_v41, %v6879_v29 }
 0x3e8   :  { %v4048_v6 = vpop.eup %4047  ;;  %vm3716_vm0 = vcmp.lt.s32.totalorder %v3715_v60, 0  ;;  %v3514_v53 = vadd.s32 %v3513_v57, %v3509_v33  ;;  %vm1898_vm10 = vweird.f32 %v6683_v27  ;;  %vm3456_vm11 = vcmp.lt.s32.totalorder %v6722_v63, 0 }
 0x3e9   :  { %v4050_v30 = vpop.eup %4049  ;;  %v3450_v1 = vxor.u32 2147483648, %v4048_v6  ;;  %v1877_v16 = vsel %vm3716_vm0, 0, %v3715_v60  ;;  %vm3455_vm12 = vcmp.le.f32.partialorder %v3454_v10, 0.7853982  ;;  %vm3546_vm0 = vweird.f32 %v6722_v63 }
 0x3ea   :  { %v3447_v26 = vxor.u32 2147483648, %v4050_v30  ;;  %v1878_v40 = vsub.s32 32, %v1877_v16  ;;  %v1882_v56 = vsub.s32 4294967266, %v1877_v16  ;;  %v1879_v58 = vshll.u32 %v1870_v21, %v1877_v16 }
 0x3eb   :  { %v3451_v25 = vsel %vm3449_vm15, %v3450_v1, %v4050_v30  ;;  %v3515_v15 = vadd.s32 536870912, %v3514_v53  ;;  %v1892_v21 = vsub.s32 4, %v6845_v45 }
 0x3ec   :  { %v3448_v54 = vsel %vm3446_vm2, %v4048_v6, %v3447_v26  ;;  %v1880_v50 = vshrl.u32 %v1862_v2, %v1878_v40  ;;  %v1883_v46 = vadd.s32 127, %v1882_v56 }
 0x3ed   :  { %v3452_v48 = vsel %vm3445_vm14, %v3448_v54, %v3451_v25  ;;  %v3516_v0 = vshrl.u32 %v3515_v15, 30  ;;  %v1893_v47 = vsel %vm1808_vm3, %v1892_v21, %v6845_v45 }
 0x3ee   :  { %v3453_v52 = vsel %vm3443_vm4, nan, %v3452_v48  ;;  %v1881_v9 = vor.u32 %v1880_v50, %v1879_v58  ;;  %v1884_v42 = vshll.u32 %v1883_v46, 23  ;;  %v1895_v23 = vsel %vm6893_vm5, 0, %v1893_v47 }
 0x3ef   :  { %v3587_v32 = vmul.f32 0.088388346, %v3453_v52  ;;  %v3517_v19 = vshll.u32 %v3516_v0, 30  ;;  %v1899_v18 = vand.u32 3, %v1895_v23  ;;  %v3540_v16 = vsub.s32 4, %v3516_v0 }
 0x3f0   :  { %v1885_v3 = vor.u32 4788187, %v1884_v42  ;;  %v1888_v17 = vcvt.s32.f32 %v1881_v9 }
 0x3f1   :  { %3619 = vst [vmem:[#allocation2 + $0xf0] sm:$0xff] %v3587_v32  ;;  %v3518_v22 = vsub.s32 %v3514_v53, %v3517_v19  ;;  %vm1904_vm7 = vcmp.eq.s32.totalorder %v1899_v18, 2  ;;  %vm1901_vm8 = vcmp.eq.s32.totalorder %v1899_v18, 0  ;;  %vm1900_vm9 = vcmp.lt.s32.totalorder %v1899_v18, 2 }
 0x3f2   :  { %v1886_v38 = vand.u32 2147483647, %v1885_v3  ;;  %v3541_v40 = vsel %vm3456_vm11, %v3540_v16, %v3516_v0 }
 0x3f3   :  { %v3520_v28 = vsub.s32 0, %v3518_v22  ;;  %v3543_v56 = vsel %vm3455_vm12, 0, %v3541_v40 }
 0x3f4   :  { %v1889_v12 = vmul.f32 %v1888_v17, %v1886_v38 }
 0x3f5   :  { %v3778_v49 = vmin.u32 %v3520_v28, %v3518_v22 }
 0x3f6   :  { %v1890_v39 = vxor.u32 2147483648, %v1889_v12 }
 0x3f7   :  { %v3522_v5 = vclz %v3778_v49 }
 0x3f8   :  { %v1891_v43 = vsel %vm1808_vm3, %v1890_v39, %v1889_v12 }
 0x3f9   :  { %v1894_v13 = vsel %vm6893_vm5, %v6683_v27, %v1891_v43  ;;  %v3779_v35 = vadd.s32 4294967294, %v3522_v5  ;;  %v3547_v27 = vand.u32 3, %v3543_v56 }
 0x3fa   :  { %4051 = vcosq.f32 %v1894_v13 }
 0x3fb   :  { %4053 = vsinq.f32 %v1894_v13  ;;  %vm3780_vm6 = vcmp.lt.s32.totalorder %v3779_v35, 0  ;;  %vm3552_vm13 = vcmp.eq.s32.totalorder %v3547_v27, 2  ;;  %vm3549_vm14 = vcmp.eq.s32.totalorder %v3547_v27, 0 }
 0x3fc   :  { %v3525_v36 = vsel %vm3780_vm6, 0, %v3779_v35  ;;  %vm3548_vm15 = vcmp.lt.s32.totalorder %v3547_v27, 2 }
 0x3fd   :  { %v3526_v31 = vsub.s32 32, %v3525_v36  ;;  %v3530_v4 = vsub.s32 4294967266, %v3525_v36  ;;  %v3527_v37 = vshll.u32 %v3518_v22, %v3525_v36 }
 0x3ff   :  { %v3528_v7 = vshrl.u32 %v3510_v24, %v3526_v31  ;;  %v3531_v34 = vadd.s32 127, %v3530_v4 }
 0x401   :  { %v3529_v14 = vor.u32 %v3528_v7, %v3527_v37  ;;  %v3532_v59 = vshll.u32 %v3531_v34, 23 }
 0x403   :  { %v3533_v44 = vor.u32 4788187, %v3532_v59  ;;  %v3536_v41 = vcvt.s32.f32 %v3529_v14 }
 0x404   :  { %v4052_v20 = vpop.eup %4051 }
 0x405   :  { %v4054_v51 = vpop.eup %4053  ;;  %v1905_v45 = vxor.u32 2147483648, %v4052_v20  ;;  %v3534_v11 = vand.u32 2147483647, %v3533_v44 }
 0x406   :  { %v1902_v55 = vxor.u32 2147483648, %v4054_v51 }
 0x407   :  { %v1906_v62 = vsel %vm1904_vm7, %v1905_v45, %v4054_v51  ;;  %v3537_v6 = vmul.f32 %v3536_v41, %v3534_v11 }
 0x408   :  { %v1903_v60 = vsel %vm1901_vm8, %v4052_v20, %v1902_v55 }
 0x409   :  { %v1907_v29 = vsel %vm1900_vm9, %v1903_v60, %v1906_v62  ;;  %v3538_v1 = vxor.u32 2147483648, %v3537_v6 }
 0x40a   :  { %v1908_v61 = vsel %vm1898_vm10, nan, %v1907_v29 }
 0x40b   :  { %v3572_v30 = vmul.f32 0.088388346, %v1908_v61  ;;  %v3539_v2 = vsel %vm3456_vm11, %v3538_v1, %v3537_v6 }
 0x40c   :  { %v3542_v26 = vsel %vm3455_vm12, %v6722_v63, %v3539_v2 }
 0x40d   :  { %3604 = vst [vmem:[#allocation2 + $0x78] sm:$0xff] %v3572_v30  ;;  %4055 = vcosq.f32 %v3542_v26 }
 0x40e   :  { %4057 = vsinq.f32 %v3542_v26 }
 0x417   :  { %v4056_v33 = vpop.eup %4055 }
 0x418   :  { %v4058_v25 = vpop.eup %4057  ;;  %v3553_v58 = vxor.u32 2147483648, %v4056_v33 }
 0x419   :  { %v3550_v57 = vxor.u32 2147483648, %v4058_v25 }
 0x41a   :  { %v3554_v54 = vsel %vm3552_vm13, %v3553_v58, %v4058_v25 }
 0x41b   :  { %v3551_v10 = vsel %vm3549_vm14, %v4056_v33, %v3550_v57 }
 0x41c   :  { %v3555_v50 = vsel %vm3548_vm15, %v3551_v10, %v3554_v54 }
 0x41d   :  { %v3556_v46 = vsel %vm3546_vm0, nan, %v3555_v50 }
 0x41e   :  { %v3588_v53 = vmul.f32 0.088388346, %v3556_v46 }
 0x420   :  { %3620 = vst [vmem:[#allocation2 + $0xf8] sm:$0xff] %v3588_v53 }
 0x421   :  { %4070 = shalt.err (!%p4067_p4)
}
 0x422   :  { %s4071_s9 = scalar_lea.hbm %s6927_s3, 4096 }
 0x423   :  { %p4072_p5 = scmp.ne.s32.totalorder %s6927_s3, %s4071_s9  ;;  %p4075_p6 = scmp.lt.u32.totalorder %s4071_s9, %s6927_s3 }
 0x425   :  { %p4077_p7 = pnand %p4075_p6, %p4072_p5 }
 0x427   :  { %4080 = shalt.err (!%p4077_p7)
}
 0x428   :  { %s4091_s14 = smov 256   ;;  %s4092_s15 = smov 16  }
 0x429   :  { %3632 = dma.vmem_to_hbm [thread:$0]  %s3627_s2, 4096, %s6927_s3, [#allocation3], %s4091_s14, %s4091_s14, %s4092_s15  }
 0x42a   :  { %4081 = dma.done.wait [#allocation3], 4096  }
 0x42b   :  { %4082 = vsyncadd [#allocation3], 4294963200 }
 0x42c   :  { %3636 = vsyncpa [#allocation3], 1 }

// kernel: tpu_custom_call.1
= control target key start
LH: loop header
LB: loop body
LE: loop exit
PB: predicated region body
PF: predicated region fallthrough
CT: control target
= control target key end

     0   :  { %v4083_v7 = vmov 0.0   ;;  %vm51_vm0 = vcmask 261120   ;;  %s6924_s0 = inlined_call_operand.vmem [shape: f32[128,32], index: 0, kind: input, shape index: {}]   ;;  %s6925_s1 = inlined_call_operand.vmem [shape: f32[32,256], index: 1, kind: input, shape index: {}]   ;;  %s6926_s2 = inlined_call_operand.vmem [shape: f32[1,256], index: 2, kind: input, shape index: {}]   ;;  %s6927_s3 = inlined_call_operand.hbm [shape: f32[128,256], index: 3, kind: output, shape index: {}]  }
   0x1   :  { %v32_v0 = vld [vmem:[%s6925_s1 + $0x8] sm:$0xff]  ;;  %v34_v1 = vld [vmem:[%s6925_s1 + $0x18] sm:$0xff]  ;;  %v31_v2 = vld [vmem:[%s6925_s1] sm:$0xff]  ;;  %164 = vmatprep.mubr.f32.mxu0 %v4083_v7  ;;  %212 = vmatprep.mubr.f32.mxu1 %v4083_v7 }
   0x2   :  { %v3781_v3 = vpack.c.bf16 %v34_v1, %v32_v0  ;;  %v33_v4 = vld [vmem:[%s6925_s1 + $0x10] sm:$0xff]  ;;  %v36_v5 = vld [vmem:[%s6925_s1 + $0x28] sm:$0xff]  ;;  %v38_v6 = vld [vmem:[%s6925_s1 + $0x38] sm:$0xff] }
   0x3   :  { %v3783_v8 = vpack.c.bf16 %v33_v4, %v31_v2  ;;  %v3785_v9 = vpack.c.bf16 %v38_v6, %v36_v5  ;;  %v35_v10 = vld [vmem:[%s6925_s1 + $0x20] sm:$0xff]  ;;  %v37_v11 = vld [vmem:[%s6925_s1 + $0x30] sm:$0xff] }
   0x4   :  { %3782 = vmatprep.subr.bf16.mxu0 %v3781_v3  ;;  %3789 = vmatprep.subr.bf16.mxu1 %v3781_v3  ;;  %v3787_v12 = vpack.c.bf16 %v37_v11, %v35_v10  ;;  %v15_v13 = vld [vmem:[%s6924_s0] sm:$0xff] }
   0x5   :  { %3784 = vmatpush1.bf16.msra.mxu0 %v3783_v8  ;;  %3791 = vmatpush1.bf16.msra.mxu1 %v3783_v8  ;;  %v23_v14 = vld [vmem:[%s6924_s0 + $0x40] sm:$0xff] }
   0x6   :  { %3786 = vmatprep.subr.bf16.mxu0 %v3785_v9  ;;  %3790 = vmatprep.subr.bf16.mxu1 %v3785_v9 }
   0x9   :  { %3788 = vmatpush1.bf16.msra.mxu0 %v3787_v12  ;;  %3792 = vmatpush1.bf16.msra.mxu1 %v3787_v12 }
   0xa   :  { %8 = vsyncpa [#allocation3], 0  ;;  %v16_v15 = vld [vmem:[%s6924_s0 + $0x8] sm:$0xff]  ;;  %v17_v17 = vld [vmem:[%s6924_s0 + $0x10] sm:$0xff]  ;;  %v41_v29 = vlaneseq  ;;  %v4084_v11 = vmov 683565275  }
   0xb   :  { %v24_v16 = vld [vmem:[%s6924_s0 + $0x48] sm:$0xff]  ;;  %v25_v18 = vld [vmem:[%s6924_s0 + $0x50] sm:$0xff]  ;;  %v18_v19 = vld [vmem:[%s6924_s0 + $0x18] sm:$0xff] }
   0xc   :  { %3637 = vmatmul.mubr.msk.f32.vlgmr.msra.gmra.mrb[0].mxu0 %vm51_vm0, %v15_v13  ;;  %3645 = vmatmul.mubr.msk.f32.vlgmr.msra.gmra.mrb[0].mxu1 %vm51_vm0, %v23_v14  ;;  %v26_v20 = vld [vmem:[%s6924_s0 + $0x58] sm:$0xff]  ;;  %v19_v21 = vld [vmem:[%s6924_s0 + $0x20] sm:$0xff]  ;;  %v20_v23 = vld [vmem:[%s6924_s0 + $0x28] sm:$0xff]  ;;  %v42_v30 = vshrl.u32 %v41_v29, 7 }
   0xd   :  { %170 = vmatprep.mubr.f32.mxu0 %v4083_v7  ;;  %218 = vmatprep.mubr.f32.mxu1 %v4083_v7  ;;  %v27_v22 = vld [vmem:[%s6924_s0 + $0x60] sm:$0xff]  ;;  %v28_v24 = vld [vmem:[%s6924_s0 + $0x68] sm:$0xff]  ;;  %v21_v25 = vld [vmem:[%s6924_s0 + $0x30] sm:$0xff] }
   0xe   :  { %v29_v26 = vld [vmem:[%s6924_s0 + $0x70] sm:$0xff]  ;;  %v22_v27 = vld [vmem:[%s6924_s0 + $0x38] sm:$0xff]  ;;  %v43_v31 = vsub.s32 0, %v42_v30  ;;  %v39_v32 = vld [vmem:[%s6926_s2] sm:$0x3]  ;;  %v47_v33 = vsub.s32 1, %v42_v30 }
   0xf   :  { %v30_v28 = vld [vmem:[%s6924_s0 + $0x78] sm:$0xff]  ;;  %s4090_s0 = smov [#allocation2]  }
  0x10   :  { %3638 = vmatmul.mubr.msk.f32.gmra.mrb[2].mxu0 %vm51_vm0, %v16_v15  ;;  %3646 = vmatmul.mubr.msk.f32.gmra.mrb[2].mxu1 %vm51_vm0, %v24_v16  ;;  %v4204_v34 = vrot.slane %v39_v32, %v43_v31  ;;  %v4206_v35 = vrot.slane %v39_v32, %v47_v33  ;;  %v4085_v15 = vmov 2475754826   ;;  %s3626_s2 = sshll.u32 %s4090_s0, 4  ;;  %s3627_s2 = int_to_ptr.vmem [resolvable:$true] %s3626_s2 }
  0x11   :  { %176 = vmatprep.mubr.f32.mxu0 %v4083_v7  ;;  %224 = vmatprep.mubr.f32.mxu1 %v4083_v7  ;;  %s4059_s6 = scalar_lea.vmem %s3627_s2, 4096  ;;  %p4064_p1 = scmp.lt.s32.totalorder %s3627_s2, %s3627_s2 }
  0x12   :  { %p4060_p0 = scmp.ne.s32.totalorder %s3627_s2, %s4059_s6  ;;  %p4065_p2 = scmp.lt.s32.totalorder %s4059_s6, %s4059_s6 }
  0x14   :  { %3639 = vmatmul.mubr.msk.f32.gmra.mrb[4].mxu0 %vm51_vm0, %v17_v17  ;;  %3647 = vmatmul.mubr.msk.f32.gmra.mrb[4].mxu1 %vm51_vm0, %v25_v18  ;;  %v4086_v17 = vmov 2131351028   ;;  %p4066_p3 = por %p4065_p2, %p4064_p1 }
  0x15   :  { %182 = vmatprep.mubr.f32.mxu0 %v4083_v7  ;;  %230 = vmatprep.mubr.f32.mxu1 %v4083_v7 }
  0x16   :  { %p4067_p4 = pnand %p4066_p3, %p4060_p0 }
  0x18   :  { %3640 = vmatmul.mubr.msk.f32.gmra.mrb[6].mxu0 %vm51_vm0, %v18_v19  ;;  %3648 = vmatmul.mubr.msk.f32.gmra.mrb[6].mxu1 %vm51_vm0, %v26_v20  ;;  %v4087_v19 = vmov 2102212464  }
  0x19   :  { %188 = vmatprep.mubr.f32.mxu0 %v4083_v7  ;;  %236 = vmatprep.mubr.f32.mxu1 %v4083_v7 }
  0x1c   :  { %3641 = vmatmul.mubr.msk.f32.gmra.mrb[8].mxu0 %vm51_vm0, %v19_v21  ;;  %3649 = vmatmul.mubr.msk.f32.gmra.mrb[8].mxu1 %vm51_vm0, %v27_v22  ;;  %v4088_v21 = vmov 920167782  }
  0x1d   :  { %194 = vmatprep.mubr.f32.mxu0 %v4083_v7  ;;  %242 = vmatprep.mubr.f32.mxu1 %v4083_v7 }
  0x20   :  { %3642 = vmatmul.mubr.msk.f32.gmra.mrb[10].mxu0 %vm51_vm0, %v20_v23  ;;  %3650 = vmatmul.mubr.msk.f32.gmra.mrb[10].mxu1 %vm51_vm0, %v28_v24 }
  0x21   :  { %200 = vmatprep.mubr.f32.mxu0 %v4083_v7  ;;  %248 = vmatprep.mubr.f32.mxu1 %v4083_v7 }
  0x24   :  { %3643 = vmatmul.mubr.msk.f32.gmra.mrb[12].mxu0 %vm51_vm0, %v21_v25  ;;  %3651 = vmatmul.mubr.msk.f32.gmra.mrb[12].mxu1 %vm51_vm0, %v29_v26 }
  0x25   :  { %206 = vmatprep.mubr.f32.mxu0 %v4083_v7  ;;  %254 = vmatprep.mubr.f32.mxu1 %v4083_v7 }
  0x28   :  { %3644 = vmatmul.mubr.msk.f32.gmra.mrb[14].mxu0 %vm51_vm0, %v22_v27  ;;  %3652 = vmatmul.mubr.msk.f32.gmra.mrb[14].mxu1 %vm51_vm0, %v30_v28  ;;  %v4089_v28 = vmov 1326507024  }
  0xdf   :  { %v166_v36 = vpop.f32.mrb[0].mxu0  ;;  %v214_v37 = vpop.f32.mrb[0].mxu1 }
  0xe0   :  { %v4209_v38 = vadd.f32 %v166_v36, %v4204_v34  ;;  %v4212_v39 = vadd.f32 %v214_v37, %v4204_v34  ;;  %v168_v40 = vpop.f32.mrb[1].mxu0  ;;  %v216_v41 = vpop.f32.mrb[1].mxu1 }
  0xe1   :  { %v4215_v42 = vadd.f32 %v168_v40, %v4206_v35  ;;  %v4236_v5 = vadd.f32 %v216_v41, %v4206_v35 }
  0xe2   :  { %v261_v43 = vand.u32 2147483647, %v4209_v38  ;;  %v264_v44 = vand.u32 2139095040, %v4209_v38  ;;  %v1909_v45 = vand.u32 2147483647, %v4212_v39  ;;  %v1912_v46 = vand.u32 2139095040, %v4212_v39 }
  0xe3   :  { %v4221_v47 = vpop.f32.mrb[2].mxu0  ;;  %v4223_v48 = vpop.f32.mrb[2].mxu1  ;;  %v367_v53 = vand.u32 2139095040, %v4215_v42  ;;  %v364_v63 = vand.u32 2147483647, %v4215_v42  ;;  %vm263_vm14 = vcmp.lt.s32.totalorder %v4209_v38, 0 }
  0xe4   :  { %v265_v49 = vshrl.u32 %v264_v44, 23  ;;  %v268_v50 = vand.u32 8388607, %v261_v43  ;;  %v1913_v51 = vshrl.u32 %v1912_v46, 23  ;;  %v1916_v52 = vand.u32 8388607, %v1909_v45 }
  0xe5   :  { %v4230_v55 = vpop.f32.mrb[3].mxu0  ;;  %v4232_v56 = vpop.f32.mrb[3].mxu1  ;;  %v368_v58 = vshrl.u32 %v367_v53, 23  ;;  %v4244_v8 = vand.u32 8388607, %v364_v63 }
  0xe6   :  { %v3653_v54 = vadd.s32 4294967169, %v265_v49  ;;  %v3717_v57 = vadd.s32 4294967169, %v1913_v51  ;;  %v269_v59 = vor.u32 8388608, %v268_v50  ;;  %v1917_v61 = vor.u32 8388608, %v1916_v52 }
  0xe7   :  { %v3657_v0 = vadd.s32 4294967169, %v368_v58 }
  0xe8   :  { %v271_v60 = vadd.s32 1, %v3653_v54  ;;  %v1919_v62 = vadd.s32 1, %v3717_v57  ;;  %v4238_v6 = vshll.u32 %v269_v59, 8  ;;  %v4240_v7 = vshll.u32 %v1917_v61, 8 }
  0xe9   :  { %v4246_v9 = vadd.s32 1, %v3657_v0 }
  0xea   :  { %vm272_vm1 = vcmp.gt.s32.totalorder %v271_v60, 0  ;;  %vm1920_vm2 = vcmp.gt.s32.totalorder %v1919_v62, 0 }
  0xeb   :  { %v273_v1 = vsel %vm272_vm1, %v271_v60, 0  ;;  %v1921_v4 = vsel %vm1920_vm2, %v1919_v62, 0  ;;  %vm375_vm7 = vcmp.gt.s32.totalorder %v4246_v9, 0 }
  0xec   :  { %v274_v2 = vshrl.u32 %v273_v1, 5  ;;  %v275_v3 = vand.u32 31, %v273_v1  ;;  %v4249_v13 = vshrl.u32 %v1921_v4, 5  ;;  %v1923_v14 = vand.u32 31, %v1921_v4 }
  0xee   :  { %v276_v10 = vsub.s32 32, %v275_v3  ;;  %v278_v12 = vshll.u32 %v4084_v11, %v275_v3  ;;  %v281_v16 = vshll.u32 %v4085_v15, %v275_v3  ;;  %v284_v18 = vshll.u32 %v4086_v17, %v275_v3 }
  0xef   :  { %v287_v20 = vshll.u32 %v4087_v19, %v275_v3  ;;  %v290_v22 = vshll.u32 %v4088_v21, %v275_v3  ;;  %vm293_vm3 = vcmp.lt.s32.totalorder %v274_v2, 1  ;;  %vm294_vm4 = vcmp.lt.s32.totalorder %v274_v2, 2 }
  0xf0   :  { %v279_v23 = vshrl.u32 %v4085_v15, %v276_v10  ;;  %v282_v24 = vshrl.u32 %v4086_v17, %v276_v10  ;;  %v285_v25 = vshrl.u32 %v4087_v19, %v276_v10  ;;  %v277_v26 = vshrl.u32 %v4084_v11, %v276_v10 }
  0xf1   :  { %v288_v27 = vshrl.u32 %v4088_v21, %v276_v10  ;;  %v291_v29 = vshrl.u32 %v4089_v28, %v276_v10  ;;  %v1924_v33 = vsub.s32 32, %v1923_v14  ;;  %vm295_vm5 = vcmp.lt.s32.totalorder %v274_v2, 3 }
  0xf2   :  { %v280_v30 = vor.u32 %v279_v23, %v278_v12  ;;  %v283_v31 = vor.u32 %v282_v24, %v281_v16  ;;  %v286_v32 = vor.u32 %v285_v25, %v284_v18  ;;  %vm296_vm6 = vcmp.lt.s32.totalorder %v274_v2, 4 }
  0xf3   :  { %v289_v36 = vor.u32 %v288_v27, %v287_v20  ;;  %v292_v37 = vor.u32 %v291_v29, %v290_v22  ;;  %v1926_v52 = vshll.u32 %v4084_v11, %v1923_v14  ;;  %v1927_v57 = vshrl.u32 %v4085_v15, %v1924_v33 }
  0xf4   :  { %v297_v40 = vsel %vm293_vm3, %v277_v26, %v280_v30  ;;  %v298_v41 = vsel %vm296_vm6, %v286_v32, 2102212464  ;;  %v301_v44 = vsel %vm293_vm3, %v280_v30, %v283_v31  ;;  %v305_v46 = vsel %vm293_vm3, %v283_v31, %v286_v32 }
  0xf5   :  { %v299_v49 = vsel %vm295_vm5, %v283_v31, %v298_v41  ;;  %v302_v50 = vsel %vm296_vm6, %v289_v36, 920167782  ;;  %v306_v51 = vsel %vm296_vm6, %v292_v37, 1326507024  ;;  %v1929_v58 = vshll.u32 %v4085_v15, %v1923_v14 }
  0xf6   :  { %v303_v53 = vsel %vm295_vm5, %v286_v32, %v302_v50  ;;  %v307_v54 = vsel %vm295_vm5, %v289_v36, %v306_v51  ;;  %v300_v59 = vsel %vm294_vm4, %v297_v40, %v299_v49  ;;  %v1930_v62 = vshrl.u32 %v4086_v17, %v1924_v33 }
  0xf7   :  { %v304_v60 = vsel %vm294_vm4, %v301_v44, %v303_v53  ;;  %v308_v61 = vsel %vm294_vm4, %v305_v46, %v307_v54  ;;  %v1928_v10 = vor.u32 %v1927_v57, %v1926_v52  ;;  %v1932_v16 = vshll.u32 %v4086_v17, %v1923_v14 }
  0xf8   :  { %v4273_v0 = vmul.u32.u64.low %v4238_v6, %v308_v61  ;;  %v4274_v1 = vmul.u32.u64.high %v4238_v6, %v308_v61, %v4273_v0  ;;  %v4277_v3 = vmul.u32.u64.low %v4238_v6, %v304_v60  ;;  %v4278_v4 = vmul.u32.u64.high %v4238_v6, %v304_v60, %v4277_v3 }
  0xf9   :  { %v1931_v12 = vor.u32 %v1930_v62, %v1929_v58  ;;  %v1933_v18 = vshrl.u32 %v4087_v19, %v1924_v33  ;;  %v1925_v2 = vshrl.u32 %v4084_v11, %v1924_v33  ;;  %v1935_v20 = vshll.u32 %v4087_v19, %v1923_v14 }
  0xfa   :  { %v1936_v22 = vshrl.u32 %v4088_v21, %v1924_v33  ;;  %v1939_v23 = vshrl.u32 %v4089_v28, %v1924_v33  ;;  %v316_v24 = vmul.u32 %v4238_v6, %v300_v59  ;;  %v1938_v26 = vshll.u32 %v4088_v21, %v1923_v14 }
  0xfb   :  { %v1934_v25 = vor.u32 %v1933_v18, %v1932_v16  ;;  %vm1941_vm8 = vcmp.lt.s32.totalorder %v4249_v13, 1  ;;  %vm318_vm9 = vc.u32 %v4274_v1, %v4277_v3  ;;  %v319_v27 = vadd.s32 1, %v4278_v4  ;;  %v4322_v16 = vpop.f32.mrb[4].mxu0 }
  0xfc   :  { %v1937_v29 = vor.u32 %v1936_v22, %v1935_v20  ;;  %vm1942_vm10 = vcmp.lt.s32.totalorder %v4249_v13, 2  ;;  %v1940_v30 = vor.u32 %v1939_v23, %v1938_v26  ;;  %vm1943_vm11 = vcmp.lt.s32.totalorder %v4249_v13, 3 }
  0xfd   :  { %vm1944_vm12 = vcmp.lt.s32.totalorder %v4249_v13, 4  ;;  %v1949_v31 = vsel %vm1941_vm8, %v1928_v10, %v1931_v12  ;;  %v320_v6 = vsel %vm318_vm9, %v319_v27, %v4278_v4  ;;  %v1953_v33 = vsel %vm1941_vm8, %v1931_v12, %v1934_v25 }
  0xfe   :  { %v1946_v32 = vsel %vm1944_vm12, %v1934_v25, 2102212464  ;;  %v1950_v14 = vsel %vm1944_vm12, %v1937_v29, 920167782  ;;  %v321_v36 = vadd.s32 %v320_v6, %v316_v24  ;;  %v1945_v37 = vsel %vm1941_vm8, %v1925_v2, %v1928_v10 }
  0xff   :  { %v1951_v40 = vsel %vm1943_vm11, %v1934_v25, %v1950_v14  ;;  %v1954_v41 = vsel %vm1944_vm12, %v1940_v30, 1326507024  ;;  %v1947_v44 = vsel %vm1943_vm11, %v1931_v12, %v1946_v32  ;;  %v376_v50 = vsel %vm375_vm7, %v4246_v9, 0 }
 0x100   :  { %v1952_v46 = vsel %vm1942_vm10, %v1949_v31, %v1951_v40  ;;  %v1955_v49 = vsel %vm1943_vm11, %v1937_v29, %v1954_v41  ;;  %v322_v51 = vadd.s32 536870912, %v321_v36  ;;  %v1948_v60 = vsel %vm1942_vm10, %v1945_v37, %v1947_v44 }
 0x101   :  { %v1956_v52 = vsel %vm1942_vm10, %v1953_v33, %v1955_v49  ;;  %v4305_v53 = vmul.u32.u64.low %v4240_v7, %v1952_v46  ;;  %v4306_v54 = vmul.u32.u64.high %v4240_v7, %v1952_v46, %v4305_v53  ;;  %v378_v61 = vand.u32 31, %v376_v50 }
 0x102   :  { %v4310_v57 = vmul.u32.u64.low %v4240_v7, %v1956_v52  ;;  %v4311_v58 = vmul.u32.u64.high %v4240_v7, %v1956_v52, %v4310_v57  ;;  %v4313_v59 = vshrl.u32 %v322_v51, 30  ;;  %v2015_v9 = vand.u32 2139095040, %v4236_v5 }
 0x103   :  { %v2012_v62 = vand.u32 2147483647, %v4236_v5  ;;  %v1967_v4 = vadd.s32 1, %v4306_v54  ;;  %v372_v10 = vor.u32 8388608, %v4244_v8  ;;  %v379_v12 = vsub.s32 32, %v378_v61 }
 0x104   :  { %v324_v0 = vshll.u32 %v4313_v59, 30  ;;  %v1964_v18 = vmul.u32 %v4240_v7, %v1948_v60  ;;  %vm1966_vm13 = vc.u32 %v4311_v58, %v4305_v53  ;;  %v2016_v20 = vshrl.u32 %v2015_v9, 23 }
 0x105   :  { %v1968_v2 = vsel %vm1966_vm13, %v1967_v4, %v4306_v54  ;;  %v382_v23 = vshrl.u32 %v4085_v15, %v379_v12  ;;  %v385_v24 = vshrl.u32 %v4086_v17, %v379_v12  ;;  %v4334_v8 = vand.u32 8388607, %v2012_v62 }
 0x106   :  { %v4327_v13 = vsub.s32 %v321_v36, %v324_v0  ;;  %v1969_v22 = vadd.s32 %v1968_v2, %v1964_v18  ;;  %v381_v7 = vshll.u32 %v4084_v11, %v378_v61  ;;  %v388_v26 = vshrl.u32 %v4087_v19, %v379_v12 }
 0x107   :  { %v4339_v27 = vshll.u32 %v372_v10, 8  ;;  %v317_v29 = vadd.s32 %v4277_v3, %v4274_v1  ;;  %v4344_v31 = vshrl.u32 %v376_v50, 5  ;;  %v384_v6 = vshll.u32 %v4085_v15, %v378_v61 }
 0x108   :  { %v327_v25 = vsub.s32 0, %v4327_v13  ;;  %v1970_v30 = vadd.s32 536870912, %v1969_v22  ;;  %v383_v14 = vor.u32 %v382_v23, %v381_v7  ;;  %v387_v33 = vshll.u32 %v4086_v17, %v378_v61 }
 0x109   :  { %v3721_v36 = vadd.s32 4294967169, %v2016_v20  ;;  %v386_v40 = vor.u32 %v385_v24, %v384_v6  ;;  %v390_v41 = vshll.u32 %v4087_v19, %v378_v61  ;;  %v391_v44 = vshrl.u32 %v4088_v21, %v379_v12 }
 0x10a   :  { %v3654_v32 = vmin.u32 %v327_v25, %v4327_v13  ;;  %v4349_v37 = vshrl.u32 %v1970_v30, 30  ;;  %v389_v1 = vor.u32 %v388_v26, %v387_v33  ;;  %v393_v3 = vshll.u32 %v4088_v21, %v378_v61 }
 0x10b   :  { %v394_v49 = vshrl.u32 %v4089_v28, %v379_v12  ;;  %v392_v51 = vor.u32 %v391_v44, %v390_v41  ;;  %vm396_vm15 = vcmp.lt.s32.totalorder %v4344_v31, 1  ;;  %vm397_vm0 = vcmp.lt.s32.totalorder %v4344_v31, 2 }
 0x10c   :  { %v329_v46 = vclz %v3654_v32  ;;  %v1972_v50 = vshll.u32 %v4349_v37, 30  ;;  %v347_v54 = vsub.s32 4, %v4313_v59  ;;  %vm399_vm1 = vcmp.lt.s32.totalorder %v4344_v31, 4 }
 0x10d   :  { %v395_v57 = vor.u32 %v394_v49, %v393_v3  ;;  %vm398_vm2 = vcmp.lt.s32.totalorder %v4344_v31, 3  ;;  %v404_v61 = vsel %vm396_vm15, %v383_v14, %v386_v40  ;;  %v405_v9 = vsel %vm399_vm1, %v392_v51, 920167782  ;;  %v4403_v3 = vpop.f32.mrb[4].mxu1 }
 0x10e   :  { %v3655_v52 = vadd.s32 4294967294, %v329_v46  ;;  %v4360_v60 = vsub.s32 %v1969_v22, %v1972_v50  ;;  %vm4367_vm3 = vcmp.le.f32.partialorder %v261_v43, 0.7853982  ;;  %v401_v4 = vsel %vm399_vm1, %v389_v1, 2102212464 }
 0x10f   :  { %v406_v10 = vsel %vm398_vm2, %v389_v1, %v405_v9  ;;  %v409_v18 = vsel %vm399_vm1, %v395_v57, 1326507024  ;;  %v380_v22 = vshrl.u32 %v4084_v11, %v379_v12  ;;  %v408_v23 = vsel %vm396_vm15, %v386_v40, %v389_v1 }
 0x110   :  { %vm3656_vm4 = vcmp.lt.s32.totalorder %v3655_v52, 0  ;;  %v1975_v20 = vsub.s32 0, %v4360_v60  ;;  %v348_v43 = vsel %vm263_vm14, %v347_v54, %v4313_v59  ;;  %vm1911_vm5 = vcmp.lt.s32.totalorder %v4212_v39, 0 }
 0x111   :  { %v332_v2 = vsel %vm3656_vm4, 0, %v3655_v52  ;;  %v410_v7 = vsel %vm398_vm2, %v392_v51, %v409_v18  ;;  %v400_v30 = vsel %vm396_vm15, %v380_v22, %v383_v14  ;;  %v402_v12 = vsel %vm398_vm2, %v386_v40, %v401_v4 }
 0x112   :  { %v333_v24 = vsub.s32 32, %v332_v2  ;;  %v337_v25 = vsub.s32 4294967266, %v332_v2  ;;  %v3718_v26 = vmin.u32 %v1975_v20, %v4360_v60  ;;  %v407_v6 = vsel %vm397_vm0, %v404_v61, %v406_v10 }
 0x113   :  { %v334_v32 = vshll.u32 %v4327_v13, %v332_v2  ;;  %v411_v41 = vsel %vm397_vm0, %v408_v23, %v410_v7  ;;  %vm4395_vm6 = vcmp.le.f32.partialorder %v1909_v45, 0.7853982  ;;  %v2022_v1 = vadd.s32 1, %v3721_v36 }
 0x114   :  { %v335_v33 = vshrl.u32 %v317_v29, %v333_v24  ;;  %v338_v59 = vadd.s32 127, %v337_v25  ;;  %v1977_v14 = vclz %v3718_v26  ;;  %v1995_v45 = vsub.s32 4, %v4349_v37 }
 0x115   :  { %v4400_v46 = vmul.u32.u64.low %v4339_v27, %v411_v41  ;;  %v4401_v40 = vmul.u32.u64.high %v4339_v27, %v411_v41, %v4400_v46  ;;  %v4406_v49 = vmul.u32.u64.low %v4339_v27, %v407_v6  ;;  %v4407_v50 = vmul.u32.u64.high %v4339_v27, %v407_v6, %v4406_v49 }
 0x116   :  { %v336_v13 = vor.u32 %v335_v33, %v334_v32  ;;  %v339_v29 = vshll.u32 %v338_v59, 23  ;;  %v3719_v51 = vadd.s32 4294967294, %v1977_v14  ;;  %v2020_v52 = vor.u32 8388608, %v4334_v8 }
 0x117   :  { %vm2023_vm7 = vcmp.gt.s32.totalorder %v2022_v1, 0  ;;  %v1965_v57 = vadd.s32 %v4305_v53, %v4311_v58  ;;  %v403_v36 = vsel %vm397_vm0, %v400_v30, %v402_v12  ;;  %v350_v4 = vsel %vm4367_vm3, 0, %v348_v43 }
 0x118   :  { %v340_v54 = vor.u32 4788187, %v339_v29  ;;  %v2024_v61 = vsel %vm2023_vm7, %v2022_v1, 0  ;;  %v343_v9 = vcvt.s32.f32 %v336_v13  ;;  %vm3720_vm8 = vcmp.lt.s32.totalorder %v3719_v51, 0 }
 0x119   :  { %vm421_vm9 = vc.u32 %v4401_v40, %v4406_v49  ;;  %v1980_v18 = vsel %vm3720_vm8, 0, %v3719_v51  ;;  %v422_v8 = vadd.s32 1, %v4407_v50  ;;  %v2026_v2 = vand.u32 31, %v2024_v61 }
 0x11a   :  { %v341_v10 = vand.u32 2147483647, %v340_v54  ;;  %v1981_v20 = vsub.s32 32, %v1980_v18  ;;  %v1985_v22 = vsub.s32 4294967266, %v1980_v18  ;;  %v1996_v53 = vsel %vm1911_vm5, %v1995_v45, %v4349_v37 }
 0x11b   :  { %v419_v58 = vmul.u32 %v4339_v27, %v403_v36  ;;  %v4425_v23 = vand.u32 3, %v350_v4  ;;  %v423_v24 = vsel %vm421_vm9, %v422_v8, %v4407_v50  ;;  %v2027_v25 = vsub.s32 32, %v2026_v2 }
 0x11c   :  { %v344_v31 = vmul.f32 %v343_v9, %v341_v10  ;;  %v1982_v43 = vshll.u32 %v4360_v60, %v1980_v18  ;;  %v1983_v7 = vshrl.u32 %v1965_v57, %v1981_v20  ;;  %v1986_v26 = vadd.s32 127, %v1985_v22 }
 0x11d   :  { %v424_v30 = vadd.s32 %v423_v24, %v419_v58  ;;  %v1998_v6 = vsel %vm4395_vm6, 0, %v1996_v53  ;;  %v4431_v32 = vshrl.u32 %v2024_v61, 5  ;;  %v2029_v37 = vshll.u32 %v4084_v11, %v2026_v2 }
 0x11e   :  { %v345_v12 = vxor.u32 2147483648, %v344_v31  ;;  %v1984_v27 = vor.u32 %v1983_v7, %v1982_v43  ;;  %v1987_v33 = vshll.u32 %v1986_v26, 23  ;;  %v2032_v41 = vshll.u32 %v4085_v15, %v2026_v2 }
 0x11f   :  { %v425_v59 = vadd.s32 536870912, %v424_v30  ;;  %v2030_v60 = vshrl.u32 %v4085_v15, %v2027_v25  ;;  %v2033_v46 = vshrl.u32 %v4086_v17, %v2027_v25  ;;  %v2036_v1 = vshrl.u32 %v4087_v19, %v2027_v25 }
 0x120   :  { %v346_v14 = vsel %vm263_vm14, %v345_v12, %v344_v31  ;;  %v1988_v29 = vor.u32 4788187, %v1987_v33  ;;  %v2035_v51 = vshll.u32 %v4086_v17, %v2026_v2  ;;  %v1991_v45 = vcvt.s32.f32 %v1984_v27 }
 0x121   :  { %v349_v13 = vsel %vm4367_vm3, %v4209_v38, %v346_v14  ;;  %v4443_v50 = vshrl.u32 %v425_v59, 30  ;;  %v2038_v54 = vshll.u32 %v4087_v19, %v2026_v2  ;;  %v2039_v57 = vshrl.u32 %v4088_v21, %v2027_v25 }
 0x122   :  { %3931 = vcosq.f32 %v349_v13  ;;  %v1989_v36 = vand.u32 2147483647, %v1988_v29  ;;  %v2037_v9 = vor.u32 %v2036_v1, %v2035_v51  ;;  %v2031_v4 = vor.u32 %v2030_v60, %v2029_v37 }
 0x123   :  { %3933 = vsinq.f32 %v349_v13  ;;  %v427_v61 = vshll.u32 %v4443_v50, 30  ;;  %v2034_v10 = vor.u32 %v2033_v46, %v2032_v41  ;;  %v2040_v0 = vor.u32 %v2039_v57, %v2038_v54 }
 0x124   :  { %v2042_v18 = vshrl.u32 %v4089_v28, %v2027_v25  ;;  %v1992_v8 = vmul.f32 %v1991_v45, %v1989_v36  ;;  %v4450_v20 = vand.u32 3, %v1998_v6  ;;  %v2041_v53 = vshll.u32 %v4088_v21, %v2026_v2 }
 0x125   :  { %v4452_v22 = vsub.s32 %v424_v30, %v427_v61  ;;  %vm359_vm10 = vcmp.eq.s32.totalorder %v4425_v23, 2  ;;  %v2028_v58 = vshrl.u32 %v4084_v11, %v2027_v25  ;;  %vm2044_vm11 = vcmp.lt.s32.totalorder %v4431_v32, 1 }
 0x126   :  { %vm2047_vm12 = vcmp.lt.s32.totalorder %v4431_v32, 4  ;;  %v2060_v31 = vshll.u32 %v2020_v52, 8  ;;  %vm356_vm13 = vcmp.eq.s32.totalorder %v4425_v23, 0  ;;  %v1993_v24 = vxor.u32 2147483648, %v1992_v8 }
 0x127   :  { %v430_v43 = vsub.s32 0, %v4452_v22  ;;  %v2043_v7 = vor.u32 %v2042_v18, %v2041_v53  ;;  %v2049_v26 = vsel %vm2047_vm12, %v2037_v9, 2102212464  ;;  %vm355_vm14 = vcmp.lt.s32.totalorder %v4425_v23, 2 }
 0x128   :  { %vm2045_vm15 = vcmp.lt.s32.totalorder %v4431_v32, 2  ;;  %v2052_v2 = vsel %vm2044_vm11, %v2031_v4, %v2034_v10  ;;  %v2053_v25 = vsel %vm2047_vm12, %v2040_v0, 920167782  ;;  %v4471_v52 = vadd.f32 %v4221_v47, %v4204_v34 }
 0x129   :  { %vm353_vm0 = vweird.f32 %v4209_v38  ;;  %v1994_v30 = vsel %vm1911_vm5, %v1993_v24, %v1992_v8  ;;  %v3658_v12 = vmin.u32 %v430_v43, %v4452_v22  ;;  %vm2046_vm1 = vcmp.lt.s32.totalorder %v4431_v32, 3 }
 0x12a   :  { %v2048_v6 = vsel %vm2044_vm11, %v2028_v58, %v2031_v4  ;;  %v1997_v37 = vsel %vm4395_vm6, %v4212_v39, %v1994_v30  ;;  %v2050_v27 = vsel %vm2046_vm1, %v2034_v10, %v2049_v26  ;;  %v2054_v33 = vsel %vm2046_vm1, %v2037_v9, %v2053_v25 }
 0x12b   :  { %v2056_v47 = vsel %vm2044_vm11, %v2034_v10, %v2037_v9  ;;  %3935 = vcosq.f32 %v1997_v37  ;;  %v432_v59 = vclz %v3658_v12  ;;  %v2055_v41 = vsel %vm2045_vm15, %v2052_v2, %v2054_v33 }
 0x12c   :  { %v2057_v14 = vsel %vm2047_vm12, %v2043_v7, 1326507024  ;;  %v3932_v60 = vpop.eup %3931  ;;  %3937 = vsinq.f32 %v1997_v37  ;;  %v4489_v1 = vmul.u32.u64.low %v2060_v31, %v2055_v41  ;;  %v4490_v13 = vmul.u32.u64.high %v2060_v31, %v2055_v41, %v4489_v1 }
 0x12d   :  { %v2058_v46 = vsel %vm2046_vm1, %v2040_v0, %v2057_v14  ;;  %v3934_v44 = vpop.eup %3933  ;;  %v360_v29 = vxor.u32 2147483648, %v3932_v60  ;;  %v3659_v51 = vadd.s32 4294967294, %v432_v59  ;;  %v2051_v45 = vsel %vm2045_vm15, %v2048_v6, %v2050_v27  ;;  %v4520_v6 = vpop.f32.mrb[5].mxu0 }
 0x12e   :  { %v2059_v54 = vsel %vm2045_vm15, %v2056_v47, %v2058_v46  ;;  %v357_v57 = vxor.u32 2147483648, %v3934_v44  ;;  %v420_v36 = vadd.s32 %v4406_v49, %v4401_v40  ;;  %v450_v10 = vsub.s32 4, %v4443_v50 }
 0x12f   :  { %v4499_v61 = vmul.u32.u64.low %v2060_v31, %v2059_v54  ;;  %v4500_v9 = vmul.u32.u64.high %v2060_v31, %v2059_v54, %v4499_v61  ;;  %v361_v4 = vsel %vm359_vm10, %v360_v29, %v3934_v44  ;;  %vm3660_vm2 = vcmp.lt.s32.totalorder %v3659_v51, 0 }
 0x130   :  { %v470_v0 = vand.u32 2139095040, %v4471_v52  ;;  %v358_v18 = vsel %vm356_vm13, %v3932_v60, %v357_v57  ;;  %v435_v32 = vsel %vm3660_vm2, 0, %v3659_v51  ;;  %v2067_v8 = vmul.u32 %v2060_v31, %v2051_v45 }
 0x131   :  { %v2070_v53 = vadd.s32 1, %v4490_v13  ;;  %v362_v40 = vsel %vm355_vm14, %v358_v18, %v361_v4  ;;  %v436_v49 = vsub.s32 32, %v435_v32  ;;  %v440_v58 = vsub.s32 4294967266, %v435_v32 }
 0x132   :  { %v467_v24 = vand.u32 2147483647, %v4471_v52  ;;  %v363_v43 = vsel %vm353_vm0, nan, %v362_v40  ;;  %v437_v7 = vshll.u32 %v4452_v22, %v435_v32  ;;  %vm2069_vm3 = vc.u32 %v4500_v9, %v4489_v1 }
 0x133   :  { %v471_v26 = vshrl.u32 %v470_v0, 23  ;;  %v3557_v2 = vmul.f32 0.088388346, %v363_v43  ;;  %v438_v31 = vshrl.u32 %v420_v36, %v436_v49  ;;  %v441_v25 = vadd.s32 127, %v440_v58 }
 0x134   :  { %v2071_v30 = vsel %vm2069_vm3, %v2070_v53, %v4490_v13  ;;  %vm2001_vm4 = vweird.f32 %v4212_v39  ;;  %vm366_vm5 = vcmp.lt.s32.totalorder %v4215_v42, 0  ;;  %vm2003_vm6 = vcmp.lt.s32.totalorder %v4450_v20, 2 }
 0x135   :  { %v2072_v23 = vadd.s32 %v2071_v30, %v2067_v8  ;;  %v3661_v12 = vadd.s32 4294967169, %v471_v26  ;;  %v3936_v38 = vpop.eup %3935  ;;  %3589 = vst [vmem:[#allocation2] sm:$0xff] %v3557_v2  ;;  %vm4525_vm7 = vcmp.le.f32.partialorder %v364_v63, 0.7853982  ;;  %v439_v37 = vor.u32 %v438_v31, %v437_v7 }
 0x136   :  { %v442_v27 = vshll.u32 %v441_v25, 23  ;;  %v3938_v33 = vpop.eup %3937  ;;  %v2008_v47 = vxor.u32 2147483648, %v3936_v38  ;;  %v474_v41 = vand.u32 8388607, %v467_v24  ;;  %vm2007_vm8 = vcmp.eq.s32.totalorder %v4450_v20, 2 }
 0x137   :  { %v2073_v59 = vadd.s32 536870912, %v2072_v23  ;;  %v477_v14 = vadd.s32 1, %v3661_v12  ;;  %v2005_v60 = vxor.u32 2147483648, %v3938_v33  ;;  %v451_v63 = vsel %vm366_vm5, %v450_v10, %v4443_v50 }
 0x138   :  { %v443_v46 = vor.u32 4788187, %v442_v27  ;;  %vm2004_vm9 = vcmp.eq.s32.totalorder %v4450_v20, 0  ;;  %v2009_v13 = vsel %vm2007_vm8, %v2008_v47, %v3938_v33  ;;  %v446_v45 = vcvt.s32.f32 %v439_v37 }
 0x139   :  { %v4536_v44 = vshrl.u32 %v2073_v59, 30  ;;  %vm478_vm10 = vcmp.gt.s32.totalorder %v477_v14, 0  ;;  %v2006_v29 = vsel %vm2004_vm9, %v3936_v38, %v2005_v60  ;;  %v453_v36 = vsel %vm4525_vm7, 0, %v451_v63 }
 0x13a   :  { %v444_v51 = vand.u32 2147483647, %v443_v46  ;;  %v479_v54 = vsel %vm478_vm10, %v477_v14, 0  ;;  %v2010_v57 = vsel %vm2003_vm6, %v2006_v29, %v2009_v13  ;;  %v475_v4 = vor.u32 8388608, %v474_v41 }
 0x13b   :  { %v2075_v61 = vshll.u32 %v4536_v44, 30  ;;  %v2011_v50 = vsel %vm2001_vm4, nan, %v2010_v57  ;;  %v481_v0 = vand.u32 31, %v479_v54  ;;  %v4547_v8 = vshrl.u32 %v479_v54, 5 }
 0x13c   :  { %v447_v10 = vmul.f32 %v446_v45, %v444_v51  ;;  %v3573_v18 = vmul.f32 0.088388346, %v2011_v50  ;;  %v4549_v40 = vand.u32 3, %v453_v36  ;;  %v2068_v20 = vadd.s32 %v4489_v1, %v4500_v9 }
 0x13d   :  { %v4545_v32 = vsub.s32 %v2072_v23, %v2075_v61  ;;  %v482_v49 = vsub.s32 32, %v481_v0  ;;  %v484_v39 = vshll.u32 %v4084_v11, %v481_v0  ;;  %v4555_v43 = vshll.u32 %v475_v4, 8  ;;  %v4592_v4 = vpop.f32.mrb[5].mxu1 }
 0x13e   :  { %v448_v53 = vxor.u32 2147483648, %v447_v10  ;;  %3605 = vst [vmem:[#allocation2 + $0x80] sm:$0xff] %v3573_v18  ;;  %v4559_v7 = vadd.f32 %v4223_v48, %v4204_v34  ;;  %v487_v31 = vshll.u32 %v4085_v15, %v481_v0  ;;  %v2098_v30 = vsub.s32 4, %v4536_v44 }
 0x13f   :  { %v2078_v58 = vsub.s32 0, %v4545_v32  ;;  %v485_v2 = vshrl.u32 %v4085_v15, %v482_v49  ;;  %v488_v1 = vshrl.u32 %v4086_v17, %v482_v49  ;;  %vm499_vm11 = vcmp.lt.s32.totalorder %v4547_v8, 1 }
 0x140   :  { %v449_v26 = vsel %vm366_vm5, %v448_v53, %v447_v10  ;;  %v490_v12 = vshll.u32 %v4086_v17, %v481_v0  ;;  %v483_v37 = vshrl.u32 %v4084_v11, %v482_v49  ;;  %v491_v27 = vshrl.u32 %v4087_v19, %v482_v49 }
 0x141   :  { %v452_v9 = vsel %vm4525_vm7, %v4215_v42, %v449_v26  ;;  %v3722_v25 = vmin.u32 %v2078_v58, %v4545_v32  ;;  %v486_v48 = vor.u32 %v485_v2, %v484_v39  ;;  %v489_v23 = vor.u32 %v488_v1, %v487_v31 }
 0x142   :  { %3939 = vcosq.f32 %v452_v9  ;;  %v493_v22 = vshll.u32 %v4087_v19, %v481_v0  ;;  %v494_v33 = vshrl.u32 %v4088_v21, %v482_v49  ;;  %v496_v47 = vshll.u32 %v4088_v21, %v481_v0 }
 0x143   :  { %3941 = vsinq.f32 %v452_v9  ;;  %v2080_v38 = vclz %v3722_v25  ;;  %v497_v59 = vshrl.u32 %v4089_v28, %v482_v49  ;;  %v492_v14 = vor.u32 %v491_v27, %v490_v12 }
 0x144   :  { %vm501_vm12 = vcmp.lt.s32.totalorder %v4547_v8, 3  ;;  %vm502_vm13 = vcmp.lt.s32.totalorder %v4547_v8, 4  ;;  %vm2014_vm14 = vcmp.lt.s32.totalorder %v4236_v5, 0  ;;  %v495_v60 = vor.u32 %v494_v33, %v493_v22 }
 0x145   :  { %v3723_v41 = vadd.s32 4294967294, %v2080_v38  ;;  %v498_v46 = vor.u32 %v497_v59, %v496_v47  ;;  %v503_v63 = vsel %vm499_vm11, %v483_v37, %v486_v48  ;;  %v507_v13 = vsel %vm499_vm11, %v486_v48, %v489_v23 }
 0x146   :  { %v504_v29 = vsel %vm502_vm13, %v492_v14, 2102212464  ;;  %v511_v51 = vsel %vm499_vm11, %v489_v23, %v492_v14  ;;  %v2118_v45 = vand.u32 2139095040, %v4559_v7  ;;  %vm458_vm0 = vcmp.lt.s32.totalorder %v4549_v40, 2 }
 0x147   :  { %vm3724_vm15 = vcmp.lt.s32.totalorder %v3723_v41, 0  ;;  %v505_v57 = vsel %vm501_vm12, %v489_v23, %v504_v29  ;;  %v508_v36 = vsel %vm502_vm13, %v495_v60, 920167782  ;;  %v512_v61 = vsel %vm502_vm13, %v498_v46, 1326507024 }
 0x148   :  { %v2083_v54 = vsel %vm3724_vm15, 0, %v3723_v41  ;;  %vm456_vm1 = vweird.f32 %v4215_v42  ;;  %vm500_vm2 = vcmp.lt.s32.totalorder %v4547_v8, 2  ;;  %vm4599_vm3 = vcmp.le.f32.partialorder %v2012_v62, 0.7853982 }
 0x149   :  { %v2084_v50 = vsub.s32 32, %v2083_v54  ;;  %v2085_v10 = vshll.u32 %v4545_v32, %v2083_v54  ;;  %v2088_v0 = vsub.s32 4294967266, %v2083_v54  ;;  %v506_v53 = vsel %vm500_vm2, %v503_v63, %v505_v57 }
 0x14a   :  { %v509_v49 = vsel %vm501_vm12, %v492_v14, %v508_v36  ;;  %v513_v58 = vsel %vm501_vm12, %v495_v60, %v512_v61  ;;  %v2119_v39 = vshrl.u32 %v2118_v45, 23  ;;  %vm459_vm4 = vcmp.eq.s32.totalorder %v4549_v40, 0 }
 0x14b   :  { %v2086_v26 = vshrl.u32 %v2068_v20, %v2084_v50  ;;  %v2089_v2 = vadd.s32 127, %v2088_v0  ;;  %v510_v32 = vsel %vm500_vm2, %v507_v13, %v509_v49  ;;  %v514_v31 = vsel %vm500_vm2, %v511_v51, %v513_v58 }
 0x14c   :  { %v3940_v1 = vpop.eup %3939  ;;  %v4608_v9 = vmul.u32.u64.low %v4555_v43, %v514_v31  ;;  %v4609_v25 = vmul.u32.u64.high %v4555_v43, %v514_v31, %v4608_v9  ;;  %v4612_v62 = vmul.u32.u64.low %v4555_v43, %v510_v32  ;;  %v4613_v48 = vmul.u32.u64.high %v4555_v43, %v510_v32, %v4612_v62 }
 0x14d   :  { %v3942_v23 = vpop.eup %3941  ;;  %v463_v12 = vxor.u32 2147483648, %v3940_v1  ;;  %v2087_v38 = vor.u32 %v2086_v26, %v2085_v10  ;;  %v2090_v8 = vshll.u32 %v2089_v2, 23  ;;  %v3725_v37 = vadd.s32 4294967169, %v2119_v39 }
 0x14e   :  { %v460_v20 = vxor.u32 2147483648, %v3942_v23  ;;  %vm462_vm5 = vcmp.eq.s32.totalorder %v4549_v40, 2  ;;  %v2115_v27 = vand.u32 2147483647, %v4559_v7  ;;  %v2099_v47 = vsel %vm2014_vm14, %v2098_v30, %v4536_v44 }
 0x14f   :  { %v464_v22 = vsel %vm462_vm5, %v463_v12, %v3942_v23  ;;  %v2091_v33 = vor.u32 4788187, %v2090_v8  ;;  %v2125_v59 = vadd.s32 1, %v3725_v37  ;;  %v522_v14 = vmul.u32 %v4555_v43, %v506_v53 }
 0x150   :  { %v461_v41 = vsel %vm459_vm4, %v3940_v1, %v460_v20  ;;  %vm524_vm6 = vc.u32 %v4609_v25, %v4612_v62  ;;  %v525_v60 = vadd.s32 1, %v4613_v48  ;;  %v2094_v13 = vcvt.s32.f32 %v2087_v38 }
 0x151   :  { %v465_v46 = vsel %vm458_vm0, %v461_v41, %v464_v22  ;;  %v2092_v63 = vand.u32 2147483647, %v2091_v33  ;;  %vm2126_vm7 = vcmp.gt.s32.totalorder %v2125_v59, 0  ;;  %v2122_v30 = vand.u32 8388607, %v2115_v27 }
 0x152   :  { %v466_v29 = vsel %vm456_vm1, nan, %v465_v46  ;;  %v526_v44 = vsel %vm524_vm6, %v525_v60, %v4613_v48  ;;  %v2127_v43 = vsel %vm2126_vm7, %v2125_v59, 0  ;;  %v2101_v54 = vsel %vm4599_vm3, 0, %v2099_v47 }
 0x153   :  { %v3558_v51 = vmul.f32 0.088388346, %v466_v29  ;;  %v2095_v45 = vmul.f32 %v2094_v13, %v2092_v63  ;;  %v527_v57 = vadd.s32 %v526_v44, %v522_v14  ;;  %v2129_v40 = vand.u32 31, %v2127_v43 }
 0x154   :  { %v4639_v42 = vadd.f32 %v4230_v55, %v4206_v35  ;;  %v4641_v50 = vand.u32 3, %v2101_v54  ;;  %v2123_v10 = vor.u32 8388608, %v2122_v30  ;;  %v2128_v0 = vshrl.u32 %v2127_v43, 5 }
 0x155   :  { %3590 = vst [vmem:[#allocation2 + $0x8] sm:$0xff] %v3558_v51  ;;  %v2096_v36 = vxor.u32 2147483648, %v2095_v45  ;;  %v528_v61 = vadd.s32 536870912, %v527_v57  ;;  %v2130_v53 = vsub.s32 32, %v2129_v40  ;;  %v2132_v39 = vshll.u32 %v4084_v11, %v2129_v40 }
 0x156   :  { %v2135_v26 = vshll.u32 %v4085_v15, %v2129_v40  ;;  %v2138_v31 = vshll.u32 %v4086_v17, %v2129_v40  ;;  %v2141_v48 = vshll.u32 %v4087_v19, %v2129_v40  ;;  %v2144_v37 = vshll.u32 %v4088_v21, %v2129_v40 }
 0x157   :  { %v2097_v49 = vsel %vm2014_vm14, %v2096_v36, %v2095_v45  ;;  %v4645_v58 = vshrl.u32 %v528_v61, 30  ;;  %v2133_v55 = vshrl.u32 %v4085_v15, %v2130_v53  ;;  %v2136_v32 = vshrl.u32 %v4086_v17, %v2130_v53 }
 0x158   :  { %v2100_v2 = vsel %vm4599_vm3, %v4236_v5, %v2097_v49  ;;  %v2139_v9 = vshrl.u32 %v4087_v19, %v2130_v53  ;;  %v2142_v38 = vshrl.u32 %v4088_v21, %v2130_v53  ;;  %v2145_v20 = vshrl.u32 %v4089_v28, %v2130_v53 }
 0x159   :  { %3943 = vcosq.f32 %v2100_v2  ;;  %v530_v1 = vshll.u32 %v4645_v58, 30  ;;  %v2134_v23 = vor.u32 %v2133_v55, %v2132_v39  ;;  %v2137_v12 = vor.u32 %v2136_v32, %v2135_v26 }
 0x15a   :  { %3945 = vsinq.f32 %v2100_v2  ;;  %v2140_v8 = vor.u32 %v2139_v9, %v2138_v31  ;;  %v2143_v22 = vor.u32 %v2142_v38, %v2141_v48  ;;  %v2163_v33 = vshll.u32 %v2123_v10, 8 }
 0x15b   :  { %v4659_v18 = vsub.s32 %v527_v57, %v530_v1  ;;  %v573_v47 = vand.u32 2139095040, %v4639_v42  ;;  %v2146_v41 = vor.u32 %v2145_v20, %v2144_v37  ;;  %vm2147_vm8 = vcmp.lt.s32.totalorder %v2128_v0, 1 }
 0x15c   :  { %vm2150_vm9 = vcmp.lt.s32.totalorder %v2128_v0, 4  ;;  %v2131_v14 = vshrl.u32 %v4084_v11, %v2130_v53  ;;  %v2155_v46 = vsel %vm2147_vm8, %v2134_v23, %v2137_v12  ;;  %vm2106_vm10 = vcmp.lt.s32.totalorder %v4641_v50, 2 }
 0x15d   :  { %v533_v59 = vsub.s32 0, %v4659_v18  ;;  %v2152_v60 = vsel %vm2150_vm9, %v2140_v8, 2102212464  ;;  %v2156_v63 = vsel %vm2150_vm9, %v2143_v22, 920167782  ;;  %vm2148_vm11 = vcmp.lt.s32.totalorder %v2128_v0, 2 }
 0x15e   :  { %vm2149_vm12 = vcmp.lt.s32.totalorder %v2128_v0, 3  ;;  %v2159_v29 = vsel %vm2147_vm8, %v2137_v12, %v2140_v8  ;;  %vm2104_vm13 = vweird.f32 %v4236_v5  ;;  %v2151_v44 = vsel %vm2147_vm8, %v2131_v14, %v2134_v23 }
 0x15f   :  { %v3662_v13 = vmin.u32 %v533_v59, %v4659_v18  ;;  %v2157_v30 = vsel %vm2149_vm12, %v2140_v8, %v2156_v63  ;;  %v2160_v43 = vsel %vm2150_vm9, %v2146_v41, 1326507024  ;;  %v574_v51 = vshrl.u32 %v573_v47, 23 }
 0x160   :  { %v2153_v54 = vsel %vm2149_vm12, %v2137_v12, %v2152_v60  ;;  %v2158_v57 = vsel %vm2148_vm11, %v2155_v46, %v2157_v30  ;;  %v2161_v40 = vsel %vm2149_vm12, %v2143_v22, %v2160_v43  ;;  %vm2107_vm14 = vcmp.eq.s32.totalorder %v4641_v50, 0 }
 0x161   :  { %v535_v45 = vclz %v3662_v13  ;;  %v2162_v36 = vsel %vm2148_vm11, %v2159_v29, %v2161_v40  ;;  %v4672_v61 = vmul.u32.u64.low %v2163_v33, %v2158_v57  ;;  %v4673_v10 = vmul.u32.u64.high %v2163_v33, %v2158_v57, %v4672_v61 }
 0x162   :  { %v4676_v39 = vmul.u32.u64.low %v2163_v33, %v2162_v36  ;;  %v4677_v26 = vmul.u32.u64.high %v2163_v33, %v2162_v36, %v4676_v39  ;;  %v3665_v2 = vadd.s32 4294967169, %v574_v51  ;;  %vm2110_vm15 = vcmp.eq.s32.totalorder %v4641_v50, 2 }
 0x163   :  { %v3944_v53 = vpop.eup %3943  ;;  %v3663_v49 = vadd.s32 4294967294, %v535_v45  ;;  %v2154_v31 = vsel %vm2148_vm11, %v2151_v44, %v2153_v54  ;;  %v570_v1 = vand.u32 2147483647, %v4639_v42  ;;  %v523_v48 = vadd.s32 %v4612_v62, %v4609_v25  ;;  %v4693_v25 = vpop.f32.mrb[6].mxu0 }
 0x164   :  { %v3946_v55 = vpop.eup %3945  ;;  %v2111_v32 = vxor.u32 2147483648, %v3944_v53  ;;  %v580_v23 = vadd.s32 1, %v3665_v2  ;;  %v553_v8 = vsub.s32 4, %v4645_v58  ;;  %v2173_v37 = vadd.s32 1, %v4673_v10 }
 0x165   :  { %v2108_v9 = vxor.u32 2147483648, %v3946_v55  ;;  %vm3664_vm0 = vcmp.lt.s32.totalorder %v3663_v49, 0  ;;  %v2170_v47 = vmul.u32 %v2163_v33, %v2154_v31  ;;  %vm2172_vm1 = vc.u32 %v4677_v26, %v4672_v61 }
 0x166   :  { %v2112_v12 = vsel %vm2110_vm15, %v2111_v32, %v3946_v55  ;;  %v538_v38 = vsel %vm3664_vm0, 0, %v3663_v49  ;;  %vm581_vm2 = vcmp.gt.s32.totalorder %v580_v23, 0  ;;  %v2174_v46 = vsel %vm2172_vm1, %v2173_v37, %v4673_v10 }
 0x167   :  { %v2109_v20 = vsel %vm2107_vm14, %v3944_v53, %v2108_v9  ;;  %v539_v22 = vsub.s32 32, %v538_v38  ;;  %v543_v0 = vsub.s32 4294967266, %v538_v38  ;;  %v540_v41 = vshll.u32 %v4659_v18, %v538_v38 }
 0x168   :  { %v2113_v59 = vsel %vm2106_vm10, %v2109_v20, %v2112_v12  ;;  %v2175_v33 = vadd.s32 %v2174_v46, %v2170_v47  ;;  %v577_v50 = vand.u32 8388607, %v570_v1  ;;  %v582_v13 = vsel %vm581_vm2, %v580_v23, 0 }
 0x169   :  { %v2114_v62 = vsel %vm2104_vm13, nan, %v2113_v59  ;;  %v541_v14 = vshrl.u32 %v523_v48, %v539_v22  ;;  %v544_v60 = vadd.s32 127, %v543_v0  ;;  %v584_v44 = vand.u32 31, %v582_v13 }
 0x16a   :  { %v3574_v63 = vmul.f32 0.088388346, %v2114_v62  ;;  %vm469_vm3 = vcmp.lt.s32.totalorder %v4471_v52, 0  ;;  %v2176_v30 = vadd.s32 536870912, %v2175_v33  ;;  %vm4703_vm4 = vcmp.le.f32.partialorder %v467_v24, 0.7853982 }
 0x16b   :  { %v542_v18 = vor.u32 %v541_v14, %v540_v41  ;;  %v545_v29 = vshll.u32 %v544_v60, 23  ;;  %v554_v51 = vsel %vm469_vm3, %v553_v8, %v4645_v58  ;;  %v585_v45 = vsub.s32 32, %v584_v44 }
 0x16c   :  { %3606 = vst [vmem:[#allocation2 + $0x88] sm:$0xff] %v3574_v63  ;;  %v4710_v57 = vshrl.u32 %v2176_v30, 30  ;;  %v578_v40 = vor.u32 8388608, %v577_v50  ;;  %v4714_v36 = vadd.f32 %v4232_v56, %v4206_v35  ;;  %v587_v24 = vshll.u32 %v4084_v11, %v584_v44 }
 0x16d   :  { %v546_v43 = vor.u32 4788187, %v545_v29  ;;  %v549_v54 = vcvt.s32.f32 %v542_v18  ;;  %v588_v53 = vshrl.u32 %v4085_v15, %v585_v45  ;;  %v591_v49 = vshrl.u32 %v4086_v17, %v585_v45 }
 0x16e   :  { %v2178_v39 = vshll.u32 %v4710_v57, 30  ;;  %v590_v58 = vshll.u32 %v4085_v15, %v584_v44  ;;  %v594_v2 = vshrl.u32 %v4087_v19, %v585_v45  ;;  %v597_v55 = vshrl.u32 %v4088_v21, %v585_v45 }
 0x16f   :  { %v547_v10 = vand.u32 2147483647, %v546_v43  ;;  %v556_v56 = vsel %vm4703_vm4, 0, %v554_v51  ;;  %v583_v31 = vshrl.u32 %v582_v13, 5  ;;  %v593_v9 = vshll.u32 %v4086_v17, %v584_v44 }
 0x170   :  { %v4726_v48 = vsub.s32 %v2175_v33, %v2178_v39  ;;  %v589_v23 = vor.u32 %v588_v53, %v587_v24  ;;  %v592_v12 = vor.u32 %v591_v49, %v590_v58  ;;  %v596_v38 = vshll.u32 %v4087_v19, %v584_v44  ;;  %v4756_v58 = vpop.f32.mrb[6].mxu1 }
 0x171   :  { %v550_v32 = vmul.f32 %v549_v54, %v547_v10  ;;  %v595_v37 = vor.u32 %v594_v2, %v593_v9  ;;  %v599_v20 = vshll.u32 %v4088_v21, %v584_v44  ;;  %v600_v22 = vshrl.u32 %v4089_v28, %v585_v45 }
 0x172   :  { %v2181_v0 = vsub.s32 0, %v4726_v48  ;;  %v598_v47 = vor.u32 %v597_v55, %v596_v38  ;;  %v4732_v59 = vshll.u32 %v578_v40, 8  ;;  %v2221_v41 = vand.u32 2139095040, %v4714_v36 }
 0x173   :  { %v551_v8 = vxor.u32 2147483648, %v550_v32  ;;  %v586_v14 = vshrl.u32 %v4084_v11, %v585_v45  ;;  %v601_v60 = vor.u32 %v600_v22, %v599_v20  ;;  %vm602_vm5 = vcmp.lt.s32.totalorder %v583_v31, 1 }
 0x174   :  { %v3726_v63 = vmin.u32 %v2181_v0, %v4726_v48  ;;  %vm604_vm6 = vcmp.lt.s32.totalorder %v583_v31, 3  ;;  %vm605_vm7 = vcmp.lt.s32.totalorder %v583_v31, 4  ;;  %v610_v13 = vsel %vm602_vm5, %v589_v23, %v592_v12 }
 0x175   :  { %v552_v62 = vsel %vm469_vm3, %v551_v8, %v550_v32  ;;  %v606_v33 = vsel %vm602_vm5, %v586_v14, %v589_v23  ;;  %v607_v50 = vsel %vm605_vm7, %v595_v37, 2102212464  ;;  %v611_v44 = vsel %vm605_vm7, %v598_v47, 920167782 }
 0x176   :  { %v555_v46 = vsel %vm4703_vm4, %v4471_v52, %v552_v62  ;;  %v2183_v18 = vclz %v3726_v63  ;;  %v608_v29 = vsel %vm604_vm6, %v592_v12, %v607_v50  ;;  %vm603_vm8 = vcmp.lt.s32.totalorder %v583_v31, 2 }
 0x177   :  { %3947 = vcosq.f32 %v555_v46  ;;  %v612_v30 = vsel %vm604_vm6, %v595_v37, %v611_v44  ;;  %v614_v43 = vsel %vm602_vm5, %v592_v12, %v595_v37  ;;  %v615_v51 = vsel %vm605_vm7, %v601_v60, 1326507024 }
 0x178   :  { %3949 = vsinq.f32 %v555_v46  ;;  %v560_v5 = vand.u32 3, %v556_v56  ;;  %v3727_v45 = vadd.s32 4294967294, %v2183_v18  ;;  %v613_v54 = vsel %vm603_vm8, %v610_v13, %v612_v30 }
 0x179   :  { %v616_v40 = vsel %vm604_vm6, %v598_v47, %v615_v51  ;;  %vm4747_vm9 = vcmp.le.f32.partialorder %v2115_v27, 0.7853982  ;;  %v609_v24 = vsel %vm603_vm8, %v606_v33, %v608_v29  ;;  %v2222_v32 = vshrl.u32 %v2221_v41, 23 }
 0x17a   :  { %v617_v53 = vsel %vm603_vm8, %v614_v43, %v616_v40  ;;  %v4752_v49 = vmul.u32.u64.low %v4732_v59, %v613_v54  ;;  %v4753_v39 = vmul.u32.u64.high %v4732_v59, %v613_v54, %v4752_v49  ;;  %vm3728_vm10 = vcmp.lt.s32.totalorder %v3727_v45, 0 }
 0x17b   :  { %v4759_v2 = vmul.u32.u64.low %v4732_v59, %v617_v53  ;;  %v4760_v55 = vmul.u32.u64.high %v4732_v59, %v617_v53, %v4759_v2  ;;  %vm2117_vm11 = vcmp.lt.s32.totalorder %v4559_v7, 0  ;;  %v2186_v27 = vsel %vm3728_vm10, 0, %v3727_v45 }
 0x17c   :  { %v2201_v56 = vsub.s32 4, %v4710_v57  ;;  %v4766_v31 = vadd.f32 %v4322_v16, %v4204_v34  ;;  %vm559_vm12 = vweird.f32 %v4471_v52  ;;  %v2171_v9 = vadd.s32 %v4672_v61, %v4677_v26 }
 0x17d   :  { %v2187_v23 = vsub.s32 32, %v2186_v27  ;;  %v2191_v12 = vsub.s32 4294967266, %v2186_v27  ;;  %v3729_v38 = vadd.s32 4294967169, %v2222_v32  ;;  %vm561_vm13 = vcmp.lt.s32.totalorder %v560_v5, 2 }
 0x17e   :  { %v625_v8 = vmul.u32 %v4732_v59, %v609_v24  ;;  %v628_v37 = vadd.s32 1, %v4753_v39  ;;  %v2218_v20 = vand.u32 2147483647, %v4714_v36  ;;  %v2188_v22 = vshll.u32 %v4726_v48, %v2186_v27 }
 0x17f   :  { %v2189_v0 = vshrl.u32 %v2171_v9, %v2187_v23  ;;  %v2192_v16 = vadd.s32 127, %v2191_v12  ;;  %vm627_vm14 = vc.u32 %v4760_v55, %v4752_v49  ;;  %v2202_v61 = vsel %vm2117_vm11, %v2201_v56, %v4710_v57 }
 0x180   :  { %v629_v26 = vsel %vm627_vm14, %v628_v37, %v4753_v39  ;;  %v2228_v41 = vadd.s32 1, %v3729_v38  ;;  %v676_v59 = vand.u32 2139095040, %v4766_v31  ;;  %vm562_vm15 = vcmp.eq.s32.totalorder %v560_v5, 0 }
 0x181   :  { %v3948_v47 = vpop.eup %3947  ;;  %v2190_v60 = vor.u32 %v2189_v0, %v2188_v22  ;;  %v2193_v46 = vshll.u32 %v2192_v16, 23  ;;  %v630_v48 = vadd.s32 %v629_v26, %v625_v8  ;;  %vm565_vm0 = vcmp.eq.s32.totalorder %v560_v5, 2 }
 0x182   :  { %v3950_v62 = vpop.eup %3949  ;;  %v566_v14 = vxor.u32 2147483648, %v3948_v47  ;;  %vm2229_vm1 = vcmp.gt.s32.totalorder %v2228_v41, 0  ;;  %v2204_v13 = vsel %vm4747_vm9, 0, %v2202_v61  ;;  %v2225_v29 = vand.u32 8388607, %v2218_v20 }
 0x183   :  { %v563_v63 = vxor.u32 2147483648, %v3950_v62  ;;  %v2194_v50 = vor.u32 4788187, %v2193_v46  ;;  %v631_v57 = vadd.s32 536870912, %v630_v48  ;;  %v2230_v44 = vsel %vm2229_vm1, %v2228_v41, 0 }
 0x184   :  { %v567_v33 = vsel %vm565_vm0, %v566_v14, %v3950_v62  ;;  %v677_v30 = vshrl.u32 %v676_v59, 23  ;;  %v2197_v45 = vcvt.s32.f32 %v2190_v60  ;;  %v2232_v24 = vand.u32 31, %v2230_v44 }
 0x185   :  { %v564_v18 = vsel %vm562_vm15, %v3948_v47, %v563_v63  ;;  %v2195_v51 = vand.u32 2147483647, %v2194_v50  ;;  %v4787_v54 = vshrl.u32 %v631_v57, 30  ;;  %v4792_v32 = vand.u32 3, %v2204_v13 }
 0x186   :  { %v568_v43 = vsel %vm561_vm13, %v564_v18, %v567_v33  ;;  %v2233_v27 = vsub.s32 32, %v2232_v24  ;;  %v673_v56 = vand.u32 2147483647, %v4766_v31  ;;  %v2226_v23 = vor.u32 8388608, %v2225_v29 }
 0x187   :  { %v569_v40 = vsel %vm559_vm12, nan, %v568_v43  ;;  %v2198_v39 = vmul.f32 %v2197_v45, %v2195_v51  ;;  %v633_v2 = vshll.u32 %v4787_v54, 30  ;;  %v3669_v12 = vadd.s32 4294967169, %v677_v30 }
 0x188   :  { %v3559_v53 = vmul.f32 0.088388346, %v569_v40  ;;  %v4797_v38 = vshrl.u32 %v2230_v44, 5  ;;  %v2235_v52 = vshll.u32 %v4084_v11, %v2232_v24  ;;  %v2236_v8 = vshrl.u32 %v4085_v15, %v2233_v27 }
 0x189   :  { %v2199_v5 = vxor.u32 2147483648, %v2198_v39  ;;  %v4795_v9 = vsub.s32 %v630_v48, %v633_v2  ;;  %v2239_v37 = vshrl.u32 %v4086_v17, %v2233_v27  ;;  %v2238_v16 = vshll.u32 %v4085_v15, %v2232_v24  ;;  %v4835_v2 = vpop.f32.mrb[7].mxu0 }
 0x18a   :  { %3591 = vst [vmem:[#allocation2 + $0x10] sm:$0xff] %v3559_v53  ;;  %v2242_v47 = vshrl.u32 %v4087_v19, %v2233_v27  ;;  %v2241_v26 = vshll.u32 %v4086_v17, %v2232_v24  ;;  %v2244_v41 = vshll.u32 %v4087_v19, %v2232_v24  ;;  %v2245_v59 = vshrl.u32 %v4088_v21, %v2233_v27 }
 0x18b   :  { %v2200_v22 = vsel %vm2117_vm11, %v2199_v5, %v2198_v39  ;;  %v636_v0 = vsub.s32 0, %v4795_v9  ;;  %v2237_v14 = vor.u32 %v2236_v8, %v2235_v52  ;;  %v2240_v60 = vor.u32 %v2239_v37, %v2238_v16 }
 0x18c   :  { %v2203_v61 = vsel %vm4747_vm9, %v4559_v7, %v2200_v22  ;;  %v626_v46 = vadd.s32 %v4752_v49, %v4760_v55  ;;  %v2243_v48 = vor.u32 %v2242_v47, %v2241_v26  ;;  %v2246_v63 = vor.u32 %v2245_v59, %v2244_v41 }
 0x18d   :  { %3951 = vcosq.f32 %v2203_v61  ;;  %v3666_v62 = vmin.u32 %v636_v0, %v4795_v9  ;;  %v2247_v10 = vshll.u32 %v4088_v21, %v2232_v24  ;;  %v2248_v50 = vshrl.u32 %v4089_v28, %v2233_v27 }
 0x18e   :  { %3953 = vsinq.f32 %v2203_v61  ;;  %v4818_v13 = vshll.u32 %v2226_v23, 8  ;;  %v2234_v57 = vshrl.u32 %v4084_v11, %v2233_v27  ;;  %vm2250_vm2 = vcmp.lt.s32.totalorder %v4797_v38, 1 }
 0x18f   :  { %v638_v33 = vclz %v3666_v62  ;;  %vm2251_vm3 = vcmp.lt.s32.totalorder %v4797_v38, 2  ;;  %v683_v18 = vadd.s32 1, %v3669_v12  ;;  %v2249_v44 = vor.u32 %v2248_v50, %v2247_v10 }
 0x190   :  { %vm2253_vm4 = vcmp.lt.s32.totalorder %v4797_v38, 4  ;;  %v2258_v49 = vsel %vm2250_vm2, %v2237_v14, %v2240_v60  ;;  %vm2210_vm5 = vcmp.eq.s32.totalorder %v4792_v32, 0  ;;  %vm2252_vm6 = vcmp.lt.s32.totalorder %v4797_v38, 3 }
 0x191   :  { %v3667_v29 = vadd.s32 4294967294, %v638_v33  ;;  %v2255_v55 = vsel %vm2253_vm4, %v2243_v48, 2102212464  ;;  %v2259_v30 = vsel %vm2253_vm4, %v2246_v63, 920167782  ;;  %v2262_v43 = vsel %vm2250_vm2, %v2240_v60, %v2243_v48 }
 0x192   :  { %vm2209_vm7 = vcmp.lt.s32.totalorder %v4792_v32, 2  ;;  %vm572_vm8 = vcmp.lt.s32.totalorder %v4639_v42, 0  ;;  %v2254_v51 = vsel %vm2250_vm2, %v2234_v57, %v2237_v14  ;;  %v2260_v45 = vsel %vm2252_vm6, %v2243_v48, %v2259_v30 }
 0x193   :  { %vm3668_vm9 = vcmp.lt.s32.totalorder %v3667_v29, 0  ;;  %v2263_v40 = vsel %vm2253_vm4, %v2249_v44, 1326507024  ;;  %vm2207_vm10 = vweird.f32 %v4559_v7  ;;  %v2261_v53 = vsel %vm2251_vm3, %v2258_v49, %v2260_v45 }
 0x194   :  { %v641_v24 = vsel %vm3668_vm9, 0, %v3667_v29  ;;  %v2264_v39 = vsel %vm2252_vm6, %v2246_v63, %v2263_v40  ;;  %vm684_vm11 = vcmp.gt.s32.totalorder %v683_v18, 0  ;;  %v2256_v23 = vsel %vm2252_vm6, %v2240_v60, %v2255_v55 }
 0x195   :  { %v642_v27 = vsub.s32 32, %v641_v24  ;;  %v646_v5 = vsub.s32 4294967266, %v641_v24  ;;  %v2265_v12 = vsel %vm2251_vm3, %v2262_v43, %v2264_v39  ;;  %v643_v16 = vshll.u32 %v4795_v9, %v641_v24 }
 0x196   :  { %v4842_v52 = vmul.u32.u64.low %v4818_v13, %v2265_v12  ;;  %v4843_v8 = vmul.u32.u64.high %v4818_v13, %v2265_v12, %v4842_v52  ;;  %v4846_v37 = vmul.u32.u64.low %v4818_v13, %v2261_v53  ;;  %v4847_v22 = vmul.u32.u64.high %v4818_v13, %v2261_v53, %v4846_v37 }
 0x197   :  { %v3952_v0 = vpop.eup %3951  ;;  %v644_v47 = vshrl.u32 %v626_v46, %v642_v27  ;;  %v647_v61 = vadd.s32 127, %v646_v5  ;;  %v685_v26 = vsel %vm684_vm11, %v683_v18, 0  ;;  %v656_v62 = vsub.s32 4, %v4787_v54 }
 0x198   :  { %v3954_v41 = vpop.eup %3953  ;;  %v2214_v59 = vxor.u32 2147483648, %v3952_v0  ;;  %v2257_v14 = vsel %vm2251_vm3, %v2254_v51, %v2256_v23  ;;  %v687_v60 = vand.u32 31, %v685_v26  ;;  %vm2213_vm12 = vcmp.eq.s32.totalorder %v4792_v32, 2 }
 0x199   :  { %v2211_v48 = vxor.u32 2147483648, %v3954_v41  ;;  %v645_v63 = vor.u32 %v644_v47, %v643_v16  ;;  %v648_v33 = vshll.u32 %v647_v61, 23  ;;  %vm2275_vm13 = vc.u32 %v4843_v8, %v4846_v37 }
 0x19a   :  { %v2215_v10 = vsel %vm2213_vm12, %v2214_v59, %v3954_v41  ;;  %v2276_v9 = vadd.s32 1, %v4847_v22  ;;  %v680_v46 = vand.u32 8388607, %v673_v56  ;;  %v2273_v57 = vmul.u32 %v4818_v13, %v2257_v14 }
 0x19b   :  { %v2212_v50 = vsel %vm2210_vm5, %v3952_v0, %v2211_v48  ;;  %v649_v38 = vor.u32 4788187, %v648_v33  ;;  %v688_v18 = vsub.s32 32, %v687_v60  ;;  %v657_v44 = vsel %vm572_vm8, %v656_v62, %v4787_v54 }
 0x19c   :  { %v2216_v29 = vsel %vm2209_vm7, %v2212_v50, %v2215_v10  ;;  %v2277_v49 = vsel %vm2275_vm13, %v2276_v9, %v4847_v22  ;;  %v4869_v55 = vshrl.u32 %v685_v26, 5  ;;  %v652_v51 = vcvt.s32.f32 %v645_v63 }
 0x19d   :  { %v2217_v30 = vsel %vm2207_vm10, nan, %v2216_v29  ;;  %v650_v43 = vand.u32 2147483647, %v649_v38  ;;  %v2278_v45 = vadd.s32 %v2277_v49, %v2273_v57  ;;  %v690_v13 = vshll.u32 %v4084_v11, %v687_v60 }
 0x19e   :  { %v3575_v40 = vmul.f32 0.088388346, %v2217_v30  ;;  %v691_v32 = vshrl.u32 %v4085_v15, %v688_v18  ;;  %v694_v24 = vshrl.u32 %v4086_v17, %v688_v18  ;;  %v693_v54 = vshll.u32 %v4085_v15, %v687_v60 }
 0x19f   :  { %v653_v53 = vmul.f32 %v652_v51, %v650_v43  ;;  %v2279_v39 = vadd.s32 536870912, %v2278_v45  ;;  %v697_v27 = vshrl.u32 %v4087_v19, %v688_v18  ;;  %v696_v7 = vshll.u32 %v4086_v17, %v687_v60 }
 0x1a0   :  { %3607 = vst [vmem:[#allocation2 + $0x90] sm:$0xff] %v3575_v40  ;;  %v692_v5 = vor.u32 %v691_v32, %v690_v13  ;;  %v699_v23 = vshll.u32 %v4087_v19, %v687_v60  ;;  %v700_v12 = vshrl.u32 %v4088_v21, %v688_v18  ;;  %v695_v0 = vor.u32 %v694_v24, %v693_v54 }
 0x1a1   :  { %v654_v52 = vxor.u32 2147483648, %v653_v53  ;;  %v4881_v22 = vshrl.u32 %v2279_v39, 30  ;;  %v703_v16 = vshrl.u32 %v4089_v28, %v688_v18  ;;  %vm4886_vm14 = vcmp.le.f32.partialorder %v570_v1, 0.7853982 }
 0x1a2   :  { %v698_v61 = vor.u32 %v697_v27, %v696_v7  ;;  %v701_v26 = vor.u32 %v700_v12, %v699_v23  ;;  %v702_v41 = vshll.u32 %v4088_v21, %v687_v60  ;;  %v659_v62 = vsel %vm4886_vm14, 0, %v657_v44  ;;  %v4935_v7 = vpop.f32.mrb[7].mxu1 }
 0x1a3   :  { %v655_v59 = vsel %vm572_vm8, %v654_v52, %v653_v53  ;;  %v2281_v14 = vshll.u32 %v4881_v22, 30  ;;  %v681_v48 = vor.u32 8388608, %v680_v46  ;;  %vm705_vm15 = vcmp.lt.s32.totalorder %v4869_v55, 1 }
 0x1a4   :  { %v658_v1 = vsel %vm4886_vm14, %v4639_v42, %v655_v59  ;;  %v704_v63 = vor.u32 %v703_v16, %v702_v41  ;;  %v4902_v33 = vadd.f32 %v4403_v3, %v4204_v34  ;;  %vm708_vm0 = vcmp.lt.s32.totalorder %v4869_v55, 4 }
 0x1a5   :  { %3955 = vcosq.f32 %v658_v1  ;;  %v4904_v60 = vsub.s32 %v2278_v45, %v2281_v14  ;;  %v713_v10 = vsel %vm705_vm15, %v692_v5, %v695_v0  ;;  %vm707_vm1 = vcmp.lt.s32.totalorder %v4869_v55, 3 }
 0x1a6   :  { %3957 = vsinq.f32 %v658_v1  ;;  %v710_v9 = vsel %vm708_vm0, %v698_v61, 2102212464  ;;  %v714_v46 = vsel %vm708_vm0, %v701_v26, 920167782  ;;  %v689_v38 = vshrl.u32 %v4084_v11, %v688_v18 }
 0x1a7   :  { %v2284_v50 = vsub.s32 0, %v4904_v60  ;;  %vm706_vm2 = vcmp.lt.s32.totalorder %v4869_v55, 2  ;;  %v715_v3 = vsel %vm707_vm1, %v698_v61, %v714_v46  ;;  %v717_v29 = vsel %vm705_vm15, %v695_v0, %v698_v61 }
 0x1a8   :  { %v716_v57 = vsel %vm706_vm2, %v713_v10, %v715_v3  ;;  %v718_v44 = vsel %vm708_vm0, %v704_v63, 1326507024  ;;  %v721_v49 = vshll.u32 %v681_v48, 8  ;;  %v663_v30 = vand.u32 3, %v659_v62 }
 0x1a9   :  { %v3730_v43 = vmin.u32 %v2284_v50, %v4904_v60  ;;  %v709_v51 = vsel %vm705_vm15, %v689_v38, %v692_v5  ;;  %v711_v45 = vsel %vm707_vm1, %v695_v0, %v710_v9  ;;  %v719_v40 = vsel %vm707_vm1, %v701_v26, %v718_v44 }
 0x1aa   :  { %v4920_v18 = vmul.u32.u64.low %v721_v49, %v716_v57  ;;  %v4921_v13 = vmul.u32.u64.high %v721_v49, %v716_v57, %v4920_v18  ;;  %vm2220_vm3 = vcmp.lt.s32.totalorder %v4714_v36, 0  ;;  %v720_v24 = vsel %vm706_vm2, %v717_v29, %v719_v40 }
 0x1ab   :  { %v2286_v32 = vclz %v3730_v43  ;;  %v2324_v53 = vand.u32 2139095040, %v4902_v33  ;;  %vm662_vm4 = vweird.f32 %v4639_v42  ;;  %v712_v39 = vsel %vm706_vm2, %v709_v51, %v711_v45 }
 0x1ac   :  { %v4931_v54 = vmul.u32.u64.low %v721_v49, %v720_v24  ;;  %v4932_v27 = vmul.u32.u64.high %v721_v49, %v720_v24, %v4931_v54  ;;  %v2321_v5 = vand.u32 2147483647, %v4902_v33  ;;  %vm664_vm5 = vcmp.lt.s32.totalorder %v663_v30, 2 }
 0x1ad   :  { %v3731_v23 = vadd.s32 4294967294, %v2286_v32  ;;  %v2325_v12 = vshrl.u32 %v2324_v53, 23  ;;  %v4939_v52 = vadd.f32 %v4520_v6, %v4206_v35  ;;  %vm665_vm6 = vcmp.eq.s32.totalorder %v663_v30, 0 }
 0x1ae   :  { %vm668_vm7 = vcmp.eq.s32.totalorder %v663_v30, 2  ;;  %v2274_v55 = vadd.s32 %v4846_v37, %v4843_v8  ;;  %v731_v0 = vadd.s32 1, %v4921_v13  ;;  %v2304_v47 = vsub.s32 4, %v4881_v22 }
 0x1af   :  { %v3956_v16 = vpop.eup %3955  ;;  %vm3732_vm8 = vcmp.lt.s32.totalorder %v3731_v23, 0  ;;  %v728_v61 = vmul.u32 %v721_v49, %v712_v39  ;;  %v3733_v26 = vadd.s32 4294967169, %v2325_v12  ;;  %vm730_vm9 = vc.u32 %v4932_v27, %v4920_v18 }
 0x1b0   :  { %v3958_v41 = vpop.eup %3957  ;;  %v669_v59 = vxor.u32 2147483648, %v3956_v16  ;;  %v2289_v62 = vsel %vm3732_vm8, 0, %v3731_v23  ;;  %v2328_v6 = vand.u32 8388607, %v2321_v5  ;;  %v779_v37 = vand.u32 2139095040, %v4939_v52 }
 0x1b1   :  { %v666_v14 = vxor.u32 2147483648, %v3958_v41  ;;  %v2290_v48 = vsub.s32 32, %v2289_v62  ;;  %v2294_v8 = vsub.s32 4294967266, %v2289_v62  ;;  %v2291_v63 = vshll.u32 %v4904_v60, %v2289_v62 }
 0x1b2   :  { %v670_v1 = vsel %vm668_vm7, %v669_v59, %v3958_v41  ;;  %v732_v10 = vsel %vm730_vm9, %v731_v0, %v4921_v13  ;;  %v2331_v9 = vadd.s32 1, %v3733_v26  ;;  %vm4957_vm10 = vcmp.le.f32.partialorder %v2218_v20, 0.7853982 }
 0x1b3   :  { %v667_v46 = vsel %vm665_vm6, %v3956_v16, %v666_v14  ;;  %v2292_v50 = vshrl.u32 %v2274_v55, %v2290_v48  ;;  %v2295_v38 = vadd.s32 127, %v2294_v8  ;;  %v733_v3 = vadd.s32 %v732_v10, %v728_v61 }
 0x1b4   :  { %v671_v57 = vsel %vm664_vm5, %v667_v46, %v670_v1  ;;  %v2305_v60 = vsel %vm2220_vm3, %v2304_v47, %v4881_v22  ;;  %vm2332_vm11 = vcmp.gt.s32.totalorder %v2331_v9, 0  ;;  %v776_v40 = vand.u32 2147483647, %v4939_v52 }
 0x1b5   :  { %v672_v44 = vsel %vm662_vm4, nan, %v671_v57  ;;  %v2293_v49 = vor.u32 %v2292_v50, %v2291_v63  ;;  %v2296_v43 = vshll.u32 %v2295_v38, 23  ;;  %v734_v51 = vadd.s32 536870912, %v733_v3 }
 0x1b6   :  { %v3560_v45 = vmul.f32 0.088388346, %v672_v44  ;;  %v2333_v30 = vsel %vm2332_vm11, %v2331_v9, 0  ;;  %v780_v13 = vshrl.u32 %v779_v37, 23  ;;  %v2307_v32 = vsel %vm4957_vm10, 0, %v2305_v60 }
 0x1b7   :  { %v2297_v20 = vor.u32 4788187, %v2296_v43  ;;  %v4969_v24 = vshrl.u32 %v734_v51, 30  ;;  %v2329_v53 = vor.u32 8388608, %v2328_v6  ;;  %v2335_v22 = vand.u32 31, %v2333_v30 }
 0x1b8   :  { %3592 = vst [vmem:[#allocation2 + $0x18] sm:$0xff] %v3560_v45  ;;  %v2300_v42 = vcvt.s32.f32 %v2293_v49  ;;  %v4972_v23 = vand.u32 3, %v2307_v32  ;;  %v3673_v55 = vadd.s32 4294967169, %v780_v13  ;;  %v4976_v0 = vand.u32 8388607, %v776_v40 }
 0x1b9   :  { %v2298_v39 = vand.u32 2147483647, %v2297_v20  ;;  %v736_v54 = vshll.u32 %v4969_v24, 30  ;;  %v2336_v12 = vsub.s32 32, %v2335_v22  ;;  %v729_v47 = vadd.s32 %v4920_v18, %v4932_v27 }
 0x1ba   :  { %v4982_v26 = vshll.u32 %v2329_v53, 8  ;;  %v2334_v41 = vshrl.u32 %v2333_v30, 5  ;;  %v2338_v59 = vshll.u32 %v4084_v11, %v2335_v22  ;;  %v2341_v8 = vshll.u32 %v4085_v15, %v2335_v22 }
 0x1bb   :  { %v2301_v16 = vmul.f32 %v2300_v42, %v2298_v39  ;;  %v4980_v61 = vsub.s32 %v733_v3, %v736_v54  ;;  %v2339_v62 = vshrl.u32 %v4085_v15, %v2336_v12  ;;  %v2342_v6 = vshrl.u32 %v4086_v17, %v2336_v12 }
 0x1bc   :  { %v2345_v37 = vshrl.u32 %v4087_v19, %v2336_v12  ;;  %v2344_v18 = vshll.u32 %v4086_v17, %v2335_v22  ;;  %v2347_v27 = vshll.u32 %v4087_v19, %v2335_v22  ;;  %v2348_v1 = vshrl.u32 %v4088_v21, %v2336_v12 }
 0x1bd   :  { %v2302_v14 = vxor.u32 2147483648, %v2301_v16  ;;  %v739_v48 = vsub.s32 0, %v4980_v61  ;;  %v786_v63 = vadd.s32 1, %v3673_v55  ;;  %v2340_v46 = vor.u32 %v2339_v62, %v2338_v59 }
 0x1be   :  { %v2343_v50 = vor.u32 %v2342_v6, %v2341_v8  ;;  %v759_v3 = vsub.s32 4, %v4969_v24  ;;  %v2346_v57 = vor.u32 %v2345_v37, %v2344_v18  ;;  %v2349_v60 = vor.u32 %v2348_v1, %v2347_v27 }
 0x1bf   :  { %v2303_v10 = vsel %vm2220_vm3, %v2302_v14, %v2301_v16  ;;  %v3670_v9 = vmin.u32 %v739_v48, %v4980_v61  ;;  %v2350_v49 = vshll.u32 %v4088_v21, %v2335_v22  ;;  %v2351_v43 = vshrl.u32 %v4089_v28, %v2336_v12  ;;  %v5013_v16 = vpop.f32.mrb[8].mxu0 }
 0x1c0   :  { %v2306_v38 = vsel %vm4957_vm10, %v4714_v36, %v2303_v10  ;;  %vm675_vm12 = vcmp.lt.s32.totalorder %v4766_v31, 0  ;;  %v2337_v51 = vshrl.u32 %v4084_v11, %v2336_v12  ;;  %vm2353_vm13 = vcmp.lt.s32.totalorder %v2334_v41, 1 }
 0x1c1   :  { %3959 = vcosq.f32 %v2306_v38  ;;  %v741_v44 = vclz %v3670_v9  ;;  %vm2354_vm14 = vcmp.lt.s32.totalorder %v2334_v41, 2  ;;  %v2352_v29 = vor.u32 %v2351_v43, %v2350_v49 }
 0x1c2   :  { %3961 = vsinq.f32 %v2306_v38  ;;  %vm2356_vm15 = vcmp.lt.s32.totalorder %v2334_v41, 4  ;;  %v2361_v30 = vsel %vm2353_vm13, %v2340_v46, %v2343_v50  ;;  %vm2355_vm0 = vcmp.lt.s32.totalorder %v2334_v41, 3 }
 0x1c3   :  { %v3671_v45 = vadd.s32 4294967294, %v741_v44  ;;  %v2358_v13 = vsel %vm2356_vm15, %v2346_v57, 2102212464  ;;  %v2362_v20 = vsel %vm2356_vm15, %v2349_v60, 920167782  ;;  %v2365_v32 = vsel %vm2353_vm13, %v2343_v50, %v2346_v57 }
 0x1c4   :  { %vm5006_vm1 = vcmp.le.f32.partialorder %v673_v56, 0.7853982  ;;  %v2357_v22 = vsel %vm2353_vm13, %v2337_v51, %v2340_v46  ;;  %v2363_v39 = vsel %vm2355_vm0, %v2346_v57, %v2362_v20  ;;  %v2366_v42 = vsel %vm2356_vm15, %v2352_v29, 1326507024 }
 0x1c5   :  { %vm3672_vm2 = vcmp.lt.s32.totalorder %v3671_v45, 0  ;;  %v2364_v12 = vsel %vm2354_vm14, %v2361_v30, %v2363_v39  ;;  %v2367_v55 = vsel %vm2355_vm0, %v2349_v60, %v2366_v42  ;;  %vm787_vm3 = vcmp.gt.s32.totalorder %v786_v63, 0 }
 0x1c6   :  { %v744_v54 = vsel %vm3672_vm2, 0, %v3671_v45  ;;  %v2359_v56 = vsel %vm2355_vm0, %v2343_v50, %v2358_v13  ;;  %v2368_v6 = vsel %vm2354_vm14, %v2365_v32, %v2367_v55  ;;  %vm2310_vm4 = vweird.f32 %v4714_v36 }
 0x1c7   :  { %v745_v59 = vsub.s32 32, %v744_v54  ;;  %v749_v62 = vsub.s32 4294967266, %v744_v54  ;;  %v5019_v14 = vmul.u32.u64.low %v4982_v26, %v2368_v6  ;;  %v5020_v48 = vmul.u32.u64.high %v4982_v26, %v2368_v6, %v5019_v14 }
 0x1c8   :  { %v5023_v8 = vmul.u32.u64.low %v4982_v26, %v2364_v12  ;;  %v5024_v37 = vmul.u32.u64.high %v4982_v26, %v2364_v12, %v5023_v8  ;;  %v746_v18 = vshll.u32 %v4980_v61, %v744_v54  ;;  %v788_v10 = vsel %vm787_vm3, %v786_v63, 0 }
 0x1c9   :  { %v747_v27 = vshrl.u32 %v729_v47, %v745_v59  ;;  %v750_v1 = vadd.s32 127, %v749_v62  ;;  %vm2312_vm5 = vcmp.lt.s32.totalorder %v4972_v23, 2  ;;  %vm2313_vm6 = vcmp.eq.s32.totalorder %v4972_v23, 0 }
 0x1ca   :  { %v2360_v9 = vsel %vm2354_vm14, %v2357_v22, %v2359_v56  ;;  %v790_v46 = vand.u32 31, %v788_v10  ;;  %vm2316_vm7 = vcmp.eq.s32.totalorder %v4972_v23, 2  ;;  %v760_v60 = vsel %vm675_vm12, %v759_v3, %v4969_v24 }
 0x1cb   :  { %v3960_v50 = vpop.eup %3959  ;;  %v748_v38 = vor.u32 %v747_v27, %v746_v18  ;;  %v751_v57 = vshll.u32 %v750_v1, 23  ;;  %vm2378_vm8 = vc.u32 %v5020_v48, %v5023_v8  ;;  %v2379_v63 = vadd.s32 1, %v5024_v37 }
 0x1cc   :  { %v3962_v61 = vpop.eup %3961  ;;  %v2317_v47 = vxor.u32 2147483648, %v3960_v50  ;;  %v784_v41 = vor.u32 8388608, %v4976_v0  ;;  %v2376_v43 = vmul.u32 %v4982_v26, %v2360_v9  ;;  %v791_v51 = vsub.s32 32, %v790_v46 }
 0x1cd   :  { %v2314_v44 = vxor.u32 2147483648, %v3962_v61  ;;  %v752_v49 = vor.u32 4788187, %v751_v57  ;;  %v762_v29 = vsel %vm5006_vm1, 0, %v760_v60  ;;  %v2380_v24 = vsel %vm2378_vm8, %v2379_v63, %v5024_v37 }
 0x1ce   :  { %v2318_v45 = vsel %vm2316_vm7, %v2317_v47, %v3962_v61  ;;  %v5045_v3 = vadd.f32 %v4592_v4, %v4206_v35  ;;  %v755_v0 = vcvt.s32.f32 %v748_v38  ;;  %v2381_v20 = vadd.s32 %v2380_v24, %v2376_v43 }
 0x1cf   :  { %v2315_v30 = vsel %vm2313_vm6, %v3960_v50, %v2314_v44  ;;  %v753_v13 = vand.u32 2147483647, %v752_v49  ;;  %v5051_v32 = vshrl.u32 %v788_v10, 5  ;;  %v794_v22 = vshrl.u32 %v4085_v15, %v791_v51 }
 0x1d0   :  { %v2319_v26 = vsel %vm2312_vm5, %v2315_v30, %v2318_v45  ;;  %v797_v39 = vshrl.u32 %v4086_v17, %v791_v51  ;;  %v2382_v54 = vadd.s32 536870912, %v2381_v20  ;;  %v800_v12 = vshrl.u32 %v4087_v19, %v791_v51 }
 0x1d1   :  { %v2320_v42 = vsel %vm2310_vm4, nan, %v2319_v26  ;;  %v756_v4 = vmul.f32 %v755_v0, %v753_v13  ;;  %v793_v59 = vshll.u32 %v4084_v11, %v790_v46  ;;  %v796_v62 = vshll.u32 %v4085_v15, %v790_v46 }
 0x1d2   :  { %v3576_v55 = vmul.f32 0.088388346, %v2320_v42  ;;  %v799_v23 = vshll.u32 %v4086_v17, %v790_v46  ;;  %v2383_v6 = vshrl.u32 %v2382_v54, 30  ;;  %v802_v14 = vshll.u32 %v4087_v19, %v790_v46 }
 0x1d3   :  { %v757_v56 = vxor.u32 2147483648, %v756_v4  ;;  %v803_v37 = vshrl.u32 %v4088_v21, %v791_v51  ;;  %v795_v36 = vor.u32 %v794_v22, %v793_v59  ;;  %v798_v18 = vor.u32 %v797_v39, %v796_v62 }
 0x1d4   :  { %3608 = vst [vmem:[#allocation2 + $0x98] sm:$0xff] %v3576_v55  ;;  %v805_v27 = vshll.u32 %v4088_v21, %v790_v46  ;;  %v806_v1 = vshrl.u32 %v4089_v28, %v791_v51  ;;  %v2384_v9 = vshll.u32 %v2383_v6, 30  ;;  %v801_v50 = vor.u32 %v800_v12, %v799_v23  ;;  %v5176_v23 = vpop.f32.mrb[9].mxu0 }
 0x1d5   :  { %v758_v10 = vsel %vm675_vm12, %v757_v56, %v756_v4  ;;  %v804_v38 = vor.u32 %v803_v37, %v802_v14  ;;  %v5070_v60 = vand.u32 3, %v762_v29  ;;  %v5072_v47 = vshll.u32 %v784_v41, 8 }
 0x1d6   :  { %v761_v57 = vsel %vm5006_vm1, %v4766_v31, %v758_v10  ;;  %v807_v61 = vor.u32 %v806_v1, %v805_v27  ;;  %v5074_v63 = vsub.s32 %v2381_v20, %v2384_v9  ;;  %v792_v46 = vshrl.u32 %v4084_v11, %v791_v51  ;;  %v5124_v10 = vpop.f32.mrb[8].mxu1 }
 0x1d7   :  { %3963 = vcosq.f32 %v761_v57  ;;  %v2427_v44 = vand.u32 2139095040, %v5045_v3  ;;  %vm808_vm9 = vcmp.lt.s32.totalorder %v5051_v32, 1  ;;  %vm810_vm10 = vcmp.lt.s32.totalorder %v5051_v32, 3 }
 0x1d8   :  { %3965 = vsinq.f32 %v761_v57  ;;  %vm811_vm11 = vcmp.lt.s32.totalorder %v5051_v32, 4  ;;  %v2387_v53 = vsub.s32 0, %v5074_v63  ;;  %v816_v43 = vsel %vm808_vm9, %v795_v36, %v798_v18 }
 0x1d9   :  { %v813_v49 = vsel %vm811_vm11, %v801_v50, 2102212464  ;;  %v817_v41 = vsel %vm811_vm11, %v804_v38, 920167782  ;;  %v820_v29 = vsel %vm808_vm9, %v798_v18, %v801_v50  ;;  %v821_v24 = vsel %vm811_vm11, %v807_v61, 1326507024 }
 0x1da   :  { %v818_v45 = vsel %vm810_vm10, %v801_v50, %v817_v41  ;;  %v2424_v51 = vand.u32 2147483647, %v5045_v3  ;;  %v3734_v30 = vmin.u32 %v2387_v53, %v5074_v63  ;;  %v2407_v13 = vsub.s32 4, %v2383_v6 }
 0x1db   :  { %vm809_vm12 = vcmp.lt.s32.totalorder %v5051_v32, 2  ;;  %v812_v0 = vsel %vm808_vm9, %v792_v46, %v795_v36  ;;  %v814_v20 = vsel %vm810_vm10, %v798_v18, %v813_v49  ;;  %v822_v22 = vsel %vm810_vm10, %v804_v38, %v821_v24 }
 0x1dc   :  { %v819_v26 = vsel %vm809_vm12, %v816_v43, %v818_v45  ;;  %v2428_v39 = vshrl.u32 %v2427_v44, 23  ;;  %v2389_v42 = vclz %v3734_v30  ;;  %v823_v4 = vsel %vm809_vm12, %v820_v29, %v822_v22 }
 0x1dd   :  { %v5096_v54 = vmul.u32.u64.low %v5072_v47, %v819_v26  ;;  %v5097_v12 = vmul.u32.u64.high %v5072_v47, %v819_v26, %v5096_v54  ;;  %vm765_vm13 = vweird.f32 %v4766_v31  ;;  %vm2323_vm14 = vcmp.lt.s32.totalorder %v4902_v33, 0 }
 0x1de   :  { %v5103_v55 = vmul.u32.u64.low %v5072_v47, %v823_v4  ;;  %v5104_v59 = vmul.u32.u64.high %v5072_v47, %v823_v4, %v5103_v55  ;;  %v3737_v62 = vadd.s32 4294967169, %v2428_v39  ;;  %vm767_vm15 = vcmp.lt.s32.totalorder %v5070_v60, 2 }
 0x1df   :  { %vm5109_vm0 = vcmp.le.f32.partialorder %v2321_v5, 0.7853982  ;;  %v3735_v56 = vadd.s32 4294967294, %v2389_v42  ;;  %v2408_v14 = vsel %vm2323_vm14, %v2407_v13, %v2383_v6  ;;  %vm768_vm1 = vcmp.eq.s32.totalorder %v5070_v60, 0 }
 0x1e0   :  { %vm771_vm2 = vcmp.eq.s32.totalorder %v5070_v60, 2  ;;  %v815_v37 = vsel %vm809_vm12, %v812_v0, %v814_v20  ;;  %v2434_v36 = vadd.s32 1, %v3737_v62  ;;  %v2377_v27 = vadd.s32 %v5023_v8, %v5020_v48 }
 0x1e1   :  { %v3964_v18 = vpop.eup %3963  ;;  %vm3736_vm3 = vcmp.lt.s32.totalorder %v3735_v56, 0  ;;  %v834_v5 = vadd.s32 1, %v5097_v12  ;;  %v2431_v1 = vand.u32 8388607, %v2424_v51  ;;  %v2410_v32 = vsel %vm5109_vm0, 0, %v2408_v14 }
 0x1e2   :  { %v3966_v6 = vpop.eup %3965  ;;  %v772_v9 = vxor.u32 2147483648, %v3964_v18  ;;  %v2392_v50 = vsel %vm3736_vm3, 0, %v3735_v56  ;;  %vm833_vm4 = vc.u32 %v5104_v59, %v5096_v54  ;;  %v831_v8 = vmul.u32 %v5072_v47, %v815_v37 }
 0x1e3   :  { %v769_v38 = vxor.u32 2147483648, %v3966_v6  ;;  %v2393_v57 = vsub.s32 32, %v2392_v50  ;;  %v2397_v48 = vsub.s32 4294967266, %v2392_v50  ;;  %v2394_v46 = vshll.u32 %v5074_v63, %v2392_v50 }
 0x1e4   :  { %v773_v61 = vsel %vm771_vm2, %v772_v9, %v3966_v6  ;;  %v835_v44 = vsel %vm833_vm4, %v834_v5, %v5097_v12  ;;  %vm2435_vm5 = vcmp.gt.s32.totalorder %v2434_v36, 0  ;;  %v2432_v29 = vor.u32 8388608, %v2431_v1 }
 0x1e5   :  { %v770_v53 = vsel %vm768_vm1, %v3964_v18, %v769_v38  ;;  %v2395_v49 = vshrl.u32 %v2377_v27, %v2393_v57  ;;  %v2398_v43 = vadd.s32 127, %v2397_v48  ;;  %v836_v41 = vadd.s32 %v835_v44, %v831_v8 }
 0x1e6   :  { %v774_v45 = vsel %vm767_vm15, %v770_v53, %v773_v61  ;;  %v2436_v24 = vsel %vm2435_vm5, %v2434_v36, 0  ;;  %v5141_v47 = vadd.f32 %v4693_v25, %v4204_v34  ;;  %v5147_v60 = vand.u32 3, %v2410_v32 }
 0x1e7   :  { %v775_v63 = vsel %vm765_vm13, nan, %v774_v45  ;;  %v2396_v30 = vor.u32 %v2395_v49, %v2394_v46  ;;  %v2399_v13 = vshll.u32 %v2398_v43, 23  ;;  %v837_v0 = vadd.s32 536870912, %v836_v41 }
 0x1e8   :  { %v3561_v20 = vmul.f32 0.088388346, %v775_v63  ;;  %v2438_v26 = vand.u32 31, %v2436_v24  ;;  %v5149_v4 = vshll.u32 %v2432_v29, 8  ;;  %v882_v31 = vand.u32 2139095040, %v5141_v47 }
 0x1e9   :  { %v2400_v22 = vor.u32 4788187, %v2399_v13  ;;  %v5145_v39 = vshrl.u32 %v837_v0, 30  ;;  %v2403_v25 = vcvt.s32.f32 %v2396_v30  ;;  %v2437_v1 = vshrl.u32 %v2436_v24, 5 }
 0x1ea   :  { %3593 = vst [vmem:[#allocation2 + $0x20] sm:$0xff] %v3561_v20  ;;  %v2439_v42 = vsub.s32 32, %v2438_v26  ;;  %v2441_v62 = vshll.u32 %v4084_v11, %v2438_v26  ;;  %v2444_v27 = vshll.u32 %v4085_v15, %v2438_v26  ;;  %v2447_v6 = vshll.u32 %v4086_v17, %v2438_v26 }
 0x1eb   :  { %v2401_v12 = vand.u32 2147483647, %v2400_v22  ;;  %v839_v55 = vshll.u32 %v5145_v39, 30  ;;  %v2450_v9 = vshll.u32 %v4087_v19, %v2438_v26  ;;  %v879_v50 = vand.u32 2147483647, %v5141_v47 }
 0x1ec   :  { %v2442_v56 = vshrl.u32 %v4085_v15, %v2439_v42  ;;  %v2445_v14 = vshrl.u32 %v4086_v17, %v2439_v42  ;;  %v2448_v37 = vshrl.u32 %v4087_v19, %v2439_v42  ;;  %v2451_v5 = vshrl.u32 %v4088_v21, %v2439_v42 }
 0x1ed   :  { %v2404_v36 = vmul.f32 %v2403_v25, %v2401_v12  ;;  %v5157_v18 = vsub.s32 %v836_v41, %v839_v55  ;;  %v2453_v46 = vshll.u32 %v4088_v21, %v2438_v26  ;;  %v2454_v44 = vshrl.u32 %v4089_v28, %v2439_v42 }
 0x1ee   :  { %v2443_v57 = vor.u32 %v2442_v56, %v2441_v62  ;;  %v2446_v48 = vor.u32 %v2445_v14, %v2444_v27  ;;  %v2449_v8 = vor.u32 %v2448_v37, %v2447_v6  ;;  %v2452_v61 = vor.u32 %v2451_v5, %v2450_v9 }
 0x1ef   :  { %v2405_v32 = vxor.u32 2147483648, %v2404_v36  ;;  %v842_v38 = vsub.s32 0, %v5157_v18  ;;  %v2440_v43 = vshrl.u32 %v4084_v11, %v2439_v42  ;;  %v883_v41 = vshrl.u32 %v882_v31, 23 }
 0x1f0   :  { %v2455_v29 = vor.u32 %v2454_v44, %v2453_v46  ;;  %vm2456_vm6 = vcmp.lt.s32.totalorder %v2437_v1, 1  ;;  %vm2457_vm7 = vcmp.lt.s32.totalorder %v2437_v1, 2  ;;  %vm2458_vm8 = vcmp.lt.s32.totalorder %v2437_v1, 3 }
 0x1f1   :  { %v2406_v53 = vsel %vm2323_vm14, %v2405_v32, %v2404_v36  ;;  %v3674_v49 = vmin.u32 %v842_v38, %v5157_v18  ;;  %vm2459_vm9 = vcmp.lt.s32.totalorder %v2437_v1, 4  ;;  %vm778_vm10 = vcmp.lt.s32.totalorder %v4939_v52, 0 }
 0x1f2   :  { %v2409_v45 = vsel %vm5109_vm0, %v4902_v33, %v2406_v53  ;;  %v2461_v63 = vsel %vm2459_vm9, %v2449_v8, 2102212464  ;;  %v2464_v30 = vsel %vm2456_vm6, %v2443_v57, %v2446_v48  ;;  %v2465_v13 = vsel %vm2459_vm9, %v2452_v61, 920167782 }
 0x1f3   :  { %3967 = vcosq.f32 %v2409_v45  ;;  %v844_v24 = vclz %v3674_v49  ;;  %v2460_v20 = vsel %vm2456_vm6, %v2440_v43, %v2443_v57  ;;  %v2466_v26 = vsel %vm2458_vm8, %v2449_v8, %v2465_v13 }
 0x1f4   :  { %3969 = vsinq.f32 %v2409_v45  ;;  %v2468_v22 = vsel %vm2456_vm6, %v2446_v48, %v2449_v8  ;;  %v2462_v42 = vsel %vm2458_vm8, %v2446_v48, %v2461_v63  ;;  %v2467_v12 = vsel %vm2457_vm7, %v2464_v30, %v2466_v26 }
 0x1f5   :  { %v3675_v0 = vadd.s32 4294967294, %v844_v24  ;;  %v2469_v25 = vsel %vm2459_vm9, %v2455_v29, 1326507024  ;;  %v3677_v55 = vadd.s32 4294967169, %v883_v41  ;;  %v832_v14 = vadd.s32 %v5096_v54, %v5104_v59 }
 0x1f6   :  { %v2470_v31 = vsel %vm2458_vm8, %v2452_v61, %v2469_v25  ;;  %v5182_v62 = vmul.u32.u64.low %v5149_v4, %v2467_v12  ;;  %v5183_v56 = vmul.u32.u64.high %v5149_v4, %v2467_v12, %v5182_v62  ;;  %v862_v9 = vsub.s32 4, %v5145_v39 }
 0x1f7   :  { %vm3676_vm11 = vcmp.lt.s32.totalorder %v3675_v0, 0  ;;  %v2471_v36 = vsel %vm2457_vm7, %v2468_v22, %v2470_v31  ;;  %v889_v27 = vadd.s32 1, %v3677_v55  ;;  %v2463_v32 = vsel %vm2457_vm7, %v2460_v20, %v2462_v42 }
 0x1f8   :  { %v847_v37 = vsel %vm3676_vm11, 0, %v3675_v0  ;;  %vm2413_vm12 = vweird.f32 %v4902_v33  ;;  %v5194_v57 = vmul.u32.u64.low %v5149_v4, %v2471_v36  ;;  %v5195_v48 = vmul.u32.u64.high %v5149_v4, %v2471_v36, %v5194_v57 }
 0x1f9   :  { %v848_v5 = vsub.s32 32, %v847_v37  ;;  %v852_v6 = vsub.s32 4294967266, %v847_v37  ;;  %v849_v38 = vshll.u32 %v5157_v18, %v847_v37  ;;  %vm890_vm13 = vcmp.gt.s32.totalorder %v889_v27, 0 }
 0x1fa   :  { %v2482_v8 = vadd.s32 1, %v5183_v56  ;;  %v891_v61 = vsel %vm890_vm13, %v889_v27, 0  ;;  %vm2415_vm14 = vcmp.lt.s32.totalorder %v5147_v60, 2  ;;  %vm5201_vm15 = vcmp.le.f32.partialorder %v776_v40, 0.7853982 }
 0x1fb   :  { %v850_v54 = vshrl.u32 %v832_v14, %v848_v5  ;;  %v853_v59 = vadd.s32 127, %v852_v6  ;;  %v886_v18 = vand.u32 8388607, %v879_v50  ;;  %v893_v46 = vand.u32 31, %v891_v61 }
 0x1fc   :  { %vm2416_vm0 = vcmp.eq.s32.totalorder %v5147_v60, 0  ;;  %v863_v43 = vsel %vm778_vm10, %v862_v9, %v5145_v39  ;;  %v2479_v40 = vmul.u32 %v5149_v4, %v2463_v32  ;;  %vm2481_vm1 = vc.u32 %v5195_v48, %v5182_v62 }
 0x1fd   :  { %v3968_v44 = vpop.eup %3967  ;;  %v851_v53 = vor.u32 %v850_v54, %v849_v38  ;;  %v854_v49 = vshll.u32 %v853_v59, 23  ;;  %v894_v29 = vsub.s32 32, %v893_v46  ;;  %vm2419_vm2 = vcmp.eq.s32.totalorder %v5147_v60, 2 }
 0x1fe   :  { %v3970_v41 = vpop.eup %3969  ;;  %v2420_v45 = vxor.u32 2147483648, %v3968_v44  ;;  %v2483_v30 = vsel %vm2481_vm1, %v2482_v8, %v5183_v56  ;;  %v887_v20 = vor.u32 8388608, %v886_v18  ;;  %v5218_v39 = vadd.f32 %v4756_v58, %v4204_v34 }
 0x1ff   :  { %v2417_v24 = vxor.u32 2147483648, %v3970_v41  ;;  %v855_v63 = vor.u32 4788187, %v854_v49  ;;  %v2484_v0 = vadd.s32 %v2483_v30, %v2479_v40  ;;  %v858_v22 = vcvt.s32.f32 %v851_v53 }
 0x200   :  { %v2421_v13 = vsel %vm2419_vm2, %v2420_v45, %v3970_v41  ;;  %v865_v42 = vsel %vm5201_vm15, 0, %v863_v43  ;;  %v897_v55 = vshrl.u32 %v4085_v15, %v894_v29  ;;  %v900_v31 = vshrl.u32 %v4086_v17, %v894_v29 }
 0x201   :  { %v2418_v4 = vsel %vm2416_vm0, %v3968_v44, %v2417_v24  ;;  %v856_v26 = vand.u32 2147483647, %v855_v63  ;;  %v2485_v25 = vadd.s32 536870912, %v2484_v0  ;;  %v892_v14 = vshrl.u32 %v891_v61, 5 }
 0x202   :  { %v2422_v12 = vsel %vm2415_vm14, %v2418_v4, %v2421_v13  ;;  %v903_v37 = vshrl.u32 %v4087_v19, %v894_v29  ;;  %v896_v5 = vshll.u32 %v4084_v11, %v893_v46  ;;  %v899_v60 = vshll.u32 %v4085_v15, %v893_v46 }
 0x203   :  { %v2423_v58 = vsel %vm2413_vm12, nan, %v2422_v12  ;;  %v859_v56 = vmul.f32 %v858_v22, %v856_v26  ;;  %v5231_v27 = vshrl.u32 %v2485_v25, 30  ;;  %v902_v9 = vshll.u32 %v4086_v17, %v893_v46 }
 0x204   :  { %v3577_v36 = vmul.f32 0.088388346, %v2423_v58  ;;  %v905_v32 = vshll.u32 %v4087_v19, %v893_v46  ;;  %v906_v38 = vshrl.u32 %v4088_v21, %v894_v29  ;;  %v898_v57 = vor.u32 %v897_v55, %v896_v5 }
 0x205   :  { %v860_v6 = vxor.u32 2147483648, %v859_v56  ;;  %v2487_v33 = vshll.u32 %v5231_v27, 30  ;;  %v901_v54 = vor.u32 %v900_v31, %v899_v60  ;;  %v909_v59 = vshrl.u32 %v4089_v28, %v894_v29 }
 0x206   :  { %3609 = vst [vmem:[#allocation2 + $0xa0] sm:$0xff] %v3577_v36  ;;  %v904_v61 = vor.u32 %v903_v37, %v902_v9  ;;  %v907_v18 = vor.u32 %v906_v38, %v905_v32  ;;  %v908_v44 = vshll.u32 %v4088_v21, %v893_v46  ;;  %v5246_v49 = vand.u32 3, %v865_v42 }
 0x207   :  { %v861_v8 = vsel %vm778_vm10, %v860_v6, %v859_v56  ;;  %v5248_v43 = vsub.s32 %v2484_v0, %v2487_v33  ;;  %v5250_v45 = vshll.u32 %v887_v20, 8  ;;  %v2530_v40 = vand.u32 2139095040, %v5218_v39  ;;  %v5287_v33 = vpop.f32.mrb[9].mxu1 }
 0x208   :  { %v864_v53 = vsel %vm5201_vm15, %v4939_v52, %v861_v8  ;;  %v910_v41 = vor.u32 %v909_v59, %v908_v44  ;;  %vm2426_vm3 = vcmp.lt.s32.totalorder %v5045_v3, 0  ;;  %vm911_vm4 = vcmp.lt.s32.totalorder %v892_v14, 1 }
 0x209   :  { %3971 = vcosq.f32 %v864_v53  ;;  %v2490_v24 = vsub.s32 0, %v5248_v43  ;;  %vm914_vm5 = vcmp.lt.s32.totalorder %v892_v14, 4  ;;  %v895_v1 = vshrl.u32 %v4084_v11, %v894_v29 }
 0x20a   :  { %3973 = vsinq.f32 %v864_v53  ;;  %v916_v46 = vsel %vm914_vm5, %v904_v61, 2102212464  ;;  %v919_v63 = vsel %vm911_vm4, %v898_v57, %v901_v54  ;;  %v920_v30 = vsel %vm914_vm5, %v907_v18, 920167782 }
 0x20b   :  { %v3738_v13 = vmin.u32 %v2490_v24, %v5248_v43  ;;  %v2510_v0 = vsub.s32 4, %v5231_v27  ;;  %vm913_vm6 = vcmp.lt.s32.totalorder %v892_v14, 3  ;;  %v923_v20 = vsel %vm911_vm4, %v901_v54, %v904_v61 }
 0x20c   :  { %vm912_vm7 = vcmp.lt.s32.totalorder %v892_v14, 2  ;;  %v915_v4 = vsel %vm911_vm4, %v895_v1, %v898_v57  ;;  %v921_v26 = vsel %vm913_vm6, %v904_v61, %v920_v30  ;;  %v924_v22 = vsel %vm914_vm5, %v910_v41, 1326507024 }
 0x20d   :  { %vm5260_vm8 = vcmp.le.f32.partialorder %v2424_v51, 0.7853982  ;;  %v2492_v29 = vclz %v3738_v13  ;;  %v917_v12 = vsel %vm913_vm6, %v901_v54, %v916_v46  ;;  %v922_v25 = vsel %vm912_vm7, %v919_v63, %v921_v26 }
 0x20e   :  { %v925_v55 = vsel %vm913_vm6, %v907_v18, %v924_v22  ;;  %v5267_v58 = vmul.u32.u64.low %v5250_v45, %v922_v25  ;;  %v5268_v56 = vmul.u32.u64.high %v5250_v45, %v922_v25, %v5267_v58  ;;  %v2531_v37 = vshrl.u32 %v2530_v40, 23 }
 0x20f   :  { %v926_v31 = vsel %vm912_vm7, %v923_v20, %v925_v55  ;;  %vm868_vm9 = vweird.f32 %v4939_v52  ;;  %v3739_v36 = vadd.s32 4294967294, %v2492_v29  ;;  %v5278_v60 = vadd.f32 %v4835_v2, %v4206_v35 }
 0x210   :  { %v5273_v51 = vmul.u32.u64.low %v5250_v45, %v926_v31  ;;  %v5274_v5 = vmul.u32.u64.high %v5250_v45, %v926_v31, %v5273_v51  ;;  %vm870_vm10 = vcmp.lt.s32.totalorder %v5246_v49, 2  ;;  %vm871_vm11 = vcmp.eq.s32.totalorder %v5246_v49, 0 }
 0x211   :  { %v918_v6 = vsel %vm912_vm7, %v915_v4, %v917_v12  ;;  %v3741_v9 = vadd.s32 4294967169, %v2531_v37  ;;  %vm874_vm12 = vcmp.eq.s32.totalorder %v5246_v49, 2  ;;  %v2480_v32 = vadd.s32 %v5182_v62, %v5195_v48 }
 0x212   :  { %vm3740_vm13 = vcmp.lt.s32.totalorder %v3739_v36, 0  ;;  %v2527_v38 = vand.u32 2147483647, %v5218_v39  ;;  %v2511_v54 = vsel %vm2426_vm3, %v2510_v0, %v5231_v27  ;;  %v937_v14 = vadd.s32 1, %v5268_v56 }
 0x213   :  { %v3972_v57 = vpop.eup %3971  ;;  %v2495_v2 = vsel %vm3740_vm13, 0, %v3739_v36  ;;  %v2537_v59 = vadd.s32 1, %v3741_v9  ;;  %v934_v62 = vmul.u32 %v5250_v45, %v918_v6  ;;  %vm936_vm14 = vc.u32 %v5274_v5, %v5267_v58 }
 0x214   :  { %v3974_v8 = vpop.eup %3973  ;;  %v875_v61 = vxor.u32 2147483648, %v3972_v57  ;;  %v2496_v18 = vsub.s32 32, %v2495_v2  ;;  %v2500_v44 = vsub.s32 4294967266, %v2495_v2  ;;  %v2497_v53 = vshll.u32 %v5248_v43, %v2495_v2 }
 0x215   :  { %v872_v48 = vxor.u32 2147483648, %v3974_v8  ;;  %vm2538_vm15 = vcmp.gt.s32.totalorder %v2537_v59, 0  ;;  %v938_v24 = vsel %vm936_vm14, %v937_v14, %v5268_v56  ;;  %v2513_v45 = vsel %vm5260_vm8, 0, %v2511_v54 }
 0x216   :  { %v876_v41 = vsel %vm874_vm12, %v875_v61, %v3974_v8  ;;  %v2498_v27 = vshrl.u32 %v2480_v32, %v2496_v18  ;;  %v2501_v40 = vadd.s32 127, %v2500_v44  ;;  %v939_v46 = vadd.s32 %v938_v24, %v934_v62 }
 0x217   :  { %v873_v1 = vsel %vm871_vm11, %v3972_v57, %v872_v48  ;;  %v2539_v63 = vsel %vm2538_vm15, %v2537_v59, 0  ;;  %v2534_v0 = vand.u32 8388607, %v2527_v38  ;;  %v5310_v12 = vand.u32 3, %v2513_v45 }
 0x218   :  { %v877_v43 = vsel %vm870_vm10, %v873_v1, %v876_v41  ;;  %v2499_v30 = vor.u32 %v2498_v27, %v2497_v53  ;;  %v2502_v13 = vshll.u32 %v2501_v40, 23  ;;  %v940_v4 = vadd.s32 536870912, %v939_v46 }
 0x219   :  { %v878_v20 = vsel %vm868_vm9, nan, %v877_v43  ;;  %v2541_v26 = vand.u32 31, %v2539_v63  ;;  %v2535_v56 = vor.u32 8388608, %v2534_v0  ;;  %v985_v37 = vand.u32 2139095040, %v5278_v60 }
 0x21a   :  { %v3562_v22 = vmul.f32 0.088388346, %v878_v20  ;;  %v2503_v29 = vor.u32 4788187, %v2502_v13  ;;  %v941_v25 = vshrl.u32 %v940_v4, 30  ;;  %v2506_v49 = vcvt.s32.f32 %v2499_v30 }
 0x21b   :  { %v2542_v55 = vsub.s32 32, %v2541_v26  ;;  %v2540_v51 = vshrl.u32 %v2539_v63, 5  ;;  %v2544_v6 = vshll.u32 %v4084_v11, %v2541_v26  ;;  %v2547_v14 = vshll.u32 %v4085_v15, %v2541_v26 }
 0x21c   :  { %3594 = vst [vmem:[#allocation2 + $0x28] sm:$0xff] %v3562_v22  ;;  %v2504_v31 = vand.u32 2147483647, %v2503_v29  ;;  %v942_v36 = vshll.u32 %v941_v25, 30  ;;  %v2550_v59 = vshll.u32 %v4086_v17, %v2541_v26  ;;  %v2553_v18 = vshll.u32 %v4087_v19, %v2541_v26 }
 0x21d   :  { %v2545_v52 = vshrl.u32 %v4085_v15, %v2542_v55  ;;  %v2548_v32 = vshrl.u32 %v4086_v17, %v2542_v55  ;;  %v2551_v57 = vshrl.u32 %v4087_v19, %v2542_v55  ;;  %v2554_v2 = vshrl.u32 %v4088_v21, %v2542_v55 }
 0x21e   :  { %v2507_v9 = vmul.f32 %v2506_v49, %v2504_v31  ;;  %v5318_v54 = vsub.s32 %v939_v46, %v942_v36  ;;  %v2557_v8 = vshrl.u32 %v4089_v28, %v2542_v55  ;;  %v2556_v44 = vshll.u32 %v4088_v21, %v2541_v26 }
 0x21f   :  { %v5325_v62 = vshll.u32 %v2535_v56, 8  ;;  %vm881_vm0 = vcmp.lt.s32.totalorder %v5141_v47, 0  ;;  %v2546_v53 = vor.u32 %v2545_v52, %v2544_v6  ;;  %v2549_v41 = vor.u32 %v2548_v32, %v2547_v14  ;;  %v5344_v32 = vpop.f32.mrb[10].mxu0 }
 0x220   :  { %v2508_v61 = vxor.u32 2147483648, %v2507_v9  ;;  %v945_v48 = vsub.s32 0, %v5318_v54  ;;  %v2552_v27 = vor.u32 %v2551_v57, %v2550_v59  ;;  %v2555_v24 = vor.u32 %v2554_v2, %v2553_v18 }
 0x221   :  { %v2558_v1 = vor.u32 %v2557_v8, %v2556_v44  ;;  %v986_v45 = vshrl.u32 %v985_v37, 23  ;;  %v965_v43 = vsub.s32 4, %v941_v25  ;;  %vm2559_vm1 = vcmp.lt.s32.totalorder %v2540_v51, 1 }
 0x222   :  { %v2509_v40 = vsel %vm2426_vm3, %v2508_v61, %v2507_v9  ;;  %v3678_v63 = vmin.u32 %v945_v48, %v5318_v54  ;;  %v2543_v30 = vshrl.u32 %v4084_v11, %v2542_v55  ;;  %vm2560_vm2 = vcmp.lt.s32.totalorder %v2540_v51, 2 }
 0x223   :  { %v2512_v46 = vsel %vm5260_vm8, %v5045_v3, %v2509_v40  ;;  %vm2562_vm4 = vcmp.lt.s32.totalorder %v2540_v51, 4  ;;  %v2567_v20 = vsel %vm2559_vm1, %v2546_v53, %v2549_v41  ;;  %vm2561_vm3 = vcmp.lt.s32.totalorder %v2540_v51, 3 }
 0x224   :  { %3975 = vcosq.f32 %v2512_v46  ;;  %v947_v13 = vclz %v3678_v63  ;;  %v2564_v0 = vsel %vm2562_vm4, %v2552_v27, 2102212464  ;;  %v2568_v4 = vsel %vm2562_vm4, %v2555_v24, 920167782 }
 0x225   :  { %3977 = vsinq.f32 %v2512_v46  ;;  %v2571_v26 = vsel %vm2559_vm1, %v2549_v41, %v2552_v27  ;;  %v2572_v22 = vsel %vm2562_vm4, %v2558_v1, 1326507024  ;;  %v2563_v42 = vsel %vm2559_vm1, %v2543_v30, %v2546_v53 }
 0x226   :  { %v3679_v29 = vadd.s32 4294967294, %v947_v13  ;;  %v2569_v31 = vsel %vm2561_vm3, %v2552_v27, %v2568_v4  ;;  %v2573_v49 = vsel %vm2561_vm3, %v2555_v24, %v2572_v22  ;;  %v2565_v56 = vsel %vm2561_vm3, %v2549_v41, %v2564_v0 }
 0x227   :  { %v2570_v37 = vsel %vm2560_vm2, %v2567_v20, %v2569_v31  ;;  %v2574_v36 = vsel %vm2560_vm2, %v2571_v26, %v2573_v49  ;;  %v3681_v55 = vadd.s32 4294967169, %v986_v45  ;;  %v935_v6 = vadd.s32 %v5267_v58, %v5274_v5 }
 0x228   :  { %vm3680_vm5 = vcmp.lt.s32.totalorder %v3679_v29, 0  ;;  %v5341_v52 = vmul.u32.u64.low %v5325_v62, %v2574_v36  ;;  %v5342_v9 = vmul.u32.u64.high %v5325_v62, %v2574_v36, %v5341_v52  ;;  %v966_v2 = vsel %vm881_vm0, %v965_v43, %v941_v25 }
 0x229   :  { %v950_v57 = vsel %vm3680_vm5, 0, %v3679_v29  ;;  %v5349_v14 = vmul.u32.u64.low %v5325_v62, %v2570_v37  ;;  %v5350_v59 = vmul.u32.u64.high %v5325_v62, %v2570_v37, %v5349_v14  ;;  %vm2516_vm6 = vweird.f32 %v5045_v3 }
 0x22a   :  { %v951_v8 = vsub.s32 32, %v950_v57  ;;  %v955_v58 = vsub.s32 4294967266, %v950_v57  ;;  %v2566_v5 = vsel %vm2560_vm2, %v2563_v42, %v2565_v56  ;;  %v992_v61 = vadd.s32 1, %v3681_v55 }
 0x22b   :  { %vm2522_vm7 = vcmp.eq.s32.totalorder %v5310_v12, 2  ;;  %vm5358_vm8 = vcmp.le.f32.partialorder %v879_v50, 0.7853982  ;;  %v982_v25 = vand.u32 2147483647, %v5278_v60  ;;  %v5365_v44 = vadd.f32 %v4935_v7, %v4206_v35 }
 0x22c   :  { %v952_v48 = vshll.u32 %v5318_v54, %v950_v57  ;;  %v953_v53 = vshrl.u32 %v935_v6, %v951_v8  ;;  %v956_v51 = vadd.s32 127, %v955_v58  ;;  %vm2584_vm9 = vc.u32 %v5342_v9, %v5349_v14 }
 0x22d   :  { %v968_v50 = vsel %vm5358_vm8, 0, %v966_v2  ;;  %v2582_v27 = vmul.u32 %v5325_v62, %v2566_v5  ;;  %v2585_v40 = vadd.s32 1, %v5350_v59  ;;  %vm993_vm10 = vcmp.gt.s32.totalorder %v992_v61, 0 }
 0x22e   :  { %v3976_v41 = vpop.eup %3975  ;;  %v954_v7 = vor.u32 %v953_v53, %v952_v48  ;;  %v957_v45 = vshll.u32 %v956_v51, 23  ;;  %v994_v46 = vsel %vm993_vm10, %v992_v61, 0  ;;  %v989_v43 = vand.u32 8388607, %v982_v25 }
 0x22f   :  { %v3978_v24 = vpop.eup %3977  ;;  %v2523_v1 = vxor.u32 2147483648, %v3976_v41  ;;  %v2586_v63 = vsel %vm2584_vm9, %v2585_v40, %v5350_v59  ;;  %v996_v30 = vand.u32 31, %v994_v46  ;;  %vm2519_vm11 = vcmp.eq.s32.totalorder %v5310_v12, 0 }
 0x230   :  { %v2520_v54 = vxor.u32 2147483648, %v3978_v24  ;;  %v958_v13 = vor.u32 4788187, %v957_v45  ;;  %v2587_v0 = vadd.s32 %v2586_v63, %v2582_v27  ;;  %vm2518_vm12 = vcmp.lt.s32.totalorder %v5310_v12, 2 }
 0x231   :  { %v2524_v62 = vsel %vm2522_vm7, %v2523_v1, %v3978_v24  ;;  %v5381_v4 = vand.u32 3, %v968_v50  ;;  %v997_v26 = vsub.s32 32, %v996_v30  ;;  %v961_v42 = vcvt.s32.f32 %v954_v7 }
 0x232   :  { %v2521_v20 = vsel %vm2519_vm11, %v3976_v41, %v2520_v54  ;;  %v959_v29 = vand.u32 2147483647, %v958_v13  ;;  %v2588_v31 = vadd.s32 536870912, %v2587_v0  ;;  %v990_v56 = vor.u32 8388608, %v989_v43 }
 0x233   :  { %v2525_v22 = vsel %vm2518_vm12, %v2521_v20, %v2524_v62  ;;  %v1000_v37 = vshrl.u32 %v4085_v15, %v997_v26  ;;  %v1003_v36 = vshrl.u32 %v4086_v17, %v997_v26  ;;  %v1006_v12 = vshrl.u32 %v4087_v19, %v997_v26 }
 0x234   :  { %v2526_v49 = vsel %vm2516_vm6, nan, %v2525_v22  ;;  %v962_v6 = vmul.f32 %v961_v42, %v959_v29  ;;  %v5387_v52 = vshrl.u32 %v2588_v31, 30  ;;  %v995_v57 = vshrl.u32 %v994_v46, 5 }
 0x235   :  { %v3578_v55 = vmul.f32 0.088388346, %v2526_v49  ;;  %v1005_v2 = vshll.u32 %v4086_v17, %v996_v30  ;;  %v1009_v59 = vshrl.u32 %v4088_v21, %v997_v26  ;;  %v2633_v8 = vand.u32 2139095040, %v5365_v44 }
 0x236   :  { %v963_v3 = vxor.u32 2147483648, %v962_v6  ;;  %v2590_v58 = vshll.u32 %v5387_v52, 30  ;;  %v999_v5 = vshll.u32 %v4084_v11, %v996_v30  ;;  %v1002_v61 = vshll.u32 %v4085_v15, %v996_v30 }
 0x237   :  { %3610 = vst [vmem:[#allocation2 + $0xa8] sm:$0xff] %v3578_v55  ;;  %v1007_v48 = vor.u32 %v1006_v12, %v1005_v2  ;;  %v1008_v53 = vshll.u32 %v4087_v19, %v996_v30  ;;  %v1011_v51 = vshll.u32 %v4088_v21, %v996_v30  ;;  %v1012_v41 = vshrl.u32 %v4089_v28, %v997_v26 }
 0x238   :  { %v964_v50 = vsel %vm881_vm0, %v963_v3, %v962_v6  ;;  %v5401_v27 = vsub.s32 %v2587_v0, %v2590_v58  ;;  %v1001_v40 = vor.u32 %v1000_v37, %v999_v5  ;;  %v1004_v24 = vor.u32 %v1003_v36, %v1002_v61  ;;  %v5428_v58 = vpop.f32.mrb[10].mxu1 }
 0x239   :  { %v967_v1 = vsel %vm5358_vm8, %v5141_v47, %v964_v50  ;;  %v1010_v7 = vor.u32 %v1009_v59, %v1008_v53  ;;  %v1013_v45 = vor.u32 %v1012_v41, %v1011_v51  ;;  %v5406_v46 = vshll.u32 %v990_v56, 8 }
 0x23a   :  { %3979 = vcosq.f32 %v967_v1  ;;  %v2593_v54 = vsub.s32 0, %v5401_v27  ;;  %vm1017_vm13 = vcmp.lt.s32.totalorder %v995_v57, 4  ;;  %v2634_v63 = vshrl.u32 %v2633_v8, 23 }
 0x23b   :  { %3981 = vsinq.f32 %v967_v1  ;;  %v998_v43 = vshrl.u32 %v4084_v11, %v997_v26  ;;  %vm1014_vm14 = vcmp.lt.s32.totalorder %v995_v57, 1  ;;  %v1019_v30 = vsel %vm1017_vm13, %v1007_v48, 2102212464 }
 0x23c   :  { %v3742_v62 = vmin.u32 %v2593_v54, %v5401_v27  ;;  %vm1015_vm15 = vcmp.lt.s32.totalorder %v995_v57, 2  ;;  %vm1016_vm0 = vcmp.lt.s32.totalorder %v995_v57, 3  ;;  %v1022_v18 = vsel %vm1014_vm14, %v1001_v40, %v1004_v24 }
 0x23d   :  { %v1018_v13 = vsel %vm1014_vm14, %v998_v43, %v1001_v40  ;;  %v1023_v0 = vsel %vm1017_vm13, %v1010_v7, 920167782  ;;  %v1026_v20 = vsel %vm1014_vm14, %v1004_v24, %v1007_v48  ;;  %v1027_v22 = vsel %vm1017_vm13, %v1013_v45, 1326507024 }
 0x23e   :  { %v2595_v29 = vclz %v3742_v62  ;;  %v1020_v42 = vsel %vm1016_vm0, %v1004_v24, %v1019_v30  ;;  %v1024_v31 = vsel %vm1016_vm0, %v1007_v48, %v1023_v0  ;;  %v1028_v49 = vsel %vm1016_vm0, %v1010_v7, %v1027_v22 }
 0x23f   :  { %v1025_v56 = vsel %vm1015_vm15, %v1022_v18, %v1024_v31  ;;  %v1029_v37 = vsel %vm1015_vm15, %v1026_v20, %v1028_v49  ;;  %v2630_v26 = vand.u32 2147483647, %v5365_v44  ;;  %v3745_v36 = vadd.s32 4294967169, %v2634_v63 }
 0x240   :  { %vm2529_vm1 = vcmp.lt.s32.totalorder %v5218_v39, 0  ;;  %v3743_v55 = vadd.s32 4294967294, %v2595_v29  ;;  %v5416_v6 = vmul.u32.u64.low %v5406_v46, %v1029_v37  ;;  %v5417_v12 = vmul.u32.u64.high %v5406_v46, %v1029_v37, %v5416_v6 }
 0x241   :  { %v1021_v2 = vsel %vm1015_vm15, %v1018_v13, %v1020_v42  ;;  %v5421_v59 = vmul.u32.u64.low %v5406_v46, %v1025_v56  ;;  %v5422_v8 = vmul.u32.u64.high %v5406_v46, %v1025_v56, %v5421_v59  ;;  %v2640_v3 = vadd.s32 1, %v3745_v36 }
 0x242   :  { %vm973_vm2 = vcmp.lt.s32.totalorder %v5381_v4, 2  ;;  %vm974_vm4 = vcmp.eq.s32.totalorder %v5381_v4, 0  ;;  %vm977_vm3 = vcmp.eq.s32.totalorder %v5381_v4, 2  ;;  %vm3744_vm5 = vcmp.lt.s32.totalorder %v3743_v55, 0 }
 0x243   :  { %v2598_v5 = vsel %vm3744_vm5, 0, %v3743_v55  ;;  %v2613_v61 = vsub.s32 4, %v5387_v52  ;;  %v2637_v57 = vand.u32 8388607, %v2630_v26  ;;  %vm2641_vm6 = vcmp.gt.s32.totalorder %v2640_v3, 0 }
 0x244   :  { %v3980_v48 = vpop.eup %3979  ;;  %v2583_v53 = vadd.s32 %v5349_v14, %v5342_v9  ;;  %v2599_v51 = vsub.s32 32, %v2598_v5  ;;  %v2603_v41 = vsub.s32 4294967266, %v2598_v5  ;;  %v1037_v50 = vmul.u32 %v5406_v46, %v1021_v2 }
 0x245   :  { %v3982_v40 = vpop.eup %3981  ;;  %v978_v24 = vxor.u32 2147483648, %v3980_v48  ;;  %vm1039_vm7 = vc.u32 %v5417_v12, %v5421_v59  ;;  %v1040_v1 = vadd.s32 1, %v5422_v8  ;;  %v2642_v7 = vsel %vm2641_vm6, %v2640_v3, 0 }
 0x246   :  { %v975_v45 = vxor.u32 2147483648, %v3982_v40  ;;  %v2600_v54 = vshll.u32 %v5401_v27, %v2598_v5  ;;  %v2601_v63 = vshrl.u32 %v2583_v53, %v2599_v51  ;;  %v2604_v43 = vadd.s32 127, %v2603_v41 }
 0x247   :  { %v979_v9 = vsel %vm977_vm3, %v978_v24, %v3982_v40  ;;  %v2614_v14 = vsel %vm2529_vm1, %v2613_v61, %v5387_v52  ;;  %v1041_v46 = vsel %vm1039_vm7, %v1040_v1, %v5422_v8  ;;  %v2644_v30 = vand.u32 31, %v2642_v7 }
 0x248   :  { %v976_v62 = vsel %vm974_vm4, %v3980_v48, %v975_v45  ;;  %v2602_v18 = vor.u32 %v2601_v63, %v2600_v54  ;;  %v2605_v13 = vshll.u32 %v2604_v43, 23  ;;  %v1042_v0 = vadd.s32 %v1041_v46, %v1037_v50 }
 0x249   :  { %vm971_vm8 = vweird.f32 %v5141_v47  ;;  %v980_v27 = vsel %vm973_vm2, %v976_v62, %v979_v9  ;;  %vm5453_vm9 = vcmp.le.f32.partialorder %v2527_v38, 0.7853982  ;;  %v2645_v52 = vsub.s32 32, %v2644_v30 }
 0x24a   :  { %v981_v22 = vsel %vm971_vm8, nan, %v980_v27  ;;  %v2606_v29 = vor.u32 4788187, %v2605_v13  ;;  %v1043_v42 = vadd.s32 536870912, %v1042_v0  ;;  %v2638_v31 = vor.u32 8388608, %v2637_v57 }
 0x24b   :  { %v3563_v49 = vmul.f32 0.088388346, %v981_v22  ;;  %v2616_v56 = vsel %vm5453_vm9, 0, %v2614_v14  ;;  %v2648_v47 = vshrl.u32 %v4085_v15, %v2645_v52  ;;  %v2651_v4 = vshrl.u32 %v4086_v17, %v2645_v52 }
 0x24c   :  { %v2607_v37 = vand.u32 2147483647, %v2606_v29  ;;  %v2609_v36 = vcvt.s32.f32 %v2602_v18  ;;  %v5461_v55 = vshrl.u32 %v1043_v42, 30  ;;  %v2654_v38 = vshrl.u32 %v4087_v19, %v2645_v52 }
 0x24d   :  { %3595 = vst [vmem:[#allocation2 + $0x30] sm:$0xff] %v3563_v49  ;;  %v2647_v6 = vshll.u32 %v4084_v11, %v2644_v30  ;;  %v2650_v2 = vshll.u32 %v4085_v15, %v2644_v30  ;;  %v2656_v8 = vshll.u32 %v4087_v19, %v2644_v30  ;;  %v2657_v3 = vshrl.u32 %v4088_v21, %v2645_v52 }
 0x24e   :  { %v2610_v5 = vmul.f32 %v2609_v36, %v2607_v37  ;;  %v1045_v61 = vshll.u32 %v5461_v55, 30  ;;  %v2643_v57 = vshrl.u32 %v2642_v7, 5  ;;  %v2653_v48 = vshll.u32 %v4086_v17, %v2644_v30 }
 0x24f   :  { %v2649_v53 = vor.u32 %v2648_v47, %v2647_v6  ;;  %v2652_v51 = vor.u32 %v2651_v4, %v2650_v2  ;;  %v2658_v41 = vor.u32 %v2657_v3, %v2656_v8  ;;  %v2660_v50 = vshrl.u32 %v4089_v28, %v2645_v52  ;;  %v5504_v47 = vpop.f32.mrb[11].mxu0 }
 0x250   :  { %v2611_v40 = vxor.u32 2147483648, %v2610_v5  ;;  %v5471_v24 = vsub.s32 %v1042_v0, %v1045_v61  ;;  %v2655_v1 = vor.u32 %v2654_v38, %v2653_v48  ;;  %v5473_v45 = vand.u32 3, %v2616_v56 }
 0x251   :  { %v2646_v54 = vshrl.u32 %v4084_v11, %v2645_v52  ;;  %v2659_v63 = vshll.u32 %v4088_v21, %v2644_v30  ;;  %v5477_v43 = vshll.u32 %v2638_v31, 8  ;;  %vm2662_vm10 = vcmp.lt.s32.totalorder %v2643_v57, 1 }
 0x252   :  { %v2612_v7 = vsel %vm2529_vm1, %v2611_v40, %v2610_v5  ;;  %v1048_v9 = vsub.s32 0, %v5471_v24  ;;  %vm2665_vm11 = vcmp.lt.s32.totalorder %v2643_v57, 4  ;;  %v2670_v62 = vsel %vm2662_vm10, %v2649_v53, %v2652_v51 }
 0x253   :  { %v2615_v14 = vsel %vm5453_vm9, %v5218_v39, %v2612_v7  ;;  %v2661_v46 = vor.u32 %v2660_v50, %v2659_v63  ;;  %v2671_v18 = vsel %vm2665_vm11, %v2658_v41, 920167782  ;;  %vm2664_vm12 = vcmp.lt.s32.totalorder %v2643_v57, 3 }
 0x254   :  { %3983 = vcosq.f32 %v2615_v14  ;;  %v3682_v30 = vmin.u32 %v1048_v9, %v5471_v24  ;;  %v2667_v13 = vsel %vm2665_vm11, %v2655_v1, 2102212464  ;;  %vm2663_vm13 = vcmp.lt.s32.totalorder %v2643_v57, 2 }
 0x255   :  { %3985 = vsinq.f32 %v2615_v14  ;;  %v2672_v0 = vsel %vm2664_vm12, %v2655_v1, %v2671_v18  ;;  %v5492_v27 = vadd.f32 %v5013_v16, %v4204_v34  ;;  %v2666_v52 = vsel %vm2662_vm10, %v2646_v54, %v2649_v53 }
 0x256   :  { %v1050_v20 = vclz %v3682_v30  ;;  %v2673_v22 = vsel %vm2663_vm13, %v2670_v62, %v2672_v0  ;;  %v2674_v29 = vsel %vm2662_vm10, %v2652_v51, %v2655_v1  ;;  %v2668_v42 = vsel %vm2664_vm12, %v2652_v51, %v2667_v13 }
 0x257   :  { %v2675_v31 = vsel %vm2665_vm11, %v2661_v46, 1326507024  ;;  %v5500_v49 = vmul.u32.u64.low %v5477_v43, %v2673_v22  ;;  %v5501_v56 = vmul.u32.u64.high %v5477_v43, %v2673_v22, %v5500_v49  ;;  %vm984_vm14 = vcmp.lt.s32.totalorder %v5278_v60, 0 }
 0x258   :  { %v3683_v16 = vadd.s32 4294967294, %v1050_v20  ;;  %v2676_v4 = vsel %vm2664_vm12, %v2658_v41, %v2675_v31  ;;  %vm5510_vm15 = vcmp.le.f32.partialorder %v982_v25, 0.7853982  ;;  %v1068_v36 = vsub.s32 4, %v5461_v55 }
 0x259   :  { %v2677_v38 = vsel %vm2663_vm13, %v2674_v29, %v2676_v4  ;;  %v1088_v6 = vand.u32 2139095040, %v5492_v27  ;;  %v5519_v2 = vadd.f32 %v5124_v10, %v4204_v34  ;;  %v2669_v8 = vsel %vm2663_vm13, %v2666_v52, %v2668_v42 }
 0x25a   :  { %vm3684_vm0 = vcmp.lt.s32.totalorder %v3683_v16, 0  ;;  %v5523_v3 = vmul.u32.u64.low %v5477_v43, %v2677_v38  ;;  %v5524_v5 = vmul.u32.u64.high %v5477_v43, %v2677_v38, %v5523_v3  ;;  %vm2619_vm1 = vweird.f32 %v5218_v39 }
 0x25b   :  { %vm2625_vm2 = vcmp.eq.s32.totalorder %v5473_v45, 2  ;;  %v1053_v25 = vsel %vm3684_vm0, 0, %v3683_v16  ;;  %v2688_v61 = vadd.s32 1, %v5501_v56  ;;  %v1089_v48 = vshrl.u32 %v1088_v6, 23 }
 0x25c   :  { %v1038_v53 = vadd.s32 %v5421_v59, %v5417_v12  ;;  %v1054_v10 = vsub.s32 32, %v1053_v25  ;;  %v1058_v51 = vsub.s32 4294967266, %v1053_v25  ;;  %v1085_v57 = vand.u32 2147483647, %v5492_v27 }
 0x25d   :  { %v1069_v41 = vsel %vm984_vm14, %v1068_v36, %v5461_v55  ;;  %v2685_v50 = vmul.u32 %v5477_v43, %v2669_v8  ;;  %v3685_v40 = vadd.s32 4294967169, %v1089_v48  ;;  %v2736_v1 = vand.u32 2139095040, %v5519_v2 }
 0x25e   :  { %v3984_v54 = vpop.eup %3983  ;;  %v1055_v63 = vshll.u32 %v5471_v24, %v1053_v25  ;;  %v1056_v7 = vshrl.u32 %v1038_v53, %v1054_v10  ;;  %v1059_v9 = vadd.s32 127, %v1058_v51  ;;  %vm2687_vm4 = vc.u32 %v5524_v5, %v5500_v49 }
 0x25f   :  { %v3986_v12 = vpop.eup %3985  ;;  %v2626_v59 = vxor.u32 2147483648, %v3984_v54  ;;  %v2689_v14 = vsel %vm2687_vm4, %v2688_v61, %v5501_v56  ;;  %v1095_v46 = vadd.s32 1, %v3685_v40  ;;  %v2737_v62 = vshrl.u32 %v2736_v1, 23 }
 0x260   :  { %v2623_v55 = vxor.u32 2147483648, %v3986_v12  ;;  %v1057_v18 = vor.u32 %v1056_v7, %v1055_v63  ;;  %v1060_v43 = vshll.u32 %v1059_v9, 23  ;;  %v2690_v30 = vadd.s32 %v2689_v14, %v2685_v50 }
 0x261   :  { %vm2621_vm3 = vcmp.lt.s32.totalorder %v5473_v45, 2  ;;  %vm2622_vm5 = vcmp.eq.s32.totalorder %v5473_v45, 0  ;;  %v2627_v24 = vsel %vm2625_vm2, %v2626_v59, %v3986_v12  ;;  %vm1096_vm6 = vcmp.gt.s32.totalorder %v1095_v46, 0 }
 0x262   :  { %v2624_v13 = vsel %vm2622_vm5, %v3984_v54, %v2623_v55  ;;  %v1061_v0 = vor.u32 4788187, %v1060_v43  ;;  %v1071_v20 = vsel %vm5510_vm15, 0, %v1069_v41  ;;  %v2691_v52 = vadd.s32 536870912, %v2690_v30 }
 0x263   :  { %v2628_v22 = vsel %vm2621_vm3, %v2624_v13, %v2627_v24  ;;  %v1092_v29 = vand.u32 8388607, %v1085_v57  ;;  %v1097_v42 = vsel %vm1096_vm6, %v1095_v46, 0  ;;  %v3749_v31 = vadd.s32 4294967169, %v2737_v62 }
 0x264   :  { %v2629_v56 = vsel %vm2619_vm1, nan, %v2628_v22  ;;  %v1062_v16 = vand.u32 2147483647, %v1061_v0  ;;  %v1064_v4 = vcvt.s32.f32 %v1057_v18  ;;  %v5551_v45 = vshrl.u32 %v2691_v52, 30 }
 0x265   :  { %v3579_v36 = vmul.f32 0.088388346, %v2629_v56  ;;  %v1099_v38 = vand.u32 31, %v1097_v42  ;;  %v5553_v8 = vand.u32 3, %v1071_v20  ;;  %v1093_v25 = vor.u32 8388608, %v1092_v29 }
 0x266   :  { %v1065_v6 = vmul.f32 %v1064_v4, %v1062_v16  ;;  %v2693_v3 = vshll.u32 %v5551_v45, 30  ;;  %v2733_v48 = vand.u32 2147483647, %v5519_v2  ;;  %v2743_v53 = vadd.s32 1, %v3749_v31 }
 0x267   :  { %3611 = vst [vmem:[#allocation2 + $0xb0] sm:$0xff] %v3579_v36  ;;  %v1100_v61 = vsub.s32 32, %v1099_v38  ;;  %v1098_v51 = vshrl.u32 %v1097_v42, 5  ;;  %v1102_v41 = vshll.u32 %v4084_v11, %v1099_v38  ;;  %v1105_v40 = vshll.u32 %v4085_v15, %v1099_v38 }
 0x268   :  { %v1066_v10 = vxor.u32 2147483648, %v1065_v6  ;;  %v5557_v39 = vsub.s32 %v2690_v30, %v2693_v3  ;;  %v1108_v54 = vshll.u32 %v4086_v17, %v1099_v38  ;;  %v1111_v12 = vshll.u32 %v4087_v19, %v1099_v38 }
 0x269   :  { %v1103_v50 = vshrl.u32 %v4085_v15, %v1100_v61  ;;  %v1106_v1 = vshrl.u32 %v4086_v17, %v1100_v61  ;;  %v1109_v9 = vshrl.u32 %v4087_v19, %v1100_v61  ;;  %v1112_v62 = vshrl.u32 %v4088_v21, %v1100_v61 }
 0x26a   :  { %v1067_v63 = vsel %vm984_vm14, %v1066_v10, %v1065_v6  ;;  %v2696_v7 = vsub.s32 0, %v5557_v39  ;;  %v5574_v18 = vshll.u32 %v1093_v25, 8  ;;  %vm2744_vm7 = vcmp.gt.s32.totalorder %v2743_v53, 0 }
 0x26b   :  { %v1070_v59 = vsel %vm5510_vm15, %v5278_v60, %v1067_v63  ;;  %v1104_v14 = vor.u32 %v1103_v50, %v1102_v41  ;;  %v1107_v46 = vor.u32 %v1106_v1, %v1105_v40  ;;  %v1110_v43 = vor.u32 %v1109_v9, %v1108_v54  ;;  %v5599_v54 = vpop.f32.mrb[11].mxu1 }
 0x26c   :  { %3987 = vcosq.f32 %v1070_v59  ;;  %v3746_v55 = vmin.u32 %v2696_v7, %v5557_v39  ;;  %v1113_v30 = vor.u32 %v1112_v62, %v1111_v12  ;;  %vm1117_vm8 = vcmp.lt.s32.totalorder %v1098_v51, 1 }
 0x26d   :  { %3989 = vsinq.f32 %v1070_v59  ;;  %v1101_v13 = vshrl.u32 %v4084_v11, %v1100_v61  ;;  %v1114_v37 = vshll.u32 %v4088_v21, %v1099_v38  ;;  %v1115_v0 = vshrl.u32 %v4089_v28, %v1100_v61 }
 0x26e   :  { %v2698_v24 = vclz %v3746_v55  ;;  %vm1118_vm9 = vcmp.lt.s32.totalorder %v1098_v51, 2  ;;  %vm1119_vm10 = vcmp.lt.s32.totalorder %v1098_v51, 3  ;;  %vm1120_vm11 = vcmp.lt.s32.totalorder %v1098_v51, 4 }
 0x26f   :  { %v1125_v20 = vsel %vm1117_vm8, %v1104_v14, %v1107_v46  ;;  %vm2632_vm12 = vcmp.lt.s32.totalorder %v5365_v44, 0  ;;  %v1116_v22 = vor.u32 %v1115_v0, %v1114_v37  ;;  %v1122_v29 = vsel %vm1120_vm11, %v1110_v43, 2102212464 }
 0x270   :  { %v3747_v52 = vadd.s32 4294967294, %v2698_v24  ;;  %v1126_v42 = vsel %vm1120_vm11, %v1113_v30, 920167782  ;;  %vm1077_vm13 = vcmp.eq.s32.totalorder %v5553_v8, 0  ;;  %v1121_v31 = vsel %vm1117_vm8, %v1101_v13, %v1104_v14 }
 0x271   :  { %v1123_v56 = vsel %vm1119_vm10, %v1107_v46, %v1122_v29  ;;  %v1127_v16 = vsel %vm1119_vm10, %v1110_v43, %v1126_v42  ;;  %v1129_v4 = vsel %vm1117_vm8, %v1107_v46, %v1110_v43  ;;  %vm1076_vm14 = vcmp.lt.s32.totalorder %v5553_v8, 2 }
 0x272   :  { %vm3748_vm15 = vcmp.lt.s32.totalorder %v3747_v52, 0  ;;  %v1128_v36 = vsel %vm1118_vm9, %v1125_v20, %v1127_v16  ;;  %v1130_v38 = vsel %vm1120_vm11, %v1116_v22, 1326507024  ;;  %v2745_v6 = vsel %vm2744_vm7, %v2743_v53, 0 }
 0x273   :  { %vm1074_vm0 = vweird.f32 %v5278_v60  ;;  %v2701_v3 = vsel %vm3748_vm15, 0, %v3747_v52  ;;  %v1131_v25 = vsel %vm1119_vm10, %v1113_v30, %v1130_v38  ;;  %v2686_v41 = vadd.s32 %v5500_v49, %v5524_v5 }
 0x274   :  { %v5592_v61 = vmul.u32.u64.low %v5574_v18, %v1128_v36  ;;  %v5593_v10 = vmul.u32.u64.high %v5574_v18, %v1128_v36, %v5592_v61  ;;  %v2702_v50 = vsub.s32 32, %v2701_v3  ;;  %v2706_v40 = vsub.s32 4294967266, %v2701_v3 }
 0x275   :  { %v1132_v1 = vsel %vm1118_vm9, %v1129_v4, %v1131_v25  ;;  %v2716_v53 = vsub.s32 4, %v5551_v45  ;;  %v1124_v63 = vsel %vm1118_vm9, %v1121_v31, %v1123_v56  ;;  %v2703_v59 = vshll.u32 %v5557_v39, %v2701_v3 }
 0x276   :  { %v5604_v7 = vmul.u32.u64.low %v5574_v18, %v1132_v1  ;;  %v5605_v9 = vmul.u32.u64.high %v5574_v18, %v1132_v1, %v5604_v7  ;;  %v3988_v12 = vpop.eup %3987  ;;  %v2704_v14 = vshrl.u32 %v2686_v41, %v2702_v50  ;;  %v2707_v46 = vadd.s32 127, %v2706_v40 }
 0x277   :  { %v2747_v49 = vand.u32 31, %v2745_v6  ;;  %v3990_v5 = vpop.eup %3989  ;;  %vm1080_vm1 = vcmp.eq.s32.totalorder %v5553_v8, 2  ;;  %v1081_v62 = vxor.u32 2147483648, %v3988_v12  ;;  %v1143_v55 = vadd.s32 1, %v5593_v10 }
 0x278   :  { %v2740_v51 = vand.u32 8388607, %v2733_v48  ;;  %v1078_v43 = vxor.u32 2147483648, %v3990_v5  ;;  %vm5614_vm2 = vcmp.le.f32.partialorder %v2630_v26, 0.7853982  ;;  %v2705_v39 = vor.u32 %v2704_v14, %v2703_v59 }
 0x279   :  { %v2708_v24 = vshll.u32 %v2707_v46, 23  ;;  %v2748_v13 = vsub.s32 32, %v2747_v49  ;;  %v1082_v37 = vsel %vm1080_vm1, %v1081_v62, %v3990_v5  ;;  %v2717_v0 = vsel %vm2632_vm12, %v2716_v53, %v5551_v45 }
 0x27a   :  { %v1140_v20 = vmul.u32 %v5574_v18, %v1124_v63  ;;  %vm1142_vm4 = vc.u32 %v5605_v9, %v5592_v61  ;;  %v1079_v52 = vsel %vm1077_vm13, %v3988_v12, %v1078_v43  ;;  %v2750_v29 = vshll.u32 %v4084_v11, %v2747_v49 }
 0x27b   :  { %v2709_v26 = vor.u32 4788187, %v2708_v24  ;;  %v1144_v22 = vsel %vm1142_vm4, %v1143_v55, %v5593_v10  ;;  %v1083_v42 = vsel %vm1076_vm14, %v1079_v52, %v1082_v37  ;;  %v2712_v31 = vcvt.s32.f32 %v2705_v39 }
 0x27c   :  { %v1145_v56 = vadd.s32 %v1144_v22, %v1140_v20  ;;  %v2751_v45 = vshrl.u32 %v4085_v15, %v2748_v13  ;;  %v1084_v18 = vsel %vm1074_vm0, nan, %v1083_v42  ;;  %v2753_v4 = vshll.u32 %v4085_v15, %v2747_v49 }
 0x27d   :  { %v2710_v16 = vand.u32 2147483647, %v2709_v26  ;;  %v2754_v36 = vshrl.u32 %v4086_v17, %v2748_v13  ;;  %v3564_v38 = vmul.f32 0.088388346, %v1084_v18  ;;  %v2746_v25 = vshrl.u32 %v2745_v6, 5 }
 0x27e   :  { %v1146_v3 = vadd.s32 536870912, %v1145_v56  ;;  %v2752_v10 = vor.u32 %v2751_v45, %v2750_v29  ;;  %v2756_v8 = vshll.u32 %v4086_v17, %v2747_v49  ;;  %v2757_v40 = vshrl.u32 %v4087_v19, %v2748_v13 }
 0x27f   :  { %v2713_v41 = vmul.f32 %v2712_v31, %v2710_v16  ;;  %v2755_v50 = vor.u32 %v2754_v36, %v2753_v4  ;;  %3596 = vst [vmem:[#allocation2 + $0x38] sm:$0xff] %v3564_v38  ;;  %v2759_v60 = vshll.u32 %v4087_v19, %v2747_v49  ;;  %v2760_v53 = vshrl.u32 %v4088_v21, %v2748_v13 }
 0x280   :  { %v1147_v1 = vshrl.u32 %v1146_v3, 30  ;;  %v2763_v63 = vshrl.u32 %v4089_v28, %v2748_v13  ;;  %v2741_v12 = vor.u32 8388608, %v2740_v51  ;;  %v2762_v59 = vshll.u32 %v4088_v21, %v2747_v49 }
 0x281   :  { %v2714_v7 = vxor.u32 2147483648, %v2713_v41  ;;  %v5643_v6 = vadd.f32 %v5176_v23, %v4206_v35  ;;  %v2719_v14 = vsel %vm5614_vm2, 0, %v2717_v0  ;;  %v2758_v5 = vor.u32 %v2757_v40, %v2756_v8 }
 0x282   :  { %v1148_v46 = vshll.u32 %v1147_v1, 30  ;;  %v2761_v62 = vor.u32 %v2760_v53, %v2759_v60  ;;  %v2764_v43 = vor.u32 %v2763_v63, %v2762_v59  ;;  %vm2765_vm3 = vcmp.lt.s32.totalorder %v2746_v25, 1  ;;  %v5684_v53 = vpop.f32.mrb[12].mxu0 }
 0x283   :  { %v2715_v55 = vsel %vm2632_vm12, %v2714_v7, %v2713_v41  ;;  %vm2766_vm5 = vcmp.lt.s32.totalorder %v2746_v25, 2  ;;  %vm2768_vm6 = vcmp.lt.s32.totalorder %v2746_v25, 4  ;;  %v2773_v23 = vsel %vm2765_vm3, %v2752_v10, %v2755_v50 }
 0x284   :  { %v2718_v49 = vsel %vm5614_vm2, %v5365_v44, %v2715_v55  ;;  %v5652_v51 = vsub.s32 %v1145_v56, %v1148_v46  ;;  %v2749_v39 = vshrl.u32 %v4084_v11, %v2748_v13  ;;  %vm2767_vm7 = vcmp.lt.s32.totalorder %v2746_v25, 3 }
 0x285   :  { %3991 = vcosq.f32 %v2718_v49  ;;  %v2774_v24 = vsel %vm2768_vm6, %v2761_v62, 920167782  ;;  %v2770_v0 = vsel %vm2768_vm6, %v2758_v5, 2102212464  ;;  %v2777_v30 = vsel %vm2765_vm3, %v2755_v50, %v2758_v5 }
 0x286   :  { %3993 = vsinq.f32 %v2718_v49  ;;  %v1151_v37 = vsub.s32 0, %v5652_v51  ;;  %v2775_v20 = vsel %vm2767_vm7, %v2758_v5, %v2774_v24  ;;  %v2778_v26 = vsel %vm2768_vm6, %v2764_v43, 1326507024 }
 0x287   :  { %v2776_v52 = vsel %vm2766_vm5, %v2773_v23, %v2775_v20  ;;  %v2781_v22 = vshll.u32 %v2741_v12, 8  ;;  %v2723_v29 = vand.u32 3, %v2719_v14  ;;  %v2769_v31 = vsel %vm2765_vm3, %v2749_v39, %v2752_v10 }
 0x288   :  { %v3686_v42 = vmin.u32 %v1151_v37, %v5652_v51  ;;  %v5663_v13 = vadd.f32 %v5287_v33, %v4206_v35  ;;  %v2771_v56 = vsel %vm2767_vm7, %v2755_v50, %v2770_v0  ;;  %v2779_v45 = vsel %vm2767_vm7, %v2761_v62, %v2778_v26 }
 0x289   :  { %v5665_v18 = vmul.u32.u64.low %v2781_v22, %v2776_v52  ;;  %v5666_v16 = vmul.u32.u64.high %v2781_v22, %v2776_v52, %v5665_v18  ;;  %v1171_v36 = vsub.s32 4, %v1147_v1  ;;  %v2780_v38 = vsel %vm2766_vm5, %v2777_v30, %v2779_v45 }
 0x28a   :  { %v1153_v4 = vclz %v3686_v42  ;;  %v1191_v3 = vand.u32 2139095040, %v5643_v6  ;;  %v5671_v41 = vmul.u32.u64.low %v2781_v22, %v2780_v38  ;;  %v5672_v8 = vmul.u32.u64.high %v2781_v22, %v2780_v38, %v5671_v41 }
 0x28b   :  { %v1188_v10 = vand.u32 2147483647, %v5643_v6  ;;  %vm2722_vm8 = vweird.f32 %v5365_v44  ;;  %vm5678_vm9 = vcmp.le.f32.partialorder %v1085_v57, 0.7853982  ;;  %vm1087_vm10 = vcmp.lt.s32.totalorder %v5492_v27, 0 }
 0x28c   :  { %v3687_v50 = vadd.s32 4294967294, %v1153_v4  ;;  %v2772_v40 = vsel %vm2766_vm5, %v2769_v31, %v2771_v56  ;;  %v1192_v60 = vshrl.u32 %v1191_v3, 23  ;;  %vm2725_vm11 = vcmp.eq.s32.totalorder %v2723_v29, 0 }
 0x28d   :  { %vm2728_vm12 = vcmp.eq.s32.totalorder %v2723_v29, 2  ;;  %v2791_v63 = vadd.s32 1, %v5666_v16  ;;  %v2839_v7 = vand.u32 2139095040, %v5663_v13  ;;  %v1141_v57 = vadd.s32 %v5592_v61, %v5605_v9 }
 0x28e   :  { %vm3688_vm13 = vcmp.lt.s32.totalorder %v3687_v50, 0  ;;  %v1172_v12 = vsel %vm1087_vm10, %v1171_v36, %v1147_v1  ;;  %v3689_v59 = vadd.s32 4294967169, %v1192_v60  ;;  %v2788_v46 = vmul.u32 %v2781_v22, %v2772_v40 }
 0x28f   :  { %v3992_v14 = vpop.eup %3991  ;;  %v1156_v25 = vsel %vm3688_vm13, 0, %v3687_v50  ;;  %vm2790_vm14 = vc.u32 %v5672_v8, %v5665_v18  ;;  %v1195_v5 = vand.u32 8388607, %v1188_v10  ;;  %v2840_v39 = vshrl.u32 %v2839_v7, 23 }
 0x290   :  { %v3994_v62 = vpop.eup %3993  ;;  %v2729_v55 = vxor.u32 2147483648, %v3992_v14  ;;  %v1157_v43 = vsub.s32 32, %v1156_v25  ;;  %v1158_v49 = vshll.u32 %v5652_v51, %v1156_v25  ;;  %v1161_v61 = vsub.s32 4294967266, %v1156_v25 }
 0x291   :  { %v2726_v9 = vxor.u32 2147483648, %v3994_v62  ;;  %v2792_v23 = vsel %vm2790_vm14, %v2791_v63, %v5666_v16  ;;  %v1198_v1 = vadd.s32 1, %v3689_v59  ;;  %vm2724_vm15 = vcmp.lt.s32.totalorder %v2723_v29, 2 }
 0x292   :  { %v2730_v24 = vsel %vm2728_vm12, %v2729_v55, %v3994_v62  ;;  %v1159_v37 = vshrl.u32 %v1141_v57, %v1157_v43  ;;  %v1162_v0 = vadd.s32 127, %v1161_v61  ;;  %v2793_v20 = vadd.s32 %v2792_v23, %v2788_v46 }
 0x293   :  { %v2727_v52 = vsel %vm2725_vm11, %v3992_v14, %v2726_v9  ;;  %vm1199_vm0 = vcmp.gt.s32.totalorder %v1198_v1, 0  ;;  %v3753_v30 = vadd.s32 4294967169, %v2840_v39  ;;  %v1174_v56 = vsel %vm5678_vm9, 0, %v1172_v12 }
 0x294   :  { %v2731_v26 = vsel %vm2724_vm15, %v2727_v52, %v2730_v24  ;;  %v1160_v22 = vor.u32 %v1159_v37, %v1158_v49  ;;  %v1163_v42 = vshll.u32 %v1162_v0, 23  ;;  %v2794_v51 = vadd.s32 536870912, %v2793_v20 }
 0x295   :  { %v2732_v31 = vsel %vm2722_vm8, nan, %v2731_v26  ;;  %v1200_v45 = vsel %vm1199_vm0, %v1198_v1, 0  ;;  %v2836_v16 = vand.u32 2147483647, %v5663_v13  ;;  %v1196_v29 = vor.u32 8388608, %v1195_v5 }
 0x296   :  { %v3580_v4 = vmul.f32 0.088388346, %v2732_v31  ;;  %v1164_v36 = vor.u32 4788187, %v1163_v42  ;;  %v5705_v38 = vshrl.u32 %v2794_v51, 30  ;;  %v1202_v3 = vand.u32 31, %v1200_v45 }
 0x297   :  { %v2846_v41 = vadd.s32 1, %v3753_v30  ;;  %v1167_v40 = vcvt.s32.f32 %v1160_v22  ;;  %v5708_v44 = vand.u32 3, %v1174_v56  ;;  %v5712_v7 = vand.u32 8388607, %v2836_v16 }
 0x298   :  { %3612 = vst [vmem:[#allocation2 + $0xb8] sm:$0xff] %v3580_v4  ;;  %v1165_v50 = vand.u32 2147483647, %v1164_v36  ;;  %v2796_v60 = vshll.u32 %v5705_v38, 30  ;;  %v1203_v63 = vsub.s32 32, %v1202_v3  ;;  %v5716_v57 = vadd.f32 %v5344_v32, %v4204_v34 }
 0x299   :  { %v2789_v59 = vadd.s32 %v5665_v18, %v5672_v8  ;;  %v5722_v25 = vshll.u32 %v1196_v29, 8  ;;  %v1201_v46 = vshrl.u32 %v1200_v45, 5  ;;  %vm2847_vm1 = vcmp.gt.s32.totalorder %v2846_v41, 0 }
 0x29a   :  { %v1168_v12 = vmul.f32 %v1167_v40, %v1165_v50  ;;  %v5720_v14 = vsub.s32 %v2793_v20, %v2796_v60  ;;  %v1206_v5 = vshrl.u32 %v4085_v15, %v1203_v63  ;;  %v1209_v62 = vshrl.u32 %v4086_v17, %v1203_v63 }
 0x29b   :  { %v1205_v32 = vshll.u32 %v4084_v11, %v1202_v3  ;;  %v1212_v49 = vshrl.u32 %v4087_v19, %v1203_v63  ;;  %v1208_v61 = vshll.u32 %v4085_v15, %v1202_v3  ;;  %v1211_v18 = vshll.u32 %v4086_v17, %v1202_v3 }
 0x29c   :  { %v1169_v55 = vxor.u32 2147483648, %v1168_v12  ;;  %v2799_v43 = vsub.s32 0, %v5720_v14  ;;  %v1214_v8 = vshll.u32 %v4087_v19, %v1202_v3  ;;  %v1215_v9 = vshrl.u32 %v4088_v21, %v1203_v63 }
 0x29d   :  { %v2819_v39 = vsub.s32 4, %v5705_v38  ;;  %v1207_v24 = vor.u32 %v1206_v5, %v1205_v32  ;;  %v1210_v0 = vor.u32 %v1209_v62, %v1208_v61  ;;  %v1213_v20 = vor.u32 %v1212_v49, %v1211_v18 }
 0x29e   :  { %v1170_v23 = vsel %vm1087_vm10, %v1169_v55, %v1168_v12  ;;  %v3750_v1 = vmin.u32 %v2799_v43, %v5720_v14  ;;  %v1216_v52 = vor.u32 %v1215_v9, %v1214_v8  ;;  %v1217_v26 = vshll.u32 %v4088_v21, %v1202_v3  ;;  %v5753_v55 = vpop.f32.mrb[12].mxu1 }
 0x29f   :  { %v1173_v37 = vsel %vm5678_vm9, %v5492_v27, %v1170_v23  ;;  %v1218_v22 = vshrl.u32 %v4089_v28, %v1203_v63  ;;  %v1204_v42 = vshrl.u32 %v4084_v11, %v1203_v63  ;;  %vm1220_vm2 = vcmp.lt.s32.totalorder %v1201_v46, 1 }
 0x2a0   :  { %3995 = vcosq.f32 %v1173_v37  ;;  %v2801_v30 = vclz %v3750_v1  ;;  %v2848_v51 = vsel %vm2847_vm1, %v2846_v41, 0  ;;  %vm2735_vm4 = vcmp.lt.s32.totalorder %v5519_v2, 0 }
 0x2a1   :  { %3997 = vsinq.f32 %v1173_v37  ;;  %v1219_v33 = vor.u32 %v1218_v22, %v1217_v26  ;;  %vm1222_vm3 = vcmp.lt.s32.totalorder %v1201_v46, 3  ;;  %vm1223_vm5 = vcmp.lt.s32.totalorder %v1201_v46, 4 }
 0x2a2   :  { %v3751_v31 = vadd.s32 4294967294, %v2801_v30  ;;  %v1225_v56 = vsel %vm1223_vm5, %v1213_v20, 2102212464  ;;  %v1228_v45 = vsel %vm1220_vm2, %v1207_v24, %v1210_v0  ;;  %v1229_v4 = vsel %vm1223_vm5, %v1216_v52, 920167782 }
 0x2a3   :  { %v1232_v36 = vsel %vm1220_vm2, %v1210_v0, %v1213_v20  ;;  %vm1221_vm7 = vcmp.lt.s32.totalorder %v1201_v46, 2  ;;  %v1230_v29 = vsel %vm1222_vm3, %v1213_v20, %v1229_v4  ;;  %v1233_v3 = vsel %vm1223_vm5, %v1219_v33, 1326507024 }
 0x2a4   :  { %vm3752_vm6 = vcmp.lt.s32.totalorder %v3751_v31, 0  ;;  %v1224_v41 = vsel %vm1220_vm2, %v1204_v42, %v1207_v24  ;;  %v1231_v40 = vsel %vm1221_vm7, %v1228_v45, %v1230_v29  ;;  %v1234_v60 = vsel %vm1222_vm3, %v1216_v52, %v1233_v3 }
 0x2a5   :  { %v2804_v50 = vsel %vm3752_vm6, 0, %v3751_v31  ;;  %v1226_v5 = vsel %vm1222_vm3, %v1210_v0, %v1225_v56  ;;  %v1235_v62 = vsel %vm1221_vm7, %v1232_v36, %v1234_v60  ;;  %vm1177_vm8 = vweird.f32 %v5492_v27 }
 0x2a6   :  { %v2805_v63 = vsub.s32 32, %v2804_v50  ;;  %v2809_v12 = vsub.s32 4294967266, %v2804_v50  ;;  %v5757_v43 = vmul.u32.u64.low %v5722_v25, %v1235_v62  ;;  %v5758_v32 = vmul.u32.u64.high %v5722_v25, %v1235_v62, %v5757_v43 }
 0x2a7   :  { %v5761_v49 = vmul.u32.u64.low %v5722_v25, %v1231_v40  ;;  %v5762_v61 = vmul.u32.u64.high %v5722_v25, %v1231_v40, %v5761_v49  ;;  %v2806_v18 = vshll.u32 %v5720_v14, %v2804_v50  ;;  %v2850_v23 = vand.u32 31, %v2848_v51 }
 0x2a8   :  { %v2807_v8 = vshrl.u32 %v2789_v59, %v2805_v63  ;;  %v2810_v9 = vadd.s32 127, %v2809_v12  ;;  %vm1179_vm9 = vcmp.lt.s32.totalorder %v5708_v44, 2  ;;  %vm1180_vm10 = vcmp.eq.s32.totalorder %v5708_v44, 0 }
 0x2a9   :  { %vm1183_vm11 = vcmp.eq.s32.totalorder %v5708_v44, 2  ;;  %v1227_v1 = vsel %vm1221_vm7, %v1224_v41, %v1226_v5  ;;  %v2844_v20 = vor.u32 8388608, %v5712_v7  ;;  %v2851_v52 = vsub.s32 32, %v2850_v23 }
 0x2aa   :  { %v3996_v24 = vpop.eup %3995  ;;  %v2808_v37 = vor.u32 %v2807_v8, %v2806_v18  ;;  %v2811_v0 = vshll.u32 %v2810_v9, 23  ;;  %v2820_v59 = vsel %vm2735_vm4, %v2819_v39, %v5705_v38  ;;  %vm1245_vm12 = vc.u32 %v5758_v32, %v5761_v49 }
 0x2ab   :  { %v3998_v30 = vpop.eup %3997  ;;  %v1184_v26 = vxor.u32 2147483648, %v3996_v24  ;;  %v1246_v14 = vadd.s32 1, %v5762_v61  ;;  %v1243_v42 = vmul.u32 %v5722_v25, %v1227_v1  ;;  %v2853_v31 = vshll.u32 %v4084_v11, %v2850_v23 }
 0x2ac   :  { %v1181_v22 = vxor.u32 2147483648, %v3998_v30  ;;  %v2812_v46 = vor.u32 4788187, %v2811_v0  ;;  %v2815_v33 = vcvt.s32.f32 %v2808_v37  ;;  %v2854_v45 = vshrl.u32 %v4085_v15, %v2851_v52 }
 0x2ad   :  { %v1185_v7 = vsel %vm1183_vm11, %v1184_v26, %v3998_v30  ;;  %v1247_v56 = vsel %vm1245_vm12, %v1246_v14, %v5762_v61  ;;  %v2857_v36 = vshrl.u32 %v4086_v17, %v2851_v52  ;;  %v5788_v29 = vshrl.u32 %v2848_v51, 5 }
 0x2ae   :  { %v1182_v38 = vsel %vm1180_vm10, %v3996_v24, %v1181_v22  ;;  %v2813_v39 = vand.u32 2147483647, %v2812_v46  ;;  %v1248_v4 = vadd.s32 %v1247_v56, %v1243_v42  ;;  %v2855_v3 = vor.u32 %v2854_v45, %v2853_v31 }
 0x2af   :  { %v1186_v25 = vsel %vm1179_vm9, %v1182_v38, %v1185_v7  ;;  %v2856_v50 = vshll.u32 %v4085_v15, %v2850_v23  ;;  %v2860_v63 = vshrl.u32 %v4087_v19, %v2851_v52  ;;  %v2859_v5 = vshll.u32 %v4086_v17, %v2850_v23 }
 0x2b0   :  { %v1187_v41 = vsel %vm1177_vm8, nan, %v1186_v25  ;;  %v2816_v40 = vmul.f32 %v2815_v33, %v2813_v39  ;;  %v1249_v60 = vadd.s32 536870912, %v1248_v4  ;;  %v2862_v62 = vshll.u32 %v4087_v19, %v2850_v23 }
 0x2b1   :  { %v3565_v12 = vmul.f32 0.088388346, %v1187_v41  ;;  %v2863_v44 = vshrl.u32 %v4088_v21, %v2851_v52  ;;  %v2858_v61 = vor.u32 %v2857_v36, %v2856_v50  ;;  %v2866_v18 = vshrl.u32 %v4089_v28, %v2851_v52  ;;  %v5843_v41 = vpop.f32.mrb[13].mxu0 }
 0x2b2   :  { %v2817_v43 = vxor.u32 2147483648, %v2816_v40  ;;  %v1250_v51 = vshrl.u32 %v1249_v60, 30  ;;  %vm5800_vm13 = vcmp.le.f32.partialorder %v2733_v48, 0.7853982  ;;  %v2865_v9 = vshll.u32 %v4088_v21, %v2850_v23 }
 0x2b3   :  { %3597 = vst [vmem:[#allocation2 + $0x40] sm:$0xff] %v3565_v12  ;;  %v2864_v8 = vor.u32 %v2863_v44, %v2862_v62  ;;  %v5805_v1 = vshll.u32 %v2844_v20, 8  ;;  %v2822_v37 = vsel %vm5800_vm13, 0, %v2820_v59  ;;  %v2861_v30 = vor.u32 %v2860_v63, %v2859_v5 }
 0x2b4   :  { %v2818_v24 = vsel %vm2735_vm4, %v2817_v43, %v2816_v40  ;;  %v1251_v0 = vshll.u32 %v1250_v51, 30  ;;  %v2867_v26 = vor.u32 %v2866_v18, %v2865_v9  ;;  %vm2868_vm14 = vcmp.lt.s32.totalorder %v5788_v29, 1 }
 0x2b5   :  { %v2821_v48 = vsel %vm5800_vm13, %v5519_v2, %v2818_v24  ;;  %v1294_v14 = vand.u32 2139095040, %v5716_v57  ;;  %vm2871_vm15 = vcmp.lt.s32.totalorder %v5788_v29, 4  ;;  %v2876_v20 = vsel %vm2868_vm14, %v2855_v3, %v2858_v61 }
 0x2b6   :  { %3999 = vcosq.f32 %v2821_v48  ;;  %v5816_v23 = vsub.s32 %v1248_v4, %v1251_v0  ;;  %v2852_v59 = vshrl.u32 %v4084_v11, %v2851_v52  ;;  %vm2870_vm0 = vcmp.lt.s32.totalorder %v5788_v29, 3 }
 0x2b7   :  { %4001 = vsinq.f32 %v2821_v48  ;;  %v2877_v22 = vsel %vm2871_vm15, %v2864_v8, 920167782  ;;  %v1274_v42 = vsub.s32 4, %v1250_v51  ;;  %vm2869_vm1 = vcmp.lt.s32.totalorder %v5788_v29, 2 }
 0x2b8   :  { %v1254_v46 = vsub.s32 0, %v5816_v23  ;;  %v2878_v31 = vsel %vm2870_vm0, %v2861_v30, %v2877_v22  ;;  %v2873_v7 = vsel %vm2871_vm15, %v2861_v30, 2102212464  ;;  %v2880_v56 = vsel %vm2868_vm14, %v2858_v61, %v2861_v30 }
 0x2b9   :  { %v2879_v33 = vsel %vm2869_vm1, %v2876_v20, %v2878_v31  ;;  %v2881_v45 = vsel %vm2871_vm15, %v2867_v26, 1326507024  ;;  %v2826_v52 = vand.u32 3, %v2822_v37  ;;  %vm1190_vm2 = vcmp.lt.s32.totalorder %v5643_v6, 0 }
 0x2ba   :  { %v3690_v38 = vmin.u32 %v1254_v46, %v5816_v23  ;;  %v1291_v39 = vand.u32 2147483647, %v5716_v57  ;;  %v2872_v4 = vsel %vm2868_vm14, %v2852_v59, %v2855_v3  ;;  %v2882_v36 = vsel %vm2870_vm0, %v2864_v8, %v2881_v45 }
 0x2bb   :  { %v5839_v25 = vmul.u32.u64.low %v5805_v1, %v2879_v33  ;;  %v5840_v50 = vmul.u32.u64.high %v5805_v1, %v2879_v33, %v5839_v25  ;;  %v2874_v60 = vsel %vm2870_vm0, %v2858_v61, %v2873_v7  ;;  %v2883_v63 = vsel %vm2869_vm1, %v2880_v56, %v2882_v36 }
 0x2bc   :  { %v1256_v40 = vclz %v3690_v38  ;;  %v1295_v12 = vshrl.u32 %v1294_v14, 23  ;;  %vm2825_vm4 = vweird.f32 %v5519_v2  ;;  %vm5852_vm3 = vcmp.le.f32.partialorder %v1188_v10, 0.7853982 }
 0x2bd   :  { %v1275_v5 = vsel %vm1190_vm2, %v1274_v42, %v1250_v51  ;;  %v5859_v62 = vmul.u32.u64.low %v5805_v1, %v2883_v63  ;;  %v5860_v44 = vmul.u32.u64.high %v5805_v1, %v2883_v63, %v5859_v62  ;;  %vm2827_vm5 = vcmp.lt.s32.totalorder %v2826_v52, 2 }
 0x2be   :  { %vm2828_vm6 = vcmp.eq.s32.totalorder %v2826_v52, 0  ;;  %v3691_v43 = vadd.s32 4294967294, %v1256_v40  ;;  %v3693_v61 = vadd.s32 4294967169, %v1295_v12  ;;  %vm2831_vm7 = vcmp.eq.s32.totalorder %v2826_v52, 2 }
 0x2bf   :  { %v1244_v18 = vadd.s32 %v5761_v49, %v5758_v32  ;;  %v2875_v10 = vsel %vm2869_vm1, %v2872_v4, %v2874_v60  ;;  %v2894_v27 = vadd.s32 1, %v5840_v50  ;;  %v1277_v51 = vsel %vm5852_vm3, 0, %v1275_v5 }
 0x2c0   :  { %v4000_v8 = vpop.eup %3999  ;;  %vm3692_vm8 = vcmp.lt.s32.totalorder %v3691_v43, 0  ;;  %v1298_v9 = vand.u32 8388607, %v1291_v39  ;;  %v1301_v24 = vadd.s32 1, %v3693_v61  ;;  %vm2893_vm9 = vc.u32 %v5860_v44, %v5839_v25 }
 0x2c1   :  { %v4002_v37 = vpop.eup %4001  ;;  %v2832_v0 = vxor.u32 2147483648, %v4000_v8  ;;  %v1259_v30 = vsel %vm3692_vm8, 0, %v3691_v43  ;;  %v5875_v32 = vadd.f32 %v5428_v58, %v4204_v34  ;;  %v2891_v26 = vmul.u32 %v5805_v1, %v2875_v10 }
 0x2c2   :  { %v2829_v49 = vxor.u32 2147483648, %v4002_v37  ;;  %v1260_v29 = vsub.s32 32, %v1259_v30  ;;  %v1264_v48 = vsub.s32 4294967266, %v1259_v30  ;;  %v1261_v20 = vshll.u32 %v5816_v23, %v1259_v30 }
 0x2c3   :  { %v2833_v14 = vsel %vm2831_vm7, %v2832_v0, %v4002_v37  ;;  %v2895_v59 = vsel %vm2893_vm9, %v2894_v27, %v5840_v50  ;;  %vm1302_vm10 = vcmp.gt.s32.totalorder %v1301_v24, 0  ;;  %v1299_v7 = vor.u32 8388608, %v1298_v9 }
 0x2c4   :  { %v2830_v22 = vsel %vm2828_vm6, %v4000_v8, %v2829_v49  ;;  %v1262_v46 = vshrl.u32 %v1244_v18, %v1260_v29  ;;  %v1265_v42 = vadd.s32 127, %v1264_v48  ;;  %v2896_v31 = vadd.s32 %v2895_v59, %v2891_v26 }
 0x2c5   :  { %v2834_v58 = vsel %vm2827_vm5, %v2830_v22, %v2833_v14  ;;  %v1303_v33 = vsel %vm1302_vm10, %v1301_v24, 0  ;;  %v2942_v56 = vand.u32 2139095040, %v5875_v32  ;;  %v5888_v60 = vand.u32 3, %v1277_v51 }
 0x2c6   :  { %v2835_v1 = vsel %vm2825_vm4, nan, %v2834_v58  ;;  %v1263_v45 = vor.u32 %v1262_v46, %v1261_v20  ;;  %v1266_v38 = vshll.u32 %v1265_v42, 23  ;;  %v2897_v23 = vadd.s32 536870912, %v2896_v31 }
 0x2c7   :  { %v3581_v4 = vmul.f32 0.088388346, %v2835_v1  ;;  %v1305_v36 = vand.u32 31, %v1303_v33  ;;  %v5890_v63 = vshll.u32 %v1299_v7, 8  ;;  %v2939_v12 = vand.u32 2147483647, %v5875_v32 }
 0x2c8   :  { %v1267_v50 = vor.u32 4788187, %v1266_v38  ;;  %v5886_v40 = vshrl.u32 %v2897_v23, 30  ;;  %v1270_v62 = vcvt.s32.f32 %v1263_v45  ;;  %v2943_v43 = vshrl.u32 %v2942_v56, 23 }
 0x2c9   :  { %3613 = vst [vmem:[#allocation2 + $0xc0] sm:$0xff] %v3581_v4  ;;  %v1306_v52 = vsub.s32 32, %v1305_v36  ;;  %v1308_v61 = vshll.u32 %v4084_v11, %v1305_v36  ;;  %v1311_v9 = vshll.u32 %v4085_v15, %v1305_v36  ;;  %v2892_v37 = vadd.s32 %v5839_v25, %v5860_v44 }
 0x2ca   :  { %v1268_v5 = vand.u32 2147483647, %v1267_v50  ;;  %v2899_v2 = vshll.u32 %v5886_v40, 30  ;;  %v1304_v0 = vshrl.u32 %v1303_v33, 5  ;;  %v1314_v30 = vshll.u32 %v4086_v17, %v1305_v36 }
 0x2cb   :  { %v1309_v18 = vshrl.u32 %v4085_v15, %v1306_v52  ;;  %v1312_v10 = vshrl.u32 %v4086_v17, %v1306_v52  ;;  %v1315_v27 = vshrl.u32 %v4087_v19, %v1306_v52  ;;  %v1318_v24 = vshrl.u32 %v4088_v21, %v1306_v52 }
 0x2cc   :  { %v1271_v8 = vmul.f32 %v1270_v62, %v1268_v5  ;;  %v5898_v51 = vsub.s32 %v2896_v31, %v2899_v2  ;;  %v1317_v49 = vshll.u32 %v4087_v19, %v1305_v36  ;;  %v1320_v22 = vshll.u32 %v4088_v21, %v1305_v36 }
 0x2cd   :  { %v1310_v26 = vor.u32 %v1309_v18, %v1308_v61  ;;  %v1313_v14 = vor.u32 %v1312_v10, %v1311_v9  ;;  %v1316_v20 = vor.u32 %v1315_v27, %v1314_v30  ;;  %v1321_v46 = vshrl.u32 %v4089_v28, %v1306_v52  ;;  %v5928_v30 = vpop.f32.mrb[13].mxu1 }
 0x2ce   :  { %v1272_v29 = vxor.u32 2147483648, %v1271_v8  ;;  %v2902_v48 = vsub.s32 0, %v5898_v51  ;;  %v1319_v59 = vor.u32 %v1318_v24, %v1317_v49  ;;  %v1307_v44 = vshrl.u32 %v4084_v11, %v1306_v52 }
 0x2cf   :  { %v3757_v31 = vadd.s32 4294967169, %v2943_v43  ;;  %v1322_v7 = vor.u32 %v1321_v46, %v1320_v22  ;;  %vm1323_vm11 = vcmp.lt.s32.totalorder %v1304_v0, 1  ;;  %vm1324_vm12 = vcmp.lt.s32.totalorder %v1304_v0, 2 }
 0x2d0   :  { %v1273_v42 = vsel %vm1190_vm2, %v1272_v29, %v1271_v8  ;;  %v3754_v25 = vmin.u32 %v2902_v48, %v5898_v51  ;;  %vm2838_vm13 = vcmp.lt.s32.totalorder %v5663_v13, 0  ;;  %vm1325_vm14 = vcmp.lt.s32.totalorder %v1304_v0, 3 }
 0x2d1   :  { %v1276_v58 = vsel %vm5852_vm3, %v5643_v6, %v1273_v42  ;;  %vm1326_vm15 = vcmp.lt.s32.totalorder %v1304_v0, 4  ;;  %v1331_v1 = vsel %vm1323_vm11, %v1310_v26, %v1313_v14  ;;  %v1327_v23 = vsel %vm1323_vm11, %v1307_v44, %v1310_v26 }
 0x2d2   :  { %4003 = vcosq.f32 %v1276_v58  ;;  %v2904_v33 = vclz %v3754_v25  ;;  %v1328_v56 = vsel %vm1326_vm15, %v1316_v20, 2102212464  ;;  %v1332_v45 = vsel %vm1326_vm15, %v1319_v59, 920167782 }
 0x2d3   :  { %4005 = vsinq.f32 %v1276_v58  ;;  %v1333_v4 = vsel %vm1325_vm14, %v1316_v20, %v1332_v45  ;;  %v1335_v36 = vsel %vm1323_vm11, %v1313_v14, %v1316_v20  ;;  %v1329_v50 = vsel %vm1325_vm14, %v1313_v14, %v1328_v56 }
 0x2d4   :  { %v3755_v38 = vadd.s32 4294967294, %v2904_v33  ;;  %v1334_v3 = vsel %vm1324_vm12, %v1331_v1, %v1333_v4  ;;  %v1336_v52 = vsel %vm1326_vm15, %v1322_v7, 1326507024  ;;  %v2949_v5 = vadd.s32 1, %v3757_v31 }
 0x2d5   :  { %v1337_v62 = vsel %vm1325_vm14, %v1319_v59, %v1336_v52  ;;  %v5919_v2 = vmul.u32.u64.low %v5890_v63, %v1334_v3  ;;  %v5920_v43 = vmul.u32.u64.high %v5890_v63, %v1334_v3, %v5919_v2  ;;  %vm1283_vm1 = vcmp.eq.s32.totalorder %v5888_v60, 0 }
 0x2d6   :  { %vm3756_vm0 = vcmp.lt.s32.totalorder %v3755_v38, 0  ;;  %v2922_v18 = vsub.s32 4, %v5886_v40  ;;  %v1338_v10 = vsel %vm1324_vm12, %v1335_v36, %v1337_v62  ;;  %vm2950_vm2 = vcmp.gt.s32.totalorder %v2949_v5, 0 }
 0x2d7   :  { %v2907_v61 = vsel %vm3756_vm0, 0, %v3755_v38  ;;  %vm1282_vm4 = vcmp.lt.s32.totalorder %v5888_v60, 2  ;;  %v1330_v9 = vsel %vm1324_vm12, %v1327_v23, %v1329_v50  ;;  %v2951_v24 = vsel %vm2950_vm2, %v2949_v5, 0 }
 0x2d8   :  { %v2908_v27 = vsub.s32 32, %v2907_v61  ;;  %v2912_v8 = vsub.s32 4294967266, %v2907_v61  ;;  %vm1280_vm3 = vweird.f32 %v5643_v6  ;;  %vm1286_vm5 = vcmp.eq.s32.totalorder %v5888_v60, 2 }
 0x2d9   :  { %v5933_v49 = vmul.u32.u64.low %v5890_v63, %v1338_v10  ;;  %v5934_v29 = vmul.u32.u64.high %v5890_v63, %v1338_v10, %v5933_v49  ;;  %v2953_v48 = vand.u32 31, %v2951_v24  ;;  %v2909_v26 = vshll.u32 %v5898_v51, %v2907_v61 }
 0x2da   :  { %v2910_v14 = vshrl.u32 %v2892_v37, %v2908_v27  ;;  %v2913_v20 = vadd.s32 127, %v2912_v8  ;;  %v1349_v59 = vadd.s32 1, %v5920_v43  ;;  %v5941_v0 = vsel %vm2838_vm13, %v2922_v18, %v5886_v40 }
 0x2db   :  { %v1346_v22 = vmul.u32 %v5890_v63, %v1330_v9  ;;  %v2946_v46 = vand.u32 8388607, %v2939_v12  ;;  %v2954_v42 = vsub.s32 32, %v2953_v48  ;;  %vm5948_vm6 = vcmp.le.f32.partialorder %v2836_v16, 0.7853982 }
 0x2dc   :  { %v4004_v25 = vpop.eup %4003  ;;  %v2911_v37 = vor.u32 %v2910_v14, %v2909_v26  ;;  %v2914_v44 = vshll.u32 %v2913_v20, 23  ;;  %v5952_v31 = vshrl.u32 %v2951_v24, 5  ;;  %v2956_v40 = vshll.u32 %v4084_v11, %v2953_v48 }
 0x2dd   :  { %v4006_v58 = vpop.eup %4005  ;;  %v1287_v7 = vxor.u32 2147483648, %v4004_v25  ;;  %vm1348_vm7 = vc.u32 %v5934_v29, %v5919_v2  ;;  %v2959_v63 = vshll.u32 %v4085_v15, %v2953_v48  ;;  %v2965_v33 = vshll.u32 %v4087_v19, %v2953_v48 }
 0x2de   :  { %v1284_v56 = vxor.u32 2147483648, %v4006_v58  ;;  %v2915_v16 = vor.u32 4788187, %v2914_v44  ;;  %v2918_v1 = vcvt.s32.f32 %v2911_v37  ;;  %v1350_v45 = vsel %vm1348_vm7, %v1349_v59, %v5920_v43 }
 0x2df   :  { %v1288_v38 = vsel %vm1286_vm5, %v1287_v7, %v4006_v58  ;;  %v1351_v23 = vadd.s32 %v1350_v45, %v1346_v22  ;;  %v2957_v4 = vshrl.u32 %v4085_v15, %v2954_v42  ;;  %v2960_v36 = vshrl.u32 %v4086_v17, %v2954_v42 }
 0x2e0   :  { %v1285_v50 = vsel %vm1283_vm1, %v4004_v25, %v1284_v56  ;;  %v2916_v3 = vand.u32 2147483647, %v2915_v16  ;;  %v2963_v52 = vshrl.u32 %v4087_v19, %v2954_v42  ;;  %v2966_v5 = vshrl.u32 %v4088_v21, %v2954_v42 }
 0x2e1   :  { %v1289_v62 = vsel %vm1282_vm4, %v1285_v50, %v1288_v38  ;;  %v1352_v43 = vadd.s32 536870912, %v1351_v23  ;;  %v2958_v61 = vor.u32 %v2957_v4, %v2956_v40  ;;  %v2962_v18 = vshll.u32 %v4086_v17, %v2953_v48 }
 0x2e2   :  { %v1290_v10 = vsel %vm1280_vm3, nan, %v1289_v62  ;;  %v2919_v27 = vmul.f32 %v2918_v1, %v2916_v3  ;;  %v2961_v8 = vor.u32 %v2960_v36, %v2959_v63  ;;  %v2967_v9 = vor.u32 %v2966_v5, %v2965_v33 }
 0x2e3   :  { %v3566_v24 = vmul.f32 0.088388346, %v1290_v10  ;;  %v1353_v49 = vshrl.u32 %v1352_v43, 30  ;;  %v2947_v26 = vor.u32 8388608, %v2946_v46  ;;  %v2969_v14 = vshrl.u32 %v4089_v28, %v2954_v42 }
 0x2e4   :  { %v2920_v20 = vxor.u32 2147483648, %v2919_v27  ;;  %v2964_v59 = vor.u32 %v2963_v52, %v2962_v18  ;;  %v2968_v60 = vshll.u32 %v4088_v21, %v2953_v48  ;;  %v5977_v22 = vadd.f32 %v5504_v47, %v4206_v35 }
 0x2e5   :  { %3598 = vst [vmem:[#allocation2 + $0x48] sm:$0xff] %v3566_v24  ;;  %v2925_v6 = vsel %vm5948_vm6, 0, %v5941_v0  ;;  %v1354_v25 = vshll.u32 %v1353_v49, 30  ;;  %vm2971_vm8 = vcmp.lt.s32.totalorder %v5952_v31, 1  ;;  %vm2974_vm9 = vcmp.lt.s32.totalorder %v5952_v31, 4 }
 0x2e6   :  { %v2921_v46 = vsel %vm2838_vm13, %v2920_v20, %v2919_v27  ;;  %v2970_v37 = vor.u32 %v2969_v14, %v2968_v60  ;;  %v2979_v48 = vsel %vm2971_vm8, %v2958_v61, %v2961_v8  ;;  %v2980_v47 = vsel %vm2974_vm9, %v2967_v9, 920167782 }
 0x2e7   :  { %v2924_v44 = vsel %vm5948_vm6, %v5663_v13, %v2921_v46  ;;  %v5993_v0 = vsub.s32 %v1351_v23, %v1354_v25  ;;  %vm2973_vm10 = vcmp.lt.s32.totalorder %v5952_v31, 3  ;;  %v2987_v40 = vshll.u32 %v2947_v26, 8  ;;  %v6043_v26 = vpop.f32.mrb[14].mxu0 }
 0x2e8   :  { %4007 = vcosq.f32 %v2924_v44  ;;  %v2955_v58 = vshrl.u32 %v4084_v11, %v2954_v42  ;;  %vm2972_vm11 = vcmp.lt.s32.totalorder %v5952_v31, 2  ;;  %v2981_v7 = vsel %vm2973_vm10, %v2964_v59, %v2980_v47 }
 0x2e9   :  { %4009 = vsinq.f32 %v2924_v44  ;;  %v1357_v63 = vsub.s32 0, %v5993_v0  ;;  %v2976_v51 = vsel %vm2974_vm9, %v2964_v59, 2102212464  ;;  %v2982_v33 = vsel %vm2972_vm11, %v2979_v48, %v2981_v7 }
 0x2ea   :  { %v2983_v56 = vsel %vm2971_vm8, %v2961_v8, %v2964_v59  ;;  %v2984_v42 = vsel %vm2974_vm9, %v2970_v37, 1326507024  ;;  %v6009_v16 = vmul.u32.u64.low %v2987_v40, %v2982_v33  ;;  %v6010_v1 = vmul.u32.u64.high %v2987_v40, %v2982_v33, %v6009_v16 }
 0x2eb   :  { %v3694_v45 = vmin.u32 %v1357_v63, %v5993_v0  ;;  %v6016_v38 = vadd.f32 %v5599_v54, %v4206_v35  ;;  %v2929_v23 = vand.u32 3, %v2925_v6  ;;  %v2975_v4 = vsel %vm2971_vm8, %v2955_v58, %v2958_v61 }
 0x2ec   :  { %v2977_v36 = vsel %vm2973_vm10, %v2961_v8, %v2976_v51  ;;  %v2985_v50 = vsel %vm2973_vm10, %v2967_v9, %v2984_v42  ;;  %v1377_v52 = vsub.s32 4, %v1353_v49  ;;  %v1397_v62 = vand.u32 2139095040, %v5977_v22 }
 0x2ed   :  { %v1359_v3 = vclz %v3694_v45  ;;  %v2986_v5 = vsel %vm2972_vm11, %v2983_v56, %v2985_v50  ;;  %vm1293_vm12 = vcmp.lt.s32.totalorder %v5716_v57, 0  ;;  %vm2928_vm13 = vweird.f32 %v5663_v13 }
 0x2ee   :  { %v6028_v54 = vmul.u32.u64.low %v2987_v40, %v2986_v5  ;;  %v6029_v43 = vmul.u32.u64.high %v2987_v40, %v2986_v5, %v6028_v54  ;;  %vm6034_vm14 = vcmp.le.f32.partialorder %v1291_v39, 0.7853982  ;;  %v2978_v10 = vsel %vm2972_vm11, %v2975_v4, %v2977_v36 }
 0x2ef   :  { %v3695_v18 = vadd.s32 4294967294, %v1359_v3  ;;  %v1394_v27 = vand.u32 2147483647, %v5977_v22  ;;  %v1398_v8 = vshrl.u32 %v1397_v62, 23  ;;  %vm2931_vm15 = vcmp.eq.s32.totalorder %v2929_v23, 0 }
 0x2f0   :  { %vm2934_vm0 = vcmp.eq.s32.totalorder %v2929_v23, 2  ;;  %v2997_v9 = vadd.s32 1, %v6010_v1  ;;  %v3045_v24 = vand.u32 2139095040, %v6016_v38  ;;  %v1347_v39 = vadd.s32 %v5919_v2, %v5934_v29 }
 0x2f1   :  { %vm3696_vm1 = vcmp.lt.s32.totalorder %v3695_v18, 0  ;;  %v1378_v14 = vsel %vm1293_vm12, %v1377_v52, %v1353_v49  ;;  %v3697_v31 = vadd.s32 4294967169, %v1398_v8  ;;  %v2994_v60 = vmul.u32 %v2987_v40, %v2978_v10 }
 0x2f2   :  { %v4008_v20 = vpop.eup %4007  ;;  %v1362_v59 = vsel %vm3696_vm1, 0, %v3695_v18  ;;  %vm2996_vm2 = vc.u32 %v6029_v43, %v6009_v16  ;;  %v3046_v6 = vshrl.u32 %v3045_v24, 23  ;;  %v1401_v47 = vand.u32 8388607, %v1394_v27 }
 0x2f3   :  { %v4010_v25 = vpop.eup %4009  ;;  %v2935_v46 = vxor.u32 2147483648, %v4008_v20  ;;  %v1363_v37 = vsub.s32 32, %v1362_v59  ;;  %v1367_v48 = vsub.s32 4294967266, %v1362_v59  ;;  %v1364_v29 = vshll.u32 %v5993_v0, %v1362_v59 }
 0x2f4   :  { %v2932_v2 = vxor.u32 2147483648, %v4010_v25  ;;  %v2998_v49 = vsel %vm2996_vm2, %v2997_v9, %v6010_v1  ;;  %v1404_v44 = vadd.s32 1, %v3697_v31  ;;  %vm2930_vm4 = vcmp.lt.s32.totalorder %v2929_v23, 2 }
 0x2f5   :  { %v2936_v58 = vsel %vm2934_vm0, %v2935_v46, %v4010_v25  ;;  %v1365_v40 = vshrl.u32 %v1347_v39, %v1363_v37  ;;  %v1368_v7 = vadd.s32 127, %v1367_v48  ;;  %v2999_v63 = vadd.s32 %v2998_v49, %v2994_v60 }
 0x2f6   :  { %v2933_v51 = vsel %vm2931_vm15, %v4008_v20, %v2932_v2  ;;  %vm1405_vm3 = vcmp.gt.s32.totalorder %v1404_v44, 0  ;;  %v3761_v33 = vadd.s32 4294967169, %v3046_v6  ;;  %v1380_v1 = vsel %vm6034_vm14, 0, %v1378_v14 }
 0x2f7   :  { %v2937_v56 = vsel %vm2930_vm4, %v2933_v51, %v2936_v58  ;;  %v1366_v42 = vor.u32 %v1365_v40, %v1364_v29  ;;  %v1369_v45 = vshll.u32 %v1368_v7, 23  ;;  %v3000_v4 = vadd.s32 536870912, %v2999_v63 }
 0x2f8   :  { %v2938_v0 = vsel %vm2928_vm13, nan, %v2937_v56  ;;  %v1406_v36 = vsel %vm1405_vm3, %v1404_v44, 0  ;;  %v3042_v50 = vand.u32 2147483647, %v6016_v38  ;;  %v1402_v23 = vor.u32 8388608, %v1401_v47 }
 0x2f9   :  { %v3582_v3 = vmul.f32 0.088388346, %v2938_v0  ;;  %v1370_v52 = vor.u32 4788187, %v1369_v45  ;;  %v6062_v5 = vshrl.u32 %v3000_v4, 30  ;;  %v1408_v62 = vand.u32 31, %v1406_v36 }
 0x2fa   :  { %v3052_v54 = vadd.s32 1, %v3761_v33  ;;  %v1373_v10 = vcvt.s32.f32 %v1366_v42  ;;  %v6065_v13 = vand.u32 3, %v1380_v1  ;;  %v2995_v9 = vadd.s32 %v6009_v16, %v6029_v43 }
 0x2fb   :  { %3614 = vst [vmem:[#allocation2 + $0xc8] sm:$0xff] %v3582_v3  ;;  %v1371_v18 = vand.u32 2147483647, %v1370_v52  ;;  %v3002_v8 = vshll.u32 %v6062_v5, 30  ;;  %v1409_v24 = vsub.s32 32, %v1408_v62  ;;  %v6071_v31 = vshll.u32 %v1402_v23, 8 }
 0x2fc   :  { %v6075_v20 = vand.u32 8388607, %v3042_v50  ;;  %v1407_v59 = vshrl.u32 %v1406_v36, 5  ;;  %vm3053_vm5 = vcmp.gt.s32.totalorder %v3052_v54, 0  ;;  %v1411_v16 = vshll.u32 %v4084_v11, %v1408_v62 }
 0x2fd   :  { %v1374_v39 = vmul.f32 %v1373_v10, %v1371_v18  ;;  %v6069_v14 = vsub.s32 %v2999_v63, %v3002_v8  ;;  %v1412_v60 = vshrl.u32 %v4085_v15, %v1409_v24  ;;  %v1415_v6 = vshrl.u32 %v4086_v17, %v1409_v24 }
 0x2fe   :  { %v1418_v43 = vshrl.u32 %v4087_v19, %v1409_v24  ;;  %v1414_v37 = vshll.u32 %v4085_v15, %v1408_v62  ;;  %v1417_v48 = vshll.u32 %v4086_v17, %v1408_v62  ;;  %v1420_v47 = vshll.u32 %v4087_v19, %v1408_v62 }
 0x2ff   :  { %v1375_v25 = vxor.u32 2147483648, %v1374_v39  ;;  %v3005_v46 = vsub.s32 0, %v6069_v14  ;;  %v1421_v2 = vshrl.u32 %v4088_v21, %v1409_v24  ;;  %v3025_v44 = vsub.s32 4, %v6062_v5 }
 0x300   :  { %v1413_v58 = vor.u32 %v1412_v60, %v1411_v16  ;;  %v1416_v7 = vor.u32 %v1415_v6, %v1414_v37  ;;  %v1419_v63 = vor.u32 %v1418_v43, %v1417_v48  ;;  %v1423_v56 = vshll.u32 %v4088_v21, %v1408_v62 }
 0x301   :  { %v1376_v29 = vsel %vm1293_vm12, %v1375_v25, %v1374_v39  ;;  %v3758_v49 = vmin.u32 %v3005_v46, %v6069_v14  ;;  %v1422_v51 = vor.u32 %v1421_v2, %v1420_v47  ;;  %v1424_v42 = vshrl.u32 %v4089_v28, %v1409_v24  ;;  %v6107_v25 = vpop.f32.mrb[14].mxu1 }
 0x302   :  { %v1379_v40 = vsel %vm6034_vm14, %v5716_v57, %v1376_v29  ;;  %v1410_v45 = vshrl.u32 %v4084_v11, %v1409_v24  ;;  %vm1426_vm6 = vcmp.lt.s32.totalorder %v1407_v59, 1  ;;  %v3054_v4 = vsel %vm3053_vm5, %v3052_v54, 0 }
 0x303   :  { %4011 = vcosq.f32 %v1379_v40  ;;  %v3007_v33 = vclz %v3758_v49  ;;  %vm2941_vm7 = vcmp.lt.s32.totalorder %v5875_v32, 0  ;;  %v1425_v61 = vor.u32 %v1424_v42, %v1423_v56 }
 0x304   :  { %4013 = vsinq.f32 %v1379_v40  ;;  %vm1428_vm8 = vcmp.lt.s32.totalorder %v1407_v59, 3  ;;  %vm1429_vm9 = vcmp.lt.s32.totalorder %v1407_v59, 4  ;;  %v1434_v36 = vsel %vm1426_vm6, %v1413_v58, %v1416_v7 }
 0x305   :  { %v3759_v0 = vadd.s32 4294967294, %v3007_v33  ;;  %v1431_v1 = vsel %vm1429_vm9, %v1419_v63, 2102212464  ;;  %v1435_v3 = vsel %vm1429_vm9, %v1422_v51, 920167782  ;;  %v1438_v52 = vsel %vm1426_vm6, %v1416_v7, %v1419_v63 }
 0x306   :  { %vm1427_vm11 = vcmp.lt.s32.totalorder %v1407_v59, 2  ;;  %v1436_v23 = vsel %vm1428_vm8, %v1419_v63, %v1435_v3  ;;  %v1439_v62 = vsel %vm1429_vm9, %v1425_v61, 1326507024  ;;  %v1430_v54 = vsel %vm1426_vm6, %v1410_v45, %v1413_v58 }
 0x307   :  { %vm3760_vm10 = vcmp.lt.s32.totalorder %v3759_v0, 0  ;;  %v1437_v10 = vsel %vm1427_vm11, %v1434_v36, %v1436_v23  ;;  %v1440_v8 = vsel %vm1428_vm8, %v1422_v51, %v1439_v62  ;;  %vm1385_vm12 = vcmp.lt.s32.totalorder %v6065_v13, 2 }
 0x308   :  { %v3010_v18 = vsel %vm3760_vm10, 0, %v3759_v0  ;;  %v1432_v60 = vsel %vm1428_vm8, %v1416_v7, %v1431_v1  ;;  %v1441_v6 = vsel %vm1427_vm11, %v1438_v52, %v1440_v8  ;;  %vm1383_vm13 = vweird.f32 %v5716_v57 }
 0x309   :  { %v3011_v24 = vsub.s32 32, %v3010_v18  ;;  %v3015_v39 = vsub.s32 4294967266, %v3010_v18  ;;  %v6111_v46 = vmul.u32.u64.low %v6071_v31, %v1441_v6  ;;  %v6112_v16 = vmul.u32.u64.high %v6071_v31, %v1441_v6, %v6111_v46 }
 0x30a   :  { %v6115_v43 = vmul.u32.u64.low %v6071_v31, %v1437_v10  ;;  %v6116_v37 = vmul.u32.u64.high %v6071_v31, %v1437_v10, %v6115_v43  ;;  %v3012_v48 = vshll.u32 %v6069_v14, %v3010_v18  ;;  %v3056_v29 = vand.u32 31, %v3054_v4 }
 0x30b   :  { %v3013_v47 = vshrl.u32 %v2995_v9, %v3011_v24  ;;  %v3016_v2 = vadd.s32 127, %v3015_v39  ;;  %vm1386_vm14 = vcmp.eq.s32.totalorder %v6065_v13, 0  ;;  %vm1389_vm15 = vcmp.eq.s32.totalorder %v6065_v13, 2 }
 0x30c   :  { %v1433_v49 = vsel %vm1427_vm11, %v1430_v54, %v1432_v60  ;;  %v6125_v58 = vadd.f32 %v5684_v53, %v4204_v34  ;;  %v3050_v51 = vor.u32 8388608, %v6075_v20  ;;  %v3057_v33 = vsub.s32 32, %v3056_v29 }
 0x30d   :  { %v4012_v40 = vpop.eup %4011  ;;  %v3014_v7 = vor.u32 %v3013_v47, %v3012_v48  ;;  %v3017_v63 = vshll.u32 %v3016_v2, 23  ;;  %v3026_v56 = vsel %vm2941_vm7, %v3025_v44, %v6062_v5  ;;  %vm1451_vm0 = vc.u32 %v6112_v16, %v6115_v43 }
 0x30e   :  { %v4014_v14 = vpop.eup %4013  ;;  %v1390_v9 = vxor.u32 2147483648, %v4012_v40  ;;  %v1452_v59 = vadd.s32 1, %v6116_v37  ;;  %v1449_v45 = vmul.u32 %v6071_v31, %v1433_v49  ;;  %v3059_v0 = vshll.u32 %v4084_v11, %v3056_v29 }
 0x30f   :  { %v1387_v42 = vxor.u32 2147483648, %v4014_v14  ;;  %v3018_v53 = vor.u32 4788187, %v3017_v63  ;;  %v3021_v61 = vcvt.s32.f32 %v3014_v7  ;;  %v3060_v36 = vshrl.u32 %v4085_v15, %v3057_v33 }
 0x310   :  { %v1391_v20 = vsel %vm1389_vm15, %v1390_v9, %v4014_v14  ;;  %v1453_v1 = vsel %vm1451_vm0, %v1452_v59, %v6116_v37  ;;  %v3063_v52 = vshrl.u32 %v4086_v17, %v3057_v33  ;;  %v6145_v23 = vshrl.u32 %v3054_v4, 5 }
 0x311   :  { %v1388_v5 = vsel %vm1386_vm14, %v4012_v40, %v1387_v42  ;;  %v3019_v44 = vand.u32 2147483647, %v3018_v53  ;;  %v1454_v3 = vadd.s32 %v1453_v1, %v1449_v45  ;;  %v3061_v62 = vor.u32 %v3060_v36, %v3059_v0 }
 0x312   :  { %v1392_v31 = vsel %vm1385_vm12, %v1388_v5, %v1391_v20  ;;  %v3062_v18 = vshll.u32 %v4085_v15, %v3056_v29  ;;  %v3066_v24 = vshrl.u32 %v4087_v19, %v3057_v33  ;;  %v3065_v60 = vshll.u32 %v4086_v17, %v3056_v29 }
 0x313   :  { %v1393_v54 = vsel %vm1383_vm13, nan, %v1392_v31  ;;  %v3022_v10 = vmul.f32 %v3021_v61, %v3019_v44  ;;  %v1455_v8 = vadd.s32 536870912, %v1454_v3  ;;  %v3068_v6 = vshll.u32 %v4087_v19, %v3056_v29 }
 0x314   :  { %v3567_v39 = vmul.f32 0.088388346, %v1393_v54  ;;  %v3069_v13 = vshrl.u32 %v4088_v21, %v3057_v33  ;;  %v3064_v37 = vor.u32 %v3063_v52, %v3062_v18  ;;  %v3072_v48 = vshrl.u32 %v4089_v28, %v3057_v33  ;;  %v6200_v54 = vpop.f32.mrb[15].mxu0 }
 0x315   :  { %v3023_v46 = vxor.u32 2147483648, %v3022_v10  ;;  %v1456_v4 = vshrl.u32 %v1455_v8, 30  ;;  %vm6157_vm1 = vcmp.le.f32.partialorder %v2939_v12, 0.7853982  ;;  %v3071_v2 = vshll.u32 %v4088_v21, %v3056_v29 }
 0x316   :  { %3599 = vst [vmem:[#allocation2 + $0x50] sm:$0xff] %v3567_v39  ;;  %v3070_v47 = vor.u32 %v3069_v13, %v3068_v6  ;;  %v6162_v49 = vshll.u32 %v3050_v51, 8  ;;  %v3028_v7 = vsel %vm6157_vm1, 0, %v3026_v56  ;;  %v3067_v14 = vor.u32 %v3066_v24, %v3065_v60 }
 0x317   :  { %v3024_v40 = vsel %vm2941_vm7, %v3023_v46, %v3022_v10  ;;  %v1457_v63 = vshll.u32 %v1456_v4, 30  ;;  %v3073_v9 = vor.u32 %v3072_v48, %v3071_v2  ;;  %vm3074_vm2 = vcmp.lt.s32.totalorder %v6145_v23, 1 }
 0x318   :  { %v3027_v12 = vsel %vm6157_vm1, %v5875_v32, %v3024_v40  ;;  %v1500_v59 = vand.u32 2139095040, %v6125_v58  ;;  %vm3077_vm4 = vcmp.lt.s32.totalorder %v6145_v23, 4  ;;  %v3082_v51 = vsel %vm3074_vm2, %v3061_v62, %v3064_v37 }
 0x319   :  { %4015 = vcosq.f32 %v3027_v12  ;;  %v6173_v29 = vsub.s32 %v1454_v3, %v1457_v63  ;;  %v3058_v56 = vshrl.u32 %v4084_v11, %v3057_v33  ;;  %vm3076_vm3 = vcmp.lt.s32.totalorder %v6145_v23, 3 }
 0x31a   :  { %4017 = vsinq.f32 %v3027_v12  ;;  %v3083_v42 = vsel %vm3077_vm4, %v3070_v47, 920167782  ;;  %v1480_v45 = vsub.s32 4, %v1456_v4  ;;  %vm3075_vm5 = vcmp.lt.s32.totalorder %v6145_v23, 2 }
 0x31b   :  { %v1460_v53 = vsub.s32 0, %v6173_v29  ;;  %v3084_v0 = vsel %vm3076_vm3, %v3067_v14, %v3083_v42  ;;  %v3079_v20 = vsel %vm3077_vm4, %v3067_v14, 2102212464  ;;  %v3086_v1 = vsel %vm3074_vm2, %v3064_v37, %v3067_v14 }
 0x31c   :  { %v3085_v61 = vsel %vm3075_vm5, %v3082_v51, %v3084_v0  ;;  %v3087_v36 = vsel %vm3077_vm4, %v3073_v9, 1326507024  ;;  %v3032_v33 = vand.u32 3, %v3028_v7  ;;  %vm1396_vm6 = vcmp.lt.s32.totalorder %v5977_v22, 0 }
 0x31d   :  { %v3698_v5 = vmin.u32 %v1460_v53, %v6173_v29  ;;  %v1497_v44 = vand.u32 2147483647, %v6125_v58  ;;  %v3078_v3 = vsel %vm3074_vm2, %v3058_v56, %v3061_v62  ;;  %v3088_v52 = vsel %vm3076_vm3, %v3070_v47, %v3087_v36 }
 0x31e   :  { %v6196_v31 = vmul.u32.u64.low %v6162_v49, %v3085_v61  ;;  %v6197_v18 = vmul.u32.u64.high %v6162_v49, %v3085_v61, %v6196_v31  ;;  %v3080_v8 = vsel %vm3076_vm3, %v3064_v37, %v3079_v20  ;;  %v3089_v24 = vsel %vm3075_vm5, %v3086_v1, %v3088_v52 }
 0x31f   :  { %v1462_v10 = vclz %v3698_v5  ;;  %v1501_v39 = vshrl.u32 %v1500_v59, 23  ;;  %vm3031_vm7 = vweird.f32 %v5875_v32  ;;  %vm6209_vm8 = vcmp.le.f32.partialorder %v1394_v27, 0.7853982 }
 0x320   :  { %v1481_v60 = vsel %vm1396_vm6, %v1480_v45, %v1456_v4  ;;  %v6216_v6 = vmul.u32.u64.low %v6162_v49, %v3089_v24  ;;  %v6217_v13 = vmul.u32.u64.high %v6162_v49, %v3089_v24, %v6216_v6  ;;  %vm3033_vm9 = vcmp.lt.s32.totalorder %v3032_v33, 2 }
 0x321   :  { %vm3034_vm10 = vcmp.eq.s32.totalorder %v3032_v33, 0  ;;  %v3699_v46 = vadd.s32 4294967294, %v1462_v10  ;;  %v3701_v37 = vadd.s32 4294967169, %v1501_v39  ;;  %vm3037_vm11 = vcmp.eq.s32.totalorder %v3032_v33, 2 }
 0x322   :  { %v1450_v48 = vadd.s32 %v6115_v43, %v6112_v16  ;;  %v3081_v27 = vsel %vm3075_vm5, %v3078_v3, %v3080_v8  ;;  %v3100_v57 = vadd.s32 1, %v6197_v18  ;;  %v1483_v4 = vsel %vm6209_vm8, 0, %v1481_v60 }
 0x323   :  { %v4016_v47 = vpop.eup %4015  ;;  %vm3700_vm12 = vcmp.lt.s32.totalorder %v3699_v46, 0  ;;  %v1504_v2 = vand.u32 8388607, %v1497_v44  ;;  %v1507_v40 = vadd.s32 1, %v3701_v37  ;;  %vm3099_vm13 = vc.u32 %v6217_v13, %v6196_v31 }
 0x324   :  { %v4018_v7 = vpop.eup %4017  ;;  %v3038_v63 = vxor.u32 2147483648, %v4016_v47  ;;  %v1465_v14 = vsel %vm3700_vm12, 0, %v3699_v46  ;;  %v6232_v16 = vadd.f32 %v5753_v55, %v4204_v34  ;;  %v3097_v9 = vmul.u32 %v6162_v49, %v3081_v27 }
 0x325   :  { %v3035_v43 = vxor.u32 2147483648, %v4018_v7  ;;  %v1466_v23 = vsub.s32 32, %v1465_v14  ;;  %v1470_v12 = vsub.s32 4294967266, %v1465_v14  ;;  %v1467_v51 = vshll.u32 %v6173_v29, %v1465_v14 }
 0x326   :  { %v3039_v59 = vsel %vm3037_vm11, %v3038_v63, %v4018_v7  ;;  %v3101_v56 = vsel %vm3099_vm13, %v3100_v57, %v6197_v18  ;;  %vm1508_vm14 = vcmp.gt.s32.totalorder %v1507_v40, 0  ;;  %v1505_v20 = vor.u32 8388608, %v1504_v2 }
 0x327   :  { %v3036_v42 = vsel %vm3034_vm10, %v4016_v47, %v3035_v43  ;;  %v1468_v53 = vshrl.u32 %v1450_v48, %v1466_v23  ;;  %v1471_v45 = vadd.s32 127, %v1470_v12  ;;  %v3102_v0 = vadd.s32 %v3101_v56, %v3097_v9 }
 0x328   :  { %v3040_v55 = vsel %vm3033_vm9, %v3036_v42, %v3039_v59  ;;  %v1509_v61 = vsel %vm1508_vm14, %v1507_v40, 0  ;;  %v3148_v1 = vand.u32 2139095040, %v6232_v16  ;;  %v6245_v8 = vand.u32 3, %v1483_v4 }
 0x329   :  { %v3041_v49 = vsel %vm3031_vm7, nan, %v3040_v55  ;;  %v1469_v36 = vor.u32 %v1468_v53, %v1467_v51  ;;  %v1472_v5 = vshll.u32 %v1471_v45, 23  ;;  %v3103_v29 = vadd.s32 536870912, %v3102_v0 }
 0x32a   :  { %v3583_v3 = vmul.f32 0.088388346, %v3041_v49  ;;  %v1511_v52 = vand.u32 31, %v1509_v61  ;;  %v6247_v24 = vshll.u32 %v1505_v20, 8  ;;  %v3145_v39 = vand.u32 2147483647, %v6232_v16 }
 0x32b   :  { %v1473_v18 = vor.u32 4788187, %v1472_v5  ;;  %v6243_v10 = vshrl.u32 %v3103_v29, 30  ;;  %v1476_v6 = vcvt.s32.f32 %v1469_v36  ;;  %v3149_v46 = vshrl.u32 %v3148_v1, 23 }
 0x32c   :  { %3615 = vst [vmem:[#allocation2 + $0xd0] sm:$0xff] %v3583_v3  ;;  %v1512_v33 = vsub.s32 32, %v1511_v52  ;;  %v1514_v37 = vshll.u32 %v4084_v11, %v1511_v52  ;;  %v1517_v2 = vshll.u32 %v4085_v15, %v1511_v52  ;;  %v3098_v7 = vadd.s32 %v6196_v31, %v6217_v13 }
 0x32d   :  { %v1474_v60 = vand.u32 2147483647, %v1473_v18  ;;  %v3105_v32 = vshll.u32 %v6243_v10, 30  ;;  %v1510_v63 = vshrl.u32 %v1509_v61, 5  ;;  %v1520_v14 = vshll.u32 %v4086_v17, %v1511_v52 }
 0x32e   :  { %v1515_v48 = vshrl.u32 %v4085_v15, %v1512_v33  ;;  %v1518_v27 = vshrl.u32 %v4086_v17, %v1512_v33  ;;  %v1521_v57 = vshrl.u32 %v4087_v19, %v1512_v33  ;;  %v1524_v40 = vshrl.u32 %v4088_v21, %v1512_v33 }
 0x32f   :  { %v1477_v47 = vmul.f32 %v1476_v6, %v1474_v60  ;;  %v6255_v4 = vsub.s32 %v3102_v0, %v3105_v32  ;;  %v1523_v43 = vshll.u32 %v4087_v19, %v1511_v52  ;;  %v1526_v42 = vshll.u32 %v4088_v21, %v1511_v52 }
 0x330   :  { %v1516_v9 = vor.u32 %v1515_v48, %v1514_v37  ;;  %v1519_v59 = vor.u32 %v1518_v27, %v1517_v2  ;;  %v1522_v51 = vor.u32 %v1521_v57, %v1520_v14  ;;  %v1527_v53 = vshrl.u32 %v4089_v28, %v1512_v33  ;;  %v6285_v14 = vpop.f32.mrb[15].mxu1 }
 0x331   :  { %v1478_v23 = vxor.u32 2147483648, %v1477_v47  ;;  %v3108_v12 = vsub.s32 0, %v6255_v4  ;;  %v1525_v56 = vor.u32 %v1524_v40, %v1523_v43  ;;  %v1513_v13 = vshrl.u32 %v4084_v11, %v1512_v33 }
 0x332   :  { %v3765_v0 = vadd.s32 4294967169, %v3149_v46  ;;  %v1528_v20 = vor.u32 %v1527_v53, %v1526_v42  ;;  %vm1529_vm15 = vcmp.lt.s32.totalorder %v1510_v63, 1  ;;  %vm1530_vm0 = vcmp.lt.s32.totalorder %v1510_v63, 2 }
 0x333   :  { %v1479_v45 = vsel %vm1396_vm6, %v1478_v23, %v1477_v47  ;;  %v3762_v31 = vmin.u32 %v3108_v12, %v6255_v4  ;;  %vm3044_vm1 = vcmp.lt.s32.totalorder %v6016_v38, 0  ;;  %vm1531_vm2 = vcmp.lt.s32.totalorder %v1510_v63, 3 }
 0x334   :  { %v1482_v55 = vsel %vm6209_vm8, %v5977_v22, %v1479_v45  ;;  %vm1532_vm4 = vcmp.lt.s32.totalorder %v1510_v63, 4  ;;  %v1537_v49 = vsel %vm1529_vm15, %v1516_v9, %v1519_v59  ;;  %v1533_v29 = vsel %vm1529_vm15, %v1513_v13, %v1516_v9 }
 0x335   :  { %4019 = vcosq.f32 %v1482_v55  ;;  %v3110_v61 = vclz %v3762_v31  ;;  %v1534_v1 = vsel %vm1532_vm4, %v1522_v51, 2102212464  ;;  %v1538_v36 = vsel %vm1532_vm4, %v1525_v56, 920167782 }
 0x336   :  { %4021 = vsinq.f32 %v1482_v55  ;;  %v1539_v3 = vsel %vm1531_vm2, %v1522_v51, %v1538_v36  ;;  %v1541_v52 = vsel %vm1529_vm15, %v1519_v59, %v1522_v51  ;;  %v1535_v18 = vsel %vm1531_vm2, %v1519_v59, %v1534_v1 }
 0x337   :  { %v3763_v5 = vadd.s32 4294967294, %v3110_v61  ;;  %v1540_v62 = vsel %vm1530_vm0, %v1537_v49, %v1539_v3  ;;  %v1542_v33 = vsel %vm1532_vm4, %v1528_v20, 1326507024  ;;  %v3155_v60 = vadd.s32 1, %v3765_v0 }
 0x338   :  { %v1543_v6 = vsel %vm1531_vm2, %v1525_v56, %v1542_v33  ;;  %v6276_v32 = vmul.u32.u64.low %v6247_v24, %v1540_v62  ;;  %v6277_v46 = vmul.u32.u64.high %v6247_v24, %v1540_v62, %v6276_v32  ;;  %vm1489_vm5 = vcmp.eq.s32.totalorder %v6245_v8, 0 }
 0x339   :  { %vm3764_vm3 = vcmp.lt.s32.totalorder %v3763_v5, 0  ;;  %v3128_v48 = vsub.s32 4, %v6243_v10  ;;  %v1544_v27 = vsel %vm1530_vm0, %v1541_v52, %v1543_v6  ;;  %vm3156_vm6 = vcmp.gt.s32.totalorder %v3155_v60, 0 }
 0x33a   :  { %v3113_v37 = vsel %vm3764_vm3, 0, %v3763_v5  ;;  %vm1488_vm7 = vcmp.lt.s32.totalorder %v6245_v8, 2  ;;  %v1536_v2 = vsel %vm1530_vm0, %v1533_v29, %v1535_v18  ;;  %v3157_v40 = vsel %vm3156_vm6, %v3155_v60, 0 }
 0x33b   :  { %v3114_v57 = vsub.s32 32, %v3113_v37  ;;  %v3118_v47 = vsub.s32 4294967266, %v3113_v37  ;;  %vm1486_vm8 = vweird.f32 %v5977_v22  ;;  %vm1492_vm9 = vcmp.eq.s32.totalorder %v6245_v8, 2 }
 0x33c   :  { %v6290_v43 = vmul.u32.u64.low %v6247_v24, %v1544_v27  ;;  %v6291_v23 = vmul.u32.u64.high %v6247_v24, %v1544_v27, %v6290_v43  ;;  %v3159_v12 = vand.u32 31, %v3157_v40  ;;  %v3115_v9 = vshll.u32 %v6255_v4, %v3113_v37 }
 0x33d   :  { %v3116_v59 = vshrl.u32 %v3098_v7, %v3114_v57  ;;  %v3119_v51 = vadd.s32 127, %v3118_v47  ;;  %v1555_v56 = vadd.s32 1, %v6277_v46  ;;  %v6298_v63 = vsel %vm3044_vm1, %v3128_v48, %v6243_v10 }
 0x33e   :  { %v1552_v42 = vmul.u32 %v6247_v24, %v1536_v2  ;;  %v3152_v53 = vand.u32 8388607, %v3145_v39  ;;  %v3160_v45 = vsub.s32 32, %v3159_v12  ;;  %vm6305_vm10 = vcmp.le.f32.partialorder %v3042_v50, 0.7853982 }
 0x33f   :  { %v4020_v31 = vpop.eup %4019  ;;  %v3117_v7 = vor.u32 %v3116_v59, %v3115_v9  ;;  %v3120_v13 = vshll.u32 %v3119_v51, 23  ;;  %v6309_v0 = vshrl.u32 %v3157_v40, 5  ;;  %v3162_v10 = vshll.u32 %v4084_v11, %v3159_v12 }
 0x340   :  { %v4022_v55 = vpop.eup %4021  ;;  %v1493_v20 = vxor.u32 2147483648, %v4020_v31  ;;  %vm1554_vm11 = vc.u32 %v6291_v23, %v6276_v32  ;;  %v3165_v24 = vshll.u32 %v4085_v15, %v3159_v12  ;;  %v3171_v61 = vshll.u32 %v4087_v19, %v3159_v12 }
 0x341   :  { %v1490_v1 = vxor.u32 2147483648, %v4022_v55  ;;  %v3121_v50 = vor.u32 4788187, %v3120_v13  ;;  %v3124_v49 = vcvt.s32.f32 %v3117_v7  ;;  %v1556_v36 = vsel %vm1554_vm11, %v1555_v56, %v6277_v46 }
 0x342   :  { %v1494_v5 = vsel %vm1492_vm9, %v1493_v20, %v4022_v55  ;;  %v1557_v29 = vadd.s32 %v1556_v36, %v1552_v42  ;;  %v3163_v3 = vshrl.u32 %v4085_v15, %v3160_v45  ;;  %v3166_v52 = vshrl.u32 %v4086_v17, %v3160_v45 }
 0x343   :  { %v1491_v18 = vsel %vm1489_vm5, %v4020_v31, %v1490_v1  ;;  %v3122_v62 = vand.u32 2147483647, %v3121_v50  ;;  %v3169_v33 = vshrl.u32 %v4087_v19, %v3160_v45  ;;  %v3172_v60 = vshrl.u32 %v4088_v21, %v3160_v45 }
 0x344   :  { %v1495_v6 = vsel %vm1488_vm7, %v1491_v18, %v1494_v5  ;;  %v1558_v46 = vadd.s32 536870912, %v1557_v29  ;;  %v3164_v37 = vor.u32 %v3163_v3, %v3162_v10  ;;  %v3168_v48 = vshll.u32 %v4086_v17, %v3159_v12 }
 0x345   :  { %v1496_v27 = vsel %vm1486_vm8, nan, %v1495_v6  ;;  %v3125_v57 = vmul.f32 %v3124_v49, %v3122_v62  ;;  %v3167_v47 = vor.u32 %v3166_v52, %v3165_v24  ;;  %v3173_v2 = vor.u32 %v3172_v60, %v3171_v61 }
 0x346   :  { %v3568_v40 = vmul.f32 0.088388346, %v1496_v27  ;;  %v1559_v43 = vshrl.u32 %v1558_v46, 30  ;;  %v3153_v9 = vor.u32 8388608, %v3152_v53  ;;  %v3175_v59 = vshrl.u32 %v4089_v28, %v3160_v45 }
 0x347   :  { %v3126_v51 = vxor.u32 2147483648, %v3125_v57  ;;  %v3170_v56 = vor.u32 %v3169_v33, %v3168_v48  ;;  %v3174_v8 = vshll.u32 %v4088_v21, %v3159_v12  ;;  %v6334_v42 = vadd.f32 %v5843_v41, %v4206_v35 }
 0x348   :  { %3600 = vst [vmem:[#allocation2 + $0x58] sm:$0xff] %v3568_v40  ;;  %v3131_v22 = vsel %vm6305_vm10, 0, %v6298_v63  ;;  %v1560_v31 = vshll.u32 %v1559_v43, 30  ;;  %vm3177_vm12 = vcmp.lt.s32.totalorder %v6309_v0, 1  ;;  %vm3180_vm13 = vcmp.lt.s32.totalorder %v6309_v0, 4 }
 0x349   :  { %v3127_v53 = vsel %vm3044_vm1, %v3126_v51, %v3125_v57  ;;  %v3176_v7 = vor.u32 %v3175_v59, %v3174_v8  ;;  %v3185_v12 = vsel %vm3177_vm12, %v3164_v37, %v3167_v47  ;;  %v3186_v41 = vsel %vm3180_vm13, %v3173_v2, 920167782 }
 0x34a   :  { %v3130_v13 = vsel %vm6305_vm10, %v6016_v38, %v3127_v53  ;;  %v6350_v63 = vsub.s32 %v1557_v29, %v1560_v31  ;;  %vm3179_vm14 = vcmp.lt.s32.totalorder %v6309_v0, 3  ;;  %v3193_v10 = vshll.u32 %v3153_v9, 8 }
 0x34b   :  { %4023 = vcosq.f32 %v3130_v13  ;;  %v3161_v55 = vshrl.u32 %v4084_v11, %v3160_v45  ;;  %vm3178_vm15 = vcmp.lt.s32.totalorder %v6309_v0, 2  ;;  %v3187_v20 = vsel %vm3179_vm14, %v3170_v56, %v3186_v41 }
 0x34c   :  { %4025 = vsinq.f32 %v3130_v13  ;;  %v1563_v24 = vsub.s32 0, %v6350_v63  ;;  %v3182_v4 = vsel %vm3180_vm13, %v3170_v56, 2102212464  ;;  %v3188_v61 = vsel %vm3178_vm15, %v3185_v12, %v3187_v20 }
 0x34d   :  { %v3189_v1 = vsel %vm3177_vm12, %v3167_v47, %v3170_v56  ;;  %v3190_v45 = vsel %vm3180_vm13, %v3176_v7, 1326507024  ;;  %v6366_v50 = vmul.u32.u64.low %v3193_v10, %v3188_v61  ;;  %v6367_v49 = vmul.u32.u64.high %v3193_v10, %v3188_v61, %v6366_v50 }
 0x34e   :  { %v3702_v36 = vmin.u32 %v1563_v24, %v6350_v63  ;;  %v6373_v5 = vadd.f32 %v5928_v30, %v4206_v35  ;;  %v3135_v29 = vand.u32 3, %v3131_v22  ;;  %v3181_v3 = vsel %vm3177_vm12, %v3161_v55, %v3164_v37 }
 0x34f   :  { %v3183_v52 = vsel %vm3179_vm14, %v3167_v47, %v3182_v4  ;;  %v3191_v18 = vsel %vm3179_vm14, %v3173_v2, %v3190_v45  ;;  %v1583_v33 = vsub.s32 4, %v1559_v43  ;;  %v1603_v6 = vand.u32 2139095040, %v6334_v42 }
 0x350   :  { %v1565_v62 = vclz %v3702_v36  ;;  %v3192_v60 = vsel %vm3178_vm15, %v3189_v1, %v3191_v18  ;;  %vm1499_vm0 = vcmp.lt.s32.totalorder %v6125_v58, 0  ;;  %vm3134_vm1 = vweird.f32 %v6016_v38 }
 0x351   :  { %v6385_v30 = vmul.u32.u64.low %v3193_v10, %v3192_v60  ;;  %v6386_v46 = vmul.u32.u64.high %v3193_v10, %v3192_v60, %v6385_v30  ;;  %vm6391_vm2 = vcmp.le.f32.partialorder %v1497_v44, 0.7853982  ;;  %v3184_v27 = vsel %vm3178_vm15, %v3181_v3, %v3183_v52 }
 0x352   :  { %v3703_v48 = vadd.s32 4294967294, %v1565_v62  ;;  %v1600_v57 = vand.u32 2147483647, %v6334_v42  ;;  %v1604_v47 = vshrl.u32 %v1603_v6, 23  ;;  %vm3137_vm4 = vcmp.eq.s32.totalorder %v3135_v29, 0 }
 0x353   :  { %vm3140_vm3 = vcmp.eq.s32.totalorder %v3135_v29, 2  ;;  %v3203_v2 = vadd.s32 1, %v6367_v49  ;;  %v3251_v40 = vand.u32 2139095040, %v6373_v5  ;;  %v1553_v9 = vadd.s32 %v6276_v32, %v6291_v23 }
 0x354   :  { %vm3704_vm5 = vcmp.lt.s32.totalorder %v3703_v48, 0  ;;  %v1584_v44 = vsel %vm1499_vm0, %v1583_v33, %v1559_v43  ;;  %v3705_v59 = vadd.s32 4294967169, %v1604_v47  ;;  %v3200_v56 = vmul.u32 %v3193_v10, %v3184_v27 }
 0x355   :  { %v4024_v51 = vpop.eup %4023  ;;  %v1568_v0 = vsel %vm3704_vm5, 0, %v3703_v48  ;;  %vm3202_vm6 = vc.u32 %v6386_v46, %v6366_v50  ;;  %v3252_v8 = vshrl.u32 %v3251_v40, 23  ;;  %v1607_v12 = vand.u32 8388607, %v1600_v57 }
 0x356   :  { %v4026_v22 = vpop.eup %4025  ;;  %v3141_v31 = vxor.u32 2147483648, %v4024_v51  ;;  %v1569_v53 = vsub.s32 32, %v1568_v0  ;;  %v1573_v7 = vsub.s32 4294967266, %v1568_v0  ;;  %v1570_v23 = vshll.u32 %v6350_v63, %v1568_v0 }
 0x357   :  { %v3138_v32 = vxor.u32 2147483648, %v4026_v22  ;;  %v3204_v43 = vsel %vm3202_vm6, %v3203_v2, %v6367_v49  ;;  %v1610_v41 = vadd.s32 1, %v3705_v59  ;;  %vm3136_vm7 = vcmp.lt.s32.totalorder %v3135_v29, 2 }
 0x358   :  { %v3142_v13 = vsel %vm3140_vm3, %v3141_v31, %v4026_v22  ;;  %v1571_v10 = vshrl.u32 %v1553_v9, %v1569_v53  ;;  %v1574_v55 = vadd.s32 127, %v1573_v7  ;;  %v3205_v20 = vadd.s32 %v3204_v43, %v3200_v56 }
 0x359   :  { %v3139_v24 = vsel %vm3137_vm4, %v4024_v51, %v3138_v32  ;;  %vm1611_vm8 = vcmp.gt.s32.totalorder %v1610_v41, 0  ;;  %v3769_v4 = vadd.s32 4294967169, %v3252_v8  ;;  %v1586_v49 = vsel %vm6391_vm2, 0, %v1584_v44 }
 0x35a   :  { %v3143_v61 = vsel %vm3136_vm7, %v3139_v24, %v3142_v13  ;;  %v1572_v1 = vor.u32 %v1571_v10, %v1570_v23  ;;  %v1575_v45 = vshll.u32 %v1574_v55, 23  ;;  %v3206_v36 = vadd.s32 536870912, %v3205_v20 }
 0x35b   :  { %v3144_v63 = vsel %vm3134_vm1, nan, %v3143_v61  ;;  %v1612_v3 = vsel %vm1611_vm8, %v1610_v41, 0  ;;  %v3248_v52 = vand.u32 2147483647, %v6373_v5  ;;  %v1608_v29 = vor.u32 8388608, %v1607_v12 }
 0x35c   :  { %v3584_v18 = vmul.f32 0.088388346, %v3144_v63  ;;  %v1576_v62 = vor.u32 4788187, %v1575_v45  ;;  %v6417_v33 = vshrl.u32 %v3206_v36, 30  ;;  %v1614_v60 = vand.u32 31, %v1612_v3 }
 0x35d   :  { %v3258_v6 = vadd.s32 1, %v3769_v4  ;;  %v1579_v48 = vcvt.s32.f32 %v1572_v1  ;;  %v6420_v38 = vand.u32 3, %v1586_v49  ;;  %v3201_v47 = vadd.s32 %v6366_v50, %v6386_v46 }
 0x35e   :  { %3616 = vst [vmem:[#allocation2 + $0xd8] sm:$0xff] %v3584_v18  ;;  %v1577_v30 = vand.u32 2147483647, %v1576_v62  ;;  %v3208_v27 = vshll.u32 %v6417_v33, 30  ;;  %v1615_v2 = vsub.s32 32, %v1614_v60  ;;  %v6426_v44 = vshll.u32 %v1608_v29, 8 }
 0x35f   :  { %v6430_v59 = vand.u32 8388607, %v3248_v52  ;;  %v1613_v51 = vshrl.u32 %v1612_v3, 5  ;;  %vm3259_vm9 = vcmp.gt.s32.totalorder %v3258_v6, 0  ;;  %v1617_v50 = vshll.u32 %v4084_v11, %v1614_v60 }
 0x360   :  { %v1580_v40 = vmul.f32 %v1579_v48, %v1577_v30  ;;  %v6424_v9 = vsub.s32 %v3205_v20, %v3208_v27  ;;  %v1618_v0 = vshrl.u32 %v4085_v15, %v1615_v2  ;;  %v1621_v56 = vshrl.u32 %v4086_v17, %v1615_v2 }
 0x361   :  { %v1624_v46 = vshrl.u32 %v4087_v19, %v1615_v2  ;;  %v1620_v31 = vshll.u32 %v4085_v15, %v1614_v60  ;;  %v1623_v53 = vshll.u32 %v4086_v17, %v1614_v60  ;;  %v1626_v7 = vshll.u32 %v4087_v19, %v1614_v60 }
 0x362   :  { %v1581_v8 = vxor.u32 2147483648, %v1580_v40  ;;  %v3211_v22 = vsub.s32 0, %v6424_v9  ;;  %v1627_v12 = vshrl.u32 %v4088_v21, %v1615_v2  ;;  %v3231_v43 = vsub.s32 4, %v6417_v33 }
 0x363   :  { %v1619_v41 = vor.u32 %v1618_v0, %v1617_v50  ;;  %v1622_v10 = vor.u32 %v1621_v56, %v1620_v31  ;;  %v1625_v55 = vor.u32 %v1624_v46, %v1623_v53  ;;  %v1629_v4 = vshll.u32 %v4088_v21, %v1614_v60 }
 0x364   :  { %v1582_v32 = vsel %vm1499_vm0, %v1581_v8, %v1580_v40  ;;  %v3766_v23 = vmin.u32 %v3211_v22, %v6424_v9  ;;  %v1628_v20 = vor.u32 %v1627_v12, %v1626_v7  ;;  %v1630_v61 = vshrl.u32 %v4089_v28, %v1615_v2 }
 0x365   :  { %v1585_v13 = vsel %vm6391_vm2, %v6125_v58, %v1582_v32  ;;  %v1616_v1 = vshrl.u32 %v4084_v11, %v1615_v2  ;;  %vm1632_vm10 = vcmp.lt.s32.totalorder %v1613_v51, 1  ;;  %v3260_v45 = vsel %vm3259_vm9, %v3258_v6, 0 }
 0x366   :  { %4027 = vcosq.f32 %v1585_v13  ;;  %v3213_v24 = vclz %v3766_v23  ;;  %vm3147_vm11 = vcmp.lt.s32.totalorder %v6232_v16, 0  ;;  %v1631_v37 = vor.u32 %v1630_v61, %v1629_v4 }
 0x367   :  { %4029 = vsinq.f32 %v1585_v13  ;;  %vm1634_vm12 = vcmp.lt.s32.totalorder %v1613_v51, 3  ;;  %vm1635_vm13 = vcmp.lt.s32.totalorder %v1613_v51, 4  ;;  %v1640_v49 = vsel %vm1632_vm10, %v1619_v41, %v1622_v10 }
 0x368   :  { %v3767_v36 = vadd.s32 4294967294, %v3213_v24  ;;  %v1637_v63 = vsel %vm1635_vm13, %v1625_v55, 2102212464  ;;  %v1641_v3 = vsel %vm1635_vm13, %v1628_v20, 920167782  ;;  %v1644_v18 = vsel %vm1632_vm10, %v1622_v10, %v1625_v55 }
 0x369   :  { %vm1633_vm15 = vcmp.lt.s32.totalorder %v1613_v51, 2  ;;  %v1642_v62 = vsel %vm1634_vm12, %v1625_v55, %v1641_v3  ;;  %v1645_v29 = vsel %vm1635_vm13, %v1631_v37, 1326507024  ;;  %v1636_v6 = vsel %vm1632_vm10, %v1616_v1, %v1619_v41 }
 0x36a   :  { %vm3768_vm14 = vcmp.lt.s32.totalorder %v3767_v36, 0  ;;  %v1643_v30 = vsel %vm1633_vm15, %v1640_v49, %v1642_v62  ;;  %v1646_v48 = vsel %vm1634_vm12, %v1628_v20, %v1645_v29  ;;  %vm1591_vm0 = vcmp.lt.s32.totalorder %v6420_v38, 2 }
 0x36b   :  { %v3216_v60 = vsel %vm3768_vm14, 0, %v3767_v36  ;;  %v1638_v40 = vsel %vm1634_vm12, %v1622_v10, %v1637_v63  ;;  %v1647_v0 = vsel %vm1633_vm15, %v1644_v18, %v1646_v48  ;;  %vm1589_vm1 = vweird.f32 %v6125_v58 }
 0x36c   :  { %v3217_v27 = vsub.s32 32, %v3216_v60  ;;  %v3221_v2 = vsub.s32 4294967266, %v3216_v60  ;;  %v6464_v56 = vmul.u32.u64.low %v6426_v44, %v1647_v0  ;;  %v6465_v8 = vmul.u32.u64.high %v6426_v44, %v1647_v0, %v6464_v56 }
 0x36d   :  { %v6468_v22 = vmul.u32.u64.low %v6426_v44, %v1643_v30  ;;  %v6469_v50 = vmul.u32.u64.high %v6426_v44, %v1643_v30, %v6468_v22  ;;  %v3218_v46 = vshll.u32 %v6424_v9, %v3216_v60  ;;  %v3262_v7 = vand.u32 31, %v3260_v45 }
 0x36e   :  { %v3219_v31 = vshrl.u32 %v3201_v47, %v3217_v27  ;;  %v3222_v53 = vadd.s32 127, %v3221_v2  ;;  %vm1592_vm2 = vcmp.eq.s32.totalorder %v6420_v38, 0  ;;  %vm1595_vm4 = vcmp.eq.s32.totalorder %v6420_v38, 2 }
 0x36f   :  { %v1639_v12 = vsel %vm1633_vm15, %v1636_v6, %v1638_v40  ;;  %v6478_v32 = vadd.f32 %v6043_v26, %v4204_v34  ;;  %v3256_v10 = vor.u32 8388608, %v6430_v59  ;;  %v3263_v55 = vsub.s32 32, %v3262_v7 }
 0x370   :  { %v4028_v23 = vpop.eup %4027  ;;  %v3220_v41 = vor.u32 %v3219_v31, %v3218_v46  ;;  %v3223_v13 = vshll.u32 %v3222_v53, 23  ;;  %v3232_v20 = vsel %vm3147_vm11, %v3231_v43, %v6417_v33  ;;  %vm1657_vm3 = vc.u32 %v6465_v8, %v6468_v22 }
 0x371   :  { %v4030_v9 = vpop.eup %4029  ;;  %v1596_v47 = vxor.u32 2147483648, %v4028_v23  ;;  %v1658_v51 = vadd.s32 1, %v6469_v50  ;;  %v1655_v4 = vmul.u32 %v6426_v44, %v1639_v12  ;;  %v3265_v61 = vshll.u32 %v4084_v11, %v3262_v7 }
 0x372   :  { %v1593_v24 = vxor.u32 2147483648, %v4030_v9  ;;  %v3224_v26 = vor.u32 4788187, %v3223_v13  ;;  %v3227_v1 = vcvt.s32.f32 %v3220_v41  ;;  %v3266_v37 = vshrl.u32 %v4085_v15, %v3263_v55 }
 0x373   :  { %v1597_v59 = vsel %vm1595_vm4, %v1596_v47, %v4030_v9  ;;  %v1659_v36 = vsel %vm1657_vm3, %v1658_v51, %v6469_v50  ;;  %v3269_v49 = vshrl.u32 %v4086_v17, %v3263_v55  ;;  %v6498_v3 = vshrl.u32 %v3260_v45, 5 }
 0x374   :  { %v1594_v33 = vsel %vm1592_vm2, %v4028_v23, %v1593_v24  ;;  %v3225_v43 = vand.u32 2147483647, %v3224_v26  ;;  %v1660_v63 = vadd.s32 %v1659_v36, %v1655_v4  ;;  %v3267_v18 = vor.u32 %v3266_v37, %v3265_v61 }
 0x375   :  { %v1598_v44 = vsel %vm1591_vm0, %v1594_v33, %v1597_v59  ;;  %v3268_v62 = vshll.u32 %v4085_v15, %v3262_v7  ;;  %v3272_v30 = vshrl.u32 %v4087_v19, %v3263_v55  ;;  %v3271_v27 = vshll.u32 %v4086_v17, %v3262_v7 }
 0x376   :  { %v1599_v29 = vsel %vm1589_vm1, nan, %v1598_v44  ;;  %v3228_v60 = vmul.f32 %v3227_v1, %v3225_v43  ;;  %v1661_v6 = vadd.s32 536870912, %v1660_v63  ;;  %v3274_v2 = vshll.u32 %v4087_v19, %v3262_v7 }
 0x377   :  { %v3569_v48 = vmul.f32 0.088388346, %v1599_v29  ;;  %v3275_v38 = vshrl.u32 %v4088_v21, %v3263_v55  ;;  %v3270_v0 = vor.u32 %v3269_v49, %v3268_v62  ;;  %v3278_v56 = vshrl.u32 %v4089_v28, %v3263_v55 }
 0x378   :  { %v3229_v40 = vxor.u32 2147483648, %v3228_v60  ;;  %v1662_v45 = vshrl.u32 %v1661_v6, 30  ;;  %vm6510_vm5 = vcmp.le.f32.partialorder %v3145_v39, 0.7853982  ;;  %v3277_v46 = vshll.u32 %v4088_v21, %v3262_v7 }
 0x379   :  { %3601 = vst [vmem:[#allocation2 + $0x60] sm:$0xff] %v3569_v48  ;;  %v3276_v50 = vor.u32 %v3275_v38, %v3274_v2  ;;  %v6515_v31 = vshll.u32 %v3256_v10, 8  ;;  %v3234_v12 = vsel %vm6510_vm5, 0, %v3232_v20  ;;  %v3273_v41 = vor.u32 %v3272_v30, %v3271_v27 }
 0x37a   :  { %v3230_v53 = vsel %vm3147_vm11, %v3229_v40, %v3228_v60  ;;  %v1663_v23 = vshll.u32 %v1662_v45, 30  ;;  %v3279_v13 = vor.u32 %v3278_v56, %v3277_v46  ;;  %vm3280_vm6 = vcmp.lt.s32.totalorder %v6498_v3, 1 }
 0x37b   :  { %v3233_v39 = vsel %vm6510_vm5, %v6232_v16, %v3230_v53  ;;  %v1706_v9 = vand.u32 2139095040, %v6478_v32  ;;  %vm3283_vm7 = vcmp.lt.s32.totalorder %v6498_v3, 4  ;;  %v3288_v10 = vsel %vm3280_vm6, %v3267_v18, %v3270_v0 }
 0x37c   :  { %4031 = vcosq.f32 %v3233_v39  ;;  %v6526_v7 = vsub.s32 %v1660_v63, %v1663_v23  ;;  %v3264_v47 = vshrl.u32 %v4084_v11, %v3263_v55  ;;  %vm3282_vm8 = vcmp.lt.s32.totalorder %v6498_v3, 3 }
 0x37d   :  { %4033 = vsinq.f32 %v3233_v39  ;;  %v3289_v20 = vsel %vm3283_vm7, %v3276_v50, 920167782  ;;  %v1686_v24 = vsub.s32 4, %v1662_v45  ;;  %vm3281_vm9 = vcmp.lt.s32.totalorder %v6498_v3, 2 }
 0x37e   :  { %v1666_v51 = vsub.s32 0, %v6526_v7  ;;  %v3290_v26 = vsel %vm3282_vm8, %v3273_v41, %v3289_v20  ;;  %v3285_v4 = vsel %vm3283_vm7, %v3273_v41, 2102212464  ;;  %v3292_v59 = vsel %vm3280_vm6, %v3270_v0, %v3273_v41 }
 0x37f   :  { %v3291_v61 = vsel %vm3281_vm9, %v3288_v10, %v3290_v26  ;;  %v3293_v1 = vsel %vm3283_vm7, %v3279_v13, 1326507024  ;;  %v3238_v55 = vand.u32 3, %v3234_v12  ;;  %vm1602_vm10 = vcmp.lt.s32.totalorder %v6334_v42, 0 }
 0x380   :  { %v3706_v36 = vmin.u32 %v1666_v51, %v6526_v7  ;;  %v1703_v37 = vand.u32 2147483647, %v6478_v32  ;;  %v3284_v33 = vsel %vm3280_vm6, %v3264_v47, %v3267_v18  ;;  %v3294_v43 = vsel %vm3282_vm8, %v3276_v50, %v3293_v1 }
 0x381   :  { %v6549_v63 = vmul.u32.u64.low %v6515_v31, %v3291_v61  ;;  %v6550_v49 = vmul.u32.u64.high %v6515_v31, %v3291_v61, %v6549_v63  ;;  %v3286_v62 = vsel %vm3282_vm8, %v3270_v0, %v3285_v4  ;;  %v3295_v29 = vsel %vm3281_vm9, %v3292_v59, %v3294_v43 }
 0x382   :  { %v1668_v44 = vclz %v3706_v36  ;;  %v1707_v60 = vshrl.u32 %v1706_v9, 23  ;;  %vm3237_vm11 = vweird.f32 %v6232_v16  ;;  %vm6560_vm12 = vcmp.le.f32.partialorder %v1600_v57, 0.7853982 }
 0x383   :  { %v1687_v6 = vsel %vm1602_vm10, %v1686_v24, %v1662_v45  ;;  %v6567_v30 = vmul.u32.u64.low %v6515_v31, %v3295_v29  ;;  %v6568_v48 = vmul.u32.u64.high %v6515_v31, %v3295_v29, %v6567_v30  ;;  %vm3239_vm13 = vcmp.lt.s32.totalorder %v3238_v55, 2 }
 0x384   :  { %vm3240_vm14 = vcmp.eq.s32.totalorder %v3238_v55, 0  ;;  %v3707_v27 = vadd.s32 4294967294, %v1668_v44  ;;  %v3709_v2 = vadd.s32 4294967169, %v1707_v60  ;;  %vm3243_vm15 = vcmp.eq.s32.totalorder %v3238_v55, 2 }
 0x385   :  { %v1656_v38 = vadd.s32 %v6468_v22, %v6465_v8  ;;  %v3287_v57 = vsel %vm3281_vm9, %v3284_v33, %v3286_v62  ;;  %v3306_v40 = vadd.s32 1, %v6550_v49  ;;  %v1689_v45 = vsel %vm6560_vm12, 0, %v1687_v6 }
 0x386   :  { %v4032_v0 = vpop.eup %4031  ;;  %vm3708_vm0 = vcmp.lt.s32.totalorder %v3707_v27, 0  ;;  %v1710_v56 = vand.u32 8388607, %v1703_v37  ;;  %v1713_v58 = vadd.s32 1, %v3709_v2  ;;  %vm3305_vm1 = vc.u32 %v6568_v48, %v6549_v63 }
 0x387   :  { %v4034_v50 = vpop.eup %4033  ;;  %v3244_v46 = vxor.u32 2147483648, %v4032_v0  ;;  %v1671_v53 = vsel %vm3708_vm0, 0, %v3707_v27  ;;  %v6583_v8 = vadd.f32 %v6107_v25, %v4204_v34  ;;  %v3303_v23 = vmul.u32 %v6515_v31, %v3287_v57 }
 0x388   :  { %v3241_v22 = vxor.u32 2147483648, %v4034_v50  ;;  %v1672_v3 = vsub.s32 32, %v1671_v53  ;;  %v1676_v12 = vsub.s32 4294967266, %v1671_v53  ;;  %v1673_v39 = vshll.u32 %v6526_v7, %v1671_v53 }
 0x389   :  { %v3245_v41 = vsel %vm3243_vm15, %v3244_v46, %v4034_v50  ;;  %v3307_v13 = vsel %vm3305_vm1, %v3306_v40, %v6550_v49  ;;  %vm1714_vm2 = vcmp.gt.s32.totalorder %v1713_v58, 0  ;;  %v1711_v25 = vor.u32 8388608, %v1710_v56 }
 0x38a   :  { %v3242_v9 = vsel %vm3240_vm14, %v4032_v0, %v3241_v22  ;;  %v1674_v10 = vshrl.u32 %v1656_v38, %v1672_v3  ;;  %v1677_v47 = vadd.s32 127, %v1676_v12  ;;  %v3308_v20 = vadd.s32 %v3307_v13, %v3303_v23 }
 0x38b   :  { %v3246_v34 = vsel %vm3239_vm13, %v3242_v9, %v3245_v41  ;;  %v1715_v51 = vsel %vm1714_vm2, %v1713_v58, 0  ;;  %v3354_v24 = vand.u32 2139095040, %v6583_v8  ;;  %v6596_v33 = vand.u32 3, %v1689_v45 }
 0x38c   :  { %v3247_v31 = vsel %vm3237_vm11, nan, %v3246_v34  ;;  %v1675_v26 = vor.u32 %v1674_v10, %v1673_v39  ;;  %v1678_v4 = vshll.u32 %v1677_v47, 23  ;;  %v3309_v7 = vadd.s32 536870912, %v3308_v20 }
 0x38d   :  { %v3585_v61 = vmul.f32 0.088388346, %v3247_v31  ;;  %v1717_v59 = vand.u32 31, %v1715_v51  ;;  %v6598_v43 = vshll.u32 %v1711_v25, 8  ;;  %v3351_v49 = vand.u32 2147483647, %v6583_v8 }
 0x38e   :  { %v1679_v1 = vor.u32 4788187, %v1678_v4  ;;  %v6594_v36 = vshrl.u32 %v3309_v7, 30  ;;  %v1682_v62 = vcvt.s32.f32 %v1675_v26  ;;  %v3355_v29 = vshrl.u32 %v3354_v24, 23 }
 0x38f   :  { %3617 = vst [vmem:[#allocation2 + $0xe0] sm:$0xff] %v3585_v61  ;;  %v1718_v55 = vsub.s32 32, %v1717_v59  ;;  %v1720_v60 = vshll.u32 %v4084_v11, %v1717_v59  ;;  %v1723_v57 = vshll.u32 %v4085_v15, %v1717_v59  ;;  %v3304_v0 = vadd.s32 %v6549_v63, %v6568_v48 }
 0x390   :  { %v1680_v44 = vand.u32 2147483647, %v1679_v1  ;;  %v3311_v16 = vshll.u32 %v6594_v36, 30  ;;  %v1716_v45 = vshrl.u32 %v1715_v51, 5  ;;  %v1726_v56 = vshll.u32 %v4086_v17, %v1717_v59 }
 0x391   :  { %v1721_v6 = vshrl.u32 %v4085_v15, %v1718_v55  ;;  %v1724_v30 = vshrl.u32 %v4086_v17, %v1718_v55  ;;  %v1727_v27 = vshrl.u32 %v4087_v19, %v1718_v55  ;;  %v1730_v40 = vshrl.u32 %v4088_v21, %v1718_v55 }
 0x392   :  { %v1683_v2 = vmul.f32 %v1682_v62, %v1680_v44  ;;  %v6606_v38 = vsub.s32 %v3308_v20, %v3311_v16  ;;  %v1729_v58 = vshll.u32 %v4087_v19, %v1717_v59  ;;  %v1732_v23 = vshll.u32 %v4088_v21, %v1717_v59 }
 0x393   :  { %v1722_v53 = vor.u32 %v1721_v6, %v1720_v60  ;;  %v1725_v22 = vor.u32 %v1724_v30, %v1723_v57  ;;  %v1728_v3 = vor.u32 %v1727_v27, %v1726_v56  ;;  %v1733_v41 = vshrl.u32 %v4089_v28, %v1718_v55 }
 0x394   :  { %v1684_v50 = vxor.u32 2147483648, %v1683_v2  ;;  %v3314_v46 = vsub.s32 0, %v6606_v38  ;;  %v1731_v12 = vor.u32 %v1730_v40, %v1729_v58  ;;  %v1719_v48 = vshrl.u32 %v4084_v11, %v1718_v55 }
 0x395   :  { %v3773_v13 = vadd.s32 4294967169, %v3355_v29  ;;  %v1734_v10 = vor.u32 %v1733_v41, %v1732_v23  ;;  %vm1735_vm4 = vcmp.lt.s32.totalorder %v1716_v45, 1  ;;  %vm1736_vm3 = vcmp.lt.s32.totalorder %v1716_v45, 2 }
 0x396   :  { %v1685_v39 = vsel %vm1602_vm10, %v1684_v50, %v1683_v2  ;;  %v3770_v63 = vmin.u32 %v3314_v46, %v6606_v38  ;;  %vm3250_vm5 = vcmp.lt.s32.totalorder %v6373_v5, 0  ;;  %vm1737_vm6 = vcmp.lt.s32.totalorder %v1716_v45, 3 }
 0x397   :  { %v1688_v9 = vsel %vm6560_vm12, %v6334_v42, %v1685_v39  ;;  %vm1738_vm7 = vcmp.lt.s32.totalorder %v1716_v45, 4  ;;  %v1743_v34 = vsel %vm1735_vm4, %v1722_v53, %v1725_v22  ;;  %v1739_v24 = vsel %vm1735_vm4, %v1719_v48, %v1722_v53 }
 0x398   :  { %4035 = vcosq.f32 %v1688_v9  ;;  %v3316_v47 = vclz %v3770_v63  ;;  %v1740_v20 = vsel %vm1738_vm7, %v1728_v3, 2102212464  ;;  %v1744_v25 = vsel %vm1738_vm7, %v1731_v12, 920167782 }
 0x399   :  { %4037 = vsinq.f32 %v1688_v9  ;;  %v1745_v31 = vsel %vm1737_vm6, %v1728_v3, %v1744_v25  ;;  %v1747_v26 = vsel %vm1735_vm4, %v1725_v22, %v1728_v3  ;;  %v1741_v4 = vsel %vm1737_vm6, %v1725_v22, %v1740_v20 }
 0x39a   :  { %v3771_v51 = vadd.s32 4294967294, %v3316_v47  ;;  %v1746_v18 = vsel %vm1736_vm3, %v1743_v34, %v1745_v31  ;;  %v1748_v7 = vsel %vm1738_vm7, %v1734_v10, 1326507024  ;;  %v3361_v61 = vadd.s32 1, %v3773_v13 }
 0x39b   :  { %v1749_v59 = vsel %vm1737_vm6, %v1731_v12, %v1748_v7  ;;  %v6627_v1 = vmul.u32.u64.low %v6598_v43, %v1746_v18  ;;  %v6628_v55 = vmul.u32.u64.high %v6598_v43, %v1746_v18, %v6627_v1  ;;  %vm1695_vm9 = vcmp.eq.s32.totalorder %v6596_v33, 0 }
 0x39c   :  { %vm3772_vm8 = vcmp.lt.s32.totalorder %v3771_v51, 0  ;;  %v3334_v62 = vsub.s32 4, %v6594_v36  ;;  %v1750_v16 = vsel %vm1736_vm3, %v1747_v26, %v1749_v59  ;;  %vm3362_vm10 = vcmp.gt.s32.totalorder %v3361_v61, 0 }
 0x39d   :  { %v3319_v44 = vsel %vm3772_vm8, 0, %v3771_v51  ;;  %vm1694_vm11 = vcmp.lt.s32.totalorder %v6596_v33, 2  ;;  %v1742_v6 = vsel %vm1736_vm3, %v1739_v24, %v1741_v4  ;;  %v3363_v30 = vsel %vm3362_vm10, %v3361_v61, 0 }
 0x39e   :  { %v3320_v29 = vsub.s32 32, %v3319_v44  ;;  %v3324_v60 = vsub.s32 4294967266, %v3319_v44  ;;  %vm1692_vm12 = vweird.f32 %v6334_v42  ;;  %vm1698_vm13 = vcmp.eq.s32.totalorder %v6596_v33, 2 }
 0x39f   :  { %v6639_v27 = vmul.u32.u64.low %v6598_v43, %v1750_v16  ;;  %v6640_v2 = vmul.u32.u64.high %v6598_v43, %v1750_v16, %v6639_v27  ;;  %v3365_v57 = vand.u32 31, %v3363_v30  ;;  %v3321_v40 = vshll.u32 %v6606_v38, %v3319_v44 }
 0x3a0   :  { %v3322_v56 = vshrl.u32 %v3304_v0, %v3320_v29  ;;  %v3325_v58 = vadd.s32 127, %v3324_v60  ;;  %v1761_v50 = vadd.s32 1, %v6628_v55  ;;  %v6647_v45 = vsel %vm3250_vm5, %v3334_v62, %v6594_v36 }
 0x3a1   :  { %v1758_v46 = vmul.u32 %v6598_v43, %v1742_v6  ;;  %v3358_v53 = vand.u32 8388607, %v3351_v49  ;;  %v3366_v22 = vsub.s32 32, %v3365_v57  ;;  %vm6654_vm14 = vcmp.le.f32.partialorder %v3248_v52, 0.7853982 }
 0x3a2   :  { %v4036_v3 = vpop.eup %4035  ;;  %v3323_v0 = vor.u32 %v3322_v56, %v3321_v40  ;;  %v3326_v12 = vshll.u32 %v3325_v58, 23  ;;  %v6658_v23 = vshrl.u32 %v3363_v30, 5  ;;  %v3368_v36 = vshll.u32 %v4084_v11, %v3365_v57 }
 0x3a3   :  { %v4038_v41 = vpop.eup %4037  ;;  %v1699_v39 = vxor.u32 2147483648, %v4036_v3  ;;  %vm1760_vm15 = vc.u32 %v6640_v2, %v6627_v1  ;;  %v3371_v43 = vshll.u32 %v4085_v15, %v3365_v57  ;;  %v3377_v63 = vshll.u32 %v4087_v19, %v3365_v57 }
 0x3a4   :  { %v1696_v48 = vxor.u32 2147483648, %v4038_v41  ;;  %v3327_v52 = vor.u32 4788187, %v3326_v12  ;;  %v3330_v13 = vcvt.s32.f32 %v3323_v0  ;;  %v1762_v9 = vsel %vm1760_vm15, %v1761_v50, %v6628_v55 }
 0x3a5   :  { %v1700_v10 = vsel %vm1698_vm13, %v1699_v39, %v4038_v41  ;;  %v1763_v47 = vadd.s32 %v1762_v9, %v1758_v46  ;;  %v3369_v20 = vshrl.u32 %v4085_v15, %v3366_v22  ;;  %v3372_v34 = vshrl.u32 %v4086_v17, %v3366_v22 }
 0x3a6   :  { %v1697_v25 = vsel %vm1695_vm9, %v4036_v3, %v1696_v48  ;;  %v3328_v51 = vand.u32 2147483647, %v3327_v52  ;;  %v3375_v24 = vshrl.u32 %v4087_v19, %v3366_v22  ;;  %v3378_v31 = vshrl.u32 %v4088_v21, %v3366_v22 }
 0x3a7   :  { %v1701_v26 = vsel %vm1694_vm11, %v1697_v25, %v1700_v10  ;;  %v1764_v4 = vadd.s32 536870912, %v1763_v47  ;;  %v3370_v18 = vor.u32 %v3369_v20, %v3368_v36  ;;  %v3374_v7 = vshll.u32 %v4086_v17, %v3365_v57 }
 0x3a8   :  { %v1702_v61 = vsel %vm1692_vm12, nan, %v1701_v26  ;;  %v3331_v59 = vmul.f32 %v3330_v13, %v3328_v51  ;;  %v3373_v55 = vor.u32 %v3372_v34, %v3371_v43  ;;  %v3379_v44 = vor.u32 %v3378_v31, %v3377_v63 }
 0x3a9   :  { %v3570_v62 = vmul.f32 0.088388346, %v1702_v61  ;;  %v1765_v16 = vshrl.u32 %v1764_v4, 30  ;;  %v3359_v29 = vor.u32 8388608, %v3358_v53  ;;  %v3381_v60 = vshrl.u32 %v4089_v28, %v3366_v22 }
 0x3aa   :  { %v3332_v6 = vxor.u32 2147483648, %v3331_v59  ;;  %v3376_v30 = vor.u32 %v3375_v24, %v3374_v7  ;;  %v3380_v33 = vshll.u32 %v4088_v21, %v3365_v57  ;;  %v6683_v27 = vadd.f32 %v6200_v54, %v4206_v35 }
 0x3ab   :  { %3602 = vst [vmem:[#allocation2 + $0x68] sm:$0xff] %v3570_v62  ;;  %v3337_v42 = vsel %vm6654_vm14, 0, %v6647_v45  ;;  %v1766_v40 = vshll.u32 %v1765_v16, 30  ;;  %vm3383_vm0 = vcmp.lt.s32.totalorder %v6658_v23, 1  ;;  %vm3386_vm1 = vcmp.lt.s32.totalorder %v6658_v23, 4 }
 0x3ac   :  { %v3333_v56 = vsel %vm3250_vm5, %v3332_v6, %v3331_v59  ;;  %v3382_v58 = vor.u32 %v3381_v60, %v3380_v33  ;;  %v3391_v57 = vsel %vm3383_vm0, %v3370_v18, %v3373_v55  ;;  %v3392_v54 = vsel %vm3386_vm1, %v3379_v44, 920167782 }
 0x3ad   :  { %v3336_v50 = vsel %vm6654_vm14, %v6373_v5, %v3333_v56  ;;  %v6699_v45 = vsub.s32 %v1763_v47, %v1766_v40  ;;  %vm3385_vm2 = vcmp.lt.s32.totalorder %v6658_v23, 3  ;;  %v3399_v46 = vshll.u32 %v3359_v29, 8 }
 0x3ae   :  { %4039 = vcosq.f32 %v3336_v50  ;;  %v3367_v53 = vshrl.u32 %v4084_v11, %v3366_v22  ;;  %vm3384_vm4 = vcmp.lt.s32.totalorder %v6658_v23, 2  ;;  %v3393_v3 = vsel %vm3385_vm2, %v3376_v30, %v3392_v54 }
 0x3af   :  { %4041 = vsinq.f32 %v3336_v50  ;;  %v1769_v0 = vsub.s32 0, %v6699_v45  ;;  %v3388_v38 = vsel %vm3386_vm1, %v3376_v30, 2102212464  ;;  %v3394_v12 = vsel %vm3384_vm4, %v3391_v57, %v3393_v3 }
 0x3b0   :  { %v3395_v36 = vsel %vm3383_vm0, %v3373_v55, %v3376_v30  ;;  %v3396_v22 = vsel %vm3386_vm1, %v3382_v58, 1326507024  ;;  %v6715_v41 = vmul.u32.u64.low %v3399_v46, %v3394_v12  ;;  %v6716_v39 = vmul.u32.u64.high %v3399_v46, %v3394_v12, %v6715_v41 }
 0x3b1   :  { %v3710_v43 = vmin.u32 %v1769_v0, %v6699_v45  ;;  %v6722_v63 = vadd.f32 %v6285_v14, %v4206_v35  ;;  %v3341_v48 = vand.u32 3, %v3337_v42  ;;  %v3387_v52 = vsel %vm3383_vm0, %v3367_v53, %v3370_v18 }
 0x3b2   :  { %v3389_v13 = vsel %vm3385_vm2, %v3373_v55, %v3388_v38  ;;  %v3397_v9 = vsel %vm3385_vm2, %v3379_v44, %v3396_v22  ;;  %v1789_v47 = vsub.s32 4, %v1765_v16  ;;  %v1809_v34 = vand.u32 2139095040, %v6683_v27 }
 0x3b3   :  { %v1771_v10 = vclz %v3710_v43  ;;  %v3398_v20 = vsel %vm3384_vm4, %v3395_v36, %v3397_v9  ;;  %vm1705_vm3 = vcmp.lt.s32.totalorder %v6478_v32, 0  ;;  %vm3340_vm5 = vweird.f32 %v6373_v5 }
 0x3b4   :  { %v6734_v35 = vmul.u32.u64.low %v3399_v46, %v3398_v20  ;;  %v6735_v14 = vmul.u32.u64.high %v3399_v46, %v3398_v20, %v6734_v35  ;;  %vm6740_vm6 = vcmp.le.f32.partialorder %v1703_v37, 0.7853982  ;;  %v3390_v24 = vsel %vm3384_vm4, %v3387_v52, %v3389_v13 }
 0x3b5   :  { %v3711_v51 = vadd.s32 4294967294, %v1771_v10  ;;  %v1810_v31 = vshrl.u32 %v1809_v34, 23  ;;  %vm3343_vm7 = vcmp.eq.s32.totalorder %v3341_v48, 0  ;;  %vm3346_vm8 = vcmp.eq.s32.totalorder %v3341_v48, 2 }
 0x3b6   :  { %v3409_v26 = vadd.s32 1, %v6716_v39  ;;  %v3457_v4 = vand.u32 2139095040, %v6722_v63  ;;  %v1759_v18 = vadd.s32 %v6627_v1, %v6640_v2  ;;  %v1790_v37 = vsel %vm1705_vm3, %v1789_v47, %v1765_v16 }
 0x3b7   :  { %vm3712_vm9 = vcmp.lt.s32.totalorder %v3711_v51, 0  ;;  %v3713_v7 = vadd.s32 4294967169, %v1810_v31  ;;  %v3406_v55 = vmul.u32 %v3399_v46, %v3390_v24  ;;  %vm3408_vm10 = vc.u32 %v6735_v14, %v6715_v41 }
 0x3b8   :  { %v4040_v61 = vpop.eup %4039  ;;  %v1774_v59 = vsel %vm3712_vm9, 0, %v3711_v51  ;;  %v1806_v23 = vand.u32 2147483647, %v6683_v27  ;;  %v3458_v6 = vshrl.u32 %v3457_v4, 23  ;;  %v3410_v2 = vsel %vm3408_vm10, %v3409_v26, %v6716_v39 }
 0x3b9   :  { %v4042_v44 = vpop.eup %4041  ;;  %v3347_v62 = vxor.u32 2147483648, %v4040_v61  ;;  %v1775_v29 = vsub.s32 32, %v1774_v59  ;;  %v1779_v60 = vsub.s32 4294967266, %v1774_v59  ;;  %v1776_v1 = vshll.u32 %v6699_v45, %v1774_v59 }
 0x3ba   :  { %v3344_v30 = vxor.u32 2147483648, %v4042_v44  ;;  %v1816_v16 = vadd.s32 1, %v3713_v7  ;;  %v3411_v56 = vadd.s32 %v3410_v2, %v3406_v55  ;;  %vm3342_vm11 = vcmp.lt.s32.totalorder %v3341_v48, 2 }
 0x3bb   :  { %v3348_v33 = vsel %vm3346_vm8, %v3347_v62, %v4042_v44  ;;  %v1777_v42 = vshrl.u32 %v1759_v18, %v1775_v29  ;;  %v1780_v40 = vadd.s32 127, %v1779_v60  ;;  %v1813_v57 = vand.u32 8388607, %v1806_v23 }
 0x3bc   :  { %v3345_v58 = vsel %vm3343_vm7, %v4040_v61, %v3344_v30  ;;  %vm1817_vm12 = vcmp.gt.s32.totalorder %v1816_v16, 0  ;;  %v3412_v53 = vadd.s32 536870912, %v3411_v56  ;;  %v1792_v3 = vsel %vm6740_vm6, 0, %v1790_v37 }
 0x3bd   :  { %v3349_v54 = vsel %vm3342_vm11, %v3345_v58, %v3348_v33  ;;  %v1778_v50 = vor.u32 %v1777_v42, %v1776_v1  ;;  %v1781_v46 = vshll.u32 %v1780_v40, 23  ;;  %v1818_v0 = vsel %vm1817_vm12, %v1816_v16, 0 }
 0x3be   :  { %v3350_v45 = vsel %vm3340_vm5, nan, %v3349_v54  ;;  %v6765_v36 = vshrl.u32 %v3412_v53, 30  ;;  %v3777_v22 = vadd.s32 4294967169, %v3458_v6  ;;  %v1814_v39 = vor.u32 8388608, %v1813_v57 }
 0x3bf   :  { %v3586_v38 = vmul.f32 0.088388346, %v3350_v45  ;;  %v1782_v12 = vor.u32 4788187, %v1781_v46  ;;  %v1820_v43 = vand.u32 31, %v1818_v0  ;;  %v1785_v52 = vcvt.s32.f32 %v1778_v50 }
 0x3c0   :  { %v3414_v13 = vshll.u32 %v6765_v36, 30  ;;  %v6768_v9 = vand.u32 3, %v1792_v3  ;;  %v3454_v10 = vand.u32 2147483647, %v6722_v63  ;;  %v3407_v20 = vadd.s32 %v6715_v41, %v6735_v14 }
 0x3c1   :  { %3618 = vst [vmem:[#allocation2 + $0xe8] sm:$0xff] %v3586_v38  ;;  %v1783_v48 = vand.u32 2147483647, %v1782_v12  ;;  %v1821_v5 = vsub.s32 32, %v1820_v43  ;;  %v3464_v35 = vadd.s32 1, %v3777_v22  ;;  %v1819_v51 = vshrl.u32 %v1818_v0, 5 }
 0x3c2   :  { %v6773_v34 = vsub.s32 %v3411_v56, %v3414_v13  ;;  %v6777_v26 = vshll.u32 %v1814_v39, 8  ;;  %v1823_v37 = vshll.u32 %v4084_v11, %v1820_v43  ;;  %v1826_v61 = vshll.u32 %v4085_v15, %v1820_v43 }
 0x3c3   :  { %v1786_v47 = vmul.f32 %v1785_v52, %v1783_v48  ;;  %v1824_v24 = vshrl.u32 %v4085_v15, %v1821_v5  ;;  %v1827_v31 = vshrl.u32 %v4086_v17, %v1821_v5  ;;  %v1830_v7 = vshrl.u32 %v4087_v19, %v1821_v5 }
 0x3c4   :  { %v3417_v18 = vsub.s32 0, %v6773_v34  ;;  %v1829_v41 = vshll.u32 %v4086_v17, %v1820_v43  ;;  %v1832_v14 = vshll.u32 %v4087_v19, %v1820_v43  ;;  %v1833_v59 = vshrl.u32 %v4088_v21, %v1821_v5 }
 0x3c5   :  { %v1787_v4 = vxor.u32 2147483648, %v1786_v47  ;;  %v1825_v62 = vor.u32 %v1824_v24, %v1823_v37  ;;  %vm3465_vm13 = vcmp.gt.s32.totalorder %v3464_v35, 0  ;;  %v1828_v60 = vor.u32 %v1827_v31, %v1826_v61 }
 0x3c6   :  { %v3774_v44 = vmin.u32 %v3417_v18, %v6773_v34  ;;  %v1831_v6 = vor.u32 %v1830_v7, %v1829_v41  ;;  %v1834_v30 = vor.u32 %v1833_v59, %v1832_v14  ;;  %v1835_v2 = vshll.u32 %v4088_v21, %v1820_v43 }
 0x3c7   :  { %v1788_v55 = vsel %vm1705_vm3, %v1787_v4, %v1786_v47  ;;  %v1836_v16 = vshrl.u32 %v4089_v28, %v1821_v5  ;;  %v1822_v33 = vshrl.u32 %v4084_v11, %v1821_v5  ;;  %vm1838_vm14 = vcmp.lt.s32.totalorder %v1819_v51, 1 }
 0x3c8   :  { %v1791_v29 = vsel %vm6740_vm6, %v6478_v32, %v1788_v55  ;;  %v3419_v1 = vclz %v3774_v44  ;;  %v3466_v42 = vsel %vm3465_vm13, %v3464_v35, 0  ;;  %vm1840_vm15 = vcmp.lt.s32.totalorder %v1819_v51, 3 }
 0x3c9   :  { %4043 = vcosq.f32 %v1791_v29  ;;  %v1837_v56 = vor.u32 %v1836_v16, %v1835_v2  ;;  %vm1841_vm0 = vcmp.lt.s32.totalorder %v1819_v51, 4  ;;  %v1846_v58 = vsel %vm1838_vm14, %v1825_v62, %v1828_v60 }
 0x3ca   :  { %4045 = vsinq.f32 %v1791_v29  ;;  %v3775_v40 = vadd.s32 4294967294, %v3419_v1  ;;  %v1843_v25 = vsel %vm1841_vm0, %v1831_v6, 2102212464  ;;  %v1847_v57 = vsel %vm1841_vm0, %v1834_v30, 920167782 }
 0x3cb   :  { %v1850_v54 = vsel %vm1838_vm14, %v1828_v60, %v1831_v6  ;;  %vm1839_vm2 = vcmp.lt.s32.totalorder %v1819_v51, 2  ;;  %v1848_v50 = vsel %vm1840_vm15, %v1831_v6, %v1847_v57  ;;  %v1851_v46 = vsel %vm1841_vm0, %v1837_v56, 1326507024 }
 0x3cc   :  { %vm3776_vm1 = vcmp.lt.s32.totalorder %v3775_v40, 0  ;;  %v1842_v45 = vsel %vm1838_vm14, %v1822_v33, %v1825_v62  ;;  %v1849_v3 = vsel %vm1839_vm2, %v1846_v58, %v1848_v50  ;;  %v1852_v0 = vsel %vm1840_vm15, %v1834_v30, %v1851_v46 }
 0x3cd   :  { %v3422_v53 = vsel %vm3776_vm1, 0, %v3775_v40  ;;  %v1844_v22 = vsel %vm1840_vm15, %v1828_v60, %v1843_v25  ;;  %v1853_v39 = vsel %vm1839_vm2, %v1850_v54, %v1852_v0  ;;  %vm1795_vm4 = vweird.f32 %v6478_v32 }
 0x3ce   :  { %v3423_v38 = vsub.s32 32, %v3422_v53  ;;  %v3427_v12 = vsub.s32 4294967266, %v3422_v53  ;;  %v6802_v43 = vmul.u32.u64.low %v6777_v26, %v1853_v39  ;;  %v6803_v48 = vmul.u32.u64.high %v6777_v26, %v1853_v39, %v6802_v43 }
 0x3cf   :  { %v6806_v52 = vmul.u32.u64.low %v6777_v26, %v1849_v3  ;;  %v6807_v13 = vmul.u32.u64.high %v6777_v26, %v1849_v3, %v6806_v52  ;;  %v3424_v5 = vshll.u32 %v6773_v34, %v3422_v53  ;;  %v3468_v24 = vand.u32 31, %v3466_v42 }
 0x3d0   :  { %v3425_v47 = vshrl.u32 %v3407_v20, %v3423_v38  ;;  %v3428_v35 = vadd.s32 127, %v3427_v12  ;;  %vm1797_vm3 = vcmp.lt.s32.totalorder %v6768_v9, 2  ;;  %vm1798_vm5 = vcmp.eq.s32.totalorder %v6768_v9, 0 }
 0x3d1   :  { %vm1801_vm6 = vcmp.eq.s32.totalorder %v6768_v9, 2  ;;  %v1845_v31 = vsel %vm1839_vm2, %v1842_v45, %v1844_v22  ;;  %v3461_v7 = vand.u32 8388607, %v3454_v10  ;;  %v6817_v61 = vsub.s32 32, %v3468_v24 }
 0x3d2   :  { %v3426_v18 = vor.u32 %v3425_v47, %v3424_v5  ;;  %v3429_v37 = vshll.u32 %v3428_v35, 23  ;;  %v3437_v41 = vsub.s32 4, %v6765_v36  ;;  %vm1863_vm7 = vc.u32 %v6803_v48, %v6806_v52 }
 0x3d3   :  { %v4044_v4 = vpop.eup %4043  ;;  %v1864_v14 = vadd.s32 1, %v6807_v13  ;;  %v1861_v55 = vmul.u32 %v6777_v26, %v1845_v31  ;;  %v3471_v44 = vshll.u32 %v4084_v11, %v3468_v24  ;;  %v3472_v6 = vshrl.u32 %v4085_v15, %v6817_v61 }
 0x3d4   :  { %v4046_v34 = vpop.eup %4045  ;;  %v1802_v20 = vxor.u32 2147483648, %v4044_v4  ;;  %v3430_v51 = vor.u32 4788187, %v3429_v37  ;;  %v3433_v29 = vcvt.s32.f32 %v3426_v18  ;;  %v3475_v16 = vshrl.u32 %v4086_v17, %v6817_v61 }
 0x3d5   :  { %v1799_v59 = vxor.u32 2147483648, %v4046_v34  ;;  %v1865_v60 = vsel %vm1863_vm7, %v1864_v14, %v6807_v13  ;;  %v3467_v33 = vshrl.u32 %v3466_v42, 5  ;;  %v3473_v40 = vor.u32 %v3472_v6, %v3471_v44 }
 0x3d6   :  { %v1803_v62 = vsel %vm1801_vm6, %v1802_v20, %v4046_v34  ;;  %v3431_v1 = vand.u32 2147483647, %v3430_v51  ;;  %v1866_v2 = vadd.s32 %v1865_v60, %v1861_v55  ;;  %v3474_v56 = vshll.u32 %v4085_v15, %v3468_v24 }
 0x3d7   :  { %v1800_v30 = vsel %vm1798_vm5, %v4044_v4, %v1799_v59  ;;  %v3478_v54 = vshrl.u32 %v4087_v19, %v6817_v61  ;;  %v3477_v46 = vshll.u32 %v4086_v17, %v3468_v24  ;;  %v3480_v53 = vshll.u32 %v4087_v19, %v3468_v24 }
 0x3d8   :  { %v1804_v26 = vsel %vm1797_vm3, %v1800_v30, %v1803_v62  ;;  %v3434_v58 = vmul.f32 %v3433_v29, %v3431_v1  ;;  %v1867_v57 = vadd.s32 536870912, %v1866_v2  ;;  %v3481_v9 = vshrl.u32 %v4088_v21, %v6817_v61 }
 0x3d9   :  { %v1805_v25 = vsel %vm1795_vm4, nan, %v1804_v26  ;;  %v3476_v15 = vor.u32 %v3475_v16, %v3474_v56  ;;  %v3484_v32 = vshrl.u32 %v4089_v28, %v6817_v61  ;;  %vm3353_vm8 = vcmp.lt.s32.totalorder %v6583_v8, 0 }
 0x3da   :  { %v3571_v50 = vmul.f32 0.088388346, %v1805_v25  ;;  %v3435_v42 = vxor.u32 2147483648, %v3434_v58  ;;  %v6845_v45 = vshrl.u32 %v1867_v57, 30  ;;  %v3462_v3 = vor.u32 8388608, %v3461_v7 }
 0x3db   :  { %v3482_v0 = vor.u32 %v3481_v9, %v3480_v53  ;;  %v3483_v38 = vshll.u32 %v4088_v21, %v3468_v24  ;;  %vm6853_vm9 = vcmp.le.f32.partialorder %v3351_v49, 0.7853982  ;;  %v3479_v22 = vor.u32 %v3478_v54, %v3477_v46 }
 0x3dc   :  { %3603 = vst [vmem:[#allocation2 + $0x70] sm:$0xff] %v3571_v50  ;;  %v3436_v19 = vsel %vm3353_vm8, %v3435_v42, %v3434_v58  ;;  %v1869_v12 = vshll.u32 %v6845_v45, 30  ;;  %v3438_v39 = vsel %vm3353_vm8, %v3437_v41, %v6765_v36  ;;  %vm3486_vm10 = vcmp.lt.s32.totalorder %v3467_v33, 1 }
 0x3dd   :  { %v3439_v28 = vsel %vm6853_vm9, %v6583_v8, %v3436_v19  ;;  %v3485_v43 = vor.u32 %v3484_v32, %v3483_v38  ;;  %vm3489_vm11 = vcmp.lt.s32.totalorder %v3467_v33, 4  ;;  %v3494_v49 = vsel %vm3486_vm10, %v3473_v40, %v3476_v15 }
 0x3de   :  { %4047 = vcosq.f32 %v3439_v28  ;;  %v1870_v21 = vsub.s32 %v1866_v2, %v1869_v12  ;;  %vm3488_vm12 = vcmp.lt.s32.totalorder %v3467_v33, 3  ;;  %v3495_v13 = vsel %vm3489_vm11, %v3482_v0, 920167782 }
 0x3df   :  { %4049 = vsinq.f32 %v3439_v28  ;;  %v3502_v5 = vshll.u32 %v3462_v3, 8  ;;  %v3440_v47 = vsel %vm6853_vm9, 0, %v3438_v39  ;;  %vm3487_vm13 = vcmp.lt.s32.totalorder %v3467_v33, 2 }
 0x3e0   :  { %v1872_v35 = vsub.s32 0, %v1870_v21  ;;  %v3496_v36 = vsel %vm3488_vm12, %v3479_v22, %v3495_v13  ;;  %v3491_v24 = vsel %vm3489_vm11, %v3479_v22, 2102212464  ;;  %v3498_v4 = vsel %vm3486_vm10, %v3476_v15, %v3479_v22 }
 0x3e1   :  { %v3497_v31 = vsel %vm3487_vm13, %v3494_v49, %v3496_v36  ;;  %v3499_v18 = vsel %vm3489_vm11, %v3485_v43, 1326507024  ;;  %v3470_v7 = vshrl.u32 %v4084_v11, %v6817_v61  ;;  %v3444_v34 = vand.u32 3, %v3440_v47 }
 0x3e2   :  { %v3714_v37 = vmin.u32 %v1872_v35, %v1870_v21  ;;  %v3500_v20 = vsel %vm3488_vm12, %v3482_v0, %v3499_v18  ;;  %v6871_v41 = vmul.u32.u64.low %v3502_v5, %v3497_v31  ;;  %v6872_v14 = vmul.u32.u64.high %v3502_v5, %v3497_v31, %v6871_v41 }
 0x3e3   :  { %v3490_v51 = vsel %vm3486_vm10, %v3470_v7, %v3473_v40  ;;  %v3492_v55 = vsel %vm3488_vm12, %v3476_v15, %v3491_v24  ;;  %v3501_v44 = vsel %vm3487_vm13, %v3498_v4, %v3500_v20  ;;  %vm3445_vm14 = vcmp.lt.s32.totalorder %v3444_v34, 2 }
 0x3e4   :  { %v1874_v59 = vclz %v3714_v37  ;;  %v6878_v62 = vmul.u32.u64.low %v3502_v5, %v3501_v44  ;;  %v6879_v29 = vmul.u32.u64.high %v3502_v5, %v3501_v44, %v6878_v62  ;;  %v3493_v11 = vsel %vm3487_vm13, %v3490_v51, %v3492_v55 }
 0x3e5   :  { %v3512_v61 = vadd.s32 1, %v6872_v14  ;;  %vm3449_vm15 = vcmp.eq.s32.totalorder %v3444_v34, 2  ;;  %v1862_v2 = vadd.s32 %v6806_v52, %v6803_v48  ;;  %v3509_v33 = vmul.u32 %v3502_v5, %v3493_v11 }
 0x3e6   :  { %v3715_v60 = vadd.s32 4294967294, %v1874_v59  ;;  %vm3511_vm1 = vc.u32 %v6879_v29, %v6871_v41  ;;  %vm3446_vm2 = vcmp.eq.s32.totalorder %v3444_v34, 0  ;;  %vm3443_vm4 = vweird.f32 %v6583_v8 }
 0x3e7   :  { %v3513_v57 = vsel %vm3511_vm1, %v3512_v61, %v6872_v14  ;;  %vm1808_vm3 = vcmp.lt.s32.totalorder %v6683_v27, 0  ;;  %vm6893_vm5 = vcmp.le.f32.partialorder %v1806_v23, 0.7853982  ;;  %v3510_v24 = vadd.s32 %v6871_v41, %v6879_v29 }
 0x3e8   :  { %v4048_v6 = vpop.eup %4047  ;;  %vm3716_vm0 = vcmp.lt.s32.totalorder %v3715_v60, 0  ;;  %v3514_v53 = vadd.s32 %v3513_v57, %v3509_v33  ;;  %vm1898_vm10 = vweird.f32 %v6683_v27  ;;  %vm3456_vm11 = vcmp.lt.s32.totalorder %v6722_v63, 0 }
 0x3e9   :  { %v4050_v30 = vpop.eup %4049  ;;  %v3450_v1 = vxor.u32 2147483648, %v4048_v6  ;;  %v1877_v16 = vsel %vm3716_vm0, 0, %v3715_v60  ;;  %vm3455_vm12 = vcmp.le.f32.partialorder %v3454_v10, 0.7853982  ;;  %vm3546_vm0 = vweird.f32 %v6722_v63 }
 0x3ea   :  { %v3447_v26 = vxor.u32 2147483648, %v4050_v30  ;;  %v1878_v40 = vsub.s32 32, %v1877_v16  ;;  %v1882_v56 = vsub.s32 4294967266, %v1877_v16  ;;  %v1879_v58 = vshll.u32 %v1870_v21, %v1877_v16 }
 0x3eb   :  { %v3451_v25 = vsel %vm3449_vm15, %v3450_v1, %v4050_v30  ;;  %v3515_v15 = vadd.s32 536870912, %v3514_v53  ;;  %v1892_v21 = vsub.s32 4, %v6845_v45 }
 0x3ec   :  { %v3448_v54 = vsel %vm3446_vm2, %v4048_v6, %v3447_v26  ;;  %v1880_v50 = vshrl.u32 %v1862_v2, %v1878_v40  ;;  %v1883_v46 = vadd.s32 127, %v1882_v56 }
 0x3ed   :  { %v3452_v48 = vsel %vm3445_vm14, %v3448_v54, %v3451_v25  ;;  %v3516_v0 = vshrl.u32 %v3515_v15, 30  ;;  %v1893_v47 = vsel %vm1808_vm3, %v1892_v21, %v6845_v45 }
 0x3ee   :  { %v3453_v52 = vsel %vm3443_vm4, nan, %v3452_v48  ;;  %v1881_v9 = vor.u32 %v1880_v50, %v1879_v58  ;;  %v1884_v42 = vshll.u32 %v1883_v46, 23  ;;  %v1895_v23 = vsel %vm6893_vm5, 0, %v1893_v47 }
 0x3ef   :  { %v3587_v32 = vmul.f32 0.088388346, %v3453_v52  ;;  %v3517_v19 = vshll.u32 %v3516_v0, 30  ;;  %v1899_v18 = vand.u32 3, %v1895_v23  ;;  %v3540_v16 = vsub.s32 4, %v3516_v0 }
 0x3f0   :  { %v1885_v3 = vor.u32 4788187, %v1884_v42  ;;  %v1888_v17 = vcvt.s32.f32 %v1881_v9 }
 0x3f1   :  { %3619 = vst [vmem:[#allocation2 + $0xf0] sm:$0xff] %v3587_v32  ;;  %v3518_v22 = vsub.s32 %v3514_v53, %v3517_v19  ;;  %vm1904_vm7 = vcmp.eq.s32.totalorder %v1899_v18, 2  ;;  %vm1901_vm8 = vcmp.eq.s32.totalorder %v1899_v18, 0  ;;  %vm1900_vm9 = vcmp.lt.s32.totalorder %v1899_v18, 2 }
 0x3f2   :  { %v1886_v38 = vand.u32 2147483647, %v1885_v3  ;;  %v3541_v40 = vsel %vm3456_vm11, %v3540_v16, %v3516_v0 }
 0x3f3   :  { %v3520_v28 = vsub.s32 0, %v3518_v22  ;;  %v3543_v56 = vsel %vm3455_vm12, 0, %v3541_v40 }
 0x3f4   :  { %v1889_v12 = vmul.f32 %v1888_v17, %v1886_v38 }
 0x3f5   :  { %v3778_v49 = vmin.u32 %v3520_v28, %v3518_v22 }
 0x3f6   :  { %v1890_v39 = vxor.u32 2147483648, %v1889_v12 }
 0x3f7   :  { %v3522_v5 = vclz %v3778_v49 }
 0x3f8   :  { %v1891_v43 = vsel %vm1808_vm3, %v1890_v39, %v1889_v12 }
 0x3f9   :  { %v1894_v13 = vsel %vm6893_vm5, %v6683_v27, %v1891_v43  ;;  %v3779_v35 = vadd.s32 4294967294, %v3522_v5  ;;  %v3547_v27 = vand.u32 3, %v3543_v56 }
 0x3fa   :  { %4051 = vcosq.f32 %v1894_v13 }
 0x3fb   :  { %4053 = vsinq.f32 %v1894_v13  ;;  %vm3780_vm6 = vcmp.lt.s32.totalorder %v3779_v35, 0  ;;  %vm3552_vm13 = vcmp.eq.s32.totalorder %v3547_v27, 2  ;;  %vm3549_vm14 = vcmp.eq.s32.totalorder %v3547_v27, 0 }
 0x3fc   :  { %v3525_v36 = vsel %vm3780_vm6, 0, %v3779_v35  ;;  %vm3548_vm15 = vcmp.lt.s32.totalorder %v3547_v27, 2 }
 0x3fd   :  { %v3526_v31 = vsub.s32 32, %v3525_v36  ;;  %v3530_v4 = vsub.s32 4294967266, %v3525_v36  ;;  %v3527_v37 = vshll.u32 %v3518_v22, %v3525_v36 }
 0x3ff   :  { %v3528_v7 = vshrl.u32 %v3510_v24, %v3526_v31  ;;  %v3531_v34 = vadd.s32 127, %v3530_v4 }
 0x401   :  { %v3529_v14 = vor.u32 %v3528_v7, %v3527_v37  ;;  %v3532_v59 = vshll.u32 %v3531_v34, 23 }
 0x403   :  { %v3533_v44 = vor.u32 4788187, %v3532_v59  ;;  %v3536_v41 = vcvt.s32.f32 %v3529_v14 }
 0x404   :  { %v4052_v20 = vpop.eup %4051 }
 0x405   :  { %v4054_v51 = vpop.eup %4053  ;;  %v1905_v45 = vxor.u32 2147483648, %v4052_v20  ;;  %v3534_v11 = vand.u32 2147483647, %v3533_v44 }
 0x406   :  { %v1902_v55 = vxor.u32 2147483648, %v4054_v51 }
 0x407   :  { %v1906_v62 = vsel %vm1904_vm7, %v1905_v45, %v4054_v51  ;;  %v3537_v6 = vmul.f32 %v3536_v41, %v3534_v11 }
 0x408   :  { %v1903_v60 = vsel %vm1901_vm8, %v4052_v20, %v1902_v55 }
 0x409   :  { %v1907_v29 = vsel %vm1900_vm9, %v1903_v60, %v1906_v62  ;;  %v3538_v1 = vxor.u32 2147483648, %v3537_v6 }
 0x40a   :  { %v1908_v61 = vsel %vm1898_vm10, nan, %v1907_v29 }
 0x40b   :  { %v3572_v30 = vmul.f32 0.088388346, %v1908_v61  ;;  %v3539_v2 = vsel %vm3456_vm11, %v3538_v1, %v3537_v6 }
 0x40c   :  { %v3542_v26 = vsel %vm3455_vm12, %v6722_v63, %v3539_v2 }
 0x40d   :  { %3604 = vst [vmem:[#allocation2 + $0x78] sm:$0xff] %v3572_v30  ;;  %4055 = vcosq.f32 %v3542_v26 }
 0x40e   :  { %4057 = vsinq.f32 %v3542_v26 }
 0x417   :  { %v4056_v33 = vpop.eup %4055 }
 0x418   :  { %v4058_v25 = vpop.eup %4057  ;;  %v3553_v58 = vxor.u32 2147483648, %v4056_v33 }
 0x419   :  { %v3550_v57 = vxor.u32 2147483648, %v4058_v25 }
 0x41a   :  { %v3554_v54 = vsel %vm3552_vm13, %v3553_v58, %v4058_v25 }
 0x41b   :  { %v3551_v10 = vsel %vm3549_vm14, %v4056_v33, %v3550_v57 }
 0x41c   :  { %v3555_v50 = vsel %vm3548_vm15, %v3551_v10, %v3554_v54 }
 0x41d   :  { %v3556_v46 = vsel %vm3546_vm0, nan, %v3555_v50 }
 0x41e   :  { %v3588_v53 = vmul.f32 0.088388346, %v3556_v46 }
 0x420   :  { %3620 = vst [vmem:[#allocation2 + $0xf8] sm:$0xff] %v3588_v53 }
 0x421   :  { %4070 = shalt.err (!%p4067_p4)
}
 0x422   :  { %s4071_s9 = scalar_lea.hbm %s6927_s3, 4096 }
 0x423   :  { %p4072_p5 = scmp.ne.s32.totalorder %s6927_s3, %s4071_s9  ;;  %p4075_p6 = scmp.lt.u32.totalorder %s4071_s9, %s6927_s3 }
 0x425   :  { %p4077_p7 = pnand %p4075_p6, %p4072_p5 }
 0x427   :  { %4080 = shalt.err (!%p4077_p7)
}
 0x428   :  { %s4091_s14 = smov 256   ;;  %s4092_s15 = smov 16  }
 0x429   :  { %3632 = dma.vmem_to_hbm [thread:$0]  %s3627_s2, 4096, %s6927_s3, [#allocation3], %s4091_s14, %s4091_s14, %s4092_s15  }
 0x42a   :  { %4081 = dma.done.wait [#allocation3], 4096  }
 0x42b   :  { %4082 = vsyncadd [#allocation3], 4294963200 }
 0x42c   :  { %3636 = vsyncpa [#allocation3], 1 }

</bundles_post_ra>
